<compile_context>
chip_gen: v7x
topology: tpu7x:2x2x1
jax: 0.10.0
libtpu: 0.0.40
codegen_flags: <defaults>
</compile_context>

<pallas_src>
import jax
import jax.numpy as jnp
from jax.experimental import pallas as pl
from jax.experimental.pallas import tpu as pltpu

IN_FEATURES = 900            # 30 * 30
IN_PAD = 1024                # lane-friendly padding of the 900 feature dim
HIDDEN = 8096
HIDDEN_PAD = 8192            # multiple of NCHUNK * HTILE
HTILE = 2048                 # hidden-chunk per grid step (~4 MB int8 weights)
NCHUNK = HIDDEN_PAD // HTILE # 4 hidden chunks total


def _detect_ncores():
    """2 partial sums on 2-TensorCore chips (v7x), 1 on v5e/v6e."""
    try:
        kind = jax.devices()[0].device_kind.lower()
    except Exception:
        return 1
    return 2 if "v7" in kind else 1


NCORES = _detect_ncores()
INNER = NCHUNK // NCORES     # reduction steps per partial sum


def _fused_ae_kernel(x_ref, w1_ref, s1_ref, b1_ref, w2_ref, s2_ref, b2_ref,
                     o_ref):
    p = pl.program_id(0)
    j = pl.program_id(1)
    last = pl.num_programs(1) - 1

    # encoder chunk: dequantize W1 (int8 -> bf16 on the VPU), MXU matmul,
    # per-hidden-channel scale on the f32 accumulator, bias, sigmoid (EUP).
    w1 = w1_ref[0].astype(jnp.bfloat16)                          # (IN_PAD, HTILE)
    z = jnp.dot(x_ref[...], w1, preferred_element_type=jnp.float32)
    z = z * s1_ref[...] + b1_ref[...]
    h = jax.nn.sigmoid(z)                                        # f32

    # decoder partial: (B, HTILE) @ (HTILE, IN_PAD), f32 accumulate.
    w2 = w2_ref[...].astype(jnp.bfloat16)
    part = jnp.dot(h.astype(jnp.bfloat16), w2,
                   preferred_element_type=jnp.float32)

    @pl.when(j == 0)
    def _():
        o_ref[0] = part                     # init with first partial (no zero fill)

    @pl.when(j > 0)
    def _():
        o_ref[0] += part

    @pl.when(j == last)
    def _():
        o_ref[0] = o_ref[0] * s2_ref[...]   # decoder per-output-channel scale

    @pl.when(jnp.logical_and(p == 0, j == last))
    def _():
        o_ref[0] = o_ref[0] + b2_ref[...]   # b2 added exactly once across partials


def _quantize_per_channel(w):
    """Symmetric int8, per-output-channel (column) scales."""
    amax = jnp.max(jnp.abs(w), axis=0)
    scale = jnp.where(amax > 0, amax / 127.0, jnp.float32(1.0))
    q = jnp.clip(jnp.round(w / scale), -127, 127).astype(jnp.int8)
    return q, scale.astype(jnp.float32)


def prepare_params(w1, b1, w2, b2):
    """Pad, quantize (int8 + per-channel f32 scales) and lay out weights ONCE.

    Padded entries are exact zeros (zero columns quantize to zeros with scale 1),
    so padded feature/hidden lanes contribute nothing to the result.
    """
    w1_p = jnp.pad(w1, ((0, IN_PAD - IN_FEATURES), (0, HIDDEN_PAD - HIDDEN)))
    w2_p = jnp.pad(w2, ((0, HIDDEN_PAD - HIDDEN), (0, IN_PAD - IN_FEATURES)))

    w1_q, s1 = _quantize_per_channel(w1_p)      # (1024, 8192) i8, (8192,) f32
    w2_q, s2 = _quantize_per_channel(w2_p)      # (8192, 1024) i8, (1024,) f32

    # Chunk-major W1: each grid step's block becomes one contiguous slab.
    w1_q = w1_q.reshape(IN_PAD, NCHUNK, HTILE).transpose(1, 0, 2)  # (NCHUNK,1024,HTILE)

    s1 = s1.reshape(1, HIDDEN_PAD)
    b1_p = jnp.pad(b1, ((0, HIDDEN_PAD - HIDDEN),)).reshape(1, HIDDEN_PAD)
    b1_p = b1_p.astype(jnp.float32)
    s2 = s2.reshape(1, IN_PAD)
    b2_p = jnp.pad(b2, ((0, IN_PAD - IN_FEATURES),)).reshape(1, IN_PAD)
    b2_p = b2_p.astype(jnp.float32)
    return w1_q, s1, b1_p, w2_q, s2, b2_p


@jax.jit
def conv_autoencoder_forward(x_nchw, params):
    """x_nchw: (B, 1, 30, 30) float32 -> (B, 1, 30, 30) float32."""
    w1_q, s1, b1, w2_q, s2, b2 = params
    B = x_nchw.shape[0]

    x = x_nchw.reshape(B, IN_FEATURES).astype(jnp.float32)
    x = jnp.pad(x, ((0, 0), (0, IN_PAD - IN_FEATURES))).astype(jnp.bfloat16)

    weight_bytes = IN_PAD * HIDDEN_PAD + HIDDEN_PAD * IN_PAD      # int8 stream
    cost = pl.CostEstimate(
        flops=4 * B * IN_PAD * HIDDEN_PAD,
        transcendentals=B * HIDDEN_PAD,
        bytes_accessed=(weight_bytes
                        + 4 * (2 * HIDDEN_PAD + 2 * IN_PAD)       # scales + biases
                        + 2 * B * IN_PAD                          # x (bf16)
                        + 4 * NCORES * B * IN_PAD),               # partials (f32)
    )

    partials = pl.pallas_call(
        _fused_ae_kernel,
        out_shape=jax.ShapeDtypeStruct((NCORES, B, IN_PAD), jnp.float32),
        grid_spec=pltpu.PrefetchScalarGridSpec(
            num_scalar_prefetch=0,
            grid=(NCORES, INNER),
            in_specs=[
                pl.BlockSpec((B, IN_PAD), lambda p, j: (0, 0)),              # x
                pl.BlockSpec((1, IN_PAD, HTILE),
                             lambda p, j: (p * INNER + j, 0, 0)),            # W1 chunk (contiguous)
                pl.BlockSpec((1, HTILE), lambda p, j: (0, p * INNER + j)),   # s1 chunk
                pl.BlockSpec((1, HTILE), lambda p, j: (0, p * INNER + j)),   # b1 chunk
                pl.BlockSpec((HTILE, IN_PAD),
                             lambda p, j: (p * INNER + j, 0)),               # W2 chunk
                pl.BlockSpec((1, IN_PAD), lambda p, j: (0, 0)),              # s2
                pl.BlockSpec((1, IN_PAD), lambda p, j: (0, 0)),              # b2
            ],
            out_specs=pl.BlockSpec((1, B, IN_PAD), lambda p, j: (p, 0, 0)),
        ),
        compiler_params=pltpu.CompilerParams(
            # TODO(synk): on v7x, confirm in the trace that the p axis shards
            # across both TensorCores; if not, switch it to pltpu.CORE_PARALLEL.
            dimension_semantics=("parallel", "arbitrary"),
            vmem_limit_bytes=40 * 1024 * 1024,   # safe vs v7x's 64 MiB physical VMEM
        ),
        cost_estimate=cost,
    )(x, w1_q, s1, b1, w2_q, s2, b2)

    # Scale + b2 already applied in-kernel; wrapper only (sums partials if
    # NCORES>1 and) slices padding off + reshapes.
    y = partials[0] if NCORES == 1 else partials.sum(axis=0)
    return y[:, :IN_FEATURES].reshape(B, 1, 30, 30)


def init_params(key):
    """Deterministic synthetic parameters (PyTorch-Linear-like uniform init)."""
    k1, k2, k3, k4 = jax.random.split(key, 4)
    bound1 = 1.0 / (IN_FEATURES ** 0.5)
    bound2 = 1.0 / (HIDDEN ** 0.5)
    w1 = jax.random.uniform(k1, (IN_FEATURES, HIDDEN), jnp.float32, -bound1, bound1)
    b1 = jax.random.uniform(k2, (HIDDEN,), jnp.float32, -bound1, bound1)
    w2 = jax.random.uniform(k3, (HIDDEN, IN_FEATURES), jnp.float32, -bound2, bound2)
    b2 = jax.random.uniform(k4, (IN_FEATURES,), jnp.float32, -bound2, bound2)
    return w1, b1, w2, b2


def reference_forward(x_nchw, w1, b1, w2, b2):
    B = x_nchw.shape[0]
    x = x_nchw.reshape(B, IN_FEATURES)
    h = jax.nn.sigmoid(x @ w1 + b1)
    y = h @ w2 + b2
    return y.reshape(B, 1, 30, 30)


if __name__ == "__main__":
    key = jax.random.PRNGKey(0)
    kx, kp = jax.random.split(key)
    B = 2
    x = jax.random.normal(kx, (B, 1, 30, 30), dtype=jnp.float32)
    w1, b1, w2, b2 = init_params(kp)

    params = prepare_params(w1, b1, w2, b2)     # pad + int8-quantize once

    out = conv_autoencoder_forward(x, params)
    out = jax.block_until_ready(out)

    ref = reference_forward(x, w1, b1, w2, b2)
    assert out.shape == (B, 1, 30, 30)
    max_err = jnp.max(jnp.abs(out - ref))
    # int8 per-channel weights + bf16 activations vs the pure-f32 reference:
    # expected max deviation ~5e-3 on outputs of magnitude ~0.3-1; 2e-2 gives
    # a >3x margin.
    assert jnp.allclose(out, ref, atol=2e-2, rtol=2e-2), f"max abs err = {max_err}"
    print("KERNEL_OK")
</pallas_src>

<mosaic_0001>
module attributes {stable_mosaic.version = 11 : i64} {
  func.func @_fused_ae_kernel(%arg0: i32, %arg1: i32, %arg2: memref<2x1024xbf16, #tpu.memory_space<vmem>>, %arg3: memref<1x1024x2048xi8, #tpu.memory_space<vmem>>, %arg4: memref<1x2048xf32, #tpu.memory_space<vmem>>, %arg5: memref<1x2048xf32, #tpu.memory_space<vmem>>, %arg6: memref<2048x1024xi8, #tpu.memory_space<vmem>>, %arg7: memref<1x1024xf32, #tpu.memory_space<vmem>>, %arg8: memref<1x1024xf32, #tpu.memory_space<vmem>>, %arg9: memref<1x2x1024xf32, #tpu.memory_space<vmem>>) attributes {dimension_semantics = [#tpu.dimension_semantics<parallel>, #tpu.dimension_semantics<arbitrary>], iteration_bounds = array<i64: 1, 4>, scalar_prefetch = 0 : i64, scratch_operands = 0 : i64, tpu.core_type = #tpu.core_type<tc>, window_params = [{pipeline_mode = #tpu.pipeline_mode<synchronous>, transform_indices = @transform_0, window_bounds = array<i64: 2, 1024>}, {transform_indices = @transform_1, window_bounds = array<i64: 1, 1024, 2048>}, {transform_indices = @transform_2, window_bounds = array<i64: 1, 2048>}, {transform_indices = @transform_3, window_bounds = array<i64: 1, 2048>}, {transform_indices = @transform_4, window_bounds = array<i64: 2048, 1024>}, {pipeline_mode = #tpu.pipeline_mode<synchronous>, transform_indices = @transform_5, window_bounds = array<i64: 1, 1024>}, {pipeline_mode = #tpu.pipeline_mode<synchronous>, transform_indices = @transform_6, window_bounds = array<i64: 1, 1024>}, {transform_indices = @transform_7, window_bounds = array<i64: 1, 2, 1024>}]} {
    %c0 = arith.constant 0 : index
    %c0_0 = arith.constant 0 : index
    %c0_1 = arith.constant 0 : index
    %0 = vector.load %arg3[%c0, %c0_0, %c0_1] : memref<1x1024x2048xi8, #tpu.memory_space<vmem>>, vector<1x1024x2048xi8>
    %1 = vector.shape_cast %0 : vector<1x1024x2048xi8> to vector<1024x2048xi8>
    %2 = arith.sitofp %1 : vector<1024x2048xi8> to vector<1024x2048xbf16>
    %c0_2 = arith.constant 0 : index
    %c0_3 = arith.constant 0 : index
    %3 = vector.load %arg2[%c0_2, %c0_3] : memref<2x1024xbf16, #tpu.memory_space<vmem>>, vector<2x1024xbf16>
    %cst = arith.constant dense<0.000000e+00> : vector<2x2048xf32>
    %4 = tpu.matmul %3, %2, %cst {dimension_numbers = #tpu.dot_dimension_numbers<[1], [0], [0], [1], [0, 0, 1, 1], [], []>} : vector<2x1024xbf16>, vector<1024x2048xbf16>, vector<2x2048xf32> -> vector<2x2048xf32>
    %c0_4 = arith.constant 0 : index
    %c0_5 = arith.constant 0 : index
    %5 = vector.load %arg4[%c0_4, %c0_5] : memref<1x2048xf32, #tpu.memory_space<vmem>>, vector<1x2048xf32>
    %6 = vector.broadcast %5 : vector<1x2048xf32> to vector<2x2048xf32>
    %7 = arith.mulf %4, %6 : vector<2x2048xf32>
    %c0_6 = arith.constant 0 : index
    %c0_7 = arith.constant 0 : index
    %8 = vector.load %arg5[%c0_6, %c0_7] : memref<1x2048xf32, #tpu.memory_space<vmem>>, vector<1x2048xf32>
    %9 = vector.broadcast %8 : vector<1x2048xf32> to vector<2x2048xf32>
    %10 = arith.addf %7, %9 : vector<2x2048xf32>
    %11 = arith.negf %10 : vector<2x2048xf32>
    %12 = math.exp %11 : vector<2x2048xf32>
    %cst_8 = arith.constant 1.000000e+00 : f32
    %13 = vector.broadcast %cst_8 : f32 to vector<2x2048xf32>
    %14 = arith.addf %13, %12 : vector<2x2048xf32>
    %15 = arith.divf %13, %14 : vector<2x2048xf32>
    %c0_9 = arith.constant 0 : index
    %c0_10 = arith.constant 0 : index
    %16 = vector.load %arg6[%c0_9, %c0_10] : memref<2048x1024xi8, #tpu.memory_space<vmem>>, vector<2048x1024xi8>
    %17 = arith.sitofp %16 : vector<2048x1024xi8> to vector<2048x1024xbf16>
    %18 = arith.truncf %15 : vector<2x2048xf32> to vector<2x2048xbf16>
    %cst_11 = arith.constant dense<0.000000e+00> : vector<2x1024xf32>
    %19 = tpu.matmul %18, %17, %cst_11 {dimension_numbers = #tpu.dot_dimension_numbers<[1], [0], [0], [1], [0, 0, 1, 1], [], []>} : vector<2x2048xbf16>, vector<2048x1024xbf16>, vector<2x1024xf32> -> vector<2x1024xf32>
    %c0_i32 = arith.constant 0 : i32
    %20 = arith.cmpi eq, %arg1, %c0_i32 : i32
    %21 = arith.extui %20 : i1 to i32
    %c0_i32_12 = arith.constant 0 : i32
    %22 = arith.cmpi ne, %21, %c0_i32_12 : i32
    scf.if %22 {
      %c0_19 = arith.constant 0 : index
      %c0_20 = arith.constant 0 : index
      %c0_21 = arith.constant 0 : index
      %34 = vector.load %arg9[%c0_19, %c0_20, %c0_21] : memref<1x2x1024xf32, #tpu.memory_space<vmem>>, vector<1x2x1024xf32>
      %35 = vector.shape_cast %34 : vector<1x2x1024xf32> to vector<2x1024xf32>
      %36 = vector.shape_cast %19 : vector<2x1024xf32> to vector<1x2x1024xf32>
      tpu.vector_store %arg9[%c0_19, %c0_20, %c0_21], %36 {strides = array<i32>} : memref<1x2x1024xf32, #tpu.memory_space<vmem>>, vector<1x2x1024xf32>,
    } else {
    }
    %c0_i32_13 = arith.constant 0 : i32
    %23 = arith.cmpi sgt, %arg1, %c0_i32_13 : i32
    %24 = arith.extui %23 : i1 to i32
    %c0_i32_14 = arith.constant 0 : i32
    %25 = arith.cmpi ne, %24, %c0_i32_14 : i32
    scf.if %25 {
      %c0_19 = arith.constant 0 : index
      %c0_20 = arith.constant 0 : index
      %c0_21 = arith.constant 0 : index
      %34 = vector.load %arg9[%c0_19, %c0_20, %c0_21] : memref<1x2x1024xf32, #tpu.memory_space<vmem>>, vector<1x2x1024xf32>
      %35 = vector.shape_cast %34 : vector<1x2x1024xf32> to vector<2x1024xf32>
      %36 = arith.addf %35, %19 : vector<2x1024xf32>
      %c0_22 = arith.constant 0 : index
      %c0_23 = arith.constant 0 : index
      %c0_24 = arith.constant 0 : index
      %37 = vector.load %arg9[%c0_22, %c0_23, %c0_24] : memref<1x2x1024xf32, #tpu.memory_space<vmem>>, vector<1x2x1024xf32>
      %38 = vector.shape_cast %37 : vector<1x2x1024xf32> to vector<2x1024xf32>
      %39 = vector.shape_cast %36 : vector<2x1024xf32> to vector<1x2x1024xf32>
      tpu.vector_store %arg9[%c0_22, %c0_23, %c0_24], %39 {strides = array<i32>} : memref<1x2x1024xf32, #tpu.memory_space<vmem>>, vector<1x2x1024xf32>,
    } else {
    }
    %c3_i32 = arith.constant 3 : i32
    %26 = arith.cmpi eq, %arg1, %c3_i32 : i32
    %27 = arith.extui %26 : i1 to i32
    %c0_i32_15 = arith.constant 0 : i32
    %28 = arith.cmpi ne, %27, %c0_i32_15 : i32
    scf.if %28 {
      %c0_19 = arith.constant 0 : index
      %c0_20 = arith.constant 0 : index
      %c0_21 = arith.constant 0 : index
      %34 = vector.load %arg9[%c0_19, %c0_20, %c0_21] : memref<1x2x1024xf32, #tpu.memory_space<vmem>>, vector<1x2x1024xf32>
      %35 = vector.shape_cast %34 : vector<1x2x1024xf32> to vector<2x1024xf32>
      %c0_22 = arith.constant 0 : index
      %c0_23 = arith.constant 0 : index
      %36 = vector.load %arg7[%c0_22, %c0_23] : memref<1x1024xf32, #tpu.memory_space<vmem>>, vector<1x1024xf32>
      %37 = vector.broadcast %36 : vector<1x1024xf32> to vector<2x1024xf32>
      %38 = arith.mulf %35, %37 : vector<2x1024xf32>
      %c0_24 = arith.constant 0 : index
      %c0_25 = arith.constant 0 : index
      %c0_26 = arith.constant 0 : index
      %39 = vector.load %arg9[%c0_24, %c0_25, %c0_26] : memref<1x2x1024xf32, #tpu.memory_space<vmem>>, vector<1x2x1024xf32>
      %40 = vector.shape_cast %39 : vector<1x2x1024xf32> to vector<2x1024xf32>
      %41 = vector.shape_cast %38 : vector<2x1024xf32> to vector<1x2x1024xf32>
      tpu.vector_store %arg9[%c0_24, %c0_25, %c0_26], %41 {strides = array<i32>} : memref<1x2x1024xf32, #tpu.memory_space<vmem>>, vector<1x2x1024xf32>,
    } else {
    }
    %c0_i32_16 = arith.constant 0 : i32
    %29 = arith.cmpi eq, %arg0, %c0_i32_16 : i32
    %c3_i32_17 = arith.constant 3 : i32
    %30 = arith.cmpi eq, %arg1, %c3_i32_17 : i32
    %31 = arith.andi %29, %30 : i1
    %32 = arith.extui %31 : i1 to i32
    %c0_i32_18 = arith.constant 0 : i32
    %33 = arith.cmpi ne, %32, %c0_i32_18 : i32
    scf.if %33 {
      %c0_19 = arith.constant 0 : index
      %c0_20 = arith.constant 0 : index
      %c0_21 = arith.constant 0 : index
      %34 = vector.load %arg9[%c0_19, %c0_20, %c0_21] : memref<1x2x1024xf32, #tpu.memory_space<vmem>>, vector<1x2x1024xf32>
      %35 = vector.shape_cast %34 : vector<1x2x1024xf32> to vector<2x1024xf32>
      %c0_22 = arith.constant 0 : index
      %c0_23 = arith.constant 0 : index
      %36 = vector.load %arg8[%c0_22, %c0_23] : memref<1x1024xf32, #tpu.memory_space<vmem>>, vector<1x1024xf32>
      %37 = vector.broadcast %36 : vector<1x1024xf32> to vector<2x1024xf32>
      %38 = arith.addf %35, %37 : vector<2x1024xf32>
      %c0_24 = arith.constant 0 : index
      %c0_25 = arith.constant 0 : index
      %c0_26 = arith.constant 0 : index
      %39 = vector.load %arg9[%c0_24, %c0_25, %c0_26] : memref<1x2x1024xf32, #tpu.memory_space<vmem>>, vector<1x2x1024xf32>
      %40 = vector.shape_cast %39 : vector<1x2x1024xf32> to vector<2x1024xf32>
      %41 = vector.shape_cast %38 : vector<2x1024xf32> to vector<1x2x1024xf32>
      tpu.vector_store %arg9[%c0_24, %c0_25, %c0_26], %41 {strides = array<i32>} : memref<1x2x1024xf32, #tpu.memory_space<vmem>>, vector<1x2x1024xf32>,
    } else {
    }
    return
  }
  func.func @transform_0(%arg0: i32, %arg1: i32) -> (i32, i32) {
    %c0_i32 = arith.constant 0 : i32
    %c0_i32_0 = arith.constant 0 : i32
    %c0_i32_1 = arith.constant 0 : i32
    return %c0_i32, %c0_i32_0 : i32, i32
  }
  func.func @transform_1(%arg0: i32, %arg1: i32) -> (i32, i32, i32) {
    %c4_i32 = arith.constant 4 : i32
    %0 = arith.muli %arg0, %c4_i32 : i32
    %1 = arith.addi %0, %arg1 : i32
    %c0_i32 = arith.constant 0 : i32
    %c0_i32_0 = arith.constant 0 : i32
    %c0_i32_1 = arith.constant 0 : i32
    return %1, %c0_i32, %c0_i32_0 : i32, i32, i32
  }
  func.func @transform_2(%arg0: i32, %arg1: i32) -> (i32, i32) {
    %c4_i32 = arith.constant 4 : i32
    %0 = arith.muli %arg0, %c4_i32 : i32
    %1 = arith.addi %0, %arg1 : i32
    %c0_i32 = arith.constant 0 : i32
    %c0_i32_0 = arith.constant 0 : i32
    return %c0_i32, %1 : i32, i32
  }
  func.func @transform_3(%arg0: i32, %arg1: i32) -> (i32, i32) {
    %c4_i32 = arith.constant 4 : i32
    %0 = arith.muli %arg0, %c4_i32 : i32
    %1 = arith.addi %0, %arg1 : i32
    %c0_i32 = arith.constant 0 : i32
    %c0_i32_0 = arith.constant 0 : i32
    return %c0_i32, %1 : i32, i32
  }
  func.func @transform_4(%arg0: i32, %arg1: i32) -> (i32, i32) {
    %c4_i32 = arith.constant 4 : i32
    %0 = arith.muli %arg0, %c4_i32 : i32
    %1 = arith.addi %0, %arg1 : i32
    %c0_i32 = arith.constant 0 : i32
    %c0_i32_0 = arith.constant 0 : i32
    return %1, %c0_i32 : i32, i32
  }
  func.func @transform_5(%arg0: i32, %arg1: i32) -> (i32, i32) {
    %c0_i32 = arith.constant 0 : i32
    %c0_i32_0 = arith.constant 0 : i32
    %c0_i32_1 = arith.constant 0 : i32
    return %c0_i32, %c0_i32_0 : i32, i32
  }
  func.func @transform_6(%arg0: i32, %arg1: i32) -> (i32, i32) {
    %c0_i32 = arith.constant 0 : i32
    %c0_i32_0 = arith.constant 0 : i32
    %c0_i32_1 = arith.constant 0 : i32
    return %c0_i32, %c0_i32_0 : i32, i32
  }
  func.func @transform_7(%arg0: i32, %arg1: i32) -> (i32, i32, i32) {
    %c0_i32 = arith.constant 0 : i32
    %c0_i32_0 = arith.constant 0 : i32
    %c0_i32_1 = arith.constant 0 : i32
    return %arg0, %c0_i32, %c0_i32_0 : i32, i32, i32
  }
}

</mosaic_0001>

<bundles_post_ra>
// kernel: conv_autoencoder_forward.1
= control target key start
LH: loop header
LB: loop body
LE: loop exit
PB: predicated region body
PF: predicated region fallthrough
CT: control target
= control target key end

     0   :  { %s9508_s0 = inlined_call_operand.vmem [shape: bf16[2,1024], index: 0, kind: input, shape index: {}]   ;;  %s9509_s1 = inlined_call_operand.hbm [shape: s8[4,1024,2048], index: 1, kind: input, shape index: {}]   ;;  %s9510_s2 = inlined_call_operand.hbm [shape: f32[1,8192], index: 2, kind: input, shape index: {}]   ;;  %s9511_s3 = inlined_call_operand.hbm [shape: f32[1,8192], index: 3, kind: input, shape index: {}]   ;;  %s9512_s4 = inlined_call_operand.hbm [shape: s8[8192,1024], index: 4, kind: input, shape index: {}]   ;;  %s9513_s5 = inlined_call_operand.hbm [shape: f32[1,1024], index: 5, kind: input, shape index: {}]   ;;  %s9514_s6 = inlined_call_operand.hbm [shape: f32[1,1024], index: 6, kind: input, shape index: {}]   ;;  %s9515_s7 = inlined_call_operand.vmem [shape: f32[1,2,1024], index: 7, kind: output, shape index: {}]  }
   0x1   :  { %9538 = sst [smem:[#allocation21_spill]] %s9509_s1 }
   0x2   :  { %9539 = sst [smem:[#allocation22_spill]] %s9510_s2 }
   0x3   :  { %9540 = sst [smem:[#allocation23_spill]] %s9513_s5 }
   0x4   :  { %9541 = sst [smem:[#allocation24_spill]] %s9515_s7 }
   0x5   :  { %12 = vsyncpa [#allocation3], 0 }
   0x6   :  { %14 = vsyncpa [#allocation3 + $0x1], 0 }
   0x7   :  { %15 = vsyncpa [#allocation5], 0 }
   0x8   :  { %17 = vsyncpa [#allocation5 + $0x1], 0 }
   0x9   :  { %18 = vsyncpa [#allocation8], 0 }
   0xa   :  { %20 = vsyncpa [#allocation8 + $0x1], 0 }
   0xb   :  { %21 = vsyncpa [#allocation11], 0  ;;  %s7712_s24 = smov 0   ;;  %s7714_s25 = smov 0  }
   0xc   :  { %s7716_s26 = smov 0   ;;  %s7718_s27 = smov 0  }
   0xd   :  { %s7720_s28 = smov 0   ;;  %s7722_s29 = smov 0  }
   0xe LB: > { %9542 = sst [smem:[#allocation17_spill]] %s7643_s26  ;;  %s9520_s30 = sadd.s32 4294967295, %s7655_s29   ;;  %s7655_s29 = sphi %s7722_s29, %s27_s29   ;;  %s7651_s28 = sphi %s7720_s28, %s9585_s28   ;;  %s7647_s27 = sphi %s7718_s27, %s9584_s27   ;;  %s7643_s26 = sphi %s7716_s26, %s9580_s26   ;;  %s7639_s25 = sphi %s7714_s25, %s9583_s25   ;;  %s7635_s24 = sphi %s7712_s24, %s9582_s24  }
   0xf   : > { %9543 = sst [smem:[#allocation18_spill]] %s7647_s27  ;;  %p84_p0 = scmp.ne.s32.totalorder %s7639_s25, %s7635_s24 }
  0x10   : > { %p7744_p1 = scmp.eq.s32.totalorder %s9520_s30, 0  ;;  %p6983_p2 = scmp.ge.s32.totalorder %s7655_s29, 1 }
  0x11   : > { %p253_p3 = scmp.lt.s32.totalorder %s7655_s29, 5  ;;  %s7657_s11 = smov [#allocation9]  }
  0x12   : > { %s9544_s8 = scalar_select %p7744_p1, 1, 0 }
  0x13   : > { %p7752_p4 = por %p7744_p1, %p84_p0  ;;  %p7756_p5 = pnand %p6983_p2, %p253_p3 }
  0x14   : > { %s269_s12 = sshll.u32 %s7657_s11, 4  ;;  %s36_s14 = sadd.s32 1, %s7651_s28  ;;  %s270_s12 = int_to_ptr.vmem [resolvable:$true] %s269_s12 }
  0x15   : > { %s9545_s9 = scalar_select %p7752_p4, 1, 0 }
  0x16   : > { %s9546_s10 = scalar_select %p7756_p5, 1, 0 }
  0x17   : > { %p7260_p6 = pneg %p7756_p5  ;;  %s71_s15 = sadd.s32 1, %s7643_s26 }
  0x18   : > { %p7770_p8 = scmp.ge.s32.totalorder %s36_s14, 4  ;;  %s9549_s5 = sld [smem:[#allocation23_spill]] }
  0x19   : > { %p7764_p7 = pnand %p7260_p6, %p7744_p1 }
  0x1a   : > { %s9548_s16 = scalar_select %p7770_p8, 1, 0 }
  0x1b   : > { %s9547_s13 = scalar_select %p7764_p7, 1, 0 }
  0x1c   : > { %p9524_p10 = pneg %p7764_p7 }
  0x1e   : > { %s7413_s19 = scalar_lea.hbm %s9549_s5, 128 }
  0x1f   : > { %p7414_p9 = scmp.ne.s32.totalorder %s9549_s5, %s7413_s19  ;;  %p7420_p13 = scmp.lt.u32.totalorder %s7413_s19, %s9549_s5 }
  0x21   : > { %p7416_p11 = pnand %p9524_p10, %p7414_p9 }
  0x23   : > { %p7417_p12 = pneg %p7416_p11 }
  0x25   : > { %p7422_p0 = pnand %p7420_p13, %p7417_p12 }
  0x27   : > { %7425 = shalt.err (!%p7422_p0)
}
  0x28   : > { %s7426_s24 = scalar_lea.vmem %s270_s12, 128  ;;  %p7434_p1 = scmp.lt.s32.totalorder %s270_s12, %s270_s12 }
  0x29   : > { %p7427_p2 = scmp.ne.s32.totalorder %s270_s12, %s7426_s24  ;;  %p7435_p4 = scmp.lt.s32.totalorder %s7426_s24, %s7426_s24 }
  0x2b   : > { %p7429_p3 = pnand %p7427_p2, %p9524_p10  ;;  %p7436_p5 = por %p7435_p4, %p7434_p1 }
  0x2d   : > { %p7430_p6 = pneg %p7429_p3 }
  0x2f   : > { %p7437_p8 = pnand %p7436_p5, %p7430_p6 }
  0x31   : > { %7440 = shalt.err (!%p7437_p8)
}
  0x32   : > { %7263 = dma.hbm_to_vmem [thread:$0]  (!%p7764_p7), %s9549_s5, 128, %s270_s12, [#allocation8]  }
  0x33   : > { %p9550_p1 = scmp.ne.s32.totalorder %s9548_s16, 0  ;;  %p78_p4 = scmp.ne.s32.totalorder %s7643_s26, %s7639_s25 }
  0x34   : > { %p79_p5 = scmp.eq.s32.totalorder %s7655_s29, 0  ;;  %p7282_p8 = scmp.lt.s32.totalorder %s7655_s29, 4 }
  0x35   : > { %s9587_s14 = smov (%p9550_p1, %s36_s14), 0  ;;  %s7807_s19 = sand.u32 1, %s7643_s26  }
  0x36   : > { %9551 = sst [smem:[#allocation19_spill]] %s9587_s14  ;;  %s68_s18 = ssub.s32 %s7651_s28, %s9587_s14 }
  0x37   : > { %p69_p9 = scmp.eq.s32.totalorder %s68_s18, 0  ;;  %p80_p11 = por %p79_p5, %p78_p4 }
  0x38   : > { %s9523_s20 = sand.u32 1, %s7655_s29   ;;  %s9521_s22 = sshll.u32 %s7807_s19, 4 }
  0x39   : > { %s7813_s12 = scalar_select %p69_p9, %s7643_s26, %s71_s15  }
  0x3a   : > { %p7816_p12 = pnand %p7282_p8, %p80_p11  ;;  %s9522_s23 = sshll.u32 %s7651_s28, 8 }
  0x3b   : > { %9552 = sst [smem:[#allocation20_spill]] %s7813_s12  ;;  %s318_s24 = scalar_lea.vmem [#allocation4], %s9521_s22 }
  0x3c   : > { %s9553_s21 = scalar_select %p7816_p12, 1, 0 }
  0x3d   : > { %s328_s11 = sshll.u32 %s318_s24, 4  ;;  %s9554_s2 = sld [smem:[#allocation22_spill]]  ;;  %s7831_s11 = int_to_ptr.vmem [resolvable:$true] %s328_s11 }
  0x3e   : > { %s7835_s15 = scalar_lea.sflag [#allocation5], %s9523_s20  ;;  %p7841_p0 = pneg %p7816_p12 }
  0x40   : > { %s9555_s24 = scalar_select %p7841_p0, 1, 0 }
  0x43   : > { %s7829_s30 = scalar_lea.hbm %s9554_s2, %s9522_s23  ;;  %s7446_s22 = scalar_lea.hbm %s9554_s2, 1024 }
  0x44   : > { %s7441_s16 = scalar_lea.hbm %s7829_s30, 256  ;;  %p7447_p6 = scmp.lt.u32.totalorder %s7829_s30, %s9554_s2 }
  0x45   : > { %p7442_p13 = scmp.ne.s32.totalorder %s7829_s30, %s7441_s16  ;;  %p7448_p1 = scmp.lt.u32.totalorder %s7446_s22, %s7441_s16 }
  0x46   : > { %p7450_p5 = scmp.lt.u32.totalorder %s7441_s16, %s7829_s30 }
  0x47   : > { %p7444_p2 = pnand %p7841_p0, %p7442_p13  ;;  %p7449_p4 = por %p7448_p1, %p7447_p6 }
  0x49   : > { %p7445_p3 = pneg %p7444_p2  ;;  %p7451_p8 = por %p7450_p5, %p7449_p4 }
  0x4b   : > { %p7452_p9 = pnand %p7451_p8, %p7445_p3 }
  0x4d   : > { %7455 = shalt.err (!%p7452_p9)
}
  0x4e   : > { %s7456_s20 = scalar_lea.vmem %s7831_s11, 256  ;;  %s7658_s17 = smov [#allocation4]  }
  0x4f   : > { %p7457_p11 = scmp.ne.s32.totalorder %s7831_s11, %s7456_s20  ;;  %s7461_s18 = sshll.u32 %s7658_s17, 4  ;;  %s7462_s18 = int_to_ptr.vmem [resolvable:$false] %s7461_s18 }
  0x50   : > { %s7463_s5 = scalar_lea.vmem %s7462_s18, 512  ;;  %p7464_p10 = scmp.lt.s32.totalorder %s7831_s11, %s7462_s18 }
  0x51   : > { %p7459_p13 = pnand %p7457_p11, %p7841_p0  ;;  %p7465_p7 = scmp.lt.s32.totalorder %s7463_s5, %s7456_s20 }
  0x53   : > { %p7460_p2 = pneg %p7459_p13  ;;  %p7466_p6 = por %p7465_p7, %p7464_p10 }
  0x55   : > { %p7467_p1 = pnand %p7466_p6, %p7460_p2 }
  0x57   : > { %7470 = shalt.err (!%p7467_p1)
}
  0x58   : > { %7273 = dma.hbm_to_vmem [thread:$0]  (!%p7816_p12), %s7829_s30, 256, %s7831_s11, %s7835_s15  }
  0x59   : > { %s9556_s16 = sshll.u32 %s7651_s28, 8  ;;  %s9557_s18 = sshll.u32 %s7807_s19, 12 }
  0x5a   : > { %s7870_s17 = scalar_lea.hbm %s9511_s3, %s9556_s16  ;;  %s360_s20 = scalar_lea.vmem [#allocation7], %s9557_s18 }
  0x5b   : > { %s370_s5 = sshll.u32 %s360_s20, 4  ;;  %s7659_s2 = smov [#allocation10]   ;;  %s7874_s5 = int_to_ptr.vmem [resolvable:$true] %s370_s5 }
  0x5c   : > { %s280_s14 = sshll.u32 %s7659_s2, 4  ;;  %s7471_s7 = scalar_lea.hbm %s9514_s6, 128  ;;  %s281_s14 = int_to_ptr.vmem [resolvable:$true] %s280_s14 }
  0x5d   : > { %p7472_p7 = scmp.ne.s32.totalorder %s9514_s6, %s7471_s7  ;;  %p9558_p10 = scmp.ne.s32.totalorder %s9547_s13, 0 }
  0x5e   : > { %p7478_p8 = scmp.lt.u32.totalorder %s7471_s7, %s9514_s6 }
  0x5f   : > { %p9559_p3 = pneg %p9558_p10 }
  0x61   : > { %p7474_p4 = pnand %p7472_p7, %p9559_p3 }
  0x63   : > { %p7475_p5 = pneg %p7474_p4 }
  0x65   : > { %p7480_p9 = pnand %p7478_p8, %p7475_p5 }
  0x67   : > { %7483 = shalt.err (!%p7480_p9)
}
  0x68   : > { %s7484_s2 = scalar_lea.vmem %s281_s14, 128  ;;  %p9560_p13 = pmov %p9559_p3 }
  0x69   : > { %p7485_p11 = scmp.ne.s32.totalorder %s281_s14, %s7484_s2  ;;  %p7492_p1 = scmp.lt.s32.totalorder %s281_s14, %s281_s14 }
  0x6a   : > { %p7493_p12 = scmp.lt.s32.totalorder %s7484_s2, %s7484_s2 }
  0x6b   : > { %p7487_p2 = pnand %p7485_p11, %p9560_p13 }
  0x6c   : > { %p7494_p0 = por %p7493_p12, %p7492_p1 }
  0x6d   : > { %p7488_p6 = pneg %p7487_p2 }
  0x6f   : > { %p7495_p3 = pnand %p7494_p0, %p7488_p6 }
  0x71   : > { %7498 = shalt.err (!%p7495_p3)
}
  0x72   : > { %7266 = dma.hbm_to_vmem [thread:$0]  (!%p9558_p10), %s9514_s6, 128, %s281_s14, [#allocation11]  }
  0x73   : > { %s7030_s7 = sshll.u32 %s7651_s28, 16  ;;  %s9561_s1 = sld [smem:[#allocation21_spill]] }
  0x74   : > { %s295_s13 = scalar_lea.vmem [#allocation2], %s9557_s18  ;;  %s7909_s16 = scalar_lea.hbm %s9512_s4, %s7030_s7 }
  0x75   : > { %s304_s20 = sshll.u32 %s295_s13, 4  ;;  %s292_s14 = scalar_lea.sflag [#allocation3], %s7807_s19  ;;  %s7904_s20 = int_to_ptr.vmem [resolvable:$true] %s304_s20 }
  0x76   : > { %p9562_p0 = scmp.ne.s32.totalorder %s9555_s24, 0 }
  0x79   : > { %s7900_s23 = scalar_lea.hbm %s9561_s1, %s7030_s7  ;;  %s7504_s12 = scalar_lea.hbm %s9561_s1, 262144 }
  0x7a   : > { %s7499_s2 = scalar_lea.hbm %s7900_s23, 65536  ;;  %p7505_p4 = scmp.lt.u32.totalorder %s7900_s23, %s9561_s1 }
  0x7b   : > { %p7500_p12 = scmp.ne.s32.totalorder %s7900_s23, %s7499_s2  ;;  %p7506_p5 = scmp.lt.u32.totalorder %s7504_s12, %s7499_s2 }
  0x7c   : > { %p7508_p9 = scmp.lt.u32.totalorder %s7499_s2, %s7900_s23 }
  0x7d   : > { %p7502_p7 = pnand %p7500_p12, %p9562_p0  ;;  %p7507_p8 = por %p7506_p5, %p7505_p4 }
  0x7f   : > { %p7503_p10 = pneg %p7502_p7  ;;  %p7509_p11 = por %p7508_p9, %p7507_p8 }
  0x81   : > { %p7510_p13 = pnand %p7509_p11, %p7503_p10 }
  0x83   : > { %7513 = shalt.err (!%p7510_p13)
}
  0x84   : > { %s7514_s7 = scalar_lea.vmem %s7904_s20, 65536  ;;  %s7660_s13 = smov [#allocation2]  }
  0x85   : > { %p7515_p2 = scmp.ne.s32.totalorder %s7904_s20, %s7514_s7  ;;  %s7519_s30 = sshll.u32 %s7660_s13, 4  ;;  %s7520_s30 = int_to_ptr.vmem [resolvable:$false] %s7519_s30 }
  0x86   : > { %s7521_s11 = scalar_lea.vmem %s7520_s30, 131072  ;;  %p7522_p3 = scmp.lt.s32.totalorder %s7904_s20, %s7520_s30 }
  0x87   : > { %p7517_p6 = pnand %p7515_p2, %p9562_p0  ;;  %p7523_p12 = scmp.lt.s32.totalorder %s7521_s11, %s7514_s7 }
  0x89   : > { %p7518_p1 = pneg %p7517_p6  ;;  %p7524_p7 = por %p7523_p12, %p7522_p3 }
  0x8b   : > { %p7525_p4 = pnand %p7524_p7, %p7518_p1 }
  0x8d   : > { %7528 = shalt.err (!%p7525_p4)
}
  0x8e   : > { %s7661_s2 = smov 2048   ;;  %s7662_s26 = smov 128  }
  0x8f   : > { %p9563_p10 = scmp.ne.s32.totalorder %s9553_s21, 0  ;;  %s9564_s27 = sshll.u32 %s7807_s19, 4 }
  0x90   : > { %s339_s12 = scalar_lea.vmem [#allocation6], %s9564_s27  ;;  %s7529_s18 = scalar_lea.hbm %s7870_s17, 256 }
  0x91   : > { %7270 = dma.hbm_to_vmem [thread:$0]  (!%p9563_p10), %s7900_s23, 65536, %s7904_s20, %s292_s14, %s7661_s2, %s7661_s2, %s7662_s26  }
  0x92   : > { %s349_s22 = sshll.u32 %s339_s12, 4  ;;  %p7530_p5 = scmp.ne.s32.totalorder %s7870_s17, %s7529_s18  ;;  %s350_s22 = int_to_ptr.vmem [resolvable:$true] %s349_s22 }
  0x93   : > { %s7534_s30 = scalar_lea.hbm %s9511_s3, 1024  ;;  %p7535_p11 = scmp.lt.u32.totalorder %s7870_s17, %s9511_s3 }
  0x94   : > { %p7532_p8 = pnand %p7530_p5, %p9562_p0  ;;  %p7536_p13 = scmp.lt.u32.totalorder %s7534_s30, %s7529_s18 }
  0x95   : > { %p7538_p6 = scmp.lt.u32.totalorder %s7529_s18, %s7870_s17 }
  0x96   : > { %p7533_p9 = pneg %p7532_p8  ;;  %p7537_p2 = por %p7536_p13, %p7535_p11 }
  0x98   : > { %p7539_p1 = por %p7538_p6, %p7537_p2 }
  0x9a   : > { %p7540_p3 = pnand %p7539_p1, %p7533_p9 }
  0x9c   : > { %7543 = shalt.err (!%p7540_p3)
}
  0x9d   : > { %s7544_s19 = scalar_lea.vmem %s350_s22, 256  ;;  %s7663_s23 = smov [#allocation6]  }
  0x9e   : > { %p7545_p12 = scmp.ne.s32.totalorder %s350_s22, %s7544_s19  ;;  %s7549_s20 = sshll.u32 %s7663_s23, 4  ;;  %s7550_s20 = int_to_ptr.vmem [resolvable:$false] %s7549_s20 }
  0x9f   : > { %s7551_s14 = scalar_lea.vmem %s7550_s20, 512  ;;  %p7552_p5 = scmp.lt.s32.totalorder %s350_s22, %s7550_s20 }
  0xa0   : > { %p7547_p7 = pnand %p7545_p12, %p9562_p0  ;;  %p7553_p8 = scmp.lt.s32.totalorder %s7551_s14, %s7544_s19 }
  0xa2   : > { %p7548_p4 = pneg %p7547_p7  ;;  %p7554_p10 = por %p7553_p8, %p7552_p5 }
  0xa4   : > { %p7555_p11 = pnand %p7554_p10, %p7548_p4 }
  0xa6   : > { %7558 = shalt.err (!%p7555_p11)
}
  0xa7   : > { %p9565_p13 = scmp.ne.s32.totalorder %s9553_s21, 0  ;;  %s9566_s1 = sand.u32 1, %s7655_s29  }
  0xa8   : > { %s7957_s2 = scalar_lea.sflag [#allocation8], %s9566_s1  ;;  %s7559_s26 = scalar_lea.hbm %s7909_s16, 65536 }
  0xa9   : > { %7276 = dma.hbm_to_vmem [thread:$0]  (!%p9565_p13), %s7870_s17, 256, %s350_s22, %s7835_s15  }
  0xaa   : > { %p7560_p9 = scmp.ne.s32.totalorder %s7909_s16, %s7559_s26  ;;  %s7564_s18 = scalar_lea.hbm %s9512_s4, 262144 }
  0xab   : > { %p7565_p6 = scmp.lt.u32.totalorder %s7909_s16, %s9512_s4  ;;  %p7566_p1 = scmp.lt.u32.totalorder %s7564_s18, %s7559_s26 }
  0xac   : > { %p7562_p2 = pnand %p7560_p9, %p9562_p0  ;;  %p7568_p12 = scmp.lt.u32.totalorder %s7559_s26, %s7909_s16 }
  0xad   : > { %p7567_p3 = por %p7566_p1, %p7565_p6 }
  0xae   : > { %p7563_p10 = pneg %p7562_p2 }
  0xaf   : > { %p7569_p7 = por %p7568_p12, %p7567_p3 }
  0xb1   : > { %p7570_p4 = pnand %p7569_p7, %p7563_p10 }
  0xb3   : > { %7573 = shalt.err (!%p7570_p4)
}
  0xb4   : > { %s7574_s15 = scalar_lea.vmem %s7874_s5, 65536  ;;  %s7664_s17 = smov [#allocation7]  }
  0xb5   : > { %p7575_p5 = scmp.ne.s32.totalorder %s7874_s5, %s7574_s15  ;;  %s7579_s22 = sshll.u32 %s7664_s17, 4  ;;  %s7580_s22 = int_to_ptr.vmem [resolvable:$false] %s7579_s22 }
  0xb6   : > { %s7581_s30 = scalar_lea.vmem %s7580_s22, 131072  ;;  %p7582_p9 = scmp.lt.s32.totalorder %s7874_s5, %s7580_s22 }
  0xb7   : > { %p7577_p8 = pnand %p7575_p5, %p9562_p0  ;;  %p7583_p2 = scmp.lt.s32.totalorder %s7581_s30, %s7574_s15 }
  0xb9   : > { %p7578_p11 = pneg %p7577_p8  ;;  %p7584_p6 = por %p7583_p2, %p7582_p9 }
  0xbb   : > { %p7585_p1 = pnand %p7584_p6, %p7578_p11 }
  0xbd   : > { %7588 = shalt.err (!%p7585_p1)
}
  0xbe   : > { %s7665_s11 = smov 1024   ;;  %s7666_s19 = smov 64  }
  0xbf   : > { %7279 = dma.hbm_to_vmem [thread:$0]  (!%p9565_p13), %s7909_s16, 65536, %s7874_s5, %s7957_s2, %s7665_s11, %s7665_s11, %s7666_s19  }
  0xc0   : > { %p9567_p0 = scmp.ne.s32.totalorder %s9546_s10, 0 }
  0xc1   : > { %s384_s24 = sand.u32 (!%p9567_p0), 1, %s7639_s25   ;;  %p9568_p10 = scmp.ne.s32.totalorder (!%p9567_p0), %s9545_s9, 0 }
  0xc2   : > { %382 = sbr.rel (%p9567_p0) target bundleno = 2544 (0x9f0), region = 48  ;;  %s7001_s23 = sshll.u32 (!%p9567_p0), %s384_s24, 12 }
  0xc3   : > { %s385_s20 = scalar_lea.sflag (!%p9567_p0), [#allocation3], %s384_s24  ;;  %s7984_s14 = scalar_lea.vmem (!%p9567_p0), [#allocation2], %s7001_s23 }
  0xc9   : > { %7614 = dma.done.wait (%p9568_p10), %s385_s20, 65536  }
  0xca   : > { %7616 = vsyncadd (%p9568_p10), %s385_s20, 4294901760  ;;  %s9569_s1 = sadd.s32 4294967295, %s7655_s29   ;;  %s7002_s5 = sshll.u32 %s384_s24, 4 }
  0xcb   : > { %s393_s21 = sand.u32 1, %s9569_s1   ;;  %s7992_s10 = scalar_lea.vmem [#allocation4], %s7002_s5 }
  0xcc   : > { %s394_s16 = scalar_lea.sflag [#allocation5], %s393_s21 }
  0xcd   : > { %7618 = dma.done.wait (%p9568_p10), %s394_s16, 512  }
  0xce   : > { %7620 = vsyncadd (%p9568_p10), %s394_s16, 4294966784  ;;  %s7998_s2 = scalar_lea.vmem [#allocation6], %s7002_s5  ;;  %s412_s26 = scalar_lea.sflag [#allocation8], %s393_s21 }
  0xcf   : > { %s8000_s27 = scalar_lea.vmem [#allocation7], %s7001_s23 }
  0xd0   : > { %7622 = dma.done.wait (%p9568_p10), %s412_s26, 65536  }
  0xd1   : > { %7624 = vsyncadd (%p9568_p10), %s412_s26, 4294901760  ;;  %p9570_p13 = scmp.ne.s32.totalorder %s9544_s8, 0 }
  0xd3   : > { %7626 = dma.done.wait (%p9570_p13), [#allocation8], 128  }
  0xd4   : > { %7628 = vsyncadd (%p9570_p13), [#allocation8], 4294967168 }
  0xd5   : > { %7630 = dma.done.wait (%p9570_p13), [#allocation11], 128  }
  0xd6   : > { %7632 = vsyncadd (%p9570_p13), [#allocation11], 4294967168  ;;  %v486_v0 = vld [vmem:[%s7984_s14 + $0x8] sm:$0xff]  ;;  %v488_v1 = vld [vmem:[%s7984_s14 + $0x18] sm:$0xff]  ;;  %v7667_v18 = vmov 1966171168   ;;  %v2027_v20 = vlaneseq }
  0xd7   : > { %v485_v2 = vld [vmem:[%s7984_s14] sm:$0xff]  ;;  %v998_v3 = vunpack.c.l.s8.bf16 %v486_v0  ;;  %v1014_v4 = vunpack.c.h.s8.bf16 %v486_v0  ;;  %v1000_v5 = vunpack.c.l.s8.bf16 %v488_v1  ;;  %v1016_v6 = vunpack.c.h.s8.bf16 %v488_v1  ;;  %v487_v7 = vld [vmem:[%s7984_s14 + $0x10] sm:$0xff]  ;;  %v502_v10 = vld [vmem:[%s7984_s14 + $0x88] sm:$0xff]  ;;  %s9571_s12 = sld [smem:[#allocation18_spill]] }
  0xd8   : > { %v997_v8 = vunpack.c.l.s8.bf16 %v485_v2  ;;  %v999_v9 = vunpack.c.l.s8.bf16 %v487_v7  ;;  %v504_v11 = vld [vmem:[%s7984_s14 + $0x98] sm:$0xff]  ;;  %v1013_v12 = vunpack.c.h.s8.bf16 %v485_v2  ;;  %v1015_v13 = vunpack.c.h.s8.bf16 %v487_v7  ;;  %v501_v16 = vld [vmem:[%s7984_s14 + $0x80] sm:$0xff]  ;;  %v503_v17 = vld [vmem:[%s7984_s14 + $0x90] sm:$0xff] }
  0xd9   : > { %2080 = vmatprep.subr.bf16.mxu0 %v998_v3  ;;  %2244 = vmatprep.subr.bf16.mxu1 %v1000_v5  ;;  %v1030_v14 = vunpack.c.l.s8.bf16 %v502_v10  ;;  %v1032_v15 = vunpack.c.l.s8.bf16 %v504_v11  ;;  %v2025_v19 = vunpack.c.l.s4 %v7667_v18  ;;  %v1029_v21 = vunpack.c.l.s8.bf16 %v501_v16  ;;  %v518_v27 = vld [vmem:[%s7984_s14 + $0x108] sm:$0xff]  ;;  %v520_v28 = vld [vmem:[%s7984_s14 + $0x118] sm:$0xff]  ;;  %v517_v33 = vld [vmem:[%s7984_s14 + $0x100] sm:$0xff] }
  0xda   : > { %2081 = vmatpush1.bf16.msra.mxu0 %v997_v8  ;;  %2245 = vmatpush1.bf16.msra.mxu1 %v999_v9  ;;  %v1031_v22 = vunpack.c.l.s8.bf16 %v503_v17  ;;  %v1046_v23 = vunpack.c.h.s8.bf16 %v502_v10  ;;  %v1048_v24 = vunpack.c.h.s8.bf16 %v504_v11  ;;  %v8022_v26 = vshrl.u32 %v2027_v20, 7  ;;  %v519_v34 = vld [vmem:[%s7984_s14 + $0x110] sm:$0xff]  ;;  %v8034_v36 = vld [vmem:[%s9508_s0] sm:$0xff]  ;;  %v534_v42 = vld [vmem:[%s7984_s14 + $0x188] sm:$0xff] }
  0xdb   : > { %2082 = vmatprep.subr.bf16.mxu0 %v1014_v4  ;;  %2246 = vmatprep.subr.bf16.mxu1 %v1016_v6  ;;  %v2026_v25 = vunpack.c.0.s8 %v2025_v19  ;;  %v1045_v29 = vunpack.c.h.s8.bf16 %v501_v16  ;;  %v1047_v30 = vunpack.c.h.s8.bf16 %v503_v17  ;;  %v1062_v31 = vunpack.c.l.s8.bf16 %v518_v27  ;;  %v536_v43 = vld [vmem:[%s7984_s14 + $0x198] sm:$0xff]  ;;  %v533_v49 = vld [vmem:[%s7984_s14 + $0x180] sm:$0xff]  ;;  %v535_v50 = vld [vmem:[%s7984_s14 + $0x190] sm:$0xff] }
  0xdc   : > { %v1064_v32 = vunpack.c.l.s8.bf16 %v520_v28  ;;  %v1061_v37 = vunpack.c.l.s8.bf16 %v517_v33  ;;  %v1063_v38 = vunpack.c.l.s8.bf16 %v519_v34  ;;  %v1078_v39 = vunpack.c.h.s8.bf16 %v518_v27  ;;  %v550_v56 = vld [vmem:[%s7984_s14 + $0x208] sm:$0xff]  ;;  %v552_v57 = vld [vmem:[%s7984_s14 + $0x218] sm:$0xff]  ;;  %v549_v62 = vld [vmem:[%s7984_s14 + $0x200] sm:$0xff] }
  0xdd   : > { %v8029_v35 = vsub.s32 %v2026_v25, %v8022_v26  ;;  %v1080_v40 = vunpack.c.h.s8.bf16 %v520_v28  ;;  %v1077_v45 = vunpack.c.h.s8.bf16 %v517_v33  ;;  %v1079_v46 = vunpack.c.h.s8.bf16 %v519_v34  ;;  %v551_v63 = vld [vmem:[%s7984_s14 + $0x210] sm:$0xff]  ;;  %v566_v4 = vld [vmem:[%s7984_s14 + $0x288] sm:$0xff]  ;;  %v568_v5 = vld [vmem:[%s7984_s14 + $0x298] sm:$0xff]  ;;  %p7023_p3 = scmp.ne.s32.totalorder %s9571_s12, 0 }
  0xde   : > { %2083 = vmatpush1.bf16.msra.mxu0 %v1013_v12  ;;  %2247 = vmatpush1.bf16.msra.mxu1 %v1015_v13  ;;  %v1094_v47 = vunpack.c.l.s8.bf16 %v534_v42  ;;  %v1096_v48 = vunpack.c.l.s8.bf16 %v536_v43  ;;  %v1093_v52 = vunpack.c.l.s8.bf16 %v533_v49  ;;  %v1095_v53 = vunpack.c.l.s8.bf16 %v535_v50  ;;  %v565_v10 = vld [vmem:[%s7984_s14 + $0x280] sm:$0xff]  ;;  %v567_v11 = vld [vmem:[%s7984_s14 + $0x290] sm:$0xff]  ;;  %v582_v16 = vld [vmem:[%s7984_s14 + $0x308] sm:$0xff]  ;;  %s9572_s13 = sld [smem:[#allocation24_spill]] (!%p7023_p3) }
  0xdf   : > { %2084 = vmatprep.subr.bf16.mxu0 %v1030_v14  ;;  %2248 = vmatprep.subr.bf16.mxu1 %v1032_v15  ;;  %v8038_v41 = vrot.slane %v8034_v36, %v8029_v35  ;;  %v1110_v54 = vunpack.c.h.s8.bf16 %v534_v42  ;;  %v1112_v55 = vunpack.c.h.s8.bf16 %v536_v43  ;;  %v1109_v58 = vunpack.c.h.s8.bf16 %v533_v49  ;;  %v584_v17 = vld [vmem:[%s7984_s14 + $0x318] sm:$0xff] }
  0xe0   : > { %v1111_v59 = vunpack.c.h.s8.bf16 %v535_v50  ;;  %v1126_v60 = vunpack.c.l.s8.bf16 %v550_v56  ;;  %v1128_v61 = vunpack.c.l.s8.bf16 %v552_v57  ;;  %v1125_v0 = vunpack.c.l.s8.bf16 %v549_v62 }
  0xe1   : > { %v2038_v44 = vcombine.high %v8038_v41, %v8038_v41  ;;  %v1127_v1 = vunpack.c.l.s8.bf16 %v551_v63  ;;  %v1142_v2 = vunpack.c.h.s8.bf16 %v550_v56  ;;  %v1144_v3 = vunpack.c.h.s8.bf16 %v552_v57 }
  0xe2   : > { %2085 = vmatpush1.bf16.msra.mxu0 %v1029_v21  ;;  %2249 = vmatpush1.bf16.msra.mxu1 %v1031_v22  ;;  %v1141_v6 = vunpack.c.h.s8.bf16 %v549_v62  ;;  %v1143_v7 = vunpack.c.h.s8.bf16 %v551_v63  ;;  %v1158_v8 = vunpack.c.l.s8.bf16 %v566_v4  ;;  %v1160_v9 = vunpack.c.l.s8.bf16 %v568_v5  ;;  %v581_v22 = vld [vmem:[%s7984_s14 + $0x300] sm:$0xff]  ;;  %v630_v62 = vld [vmem:[%s7984_s14 + $0x488] sm:$0xff] }
  0xe3   : > { %2086 = vmatprep.subr.bf16.mxu0 %v1046_v23  ;;  %2250 = vmatprep.subr.bf16.mxu1 %v1048_v24  ;;  %v8047_v51 = vrot.slane %v2038_v44, %v8029_v35  ;;  %v1157_v12 = vunpack.c.l.s8.bf16 %v565_v10  ;;  %v1159_v13 = vunpack.c.l.s8.bf16 %v567_v11  ;;  %v1174_v14 = vunpack.c.h.s8.bf16 %v566_v4  ;;  %v583_v23 = vld [vmem:[%s7984_s14 + $0x310] sm:$0xff]  ;;  %v614_v44 = vld [vmem:[%s7984_s14 + $0x408] sm:$0xff] }
  0xe4   : > { %v1176_v15 = vunpack.c.h.s8.bf16 %v568_v5  ;;  %v1173_v18 = vunpack.c.h.s8.bf16 %v565_v10  ;;  %v1175_v19 = vunpack.c.h.s8.bf16 %v567_v11  ;;  %v1190_v20 = vunpack.c.l.s8.bf16 %v582_v16  ;;  %v631_v4 = vld [vmem:[%s7984_s14 + $0x490] sm:$0xff]  ;;  %v648_v10 = vld [vmem:[%s7984_s14 + $0x518] sm:$0xff] }
  0xe5   : > { %2112 = vmatprep.mubr.bf16.mxu0 %v8047_v51  ;;  %2276 = vmatprep.mubr.bf16.mxu1 %v8047_v51  ;;  %v1192_v21 = vunpack.c.l.s8.bf16 %v584_v17  ;;  %v1189_v24 = vunpack.c.l.s8.bf16 %v581_v22  ;;  %v1191_v25 = vunpack.c.l.s8.bf16 %v583_v23  ;;  %v1206_v27 = vunpack.c.h.s8.bf16 %v582_v16  ;;  %v647_v16 = vld [vmem:[%s7984_s14 + $0x510] sm:$0xff] }
  0xe6   : > { %2087 = vmatpush1.bf16.msra.mxu0 %v1045_v29  ;;  %2251 = vmatpush1.bf16.msra.mxu1 %v1047_v30  ;;  %v1208_v28 = vunpack.c.h.s8.bf16 %v584_v17  ;;  %v598_v29 = vld [vmem:[%s7984_s14 + $0x388] sm:$0xff]  ;;  %v600_v30 = vld [vmem:[%s7984_s14 + $0x398] sm:$0xff]  ;;  %v1254_v49 = vunpack.c.l.s8.bf16 %v614_v44  ;;  %v8088_v63 = vcombine.high %v8047_v51, %v8047_v51 }
  0xe7   : > { %2088 = vmatprep.subr.bf16.mxu0 %v1062_v31  ;;  %2252 = vmatprep.subr.bf16.mxu1 %v1064_v32  ;;  %v1205_v31 = vunpack.c.h.s8.bf16 %v581_v22  ;;  %v1207_v32 = vunpack.c.h.s8.bf16 %v583_v23  ;;  %v1222_v33 = vunpack.c.l.s8.bf16 %v598_v29  ;;  %v1224_v34 = vunpack.c.l.s8.bf16 %v600_v30  ;;  %v664_v22 = vld [vmem:[%s7984_s14 + $0x598] sm:$0xff] }
  0xe8   : > { %v1238_v42 = vunpack.c.h.s8.bf16 %v598_v29  ;;  %v1240_v43 = vunpack.c.h.s8.bf16 %v600_v30  ;;  %v663_v29 = vld [vmem:[%s7984_s14 + $0x590] sm:$0xff] }
  0xea   : > { %2089 = vmatpush1.bf16.msra.mxu0 %v1061_v37  ;;  %2253 = vmatpush1.bf16.msra.mxu1 %v1063_v38  ;;  %v597_v37 = vld [vmem:[%s7984_s14 + $0x380] sm:$0xff]  ;;  %v599_v38 = vld [vmem:[%s7984_s14 + $0x390] sm:$0xff] }
  0xeb   : > { %2090 = vmatprep.subr.bf16.mxu0 %v1078_v39  ;;  %2254 = vmatprep.subr.bf16.mxu1 %v1080_v40  ;;  %v1221_v39 = vunpack.c.l.s8.bf16 %v597_v37  ;;  %v1223_v40 = vunpack.c.l.s8.bf16 %v599_v38 }
  0xee   : > { %2091 = vmatpush1.bf16.msra.mxu0 %v1077_v45  ;;  %2255 = vmatpush1.bf16.msra.mxu1 %v1079_v46  ;;  %v616_v45 = vld [vmem:[%s7984_s14 + $0x418] sm:$0xff]  ;;  %v2023_v46 = vcombine.high %v8034_v36, %v8034_v36 }
  0xef   : > { %2092 = vmatprep.subr.bf16.mxu0 %v1094_v47  ;;  %2256 = vmatprep.subr.bf16.mxu1 %v1096_v48  ;;  %v1237_v47 = vunpack.c.h.s8.bf16 %v597_v37  ;;  %v1239_v48 = vunpack.c.h.s8.bf16 %v599_v38  ;;  %v1256_v50 = vunpack.c.l.s8.bf16 %v616_v45  ;;  %v680_v37 = vld [vmem:[%s7984_s14 + $0x618] sm:$0xff] }
  0xf2   : > { %2093 = vmatpush1.bf16.msra.mxu0 %v1093_v52  ;;  %2257 = vmatpush1.bf16.msra.mxu1 %v1095_v53  ;;  %v613_v52 = vld [vmem:[%s7984_s14 + $0x400] sm:$0xff]  ;;  %v615_v53 = vld [vmem:[%s7984_s14 + $0x410] sm:$0xff] }
  0xf3   : > { %2094 = vmatprep.subr.bf16.mxu0 %v1110_v54  ;;  %2258 = vmatprep.subr.bf16.mxu1 %v1112_v55  ;;  %v2037_v54 = vrot.slane %v2023_v46, %v8029_v35  ;;  %v8076_v55 = vrot.slane %v8038_v41, %v8029_v35  ;;  %v1253_v36 = vunpack.c.l.s8.bf16 %v613_v52  ;;  %v1255_v57 = vunpack.c.l.s8.bf16 %v615_v53  ;;  %v632_v41 = vld [vmem:[%s7984_s14 + $0x498] sm:$0xff] }
  0xf5   : > { %v2039_v56 = vcombine.high %v2037_v54, %v2037_v54 }
  0xf6   : > { %2095 = vmatpush1.bf16.msra.mxu0 %v1109_v58  ;;  %2259 = vmatpush1.bf16.msra.mxu1 %v1111_v59  ;;  %v1270_v58 = vunpack.c.h.s8.bf16 %v614_v44  ;;  %v1272_v59 = vunpack.c.h.s8.bf16 %v616_v45  ;;  %v679_v44 = vld [vmem:[%s7984_s14 + $0x610] sm:$0xff] }
  0xf7   : > { %2096 = vmatprep.subr.bf16.mxu0 %v1126_v60  ;;  %2260 = vmatprep.subr.bf16.mxu1 %v1128_v61  ;;  %v8079_v60 = vrot.slane %v2039_v56, %v8029_v35  ;;  %v8082_v61 = vrot.slane %v2037_v54, %v8029_v35  ;;  %v1286_v35 = vunpack.c.l.s8.bf16 %v630_v62  ;;  %v1383_v46 = vunpack.c.l.s8.bf16 %v679_v44 }
  0xfa   : > { %2097 = vmatpush1.bf16.msra.mxu0 %v1125_v0  ;;  %2261 = vmatpush1.bf16.msra.mxu1 %v1127_v1  ;;  %v1269_v0 = vunpack.c.h.s8.bf16 %v613_v52  ;;  %v1271_v1 = vunpack.c.h.s8.bf16 %v615_v53  ;;  %v1399_v53 = vunpack.c.h.s8.bf16 %v679_v44 }
  0xfb   : > { %2098 = vmatprep.subr.bf16.mxu0 %v1142_v2  ;;  %2262 = vmatprep.subr.bf16.mxu1 %v1144_v3  ;;  %v1288_v2 = vunpack.c.l.s8.bf16 %v632_v41  ;;  %v629_v3 = vld [vmem:[%s7984_s14 + $0x480] sm:$0xff] }
  0xfc   : > { %v1285_v5 = vunpack.c.l.s8.bf16 %v629_v3  ;;  %v1301_v11 = vunpack.c.h.s8.bf16 %v629_v3 }
  0xfe   : > { %2099 = vmatpush1.bf16.msra.mxu0 %v1141_v6  ;;  %2263 = vmatpush1.bf16.msra.mxu1 %v1143_v7  ;;  %v1287_v6 = vunpack.c.l.s8.bf16 %v631_v4  ;;  %v1302_v7 = vunpack.c.h.s8.bf16 %v630_v62 }
  0xff   : > { %2100 = vmatprep.subr.bf16.mxu0 %v1158_v8  ;;  %2264 = vmatprep.subr.bf16.mxu1 %v1160_v9  ;;  %v1304_v8 = vunpack.c.h.s8.bf16 %v632_v41  ;;  %v646_v9 = vld [vmem:[%s7984_s14 + $0x508] sm:$0xff] }
 0x102   : > { %2101 = vmatpush1.bf16.msra.mxu0 %v1157_v12  ;;  %2265 = vmatpush1.bf16.msra.mxu1 %v1159_v13  ;;  %v1303_v12 = vunpack.c.h.s8.bf16 %v631_v4  ;;  %v1318_v13 = vunpack.c.l.s8.bf16 %v646_v9 }
 0x103   : > { %2102 = vmatprep.subr.bf16.mxu0 %v1174_v14  ;;  %2266 = vmatprep.subr.bf16.mxu1 %v1176_v15  ;;  %v1320_v14 = vunpack.c.l.s8.bf16 %v648_v10  ;;  %v645_v15 = vld [vmem:[%s7984_s14 + $0x500] sm:$0xff] }
 0x104   : > { %v1317_v17 = vunpack.c.l.s8.bf16 %v645_v15  ;;  %v1333_v23 = vunpack.c.h.s8.bf16 %v645_v15 }
 0x106   : > { %2103 = vmatpush1.bf16.msra.mxu0 %v1173_v18  ;;  %2267 = vmatpush1.bf16.msra.mxu1 %v1175_v19  ;;  %v1319_v18 = vunpack.c.l.s8.bf16 %v647_v16  ;;  %v1334_v19 = vunpack.c.h.s8.bf16 %v646_v9 }
 0x107   : > { %2104 = vmatprep.subr.bf16.mxu0 %v1190_v20  ;;  %2268 = vmatprep.subr.bf16.mxu1 %v1192_v21  ;;  %v1336_v20 = vunpack.c.h.s8.bf16 %v648_v10  ;;  %v662_v21 = vld [vmem:[%s7984_s14 + $0x588] sm:$0xff] }
 0x10a   : > { %2105 = vmatpush1.bf16.msra.mxu0 %v1189_v24  ;;  %2269 = vmatpush1.bf16.msra.mxu1 %v1191_v25  ;;  %v1335_v24 = vunpack.c.h.s8.bf16 %v647_v16  ;;  %v1350_v25 = vunpack.c.l.s8.bf16 %v662_v21 }
 0x10b   : > { %2106 = vmatprep.subr.bf16.mxu0 %v1206_v27  ;;  %2270 = vmatprep.subr.bf16.mxu1 %v1208_v28  ;;  %v1352_v27 = vunpack.c.l.s8.bf16 %v664_v22  ;;  %v661_v28 = vld [vmem:[%s7984_s14 + $0x580] sm:$0xff] }
 0x10c   : > { %v1349_v30 = vunpack.c.l.s8.bf16 %v661_v28  ;;  %v1365_v38 = vunpack.c.h.s8.bf16 %v661_v28 }
 0x10e   : > { %2107 = vmatpush1.bf16.msra.mxu0 %v1205_v31  ;;  %2271 = vmatpush1.bf16.msra.mxu1 %v1207_v32  ;;  %v1351_v31 = vunpack.c.l.s8.bf16 %v663_v29  ;;  %v1366_v32 = vunpack.c.h.s8.bf16 %v662_v21 }
 0x10f   : > { %2108 = vmatprep.subr.bf16.mxu0 %v1222_v33  ;;  %2272 = vmatprep.subr.bf16.mxu1 %v1224_v34  ;;  %v1368_v33 = vunpack.c.h.s8.bf16 %v664_v22  ;;  %v678_v34 = vld [vmem:[%s7984_s14 + $0x608] sm:$0xff] }
 0x112   : > { %2109 = vmatpush1.bf16.msra.mxu0 %v1221_v39  ;;  %2273 = vmatpush1.bf16.msra.mxu1 %v1223_v40  ;;  %v1367_v39 = vunpack.c.h.s8.bf16 %v663_v29  ;;  %v1382_v40 = vunpack.c.l.s8.bf16 %v678_v34 }
 0x113   : > { %2110 = vmatprep.subr.bf16.mxu0 %v1238_v42  ;;  %2274 = vmatprep.subr.bf16.mxu1 %v1240_v43  ;;  %v1384_v42 = vunpack.c.l.s8.bf16 %v680_v37  ;;  %v677_v43 = vld [vmem:[%s7984_s14 + $0x600] sm:$0xff] }
 0x114   : > { %v1381_v45 = vunpack.c.l.s8.bf16 %v677_v43  ;;  %v1397_v52 = vunpack.c.h.s8.bf16 %v677_v43 }
 0x116   : > { %2111 = vmatpush1.bf16.msra.mxu0 %v1237_v47  ;;  %2275 = vmatpush1.bf16.msra.mxu1 %v1239_v48  ;;  %v1398_v47 = vunpack.c.h.s8.bf16 %v678_v34  ;;  %v1400_v48 = vunpack.c.h.s8.bf16 %v680_v37 }
 0x117   : > { %2121 = vmatprep.subr.bf16.mxu0 %v1254_v49  ;;  %2285 = vmatprep.subr.bf16.mxu1 %v1256_v50  ;;  %v694_v49 = vld [vmem:[%s7984_s14 + $0x688] sm:$0xff]  ;;  %v696_v50 = vld [vmem:[%s7984_s14 + $0x698] sm:$0xff] }
 0x118   : > { %v1414_v54 = vunpack.c.l.s8.bf16 %v694_v49  ;;  %v1416_v56 = vunpack.c.l.s8.bf16 %v696_v50  ;;  %v1430_v62 = vunpack.c.h.s8.bf16 %v694_v49  ;;  %v1432_v41 = vunpack.c.h.s8.bf16 %v696_v50 }
 0x119   : > { %2113 = vmatmul.mubr.bf16.vlgmr.msra.gmra.mrb[0].mxu0 %v8076_v55  ;;  %2277 = vmatmul.mubr.bf16.vlgmr.msra.gmra.mrb[0].mxu1 %v8076_v55 }
 0x11a   : > { %2122 = vmatpush1.bf16.msra.mxu0 %v1253_v36  ;;  %2286 = vmatpush1.bf16.msra.mxu1 %v1255_v57  ;;  %v693_v36 = vld [vmem:[%s7984_s14 + $0x680] sm:$0xff]  ;;  %v695_v57 = vld [vmem:[%s7984_s14 + $0x690] sm:$0xff] }
 0x11b   : > { %2123 = vmatprep.subr.bf16.mxu0 %v1270_v58  ;;  %2287 = vmatprep.subr.bf16.mxu1 %v1272_v59  ;;  %v1413_v58 = vunpack.c.l.s8.bf16 %v693_v36  ;;  %v1415_v59 = vunpack.c.l.s8.bf16 %v695_v57 }
 0x11c   : > { %2153 = vmatprep.mubr.bf16.mxu0 %v8088_v63  ;;  %2317 = vmatprep.mubr.bf16.mxu1 %v8088_v63 }
 0x11e   : > { %2124 = vmatpush1.bf16.msra.mxu0 %v1269_v0  ;;  %2288 = vmatpush1.bf16.msra.mxu1 %v1271_v1  ;;  %v710_v0 = vld [vmem:[%s7984_s14 + $0x708] sm:$0xff]  ;;  %v712_v1 = vld [vmem:[%s7984_s14 + $0x718] sm:$0xff] }
 0x11f   : > { %2125 = vmatprep.subr.bf16.mxu0 %v1286_v35  ;;  %2289 = vmatprep.subr.bf16.mxu1 %v1288_v2  ;;  %v1429_v35 = vunpack.c.h.s8.bf16 %v693_v36  ;;  %v1431_v2 = vunpack.c.h.s8.bf16 %v695_v57  ;;  %v1446_v3 = vunpack.c.l.s8.bf16 %v710_v0  ;;  %v1448_v4 = vunpack.c.l.s8.bf16 %v712_v1 }
 0x120   : > { %v1462_v9 = vunpack.c.h.s8.bf16 %v710_v0  ;;  %v1464_v10 = vunpack.c.h.s8.bf16 %v712_v1 }
 0x122   : > { %2126 = vmatpush1.bf16.msra.mxu0 %v1285_v5  ;;  %2290 = vmatpush1.bf16.msra.mxu1 %v1287_v6  ;;  %v709_v5 = vld [vmem:[%s7984_s14 + $0x700] sm:$0xff]  ;;  %v711_v6 = vld [vmem:[%s7984_s14 + $0x710] sm:$0xff] }
 0x123   : > { %2127 = vmatprep.subr.bf16.mxu0 %v1302_v7  ;;  %2291 = vmatprep.subr.bf16.mxu1 %v1304_v8  ;;  %v1445_v7 = vunpack.c.l.s8.bf16 %v709_v5  ;;  %v1447_v8 = vunpack.c.l.s8.bf16 %v711_v6 }
 0x126   : > { %2128 = vmatpush1.bf16.msra.mxu0 %v1301_v11  ;;  %2292 = vmatpush1.bf16.msra.mxu1 %v1303_v12  ;;  %v726_v11 = vld [vmem:[%s7984_s14 + $0x788] sm:$0xff]  ;;  %v728_v12 = vld [vmem:[%s7984_s14 + $0x798] sm:$0xff] }
 0x127   : > { %2129 = vmatprep.subr.bf16.mxu0 %v1318_v13  ;;  %2293 = vmatprep.subr.bf16.mxu1 %v1320_v14  ;;  %v1461_v13 = vunpack.c.h.s8.bf16 %v709_v5  ;;  %v1463_v14 = vunpack.c.h.s8.bf16 %v711_v6  ;;  %v1478_v15 = vunpack.c.l.s8.bf16 %v726_v11  ;;  %v1480_v16 = vunpack.c.l.s8.bf16 %v728_v12 }
 0x128   : > { %v1494_v21 = vunpack.c.h.s8.bf16 %v726_v11  ;;  %v1496_v22 = vunpack.c.h.s8.bf16 %v728_v12 }
 0x12a   : > { %2130 = vmatpush1.bf16.msra.mxu0 %v1317_v17  ;;  %2294 = vmatpush1.bf16.msra.mxu1 %v1319_v18  ;;  %v725_v17 = vld [vmem:[%s7984_s14 + $0x780] sm:$0xff]  ;;  %v727_v18 = vld [vmem:[%s7984_s14 + $0x790] sm:$0xff] }
 0x12b   : > { %2131 = vmatprep.subr.bf16.mxu0 %v1334_v19  ;;  %2295 = vmatprep.subr.bf16.mxu1 %v1336_v20  ;;  %v1477_v19 = vunpack.c.l.s8.bf16 %v725_v17  ;;  %v1479_v20 = vunpack.c.l.s8.bf16 %v727_v18 }
 0x12e   : > { %2132 = vmatpush1.bf16.msra.mxu0 %v1333_v23  ;;  %2296 = vmatpush1.bf16.msra.mxu1 %v1335_v24  ;;  %v742_v23 = vld [vmem:[%s7984_s14 + $0x808] sm:$0xff]  ;;  %v744_v24 = vld [vmem:[%s7984_s14 + $0x818] sm:$0xff] }
 0x12f   : > { %2133 = vmatprep.subr.bf16.mxu0 %v1350_v25  ;;  %2297 = vmatprep.subr.bf16.mxu1 %v1352_v27  ;;  %v1493_v25 = vunpack.c.h.s8.bf16 %v725_v17  ;;  %v1495_v27 = vunpack.c.h.s8.bf16 %v727_v18  ;;  %v1510_v28 = vunpack.c.l.s8.bf16 %v742_v23  ;;  %v1512_v29 = vunpack.c.l.s8.bf16 %v744_v24 }
 0x130   : > { %v1526_v37 = vunpack.c.h.s8.bf16 %v742_v23 }
 0x132   : > { %2134 = vmatpush1.bf16.msra.mxu0 %v1349_v30  ;;  %2298 = vmatpush1.bf16.msra.mxu1 %v1351_v31  ;;  %v741_v30 = vld [vmem:[%s7984_s14 + $0x800] sm:$0xff]  ;;  %v743_v31 = vld [vmem:[%s7984_s14 + $0x810] sm:$0xff] }
 0x133   : > { %2135 = vmatprep.subr.bf16.mxu0 %v1366_v32  ;;  %2299 = vmatprep.subr.bf16.mxu1 %v1368_v33  ;;  %v8126_v32 = vcombine.high %v8076_v55, %v8076_v55  ;;  %v1509_v33 = vunpack.c.l.s8.bf16 %v741_v30  ;;  %v1511_v34 = vunpack.c.l.s8.bf16 %v743_v31  ;;  %v1527_v43 = vunpack.c.h.s8.bf16 %v743_v31 }
 0x136   : > { %2136 = vmatpush1.bf16.msra.mxu0 %v1365_v38  ;;  %2300 = vmatpush1.bf16.msra.mxu1 %v1367_v39  ;;  %v1528_v38 = vunpack.c.h.s8.bf16 %v744_v24  ;;  %v758_v39 = vld [vmem:[%s7984_s14 + $0x888] sm:$0xff] }
 0x137   : > { %2137 = vmatprep.subr.bf16.mxu0 %v1382_v40  ;;  %2301 = vmatprep.subr.bf16.mxu1 %v1384_v42  ;;  %v760_v40 = vld [vmem:[%s7984_s14 + $0x898] sm:$0xff]  ;;  %v1525_v42 = vunpack.c.h.s8.bf16 %v741_v30  ;;  %v1542_v44 = vunpack.c.l.s8.bf16 %v758_v39  ;;  %v1558_v50 = vunpack.c.h.s8.bf16 %v758_v39 }
 0x13a   : > { %2138 = vmatpush1.bf16.msra.mxu0 %v1381_v45  ;;  %2302 = vmatpush1.bf16.msra.mxu1 %v1383_v46  ;;  %v1544_v45 = vunpack.c.l.s8.bf16 %v760_v40  ;;  %v757_v46 = vld [vmem:[%s7984_s14 + $0x880] sm:$0xff] }
 0x13b   : > { %2139 = vmatprep.subr.bf16.mxu0 %v1398_v47  ;;  %2303 = vmatprep.subr.bf16.mxu1 %v1400_v48  ;;  %v759_v47 = vld [vmem:[%s7984_s14 + $0x890] sm:$0xff]  ;;  %v1541_v48 = vunpack.c.l.s8.bf16 %v757_v46 }
 0x13c   : > { %v1543_v49 = vunpack.c.l.s8.bf16 %v759_v47  ;;  %v1559_v36 = vunpack.c.h.s8.bf16 %v759_v47 }
 0x13e   : > { %2140 = vmatpush1.bf16.msra.mxu0 %v1397_v52  ;;  %2304 = vmatpush1.bf16.msra.mxu1 %v1399_v53  ;;  %v1560_v52 = vunpack.c.h.s8.bf16 %v760_v40  ;;  %v774_v53 = vld [vmem:[%s7984_s14 + $0x908] sm:$0xff] }
 0x13f   : > { %2141 = vmatprep.subr.bf16.mxu0 %v1414_v54  ;;  %2305 = vmatprep.subr.bf16.mxu1 %v1416_v56  ;;  %v776_v54 = vld [vmem:[%s7984_s14 + $0x918] sm:$0xff]  ;;  %v1557_v56 = vunpack.c.h.s8.bf16 %v757_v46  ;;  %v1574_v57 = vunpack.c.l.s8.bf16 %v774_v53  ;;  %v1590_v1 = vunpack.c.h.s8.bf16 %v774_v53 }
 0x142   : > { %2142 = vmatpush1.bf16.msra.mxu0 %v1413_v58  ;;  %2306 = vmatpush1.bf16.msra.mxu1 %v1415_v59  ;;  %v1576_v58 = vunpack.c.l.s8.bf16 %v776_v54  ;;  %v773_v59 = vld [vmem:[%s7984_s14 + $0x900] sm:$0xff] }
 0x143   : > { %2143 = vmatprep.subr.bf16.mxu0 %v1430_v62  ;;  %2307 = vmatprep.subr.bf16.mxu1 %v1432_v41  ;;  %v775_v62 = vld [vmem:[%s7984_s14 + $0x910] sm:$0xff]  ;;  %v1573_v41 = vunpack.c.l.s8.bf16 %v773_v59 }
 0x144   : > { %v1575_v0 = vunpack.c.l.s8.bf16 %v775_v62  ;;  %v1591_v5 = vunpack.c.h.s8.bf16 %v775_v62 }
 0x146   : > { %2144 = vmatpush1.bf16.msra.mxu0 %v1429_v35  ;;  %2308 = vmatpush1.bf16.msra.mxu1 %v1431_v2  ;;  %v1592_v35 = vunpack.c.h.s8.bf16 %v776_v54  ;;  %v790_v2 = vld [vmem:[%s7984_s14 + $0x988] sm:$0xff] }
 0x147   : > { %2145 = vmatprep.subr.bf16.mxu0 %v1446_v3  ;;  %2309 = vmatprep.subr.bf16.mxu1 %v1448_v4  ;;  %v792_v3 = vld [vmem:[%s7984_s14 + $0x998] sm:$0xff]  ;;  %v1589_v4 = vunpack.c.h.s8.bf16 %v773_v59  ;;  %v1606_v6 = vunpack.c.l.s8.bf16 %v790_v2  ;;  %v1622_v12 = vunpack.c.h.s8.bf16 %v790_v2 }
 0x14a   : > { %2146 = vmatpush1.bf16.msra.mxu0 %v1445_v7  ;;  %2310 = vmatpush1.bf16.msra.mxu1 %v1447_v8  ;;  %v1608_v7 = vunpack.c.l.s8.bf16 %v792_v3  ;;  %v789_v8 = vld [vmem:[%s7984_s14 + $0x980] sm:$0xff] }
 0x14b   : > { %2147 = vmatprep.subr.bf16.mxu0 %v1462_v9  ;;  %2311 = vmatprep.subr.bf16.mxu1 %v1464_v10  ;;  %v791_v9 = vld [vmem:[%s7984_s14 + $0x990] sm:$0xff]  ;;  %v1605_v10 = vunpack.c.l.s8.bf16 %v789_v8 }
 0x14c   : > { %v1607_v11 = vunpack.c.l.s8.bf16 %v791_v9  ;;  %v1623_v17 = vunpack.c.h.s8.bf16 %v791_v9 }
 0x14e   : > { %2148 = vmatpush1.bf16.msra.mxu0 %v1461_v13  ;;  %2312 = vmatpush1.bf16.msra.mxu1 %v1463_v14  ;;  %v1624_v13 = vunpack.c.h.s8.bf16 %v792_v3  ;;  %v806_v14 = vld [vmem:[%s7984_s14 + $0xa08] sm:$0xff] }
 0x14f   : > { %2149 = vmatprep.subr.bf16.mxu0 %v1478_v15  ;;  %2313 = vmatprep.subr.bf16.mxu1 %v1480_v16  ;;  %v808_v15 = vld [vmem:[%s7984_s14 + $0xa18] sm:$0xff]  ;;  %v1621_v16 = vunpack.c.h.s8.bf16 %v789_v8  ;;  %v1638_v18 = vunpack.c.l.s8.bf16 %v806_v14  ;;  %v1654_v24 = vunpack.c.h.s8.bf16 %v806_v14 }
 0x152   : > { %2150 = vmatpush1.bf16.msra.mxu0 %v1477_v19  ;;  %2314 = vmatpush1.bf16.msra.mxu1 %v1479_v20  ;;  %v1640_v19 = vunpack.c.l.s8.bf16 %v808_v15  ;;  %v805_v20 = vld [vmem:[%s7984_s14 + $0xa00] sm:$0xff] }
 0x153   : > { %2151 = vmatprep.subr.bf16.mxu0 %v1494_v21  ;;  %2315 = vmatprep.subr.bf16.mxu1 %v1496_v22  ;;  %v807_v21 = vld [vmem:[%s7984_s14 + $0xa10] sm:$0xff]  ;;  %v1637_v22 = vunpack.c.l.s8.bf16 %v805_v20 }
 0x154   : > { %v1639_v23 = vunpack.c.l.s8.bf16 %v807_v21  ;;  %v1655_v30 = vunpack.c.h.s8.bf16 %v807_v21 }
 0x156   : > { %2152 = vmatpush1.bf16.msra.mxu0 %v1493_v25  ;;  %2316 = vmatpush1.bf16.msra.mxu1 %v1495_v27  ;;  %v1656_v25 = vunpack.c.h.s8.bf16 %v808_v15  ;;  %v822_v27 = vld [vmem:[%s7984_s14 + $0xa88] sm:$0xff] }
 0x157   : > { %2162 = vmatprep.subr.bf16.mxu0 %v1510_v28  ;;  %2326 = vmatprep.subr.bf16.mxu1 %v1512_v29  ;;  %v824_v28 = vld [vmem:[%s7984_s14 + $0xa98] sm:$0xff]  ;;  %v1653_v29 = vunpack.c.h.s8.bf16 %v805_v20  ;;  %v1670_v31 = vunpack.c.l.s8.bf16 %v822_v27  ;;  %v1686_v40 = vunpack.c.h.s8.bf16 %v822_v27 }
 0x159   : > { %2154 = vmatmul.mubr.bf16.vlgmr.msra.gmra.mrb[0].mxu0 %v8126_v32  ;;  %2318 = vmatmul.mubr.bf16.vlgmr.msra.gmra.mrb[0].mxu1 %v8126_v32 }
 0x15a   : > { %2163 = vmatpush1.bf16.msra.mxu0 %v1509_v33  ;;  %2327 = vmatpush1.bf16.msra.mxu1 %v1511_v34  ;;  %v1672_v33 = vunpack.c.l.s8.bf16 %v824_v28  ;;  %v821_v34 = vld [vmem:[%s7984_s14 + $0xa80] sm:$0xff] }
 0x15b   : > { %2164 = vmatprep.subr.bf16.mxu0 %v1526_v37  ;;  %2328 = vmatprep.subr.bf16.mxu1 %v1528_v38  ;;  %v823_v37 = vld [vmem:[%s7984_s14 + $0xa90] sm:$0xff]  ;;  %v1669_v38 = vunpack.c.l.s8.bf16 %v821_v34 }
 0x15c   : > { %2194 = vmatprep.mubr.bf16.mxu0 %v8079_v60  ;;  %2358 = vmatprep.mubr.bf16.mxu1 %v8079_v60  ;;  %v1671_v39 = vunpack.c.l.s8.bf16 %v823_v37  ;;  %v1687_v46 = vunpack.c.h.s8.bf16 %v823_v37 }
 0x15e   : > { %2165 = vmatpush1.bf16.msra.mxu0 %v1525_v42  ;;  %2329 = vmatpush1.bf16.msra.mxu1 %v1527_v43  ;;  %v1688_v42 = vunpack.c.h.s8.bf16 %v824_v28  ;;  %v838_v43 = vld [vmem:[%s7984_s14 + $0xb08] sm:$0xff] }
 0x15f   : > { %2166 = vmatprep.subr.bf16.mxu0 %v1542_v44  ;;  %2330 = vmatprep.subr.bf16.mxu1 %v1544_v45  ;;  %v840_v44 = vld [vmem:[%s7984_s14 + $0xb18] sm:$0xff]  ;;  %v1685_v45 = vunpack.c.h.s8.bf16 %v821_v34  ;;  %v1702_v47 = vunpack.c.l.s8.bf16 %v838_v43  ;;  %v1718_v54 = vunpack.c.h.s8.bf16 %v838_v43 }
 0x162   : > { %2167 = vmatpush1.bf16.msra.mxu0 %v1541_v48  ;;  %2331 = vmatpush1.bf16.msra.mxu1 %v1543_v49  ;;  %v1704_v48 = vunpack.c.l.s8.bf16 %v840_v44  ;;  %v837_v49 = vld [vmem:[%s7984_s14 + $0xb00] sm:$0xff] }
 0x163   : > { %2168 = vmatprep.subr.bf16.mxu0 %v1558_v50  ;;  %2332 = vmatprep.subr.bf16.mxu1 %v1560_v52  ;;  %v839_v50 = vld [vmem:[%s7984_s14 + $0xb10] sm:$0xff]  ;;  %v1701_v52 = vunpack.c.l.s8.bf16 %v837_v49 }
 0x164   : > { %v1703_v53 = vunpack.c.l.s8.bf16 %v839_v50  ;;  %v1719_v59 = vunpack.c.h.s8.bf16 %v839_v50 }
 0x166   : > { %2169 = vmatpush1.bf16.msra.mxu0 %v1557_v56  ;;  %2333 = vmatpush1.bf16.msra.mxu1 %v1559_v36  ;;  %v1720_v56 = vunpack.c.h.s8.bf16 %v840_v44  ;;  %v854_v36 = vld [vmem:[%s7984_s14 + $0xb88] sm:$0xff] }
 0x167   : > { %2170 = vmatprep.subr.bf16.mxu0 %v1574_v57  ;;  %2334 = vmatprep.subr.bf16.mxu1 %v1576_v58  ;;  %v856_v57 = vld [vmem:[%s7984_s14 + $0xb98] sm:$0xff]  ;;  %v1717_v58 = vunpack.c.h.s8.bf16 %v837_v49  ;;  %v1734_v62 = vunpack.c.l.s8.bf16 %v854_v36  ;;  %v1750_v3 = vunpack.c.h.s8.bf16 %v854_v36 }
 0x16a   : > { %2171 = vmatpush1.bf16.msra.mxu0 %v1573_v41  ;;  %2335 = vmatpush1.bf16.msra.mxu1 %v1575_v0  ;;  %v1736_v41 = vunpack.c.l.s8.bf16 %v856_v57  ;;  %v853_v0 = vld [vmem:[%s7984_s14 + $0xb80] sm:$0xff] }
 0x16b   : > { %2172 = vmatprep.subr.bf16.mxu0 %v1590_v1  ;;  %2336 = vmatprep.subr.bf16.mxu1 %v1592_v35  ;;  %v855_v1 = vld [vmem:[%s7984_s14 + $0xb90] sm:$0xff]  ;;  %v1733_v35 = vunpack.c.l.s8.bf16 %v853_v0 }
 0x16c   : > { %v1735_v2 = vunpack.c.l.s8.bf16 %v855_v1  ;;  %v1751_v8 = vunpack.c.h.s8.bf16 %v855_v1 }
 0x16e   : > { %2173 = vmatpush1.bf16.msra.mxu0 %v1589_v4  ;;  %2337 = vmatpush1.bf16.msra.mxu1 %v1591_v5  ;;  %v1752_v4 = vunpack.c.h.s8.bf16 %v856_v57  ;;  %v870_v5 = vld [vmem:[%s7984_s14 + $0xc08] sm:$0xff] }
 0x16f   : > { %2174 = vmatprep.subr.bf16.mxu0 %v1606_v6  ;;  %2338 = vmatprep.subr.bf16.mxu1 %v1608_v7  ;;  %v872_v6 = vld [vmem:[%s7984_s14 + $0xc18] sm:$0xff]  ;;  %v1749_v7 = vunpack.c.h.s8.bf16 %v853_v0  ;;  %v1766_v9 = vunpack.c.l.s8.bf16 %v870_v5  ;;  %v1782_v15 = vunpack.c.h.s8.bf16 %v870_v5 }
 0x172   : > { %2175 = vmatpush1.bf16.msra.mxu0 %v1605_v10  ;;  %2339 = vmatpush1.bf16.msra.mxu1 %v1607_v11  ;;  %v1768_v10 = vunpack.c.l.s8.bf16 %v872_v6  ;;  %v869_v11 = vld [vmem:[%s7984_s14 + $0xc00] sm:$0xff] }
 0x173   : > { %2176 = vmatprep.subr.bf16.mxu0 %v1622_v12  ;;  %2340 = vmatprep.subr.bf16.mxu1 %v1624_v13  ;;  %v871_v12 = vld [vmem:[%s7984_s14 + $0xc10] sm:$0xff]  ;;  %v1765_v13 = vunpack.c.l.s8.bf16 %v869_v11  ;;  %v1781_v20 = vunpack.c.h.s8.bf16 %v869_v11 }
 0x174   : > { %v1767_v14 = vunpack.c.l.s8.bf16 %v871_v12  ;;  %v1783_v21 = vunpack.c.h.s8.bf16 %v871_v12 }
 0x176   : > { %2177 = vmatpush1.bf16.msra.mxu0 %v1621_v16  ;;  %2341 = vmatpush1.bf16.msra.mxu1 %v1623_v17  ;;  %v1784_v16 = vunpack.c.h.s8.bf16 %v872_v6  ;;  %v886_v17 = vld [vmem:[%s7984_s14 + $0xc88] sm:$0xff] }
 0x177   : > { %2178 = vmatprep.subr.bf16.mxu0 %v1638_v18  ;;  %2342 = vmatprep.subr.bf16.mxu1 %v1640_v19  ;;  %v888_v18 = vld [vmem:[%s7984_s14 + $0xc98] sm:$0xff]  ;;  %v8168_v19 = vcombine.high %v8079_v60, %v8079_v60 }
 0x17a   : > { %2179 = vmatpush1.bf16.msra.mxu0 %v1637_v22  ;;  %2343 = vmatpush1.bf16.msra.mxu1 %v1639_v23  ;;  %v1798_v22 = vunpack.c.l.s8.bf16 %v886_v17  ;;  %v1800_v23 = vunpack.c.l.s8.bf16 %v888_v18 }
 0x17b   : > { %2180 = vmatprep.subr.bf16.mxu0 %v1654_v24  ;;  %2344 = vmatprep.subr.bf16.mxu1 %v1656_v25  ;;  %v885_v24 = vld [vmem:[%s7984_s14 + $0xc80] sm:$0xff]  ;;  %v887_v25 = vld [vmem:[%s7984_s14 + $0xc90] sm:$0xff] }
 0x17c   : > { %v1797_v27 = vunpack.c.l.s8.bf16 %v885_v24  ;;  %v1799_v28 = vunpack.c.l.s8.bf16 %v887_v25  ;;  %v1813_v34 = vunpack.c.h.s8.bf16 %v885_v24  ;;  %v1815_v37 = vunpack.c.h.s8.bf16 %v887_v25 }
 0x17e   : > { %2181 = vmatpush1.bf16.msra.mxu0 %v1653_v29  ;;  %2345 = vmatpush1.bf16.msra.mxu1 %v1655_v30  ;;  %v1814_v29 = vunpack.c.h.s8.bf16 %v886_v17  ;;  %v1816_v30 = vunpack.c.h.s8.bf16 %v888_v18 }
 0x17f   : > { %2182 = vmatprep.subr.bf16.mxu0 %v1670_v31  ;;  %2346 = vmatprep.subr.bf16.mxu1 %v1672_v33  ;;  %v902_v31 = vld [vmem:[%s7984_s14 + $0xd08] sm:$0xff]  ;;  %v904_v33 = vld [vmem:[%s7984_s14 + $0xd18] sm:$0xff] }
 0x182   : > { %2183 = vmatpush1.bf16.msra.mxu0 %v1669_v38  ;;  %2347 = vmatpush1.bf16.msra.mxu1 %v1671_v39  ;;  %v1830_v38 = vunpack.c.l.s8.bf16 %v902_v31  ;;  %v1832_v39 = vunpack.c.l.s8.bf16 %v904_v33 }
 0x183   : > { %2184 = vmatprep.subr.bf16.mxu0 %v1686_v40  ;;  %2348 = vmatprep.subr.bf16.mxu1 %v1688_v42  ;;  %v901_v40 = vld [vmem:[%s7984_s14 + $0xd00] sm:$0xff]  ;;  %v903_v42 = vld [vmem:[%s7984_s14 + $0xd10] sm:$0xff] }
 0x184   : > { %v1829_v43 = vunpack.c.l.s8.bf16 %v901_v40  ;;  %v1831_v44 = vunpack.c.l.s8.bf16 %v903_v42  ;;  %v1845_v49 = vunpack.c.h.s8.bf16 %v901_v40  ;;  %v1847_v50 = vunpack.c.h.s8.bf16 %v903_v42 }
 0x186   : > { %2185 = vmatpush1.bf16.msra.mxu0 %v1685_v45  ;;  %2349 = vmatpush1.bf16.msra.mxu1 %v1687_v46  ;;  %v1846_v45 = vunpack.c.h.s8.bf16 %v902_v31  ;;  %v1848_v46 = vunpack.c.h.s8.bf16 %v904_v33 }
 0x187   : > { %2186 = vmatprep.subr.bf16.mxu0 %v1702_v47  ;;  %2350 = vmatprep.subr.bf16.mxu1 %v1704_v48  ;;  %v918_v47 = vld [vmem:[%s7984_s14 + $0xd88] sm:$0xff]  ;;  %v920_v48 = vld [vmem:[%s7984_s14 + $0xd98] sm:$0xff] }
 0x18a   : > { %2187 = vmatpush1.bf16.msra.mxu0 %v1701_v52  ;;  %2351 = vmatpush1.bf16.msra.mxu1 %v1703_v53  ;;  %v1862_v52 = vunpack.c.l.s8.bf16 %v918_v47  ;;  %v1864_v53 = vunpack.c.l.s8.bf16 %v920_v48 }
 0x18b   : > { %2188 = vmatprep.subr.bf16.mxu0 %v1718_v54  ;;  %2352 = vmatprep.subr.bf16.mxu1 %v1720_v56  ;;  %v917_v54 = vld [vmem:[%s7984_s14 + $0xd80] sm:$0xff]  ;;  %v919_v56 = vld [vmem:[%s7984_s14 + $0xd90] sm:$0xff] }
 0x18c   : > { %v1861_v36 = vunpack.c.l.s8.bf16 %v917_v54  ;;  %v1863_v57 = vunpack.c.l.s8.bf16 %v919_v56  ;;  %v1877_v0 = vunpack.c.h.s8.bf16 %v917_v54  ;;  %v1879_v1 = vunpack.c.h.s8.bf16 %v919_v56 }
 0x18e   : > { %2189 = vmatpush1.bf16.msra.mxu0 %v1717_v58  ;;  %2353 = vmatpush1.bf16.msra.mxu1 %v1719_v59  ;;  %v1878_v58 = vunpack.c.h.s8.bf16 %v918_v47  ;;  %v1880_v59 = vunpack.c.h.s8.bf16 %v920_v48 }
 0x18f   : > { %2190 = vmatprep.subr.bf16.mxu0 %v1734_v62  ;;  %2354 = vmatprep.subr.bf16.mxu1 %v1736_v41  ;;  %v934_v62 = vld [vmem:[%s7984_s14 + $0xe08] sm:$0xff]  ;;  %v936_v41 = vld [vmem:[%s7984_s14 + $0xe18] sm:$0xff] }
 0x192   : > { %2191 = vmatpush1.bf16.msra.mxu0 %v1733_v35  ;;  %2355 = vmatpush1.bf16.msra.mxu1 %v1735_v2  ;;  %v1894_v35 = vunpack.c.l.s8.bf16 %v934_v62  ;;  %v1896_v2 = vunpack.c.l.s8.bf16 %v936_v41 }
 0x193   : > { %2192 = vmatprep.subr.bf16.mxu0 %v1750_v3  ;;  %2356 = vmatprep.subr.bf16.mxu1 %v1752_v4  ;;  %v933_v3 = vld [vmem:[%s7984_s14 + $0xe00] sm:$0xff]  ;;  %v935_v4 = vld [vmem:[%s7984_s14 + $0xe10] sm:$0xff] }
 0x194   : > { %v1893_v5 = vunpack.c.l.s8.bf16 %v933_v3  ;;  %v1895_v6 = vunpack.c.l.s8.bf16 %v935_v4  ;;  %v1909_v11 = vunpack.c.h.s8.bf16 %v933_v3  ;;  %v1911_v12 = vunpack.c.h.s8.bf16 %v935_v4  ;;  %v508_v3 = vld [vmem:[%s7984_s14 + $0xb8] sm:$0xff] }
 0x196   : > { %2193 = vmatpush1.bf16.msra.mxu0 %v1749_v7  ;;  %2357 = vmatpush1.bf16.msra.mxu1 %v1751_v8  ;;  %v1910_v7 = vunpack.c.h.s8.bf16 %v934_v62  ;;  %v1912_v8 = vunpack.c.h.s8.bf16 %v936_v41  ;;  %v8206_v62 = vcombine.high %v8082_v61, %v8082_v61 }
 0x197   : > { %2203 = vmatprep.subr.bf16.mxu0 %v1766_v9  ;;  %2367 = vmatprep.subr.bf16.mxu1 %v1768_v10  ;;  %v950_v9 = vld [vmem:[%s7984_s14 + $0xe88] sm:$0xff]  ;;  %v952_v10 = vld [vmem:[%s7984_s14 + $0xe98] sm:$0xff] }
 0x199   : > { %2195 = vmatmul.mubr.bf16.vlgmr.msra.gmra.mrb[0].mxu0 %v8082_v61  ;;  %2359 = vmatmul.mubr.bf16.vlgmr.msra.gmra.mrb[0].mxu1 %v8082_v61 }
 0x19a   : > { %2204 = vmatpush1.bf16.msra.mxu0 %v1765_v13  ;;  %2368 = vmatpush1.bf16.msra.mxu1 %v1767_v14  ;;  %v1926_v13 = vunpack.c.l.s8.bf16 %v950_v9  ;;  %v1928_v14 = vunpack.c.l.s8.bf16 %v952_v10 }
 0x19b   : > { %2205 = vmatprep.subr.bf16.mxu0 %v1782_v15  ;;  %2369 = vmatprep.subr.bf16.mxu1 %v1784_v16  ;;  %v949_v15 = vld [vmem:[%s7984_s14 + $0xe80] sm:$0xff]  ;;  %v951_v16 = vld [vmem:[%s7984_s14 + $0xe90] sm:$0xff] }
 0x19c   : > { %2235 = vmatprep.mubr.bf16.mxu0 %v8168_v19  ;;  %2399 = vmatprep.mubr.bf16.mxu1 %v8168_v19  ;;  %v1925_v17 = vunpack.c.l.s8.bf16 %v949_v15  ;;  %v1927_v18 = vunpack.c.l.s8.bf16 %v951_v16  ;;  %v1941_v24 = vunpack.c.h.s8.bf16 %v949_v15  ;;  %v1943_v25 = vunpack.c.h.s8.bf16 %v951_v16  ;;  %v524_v15 = vld [vmem:[%s7984_s14 + $0x138] sm:$0xff] }
 0x19e   : > { %2206 = vmatpush1.bf16.msra.mxu0 %v1781_v20  ;;  %2370 = vmatpush1.bf16.msra.mxu1 %v1783_v21  ;;  %v1942_v20 = vunpack.c.h.s8.bf16 %v950_v9  ;;  %v1944_v21 = vunpack.c.h.s8.bf16 %v952_v10  ;;  %v507_v9 = vld [vmem:[%s7984_s14 + $0xb0] sm:$0xff] }
 0x19f   : > { %2207 = vmatprep.subr.bf16.mxu0 %v1798_v22  ;;  %2371 = vmatprep.subr.bf16.mxu1 %v1800_v23  ;;  %v966_v22 = vld [vmem:[%s7984_s14 + $0xf08] sm:$0xff]  ;;  %v968_v23 = vld [vmem:[%s7984_s14 + $0xf18] sm:$0xff] }
 0x1a2   : > { %2208 = vmatpush1.bf16.msra.mxu0 %v1797_v27  ;;  %2372 = vmatpush1.bf16.msra.mxu1 %v1799_v28  ;;  %v1958_v27 = vunpack.c.l.s8.bf16 %v966_v22  ;;  %v1960_v28 = vunpack.c.l.s8.bf16 %v968_v23 }
 0x1a3   : > { %2209 = vmatprep.subr.bf16.mxu0 %v1814_v29  ;;  %2373 = vmatprep.subr.bf16.mxu1 %v1816_v30  ;;  %v965_v29 = vld [vmem:[%s7984_s14 + $0xf00] sm:$0xff]  ;;  %v967_v30 = vld [vmem:[%s7984_s14 + $0xf10] sm:$0xff] }
 0x1a4   : > { %v1957_v31 = vunpack.c.l.s8.bf16 %v965_v29  ;;  %v1959_v33 = vunpack.c.l.s8.bf16 %v967_v30  ;;  %v1973_v40 = vunpack.c.h.s8.bf16 %v965_v29  ;;  %v1975_v42 = vunpack.c.h.s8.bf16 %v967_v30  ;;  %v540_v29 = vld [vmem:[%s7984_s14 + $0x1b8] sm:$0xff] }
 0x1a6   : > { %2210 = vmatpush1.bf16.msra.mxu0 %v1813_v34  ;;  %2374 = vmatpush1.bf16.msra.mxu1 %v1815_v37  ;;  %v1974_v34 = vunpack.c.h.s8.bf16 %v966_v22  ;;  %v1976_v37 = vunpack.c.h.s8.bf16 %v968_v23  ;;  %v523_v22 = vld [vmem:[%s7984_s14 + $0x130] sm:$0xff] }
 0x1a7   : > { %2211 = vmatprep.subr.bf16.mxu0 %v1830_v38  ;;  %2375 = vmatprep.subr.bf16.mxu1 %v1832_v39  ;;  %v982_v38 = vld [vmem:[%s7984_s14 + $0xf88] sm:$0xff]  ;;  %v984_v39 = vld [vmem:[%s7984_s14 + $0xf98] sm:$0xff] }
 0x1aa   : > { %2212 = vmatpush1.bf16.msra.mxu0 %v1829_v43  ;;  %2376 = vmatpush1.bf16.msra.mxu1 %v1831_v44  ;;  %v1990_v43 = vunpack.c.l.s8.bf16 %v982_v38  ;;  %v1992_v44 = vunpack.c.l.s8.bf16 %v984_v39 }
 0x1ab   : > { %2213 = vmatprep.subr.bf16.mxu0 %v1846_v45  ;;  %2377 = vmatprep.subr.bf16.mxu1 %v1848_v46  ;;  %v981_v45 = vld [vmem:[%s7984_s14 + $0xf80] sm:$0xff]  ;;  %v983_v46 = vld [vmem:[%s7984_s14 + $0xf90] sm:$0xff] }
 0x1ac   : > { %v1989_v47 = vunpack.c.l.s8.bf16 %v981_v45  ;;  %v1991_v48 = vunpack.c.l.s8.bf16 %v983_v46  ;;  %v2005_v54 = vunpack.c.h.s8.bf16 %v981_v45  ;;  %v2007_v56 = vunpack.c.h.s8.bf16 %v983_v46  ;;  %v556_v45 = vld [vmem:[%s7984_s14 + $0x238] sm:$0xff] }
 0x1ae   : > { %2214 = vmatpush1.bf16.msra.mxu0 %v1845_v49  ;;  %2378 = vmatpush1.bf16.msra.mxu1 %v1847_v50  ;;  %v2006_v49 = vunpack.c.h.s8.bf16 %v982_v38  ;;  %v2008_v50 = vunpack.c.h.s8.bf16 %v984_v39  ;;  %v539_v38 = vld [vmem:[%s7984_s14 + $0x1b0] sm:$0xff] }
 0x1af   : > { %2215 = vmatprep.subr.bf16.mxu0 %v1862_v52  ;;  %2379 = vmatprep.subr.bf16.mxu1 %v1864_v53  ;;  %v490_v52 = vld [vmem:[%s7984_s14 + $0x28] sm:$0xff]  ;;  %v492_v53 = vld [vmem:[%s7984_s14 + $0x38] sm:$0xff] }
 0x1b2   : > { %2216 = vmatpush1.bf16.msra.mxu0 %v1861_v36  ;;  %2380 = vmatpush1.bf16.msra.mxu1 %v1863_v57  ;;  %v1002_v36 = vunpack.c.l.s8.bf16 %v490_v52  ;;  %v1004_v57 = vunpack.c.l.s8.bf16 %v492_v53 }
 0x1b3   : > { %2217 = vmatprep.subr.bf16.mxu0 %v1878_v58  ;;  %2381 = vmatprep.subr.bf16.mxu1 %v1880_v59  ;;  %v489_v58 = vld [vmem:[%s7984_s14 + $0x20] sm:$0xff]  ;;  %v491_v59 = vld [vmem:[%s7984_s14 + $0x30] sm:$0xff] }
 0x1b4   : > { %v1001_v41 = vunpack.c.l.s8.bf16 %v489_v58  ;;  %v1017_v4 = vunpack.c.h.s8.bf16 %v489_v58  ;;  %v572_v58 = vld [vmem:[%s7984_s14 + $0x2b8] sm:$0xff] }
 0x1b6   : > { %2218 = vmatpush1.bf16.msra.mxu0 %v1877_v0  ;;  %2382 = vmatpush1.bf16.msra.mxu1 %v1879_v1  ;;  %v1003_v0 = vunpack.c.l.s8.bf16 %v491_v59  ;;  %v1018_v1 = vunpack.c.h.s8.bf16 %v490_v52  ;;  %v555_v52 = vld [vmem:[%s7984_s14 + $0x230] sm:$0xff] }
 0x1b7   : > { %2219 = vmatprep.subr.bf16.mxu0 %v1894_v35  ;;  %2383 = vmatprep.subr.bf16.mxu1 %v1896_v2  ;;  %v1020_v35 = vunpack.c.h.s8.bf16 %v492_v53  ;;  %v506_v2 = vld [vmem:[%s7984_s14 + $0xa8] sm:$0xff] }
 0x1ba   : > { %2220 = vmatpush1.bf16.msra.mxu0 %v1893_v5  ;;  %2384 = vmatpush1.bf16.msra.mxu1 %v1895_v6  ;;  %v1019_v5 = vunpack.c.h.s8.bf16 %v491_v59  ;;  %v1034_v6 = vunpack.c.l.s8.bf16 %v506_v2 }
 0x1bb   : > { %2221 = vmatprep.subr.bf16.mxu0 %v1910_v7  ;;  %2385 = vmatprep.subr.bf16.mxu1 %v1912_v8  ;;  %v1036_v7 = vunpack.c.l.s8.bf16 %v508_v3  ;;  %v505_v8 = vld [vmem:[%s7984_s14 + $0xa0] sm:$0xff] }
 0x1bc   : > { %v1033_v10 = vunpack.c.l.s8.bf16 %v505_v8  ;;  %v1049_v16 = vunpack.c.h.s8.bf16 %v505_v8  ;;  %v588_v8 = vld [vmem:[%s7984_s14 + $0x338] sm:$0xff] }
 0x1be   : > { %2222 = vmatpush1.bf16.msra.mxu0 %v1909_v11  ;;  %2386 = vmatpush1.bf16.msra.mxu1 %v1911_v12  ;;  %v1035_v11 = vunpack.c.l.s8.bf16 %v507_v9  ;;  %v1050_v12 = vunpack.c.h.s8.bf16 %v506_v2  ;;  %v571_v2 = vld [vmem:[%s7984_s14 + $0x2b0] sm:$0xff] }
 0x1bf   : > { %2223 = vmatprep.subr.bf16.mxu0 %v1926_v13  ;;  %2387 = vmatprep.subr.bf16.mxu1 %v1928_v14  ;;  %v1052_v13 = vunpack.c.h.s8.bf16 %v508_v3  ;;  %v522_v14 = vld [vmem:[%s7984_s14 + $0x128] sm:$0xff] }
 0x1c2   : > { %2224 = vmatpush1.bf16.msra.mxu0 %v1925_v17  ;;  %2388 = vmatpush1.bf16.msra.mxu1 %v1927_v18  ;;  %v1051_v17 = vunpack.c.h.s8.bf16 %v507_v9  ;;  %v1066_v18 = vunpack.c.l.s8.bf16 %v522_v14 }
 0x1c3   : > { %2225 = vmatprep.subr.bf16.mxu0 %v1942_v20  ;;  %2389 = vmatprep.subr.bf16.mxu1 %v1944_v21  ;;  %v1068_v20 = vunpack.c.l.s8.bf16 %v524_v15  ;;  %v521_v21 = vld [vmem:[%s7984_s14 + $0x120] sm:$0xff] }
 0x1c4   : > { %v1065_v23 = vunpack.c.l.s8.bf16 %v521_v21  ;;  %v1081_v30 = vunpack.c.h.s8.bf16 %v521_v21  ;;  %v604_v21 = vld [vmem:[%s7984_s14 + $0x3b8] sm:$0xff] }
 0x1c6   : > { %2226 = vmatpush1.bf16.msra.mxu0 %v1941_v24  ;;  %2390 = vmatpush1.bf16.msra.mxu1 %v1943_v25  ;;  %v1067_v24 = vunpack.c.l.s8.bf16 %v523_v22  ;;  %v1082_v25 = vunpack.c.h.s8.bf16 %v522_v14  ;;  %v587_v14 = vld [vmem:[%s7984_s14 + $0x330] sm:$0xff] }
 0x1c7   : > { %2227 = vmatprep.subr.bf16.mxu0 %v1958_v27  ;;  %2391 = vmatprep.subr.bf16.mxu1 %v1960_v28  ;;  %v1084_v27 = vunpack.c.h.s8.bf16 %v524_v15  ;;  %v538_v28 = vld [vmem:[%s7984_s14 + $0x1a8] sm:$0xff] }
 0x1ca   : > { %2228 = vmatpush1.bf16.msra.mxu0 %v1957_v31  ;;  %2392 = vmatpush1.bf16.msra.mxu1 %v1959_v33  ;;  %v1083_v31 = vunpack.c.h.s8.bf16 %v523_v22  ;;  %v1098_v33 = vunpack.c.l.s8.bf16 %v538_v28 }
 0x1cb   : > { %2229 = vmatprep.subr.bf16.mxu0 %v1974_v34  ;;  %2393 = vmatprep.subr.bf16.mxu1 %v1976_v37  ;;  %v1100_v34 = vunpack.c.l.s8.bf16 %v540_v29  ;;  %v537_v37 = vld [vmem:[%s7984_s14 + $0x1a0] sm:$0xff] }
 0x1cc   : > { %v1097_v39 = vunpack.c.l.s8.bf16 %v537_v37  ;;  %v1113_v46 = vunpack.c.h.s8.bf16 %v537_v37  ;;  %v620_v37 = vld [vmem:[%s7984_s14 + $0x438] sm:$0xff] }
 0x1ce   : > { %2230 = vmatpush1.bf16.msra.mxu0 %v1973_v40  ;;  %2394 = vmatpush1.bf16.msra.mxu1 %v1975_v42  ;;  %v1099_v40 = vunpack.c.l.s8.bf16 %v539_v38  ;;  %v1114_v42 = vunpack.c.h.s8.bf16 %v538_v28  ;;  %v603_v28 = vld [vmem:[%s7984_s14 + $0x3b0] sm:$0xff] }
 0x1cf   : > { %2231 = vmatprep.subr.bf16.mxu0 %v1990_v43  ;;  %2395 = vmatprep.subr.bf16.mxu1 %v1992_v44  ;;  %v1116_v43 = vunpack.c.h.s8.bf16 %v540_v29  ;;  %v554_v44 = vld [vmem:[%s7984_s14 + $0x228] sm:$0xff] }
 0x1d2   : > { %2232 = vmatpush1.bf16.msra.mxu0 %v1989_v47  ;;  %2396 = vmatpush1.bf16.msra.mxu1 %v1991_v48  ;;  %v1115_v47 = vunpack.c.h.s8.bf16 %v539_v38  ;;  %v1130_v48 = vunpack.c.l.s8.bf16 %v554_v44 }
 0x1d3   : > { %2233 = vmatprep.subr.bf16.mxu0 %v2006_v49  ;;  %2397 = vmatprep.subr.bf16.mxu1 %v2008_v50  ;;  %v1132_v49 = vunpack.c.l.s8.bf16 %v556_v45  ;;  %v553_v50 = vld [vmem:[%s7984_s14 + $0x220] sm:$0xff] }
 0x1d4   : > { %v1129_v53 = vunpack.c.l.s8.bf16 %v553_v50  ;;  %v1145_v59 = vunpack.c.h.s8.bf16 %v553_v50  ;;  %v636_v50 = vld [vmem:[%s7984_s14 + $0x4b8] sm:$0xff] }
 0x1d6   : > { %2234 = vmatpush1.bf16.msra.mxu0 %v2005_v54  ;;  %2398 = vmatpush1.bf16.msra.mxu1 %v2007_v56  ;;  %v1131_v54 = vunpack.c.l.s8.bf16 %v555_v52  ;;  %v1146_v56 = vunpack.c.h.s8.bf16 %v554_v44  ;;  %v619_v44 = vld [vmem:[%s7984_s14 + $0x430] sm:$0xff] }
 0x1d7   : > { %2408 = vmatprep.subr.bf16.mxu0 %v1002_v36  ;;  %2572 = vmatprep.subr.bf16.mxu1 %v1004_v57  ;;  %v1148_v36 = vunpack.c.h.s8.bf16 %v556_v45  ;;  %v570_v57 = vld [vmem:[%s7984_s14 + $0x2a8] sm:$0xff] }
 0x1d9   : > { %2236 = vmatmul.mubr.bf16.vlgmr.msra.gmra.mrb[0].mxu0 %v8206_v62  ;;  %2400 = vmatmul.mubr.bf16.vlgmr.msra.gmra.mrb[0].mxu1 %v8206_v62 }
 0x1da   : > { %2409 = vmatpush1.bf16.msra.mxu0 %v1001_v41  ;;  %2573 = vmatpush1.bf16.msra.mxu1 %v1003_v0  ;;  %v1147_v41 = vunpack.c.h.s8.bf16 %v555_v52  ;;  %v1162_v0 = vunpack.c.l.s8.bf16 %v570_v57 }
 0x1db   : > { %2410 = vmatprep.subr.bf16.mxu0 %v1018_v1  ;;  %2574 = vmatprep.subr.bf16.mxu1 %v1020_v35  ;;  %v1164_v1 = vunpack.c.l.s8.bf16 %v572_v58  ;;  %v569_v35 = vld [vmem:[%s7984_s14 + $0x2a0] sm:$0xff] }
 0x1dc   : > { %2440 = vmatprep.mubr.bf16.mxu0 %v8047_v51  ;;  %2604 = vmatprep.mubr.bf16.mxu1 %v8047_v51  ;;  %v1161_v3 = vunpack.c.l.s8.bf16 %v569_v35  ;;  %v1177_v9 = vunpack.c.h.s8.bf16 %v569_v35  ;;  %v652_v35 = vld [vmem:[%s7984_s14 + $0x538] sm:$0xff] }
 0x1de   : > { %2411 = vmatpush1.bf16.msra.mxu0 %v1017_v4  ;;  %2575 = vmatpush1.bf16.msra.mxu1 %v1019_v5  ;;  %v1163_v4 = vunpack.c.l.s8.bf16 %v571_v2  ;;  %v1178_v5 = vunpack.c.h.s8.bf16 %v570_v57  ;;  %v635_v57 = vld [vmem:[%s7984_s14 + $0x4b0] sm:$0xff] }
 0x1df   : > { %2412 = vmatprep.subr.bf16.mxu0 %v1034_v6  ;;  %2576 = vmatprep.subr.bf16.mxu1 %v1036_v7  ;;  %v1180_v6 = vunpack.c.h.s8.bf16 %v572_v58  ;;  %v586_v7 = vld [vmem:[%s7984_s14 + $0x328] sm:$0xff] }
 0x1e2   : > { %2413 = vmatpush1.bf16.msra.mxu0 %v1033_v10  ;;  %2577 = vmatpush1.bf16.msra.mxu1 %v1035_v11  ;;  %v1179_v10 = vunpack.c.h.s8.bf16 %v571_v2  ;;  %v1194_v11 = vunpack.c.l.s8.bf16 %v586_v7 }
 0x1e3   : > { %2414 = vmatprep.subr.bf16.mxu0 %v1050_v12  ;;  %2578 = vmatprep.subr.bf16.mxu1 %v1052_v13  ;;  %v1196_v12 = vunpack.c.l.s8.bf16 %v588_v8  ;;  %v585_v13 = vld [vmem:[%s7984_s14 + $0x320] sm:$0xff] }
 0x1e4   : > { %v1193_v15 = vunpack.c.l.s8.bf16 %v585_v13  ;;  %v1209_v22 = vunpack.c.h.s8.bf16 %v585_v13  ;;  %v668_v13 = vld [vmem:[%s7984_s14 + $0x5b8] sm:$0xff] }
 0x1e6   : > { %2415 = vmatpush1.bf16.msra.mxu0 %v1049_v16  ;;  %2579 = vmatpush1.bf16.msra.mxu1 %v1051_v17  ;;  %v1195_v16 = vunpack.c.l.s8.bf16 %v587_v14  ;;  %v1210_v17 = vunpack.c.h.s8.bf16 %v586_v7  ;;  %v651_v7 = vld [vmem:[%s7984_s14 + $0x530] sm:$0xff] }
 0x1e7   : > { %2416 = vmatprep.subr.bf16.mxu0 %v1066_v18  ;;  %2580 = vmatprep.subr.bf16.mxu1 %v1068_v20  ;;  %v1212_v18 = vunpack.c.h.s8.bf16 %v588_v8  ;;  %v602_v20 = vld [vmem:[%s7984_s14 + $0x3a8] sm:$0xff] }
 0x1ea   : > { %2417 = vmatpush1.bf16.msra.mxu0 %v1065_v23  ;;  %2581 = vmatpush1.bf16.msra.mxu1 %v1067_v24  ;;  %v1211_v23 = vunpack.c.h.s8.bf16 %v587_v14  ;;  %v1226_v24 = vunpack.c.l.s8.bf16 %v602_v20 }
 0x1eb   : > { %2418 = vmatprep.subr.bf16.mxu0 %v1082_v25  ;;  %2582 = vmatprep.subr.bf16.mxu1 %v1084_v27  ;;  %v1228_v25 = vunpack.c.l.s8.bf16 %v604_v21  ;;  %v601_v27 = vld [vmem:[%s7984_s14 + $0x3a0] sm:$0xff] }
 0x1ec   : > { %v1225_v29 = vunpack.c.l.s8.bf16 %v601_v27  ;;  %v1241_v38 = vunpack.c.h.s8.bf16 %v601_v27  ;;  %v684_v27 = vld [vmem:[%s7984_s14 + $0x638] sm:$0xff] }
 0x1ee   : > { %2419 = vmatpush1.bf16.msra.mxu0 %v1081_v30  ;;  %2583 = vmatpush1.bf16.msra.mxu1 %v1083_v31  ;;  %v1227_v30 = vunpack.c.l.s8.bf16 %v603_v28  ;;  %v1242_v31 = vunpack.c.h.s8.bf16 %v602_v20  ;;  %v667_v20 = vld [vmem:[%s7984_s14 + $0x5b0] sm:$0xff] }
 0x1ef   : > { %2420 = vmatprep.subr.bf16.mxu0 %v1098_v33  ;;  %2584 = vmatprep.subr.bf16.mxu1 %v1100_v34  ;;  %v1244_v33 = vunpack.c.h.s8.bf16 %v604_v21  ;;  %v618_v34 = vld [vmem:[%s7984_s14 + $0x428] sm:$0xff] }
 0x1f2   : > { %2421 = vmatpush1.bf16.msra.mxu0 %v1097_v39  ;;  %2585 = vmatpush1.bf16.msra.mxu1 %v1099_v40  ;;  %v1243_v39 = vunpack.c.h.s8.bf16 %v603_v28  ;;  %v1258_v40 = vunpack.c.l.s8.bf16 %v618_v34 }
 0x1f3   : > { %2422 = vmatprep.subr.bf16.mxu0 %v1114_v42  ;;  %2586 = vmatprep.subr.bf16.mxu1 %v1116_v43  ;;  %v1260_v42 = vunpack.c.l.s8.bf16 %v620_v37  ;;  %v617_v43 = vld [vmem:[%s7984_s14 + $0x420] sm:$0xff] }
 0x1f4   : > { %v1257_v45 = vunpack.c.l.s8.bf16 %v617_v43  ;;  %v1273_v52 = vunpack.c.h.s8.bf16 %v617_v43  ;;  %v700_v43 = vld [vmem:[%s7984_s14 + $0x6b8] sm:$0xff] }
 0x1f6   : > { %2423 = vmatpush1.bf16.msra.mxu0 %v1113_v46  ;;  %2587 = vmatpush1.bf16.msra.mxu1 %v1115_v47  ;;  %v1259_v46 = vunpack.c.l.s8.bf16 %v619_v44  ;;  %v1274_v47 = vunpack.c.h.s8.bf16 %v618_v34  ;;  %v683_v34 = vld [vmem:[%s7984_s14 + $0x630] sm:$0xff] }
 0x1f7   : > { %2424 = vmatprep.subr.bf16.mxu0 %v1130_v48  ;;  %2588 = vmatprep.subr.bf16.mxu1 %v1132_v49  ;;  %v1276_v48 = vunpack.c.h.s8.bf16 %v620_v37  ;;  %v634_v49 = vld [vmem:[%s7984_s14 + $0x4a8] sm:$0xff] }
 0x1fa   : > { %2425 = vmatpush1.bf16.msra.mxu0 %v1129_v53  ;;  %2589 = vmatpush1.bf16.msra.mxu1 %v1131_v54  ;;  %v1275_v53 = vunpack.c.h.s8.bf16 %v619_v44  ;;  %v1290_v54 = vunpack.c.l.s8.bf16 %v634_v49 }
 0x1fb   : > { %2426 = vmatprep.subr.bf16.mxu0 %v1146_v56  ;;  %2590 = vmatprep.subr.bf16.mxu1 %v1148_v36  ;;  %v1292_v56 = vunpack.c.l.s8.bf16 %v636_v50  ;;  %v633_v36 = vld [vmem:[%s7984_s14 + $0x4a0] sm:$0xff] }
 0x1fc   : > { %v1289_v58 = vunpack.c.l.s8.bf16 %v633_v36  ;;  %v1305_v2 = vunpack.c.h.s8.bf16 %v633_v36  ;;  %v716_v36 = vld [vmem:[%s7984_s14 + $0x738] sm:$0xff] }
 0x1fe   : > { %2427 = vmatpush1.bf16.msra.mxu0 %v1145_v59  ;;  %2591 = vmatpush1.bf16.msra.mxu1 %v1147_v41  ;;  %v1291_v59 = vunpack.c.l.s8.bf16 %v635_v57  ;;  %v1306_v41 = vunpack.c.h.s8.bf16 %v634_v49  ;;  %v699_v49 = vld [vmem:[%s7984_s14 + $0x6b0] sm:$0xff] }
 0x1ff   : > { %2428 = vmatprep.subr.bf16.mxu0 %v1162_v0  ;;  %2592 = vmatprep.subr.bf16.mxu1 %v1164_v1  ;;  %v1308_v0 = vunpack.c.h.s8.bf16 %v636_v50  ;;  %v650_v1 = vld [vmem:[%s7984_s14 + $0x528] sm:$0xff] }
 0x202   : > { %2429 = vmatpush1.bf16.msra.mxu0 %v1161_v3  ;;  %2593 = vmatpush1.bf16.msra.mxu1 %v1163_v4  ;;  %v1307_v3 = vunpack.c.h.s8.bf16 %v635_v57  ;;  %v1322_v4 = vunpack.c.l.s8.bf16 %v650_v1 }
 0x203   : > { %2430 = vmatprep.subr.bf16.mxu0 %v1178_v5  ;;  %2594 = vmatprep.subr.bf16.mxu1 %v1180_v6  ;;  %v1324_v5 = vunpack.c.l.s8.bf16 %v652_v35  ;;  %v649_v6 = vld [vmem:[%s7984_s14 + $0x520] sm:$0xff] }
 0x204   : > { %v1321_v8 = vunpack.c.l.s8.bf16 %v649_v6  ;;  %v1337_v14 = vunpack.c.h.s8.bf16 %v649_v6  ;;  %v732_v6 = vld [vmem:[%s7984_s14 + $0x7b8] sm:$0xff] }
 0x206   : > { %2431 = vmatpush1.bf16.msra.mxu0 %v1177_v9  ;;  %2595 = vmatpush1.bf16.msra.mxu1 %v1179_v10  ;;  %v1323_v9 = vunpack.c.l.s8.bf16 %v651_v7  ;;  %v1338_v10 = vunpack.c.h.s8.bf16 %v650_v1  ;;  %v715_v1 = vld [vmem:[%s7984_s14 + $0x730] sm:$0xff] }
 0x207   : > { %2432 = vmatprep.subr.bf16.mxu0 %v1194_v11  ;;  %2596 = vmatprep.subr.bf16.mxu1 %v1196_v12  ;;  %v1340_v11 = vunpack.c.h.s8.bf16 %v652_v35  ;;  %v666_v12 = vld [vmem:[%s7984_s14 + $0x5a8] sm:$0xff] }
 0x20a   : > { %2433 = vmatpush1.bf16.msra.mxu0 %v1193_v15  ;;  %2597 = vmatpush1.bf16.msra.mxu1 %v1195_v16  ;;  %v1339_v15 = vunpack.c.h.s8.bf16 %v651_v7  ;;  %v1354_v16 = vunpack.c.l.s8.bf16 %v666_v12 }
 0x20b   : > { %2434 = vmatprep.subr.bf16.mxu0 %v1210_v17  ;;  %2598 = vmatprep.subr.bf16.mxu1 %v1212_v18  ;;  %v1356_v17 = vunpack.c.l.s8.bf16 %v668_v13  ;;  %v665_v18 = vld [vmem:[%s7984_s14 + $0x5a0] sm:$0xff] }
 0x20c   : > { %v1353_v21 = vunpack.c.l.s8.bf16 %v665_v18  ;;  %v1369_v28 = vunpack.c.h.s8.bf16 %v665_v18  ;;  %v748_v18 = vld [vmem:[%s7984_s14 + $0x838] sm:$0xff] }
 0x20e   : > { %2435 = vmatpush1.bf16.msra.mxu0 %v1209_v22  ;;  %2599 = vmatpush1.bf16.msra.mxu1 %v1211_v23  ;;  %v1355_v22 = vunpack.c.l.s8.bf16 %v667_v20  ;;  %v1370_v23 = vunpack.c.h.s8.bf16 %v666_v12  ;;  %v731_v12 = vld [vmem:[%s7984_s14 + $0x7b0] sm:$0xff] }
 0x20f   : > { %2436 = vmatprep.subr.bf16.mxu0 %v1226_v24  ;;  %2600 = vmatprep.subr.bf16.mxu1 %v1228_v25  ;;  %v1372_v24 = vunpack.c.h.s8.bf16 %v668_v13  ;;  %v682_v25 = vld [vmem:[%s7984_s14 + $0x628] sm:$0xff] }
 0x212   : > { %2437 = vmatpush1.bf16.msra.mxu0 %v1225_v29  ;;  %2601 = vmatpush1.bf16.msra.mxu1 %v1227_v30  ;;  %v1371_v29 = vunpack.c.h.s8.bf16 %v667_v20  ;;  %v1386_v30 = vunpack.c.l.s8.bf16 %v682_v25 }
 0x213   : > { %2438 = vmatprep.subr.bf16.mxu0 %v1242_v31  ;;  %2602 = vmatprep.subr.bf16.mxu1 %v1244_v33  ;;  %v1388_v31 = vunpack.c.l.s8.bf16 %v684_v27  ;;  %v681_v33 = vld [vmem:[%s7984_s14 + $0x620] sm:$0xff] }
 0x214   : > { %v1385_v37 = vunpack.c.l.s8.bf16 %v681_v33  ;;  %v1401_v44 = vunpack.c.h.s8.bf16 %v681_v33  ;;  %v764_v33 = vld [vmem:[%s7984_s14 + $0x8b8] sm:$0xff] }
 0x216   : > { %2439 = vmatpush1.bf16.msra.mxu0 %v1241_v38  ;;  %2603 = vmatpush1.bf16.msra.mxu1 %v1243_v39  ;;  %v1387_v38 = vunpack.c.l.s8.bf16 %v683_v34  ;;  %v1402_v39 = vunpack.c.h.s8.bf16 %v682_v25  ;;  %v747_v25 = vld [vmem:[%s7984_s14 + $0x830] sm:$0xff] }
 0x217   : > { %2449 = vmatprep.subr.bf16.mxu0 %v1258_v40  ;;  %2613 = vmatprep.subr.bf16.mxu1 %v1260_v42  ;;  %v1404_v40 = vunpack.c.h.s8.bf16 %v684_v27  ;;  %v698_v42 = vld [vmem:[%s7984_s14 + $0x6a8] sm:$0xff] }
 0x219   : > { %2441 = vmatmul.mubr.bf16.vlgmr.msra.gmra.mrb[4].mxu0 %v8076_v55  ;;  %2605 = vmatmul.mubr.bf16.vlgmr.msra.gmra.mrb[4].mxu1 %v8076_v55 }
 0x21a   : > { %2450 = vmatpush1.bf16.msra.mxu0 %v1257_v45  ;;  %2614 = vmatpush1.bf16.msra.mxu1 %v1259_v46  ;;  %v1403_v45 = vunpack.c.h.s8.bf16 %v683_v34  ;;  %v1418_v46 = vunpack.c.l.s8.bf16 %v698_v42 }
 0x21b   : > { %2451 = vmatprep.subr.bf16.mxu0 %v1274_v47  ;;  %2615 = vmatprep.subr.bf16.mxu1 %v1276_v48  ;;  %v1420_v47 = vunpack.c.l.s8.bf16 %v700_v43  ;;  %v697_v48 = vld [vmem:[%s7984_s14 + $0x6a0] sm:$0xff] }
 0x21c   : > { %2481 = vmatprep.mubr.bf16.mxu0 %v8088_v63  ;;  %2645 = vmatprep.mubr.bf16.mxu1 %v8088_v63  ;;  %v1417_v50 = vunpack.c.l.s8.bf16 %v697_v48  ;;  %v1433_v57 = vunpack.c.h.s8.bf16 %v697_v48  ;;  %v780_v48 = vld [vmem:[%s7984_s14 + $0x938] sm:$0xff] }
 0x21e   : > { %2452 = vmatpush1.bf16.msra.mxu0 %v1273_v52  ;;  %2616 = vmatpush1.bf16.msra.mxu1 %v1275_v53  ;;  %v1419_v52 = vunpack.c.l.s8.bf16 %v699_v49  ;;  %v1434_v53 = vunpack.c.h.s8.bf16 %v698_v42  ;;  %v763_v42 = vld [vmem:[%s7984_s14 + $0x8b0] sm:$0xff] }
 0x21f   : > { %2453 = vmatprep.subr.bf16.mxu0 %v1290_v54  ;;  %2617 = vmatprep.subr.bf16.mxu1 %v1292_v56  ;;  %v1436_v54 = vunpack.c.h.s8.bf16 %v700_v43  ;;  %v714_v56 = vld [vmem:[%s7984_s14 + $0x728] sm:$0xff] }
 0x222   : > { %2454 = vmatpush1.bf16.msra.mxu0 %v1289_v58  ;;  %2618 = vmatpush1.bf16.msra.mxu1 %v1291_v59  ;;  %v1435_v58 = vunpack.c.h.s8.bf16 %v699_v49  ;;  %v1450_v59 = vunpack.c.l.s8.bf16 %v714_v56 }
 0x223   : > { %2455 = vmatprep.subr.bf16.mxu0 %v1306_v41  ;;  %2619 = vmatprep.subr.bf16.mxu1 %v1308_v0  ;;  %v1452_v41 = vunpack.c.l.s8.bf16 %v716_v36  ;;  %v713_v0 = vld [vmem:[%s7984_s14 + $0x720] sm:$0xff] }
 0x224   : > { %v1449_v35 = vunpack.c.l.s8.bf16 %v713_v0  ;;  %v1465_v7 = vunpack.c.h.s8.bf16 %v713_v0  ;;  %v796_v0 = vld [vmem:[%s7984_s14 + $0x9b8] sm:$0xff] }
 0x226   : > { %2456 = vmatpush1.bf16.msra.mxu0 %v1305_v2  ;;  %2620 = vmatpush1.bf16.msra.mxu1 %v1307_v3  ;;  %v1451_v2 = vunpack.c.l.s8.bf16 %v715_v1  ;;  %v1466_v3 = vunpack.c.h.s8.bf16 %v714_v56  ;;  %v779_v56 = vld [vmem:[%s7984_s14 + $0x930] sm:$0xff] }
 0x227   : > { %2457 = vmatprep.subr.bf16.mxu0 %v1322_v4  ;;  %2621 = vmatprep.subr.bf16.mxu1 %v1324_v5  ;;  %v1468_v4 = vunpack.c.h.s8.bf16 %v716_v36  ;;  %v730_v5 = vld [vmem:[%s7984_s14 + $0x7a8] sm:$0xff] }
 0x22a   : > { %2458 = vmatpush1.bf16.msra.mxu0 %v1321_v8  ;;  %2622 = vmatpush1.bf16.msra.mxu1 %v1323_v9  ;;  %v1467_v8 = vunpack.c.h.s8.bf16 %v715_v1  ;;  %v1482_v9 = vunpack.c.l.s8.bf16 %v730_v5 }
 0x22b   : > { %2459 = vmatprep.subr.bf16.mxu0 %v1338_v10  ;;  %2623 = vmatprep.subr.bf16.mxu1 %v1340_v11  ;;  %v1484_v10 = vunpack.c.l.s8.bf16 %v732_v6  ;;  %v729_v11 = vld [vmem:[%s7984_s14 + $0x7a0] sm:$0xff] }
 0x22c   : > { %v1481_v13 = vunpack.c.l.s8.bf16 %v729_v11  ;;  %v1497_v20 = vunpack.c.h.s8.bf16 %v729_v11  ;;  %v812_v11 = vld [vmem:[%s7984_s14 + $0xa38] sm:$0xff] }
 0x22e   : > { %2460 = vmatpush1.bf16.msra.mxu0 %v1337_v14  ;;  %2624 = vmatpush1.bf16.msra.mxu1 %v1339_v15  ;;  %v1483_v14 = vunpack.c.l.s8.bf16 %v731_v12  ;;  %v1498_v15 = vunpack.c.h.s8.bf16 %v730_v5  ;;  %v795_v5 = vld [vmem:[%s7984_s14 + $0x9b0] sm:$0xff] }
 0x22f   : > { %2461 = vmatprep.subr.bf16.mxu0 %v1354_v16  ;;  %2625 = vmatprep.subr.bf16.mxu1 %v1356_v17  ;;  %v1500_v16 = vunpack.c.h.s8.bf16 %v732_v6  ;;  %v746_v17 = vld [vmem:[%s7984_s14 + $0x828] sm:$0xff] }
 0x232   : > { %2462 = vmatpush1.bf16.msra.mxu0 %v1353_v21  ;;  %2626 = vmatpush1.bf16.msra.mxu1 %v1355_v22  ;;  %v1499_v21 = vunpack.c.h.s8.bf16 %v731_v12  ;;  %v1514_v22 = vunpack.c.l.s8.bf16 %v746_v17 }
 0x233   : > { %2463 = vmatprep.subr.bf16.mxu0 %v1370_v23  ;;  %2627 = vmatprep.subr.bf16.mxu1 %v1372_v24  ;;  %v1516_v23 = vunpack.c.l.s8.bf16 %v748_v18  ;;  %v745_v24 = vld [vmem:[%s7984_s14 + $0x820] sm:$0xff] }
 0x234   : > { %v1513_v27 = vunpack.c.l.s8.bf16 %v745_v24  ;;  %v1529_v34 = vunpack.c.h.s8.bf16 %v745_v24  ;;  %v828_v24 = vld [vmem:[%s7984_s14 + $0xab8] sm:$0xff] }
 0x236   : > { %2464 = vmatpush1.bf16.msra.mxu0 %v1369_v28  ;;  %2628 = vmatpush1.bf16.msra.mxu1 %v1371_v29  ;;  %v1515_v28 = vunpack.c.l.s8.bf16 %v747_v25  ;;  %v1530_v29 = vunpack.c.h.s8.bf16 %v746_v17  ;;  %v811_v17 = vld [vmem:[%s7984_s14 + $0xa30] sm:$0xff] }
 0x237   : > { %2465 = vmatprep.subr.bf16.mxu0 %v1386_v30  ;;  %2629 = vmatprep.subr.bf16.mxu1 %v1388_v31  ;;  %v1532_v30 = vunpack.c.h.s8.bf16 %v748_v18  ;;  %v762_v31 = vld [vmem:[%s7984_s14 + $0x8a8] sm:$0xff] }
 0x23a   : > { %2466 = vmatpush1.bf16.msra.mxu0 %v1385_v37  ;;  %2630 = vmatpush1.bf16.msra.mxu1 %v1387_v38  ;;  %v1531_v37 = vunpack.c.h.s8.bf16 %v747_v25  ;;  %v1546_v38 = vunpack.c.l.s8.bf16 %v762_v31 }
 0x23b   : > { %2467 = vmatprep.subr.bf16.mxu0 %v1402_v39  ;;  %2631 = vmatprep.subr.bf16.mxu1 %v1404_v40  ;;  %v1548_v39 = vunpack.c.l.s8.bf16 %v764_v33  ;;  %v761_v40 = vld [vmem:[%s7984_s14 + $0x8a0] sm:$0xff] }
 0x23c   : > { %v1545_v43 = vunpack.c.l.s8.bf16 %v761_v40  ;;  %v1561_v49 = vunpack.c.h.s8.bf16 %v761_v40  ;;  %v844_v40 = vld [vmem:[%s7984_s14 + $0xb38] sm:$0xff] }
 0x23e   : > { %2468 = vmatpush1.bf16.msra.mxu0 %v1401_v44  ;;  %2632 = vmatpush1.bf16.msra.mxu1 %v1403_v45  ;;  %v1547_v44 = vunpack.c.l.s8.bf16 %v763_v42  ;;  %v1562_v45 = vunpack.c.h.s8.bf16 %v762_v31  ;;  %v827_v31 = vld [vmem:[%s7984_s14 + $0xab0] sm:$0xff] }
 0x23f   : > { %2469 = vmatprep.subr.bf16.mxu0 %v1418_v46  ;;  %2633 = vmatprep.subr.bf16.mxu1 %v1420_v47  ;;  %v1564_v46 = vunpack.c.h.s8.bf16 %v764_v33  ;;  %v778_v47 = vld [vmem:[%s7984_s14 + $0x928] sm:$0xff] }
 0x242   : > { %2470 = vmatpush1.bf16.msra.mxu0 %v1417_v50  ;;  %2634 = vmatpush1.bf16.msra.mxu1 %v1419_v52  ;;  %v1563_v50 = vunpack.c.h.s8.bf16 %v763_v42  ;;  %v1578_v52 = vunpack.c.l.s8.bf16 %v778_v47 }
 0x243   : > { %2471 = vmatprep.subr.bf16.mxu0 %v1434_v53  ;;  %2635 = vmatprep.subr.bf16.mxu1 %v1436_v54  ;;  %v1580_v53 = vunpack.c.l.s8.bf16 %v780_v48  ;;  %v777_v54 = vld [vmem:[%s7984_s14 + $0x920] sm:$0xff] }
 0x244   : > { %v1577_v36 = vunpack.c.l.s8.bf16 %v777_v54  ;;  %v1593_v1 = vunpack.c.h.s8.bf16 %v777_v54  ;;  %v860_v54 = vld [vmem:[%s7984_s14 + $0xbb8] sm:$0xff] }
 0x246   : > { %2472 = vmatpush1.bf16.msra.mxu0 %v1433_v57  ;;  %2636 = vmatpush1.bf16.msra.mxu1 %v1435_v58  ;;  %v1579_v57 = vunpack.c.l.s8.bf16 %v779_v56  ;;  %v1594_v58 = vunpack.c.h.s8.bf16 %v778_v47  ;;  %v843_v47 = vld [vmem:[%s7984_s14 + $0xb30] sm:$0xff] }
 0x247   : > { %2473 = vmatprep.subr.bf16.mxu0 %v1450_v59  ;;  %2637 = vmatprep.subr.bf16.mxu1 %v1452_v41  ;;  %v1596_v59 = vunpack.c.h.s8.bf16 %v780_v48  ;;  %v794_v41 = vld [vmem:[%s7984_s14 + $0x9a8] sm:$0xff] }
 0x24a   : > { %2474 = vmatpush1.bf16.msra.mxu0 %v1449_v35  ;;  %2638 = vmatpush1.bf16.msra.mxu1 %v1451_v2  ;;  %v1595_v35 = vunpack.c.h.s8.bf16 %v779_v56  ;;  %v1610_v2 = vunpack.c.l.s8.bf16 %v794_v41 }
 0x24b   : > { %2475 = vmatprep.subr.bf16.mxu0 %v1466_v3  ;;  %2639 = vmatprep.subr.bf16.mxu1 %v1468_v4  ;;  %v1612_v3 = vunpack.c.l.s8.bf16 %v796_v0  ;;  %v793_v4 = vld [vmem:[%s7984_s14 + $0x9a0] sm:$0xff] }
 0x24c   : > { %v1609_v6 = vunpack.c.l.s8.bf16 %v793_v4  ;;  %v1625_v12 = vunpack.c.h.s8.bf16 %v793_v4  ;;  %v876_v4 = vld [vmem:[%s7984_s14 + $0xc38] sm:$0xff] }
 0x24e   : > { %2476 = vmatpush1.bf16.msra.mxu0 %v1465_v7  ;;  %2640 = vmatpush1.bf16.msra.mxu1 %v1467_v8  ;;  %v1611_v7 = vunpack.c.l.s8.bf16 %v795_v5  ;;  %v1626_v8 = vunpack.c.h.s8.bf16 %v794_v41  ;;  %v859_v41 = vld [vmem:[%s7984_s14 + $0xbb0] sm:$0xff] }
 0x24f   : > { %2477 = vmatprep.subr.bf16.mxu0 %v1482_v9  ;;  %2641 = vmatprep.subr.bf16.mxu1 %v1484_v10  ;;  %v1628_v9 = vunpack.c.h.s8.bf16 %v796_v0  ;;  %v810_v10 = vld [vmem:[%s7984_s14 + $0xa28] sm:$0xff] }
 0x252   : > { %2478 = vmatpush1.bf16.msra.mxu0 %v1481_v13  ;;  %2642 = vmatpush1.bf16.msra.mxu1 %v1483_v14  ;;  %v1627_v13 = vunpack.c.h.s8.bf16 %v795_v5  ;;  %v1642_v14 = vunpack.c.l.s8.bf16 %v810_v10 }
 0x253   : > { %2479 = vmatprep.subr.bf16.mxu0 %v1498_v15  ;;  %2643 = vmatprep.subr.bf16.mxu1 %v1500_v16  ;;  %v1644_v15 = vunpack.c.l.s8.bf16 %v812_v11  ;;  %v809_v16 = vld [vmem:[%s7984_s14 + $0xa20] sm:$0xff] }
 0x254   : > { %v1641_v18 = vunpack.c.l.s8.bf16 %v809_v16  ;;  %v1657_v25 = vunpack.c.h.s8.bf16 %v809_v16  ;;  %v892_v16 = vld [vmem:[%s7984_s14 + $0xcb8] sm:$0xff] }
 0x256   : > { %2480 = vmatpush1.bf16.msra.mxu0 %v1497_v20  ;;  %2644 = vmatpush1.bf16.msra.mxu1 %v1499_v21  ;;  %v1643_v20 = vunpack.c.l.s8.bf16 %v811_v17  ;;  %v1658_v21 = vunpack.c.h.s8.bf16 %v810_v10  ;;  %v875_v10 = vld [vmem:[%s7984_s14 + $0xc30] sm:$0xff] }
 0x257   : > { %2490 = vmatprep.subr.bf16.mxu0 %v1514_v22  ;;  %2654 = vmatprep.subr.bf16.mxu1 %v1516_v23  ;;  %v1660_v22 = vunpack.c.h.s8.bf16 %v812_v11  ;;  %v826_v23 = vld [vmem:[%s7984_s14 + $0xaa8] sm:$0xff] }
 0x259   : > { %2482 = vmatmul.mubr.bf16.vlgmr.msra.gmra.mrb[4].mxu0 %v8126_v32  ;;  %2646 = vmatmul.mubr.bf16.vlgmr.msra.gmra.mrb[4].mxu1 %v8126_v32 }
 0x25a   : > { %2491 = vmatpush1.bf16.msra.mxu0 %v1513_v27  ;;  %2655 = vmatpush1.bf16.msra.mxu1 %v1515_v28  ;;  %v1659_v27 = vunpack.c.h.s8.bf16 %v811_v17  ;;  %v1674_v28 = vunpack.c.l.s8.bf16 %v826_v23 }
 0x25b   : > { %2492 = vmatprep.subr.bf16.mxu0 %v1530_v29  ;;  %2656 = vmatprep.subr.bf16.mxu1 %v1532_v30  ;;  %v1676_v29 = vunpack.c.l.s8.bf16 %v828_v24  ;;  %v825_v30 = vld [vmem:[%s7984_s14 + $0xaa0] sm:$0xff] }
 0x25c   : > { %2522 = vmatprep.mubr.bf16.mxu0 %v8079_v60  ;;  %2686 = vmatprep.mubr.bf16.mxu1 %v8079_v60  ;;  %v1673_v33 = vunpack.c.l.s8.bf16 %v825_v30  ;;  %v1689_v42 = vunpack.c.h.s8.bf16 %v825_v30  ;;  %v908_v30 = vld [vmem:[%s7984_s14 + $0xd38] sm:$0xff] }
 0x25e   : > { %2493 = vmatpush1.bf16.msra.mxu0 %v1529_v34  ;;  %2657 = vmatpush1.bf16.msra.mxu1 %v1531_v37  ;;  %v1675_v34 = vunpack.c.l.s8.bf16 %v827_v31  ;;  %v1690_v37 = vunpack.c.h.s8.bf16 %v826_v23  ;;  %v891_v23 = vld [vmem:[%s7984_s14 + $0xcb0] sm:$0xff] }
 0x25f   : > { %2494 = vmatprep.subr.bf16.mxu0 %v1546_v38  ;;  %2658 = vmatprep.subr.bf16.mxu1 %v1548_v39  ;;  %v1692_v38 = vunpack.c.h.s8.bf16 %v828_v24  ;;  %v842_v39 = vld [vmem:[%s7984_s14 + $0xb28] sm:$0xff] }
 0x262   : > { %2495 = vmatpush1.bf16.msra.mxu0 %v1545_v43  ;;  %2659 = vmatpush1.bf16.msra.mxu1 %v1547_v44  ;;  %v1691_v43 = vunpack.c.h.s8.bf16 %v827_v31  ;;  %v1706_v44 = vunpack.c.l.s8.bf16 %v842_v39 }
 0x263   : > { %2496 = vmatprep.subr.bf16.mxu0 %v1562_v45  ;;  %2660 = vmatprep.subr.bf16.mxu1 %v1564_v46  ;;  %v1708_v45 = vunpack.c.l.s8.bf16 %v844_v40  ;;  %v841_v46 = vld [vmem:[%s7984_s14 + $0xb20] sm:$0xff] }
 0x264   : > { %v1705_v48 = vunpack.c.l.s8.bf16 %v841_v46  ;;  %v1721_v56 = vunpack.c.h.s8.bf16 %v841_v46  ;;  %v924_v46 = vld [vmem:[%s7984_s14 + $0xdb8] sm:$0xff] }
 0x266   : > { %2497 = vmatpush1.bf16.msra.mxu0 %v1561_v49  ;;  %2661 = vmatpush1.bf16.msra.mxu1 %v1563_v50  ;;  %v1707_v49 = vunpack.c.l.s8.bf16 %v843_v47  ;;  %v1722_v50 = vunpack.c.h.s8.bf16 %v842_v39  ;;  %v907_v39 = vld [vmem:[%s7984_s14 + $0xd30] sm:$0xff] }
 0x267   : > { %2498 = vmatprep.subr.bf16.mxu0 %v1578_v52  ;;  %2662 = vmatprep.subr.bf16.mxu1 %v1580_v53  ;;  %v1724_v52 = vunpack.c.h.s8.bf16 %v844_v40  ;;  %v858_v53 = vld [vmem:[%s7984_s14 + $0xba8] sm:$0xff] }
 0x26a   : > { %2499 = vmatpush1.bf16.msra.mxu0 %v1577_v36  ;;  %2663 = vmatpush1.bf16.msra.mxu1 %v1579_v57  ;;  %v1723_v36 = vunpack.c.h.s8.bf16 %v843_v47  ;;  %v1738_v57 = vunpack.c.l.s8.bf16 %v858_v53 }
 0x26b   : > { %2500 = vmatprep.subr.bf16.mxu0 %v1594_v58  ;;  %2664 = vmatprep.subr.bf16.mxu1 %v1596_v59  ;;  %v1740_v58 = vunpack.c.l.s8.bf16 %v860_v54  ;;  %v857_v59 = vld [vmem:[%s7984_s14 + $0xba0] sm:$0xff] }
 0x26c   : > { %v1737_v0 = vunpack.c.l.s8.bf16 %v857_v59  ;;  %v1753_v5 = vunpack.c.h.s8.bf16 %v857_v59 }
 0x26e   : > { %2501 = vmatpush1.bf16.msra.mxu0 %v1593_v1  ;;  %2665 = vmatpush1.bf16.msra.mxu1 %v1595_v35  ;;  %v1739_v1 = vunpack.c.l.s8.bf16 %v859_v41  ;;  %v1754_v35 = vunpack.c.h.s8.bf16 %v858_v53  ;;  %v923_v53 = vld [vmem:[%s7984_s14 + $0xdb0] sm:$0xff] }
 0x26f   : > { %2502 = vmatprep.subr.bf16.mxu0 %v1610_v2  ;;  %2666 = vmatprep.subr.bf16.mxu1 %v1612_v3  ;;  %v1756_v2 = vunpack.c.h.s8.bf16 %v860_v54  ;;  %v874_v3 = vld [vmem:[%s7984_s14 + $0xc28] sm:$0xff] }
 0x272   : > { %2503 = vmatpush1.bf16.msra.mxu0 %v1609_v6  ;;  %2667 = vmatpush1.bf16.msra.mxu1 %v1611_v7  ;;  %v1755_v6 = vunpack.c.h.s8.bf16 %v859_v41  ;;  %v1770_v7 = vunpack.c.l.s8.bf16 %v874_v3 }
 0x273   : > { %2504 = vmatprep.subr.bf16.mxu0 %v1626_v8  ;;  %2668 = vmatprep.subr.bf16.mxu1 %v1628_v9  ;;  %v1772_v8 = vunpack.c.l.s8.bf16 %v876_v4  ;;  %v873_v9 = vld [vmem:[%s7984_s14 + $0xc20] sm:$0xff] }
 0x274   : > { %v1769_v11 = vunpack.c.l.s8.bf16 %v873_v9  ;;  %v1785_v17 = vunpack.c.h.s8.bf16 %v873_v9 }
 0x276   : > { %2505 = vmatpush1.bf16.msra.mxu0 %v1625_v12  ;;  %2669 = vmatpush1.bf16.msra.mxu1 %v1627_v13  ;;  %v1771_v12 = vunpack.c.l.s8.bf16 %v875_v10  ;;  %v1786_v13 = vunpack.c.h.s8.bf16 %v874_v3  ;;  %v1884_v3 = vunpack.c.h.s8.bf16 %v924_v46 }
 0x277   : > { %2506 = vmatprep.subr.bf16.mxu0 %v1642_v14  ;;  %2670 = vmatprep.subr.bf16.mxu1 %v1644_v15  ;;  %v1788_v14 = vunpack.c.h.s8.bf16 %v876_v4  ;;  %v890_v15 = vld [vmem:[%s7984_s14 + $0xca8] sm:$0xff] }
 0x278   : > { %v938_v4 = vld [vmem:[%s7984_s14 + $0xe28] sm:$0xff] }
 0x27a   : > { %2507 = vmatpush1.bf16.msra.mxu0 %v1641_v18  ;;  %2671 = vmatpush1.bf16.msra.mxu1 %v1643_v20  ;;  %v1787_v18 = vunpack.c.h.s8.bf16 %v875_v10  ;;  %v1802_v20 = vunpack.c.l.s8.bf16 %v890_v15  ;;  %v937_v10 = vld [vmem:[%s7984_s14 + $0xe20] sm:$0xff] }
 0x27b   : > { %2508 = vmatprep.subr.bf16.mxu0 %v1658_v21  ;;  %2672 = vmatprep.subr.bf16.mxu1 %v1660_v22  ;;  %v1804_v21 = vunpack.c.l.s8.bf16 %v892_v16  ;;  %v889_v22 = vld [vmem:[%s7984_s14 + $0xca0] sm:$0xff] }
 0x27c   : > { %v1801_v24 = vunpack.c.l.s8.bf16 %v889_v22  ;;  %v1817_v31 = vunpack.c.h.s8.bf16 %v889_v22 }
 0x27e   : > { %2509 = vmatpush1.bf16.msra.mxu0 %v1657_v25  ;;  %2673 = vmatpush1.bf16.msra.mxu1 %v1659_v27  ;;  %v1803_v25 = vunpack.c.l.s8.bf16 %v891_v23  ;;  %v1818_v27 = vunpack.c.h.s8.bf16 %v890_v15 }
 0x27f   : > { %2510 = vmatprep.subr.bf16.mxu0 %v1674_v28  ;;  %2674 = vmatprep.subr.bf16.mxu1 %v1676_v29  ;;  %v1820_v28 = vunpack.c.h.s8.bf16 %v892_v16  ;;  %v906_v29 = vld [vmem:[%s7984_s14 + $0xd28] sm:$0xff] }
 0x280   : > { %v954_v16 = vld [vmem:[%s7984_s14 + $0xea8] sm:$0xff] }
 0x282   : > { %2511 = vmatpush1.bf16.msra.mxu0 %v1673_v33  ;;  %2675 = vmatpush1.bf16.msra.mxu1 %v1675_v34  ;;  %v1819_v33 = vunpack.c.h.s8.bf16 %v891_v23  ;;  %v1834_v34 = vunpack.c.l.s8.bf16 %v906_v29  ;;  %v953_v23 = vld [vmem:[%s7984_s14 + $0xea0] sm:$0xff] }
 0x283   : > { %2512 = vmatprep.subr.bf16.mxu0 %v1690_v37  ;;  %2676 = vmatprep.subr.bf16.mxu1 %v1692_v38  ;;  %v1836_v37 = vunpack.c.l.s8.bf16 %v908_v30  ;;  %v905_v38 = vld [vmem:[%s7984_s14 + $0xd20] sm:$0xff] }
 0x284   : > { %v1833_v40 = vunpack.c.l.s8.bf16 %v905_v38  ;;  %v1849_v47 = vunpack.c.h.s8.bf16 %v905_v38 }
 0x286   : > { %2513 = vmatpush1.bf16.msra.mxu0 %v1689_v42  ;;  %2677 = vmatpush1.bf16.msra.mxu1 %v1691_v43  ;;  %v1835_v42 = vunpack.c.l.s8.bf16 %v907_v39  ;;  %v1850_v43 = vunpack.c.h.s8.bf16 %v906_v29 }
 0x287   : > { %2514 = vmatprep.subr.bf16.mxu0 %v1706_v44  ;;  %2678 = vmatprep.subr.bf16.mxu1 %v1708_v45  ;;  %v1852_v44 = vunpack.c.h.s8.bf16 %v908_v30  ;;  %v922_v45 = vld [vmem:[%s7984_s14 + $0xda8] sm:$0xff] }
 0x288   : > { %v970_v30 = vld [vmem:[%s7984_s14 + $0xf28] sm:$0xff] }
 0x28a   : > { %2515 = vmatpush1.bf16.msra.mxu0 %v1705_v48  ;;  %2679 = vmatpush1.bf16.msra.mxu1 %v1707_v49  ;;  %v1851_v48 = vunpack.c.h.s8.bf16 %v907_v39  ;;  %v1866_v49 = vunpack.c.l.s8.bf16 %v922_v45  ;;  %v969_v39 = vld [vmem:[%s7984_s14 + $0xf20] sm:$0xff] }
 0x28b   : > { %2516 = vmatprep.subr.bf16.mxu0 %v1722_v50  ;;  %2680 = vmatprep.subr.bf16.mxu1 %v1724_v52  ;;  %v1868_v50 = vunpack.c.l.s8.bf16 %v924_v46  ;;  %v921_v52 = vld [vmem:[%s7984_s14 + $0xda0] sm:$0xff]  ;;  %v986_v46 = vld [vmem:[%s7984_s14 + $0xfa8] sm:$0xff] }
 0x28c   : > { %v1865_v41 = vunpack.c.l.s8.bf16 %v921_v52 }
 0x28e   : > { %2517 = vmatpush1.bf16.msra.mxu0 %v1721_v56  ;;  %2681 = vmatpush1.bf16.msra.mxu1 %v1723_v36 }
 0x28f   : > { %2518 = vmatprep.subr.bf16.mxu0 %v1738_v57  ;;  %2682 = vmatprep.subr.bf16.mxu1 %v1740_v58 }
 0x292   : > { %2519 = vmatpush1.bf16.msra.mxu0 %v1737_v0  ;;  %2683 = vmatpush1.bf16.msra.mxu1 %v1739_v1  ;;  %v1867_v0 = vunpack.c.l.s8.bf16 %v923_v53 }
 0x293   : > { %2520 = vmatprep.subr.bf16.mxu0 %v1754_v35  ;;  %2684 = vmatprep.subr.bf16.mxu1 %v1756_v2  ;;  %v1882_v2 = vunpack.c.h.s8.bf16 %v922_v45 }
 0x296   : > { %2521 = vmatpush1.bf16.msra.mxu0 %v1753_v5  ;;  %2685 = vmatpush1.bf16.msra.mxu1 %v1755_v6  ;;  %v940_v5 = vld [vmem:[%s7984_s14 + $0xe38] sm:$0xff]  ;;  %v1881_v6 = vunpack.c.h.s8.bf16 %v921_v52 }
 0x297   : > { %2531 = vmatprep.subr.bf16.mxu0 %v1770_v7  ;;  %2695 = vmatprep.subr.bf16.mxu1 %v1772_v8  ;;  %v1883_v7 = vunpack.c.h.s8.bf16 %v923_v53  ;;  %v1898_v8 = vunpack.c.l.s8.bf16 %v938_v4  ;;  %v1900_v9 = vunpack.c.l.s8.bf16 %v940_v5  ;;  %v1916_v15 = vunpack.c.h.s8.bf16 %v940_v5  ;;  %v985_v53 = vld [vmem:[%s7984_s14 + $0xfa0] sm:$0xff] }
 0x299   : > { %2523 = vmatmul.mubr.bf16.vlgmr.msra.gmra.mrb[4].mxu0 %v8082_v61  ;;  %2687 = vmatmul.mubr.bf16.vlgmr.msra.gmra.mrb[4].mxu1 %v8082_v61 }
 0x29a   : > { %2532 = vmatpush1.bf16.msra.mxu0 %v1769_v11  ;;  %2696 = vmatpush1.bf16.msra.mxu1 %v1771_v12  ;;  %v939_v11 = vld [vmem:[%s7984_s14 + $0xe30] sm:$0xff]  ;;  %v1897_v12 = vunpack.c.l.s8.bf16 %v937_v10 }
 0x29b   : > { %2533 = vmatprep.subr.bf16.mxu0 %v1786_v13  ;;  %2697 = vmatprep.subr.bf16.mxu1 %v1788_v14  ;;  %v1899_v13 = vunpack.c.l.s8.bf16 %v939_v11  ;;  %v1914_v14 = vunpack.c.h.s8.bf16 %v938_v4 }
 0x29c   : > { %2563 = vmatprep.mubr.bf16.mxu0 %v8168_v19  ;;  %2727 = vmatprep.mubr.bf16.mxu1 %v8168_v19 }
 0x29e   : > { %2534 = vmatpush1.bf16.msra.mxu0 %v1785_v17  ;;  %2698 = vmatpush1.bf16.msra.mxu1 %v1787_v18  ;;  %v956_v17 = vld [vmem:[%s7984_s14 + $0xeb8] sm:$0xff]  ;;  %v1913_v18 = vunpack.c.h.s8.bf16 %v937_v10 }
 0x29f   : > { %2535 = vmatprep.subr.bf16.mxu0 %v1802_v20  ;;  %2699 = vmatprep.subr.bf16.mxu1 %v1804_v21  ;;  %v1915_v20 = vunpack.c.h.s8.bf16 %v939_v11  ;;  %v1930_v21 = vunpack.c.l.s8.bf16 %v954_v16  ;;  %v1932_v22 = vunpack.c.l.s8.bf16 %v956_v17  ;;  %v1948_v29 = vunpack.c.h.s8.bf16 %v956_v17 }
 0x2a2   : > { %2536 = vmatpush1.bf16.msra.mxu0 %v1801_v24  ;;  %2700 = vmatpush1.bf16.msra.mxu1 %v1803_v25  ;;  %v955_v24 = vld [vmem:[%s7984_s14 + $0xeb0] sm:$0xff]  ;;  %v1929_v25 = vunpack.c.l.s8.bf16 %v953_v23 }
 0x2a3   : > { %2537 = vmatprep.subr.bf16.mxu0 %v1818_v27  ;;  %2701 = vmatprep.subr.bf16.mxu1 %v1820_v28  ;;  %v1931_v27 = vunpack.c.l.s8.bf16 %v955_v24  ;;  %v1946_v28 = vunpack.c.h.s8.bf16 %v954_v16 }
 0x2a6   : > { %2538 = vmatpush1.bf16.msra.mxu0 %v1817_v31  ;;  %2702 = vmatpush1.bf16.msra.mxu1 %v1819_v33  ;;  %v972_v31 = vld [vmem:[%s7984_s14 + $0xf38] sm:$0xff]  ;;  %v1945_v33 = vunpack.c.h.s8.bf16 %v953_v23 }
 0x2a7   : > { %2539 = vmatprep.subr.bf16.mxu0 %v1834_v34  ;;  %2703 = vmatprep.subr.bf16.mxu1 %v1836_v37  ;;  %v1947_v34 = vunpack.c.h.s8.bf16 %v955_v24  ;;  %v1962_v37 = vunpack.c.l.s8.bf16 %v970_v30  ;;  %v1964_v38 = vunpack.c.l.s8.bf16 %v972_v31  ;;  %v1980_v45 = vunpack.c.h.s8.bf16 %v972_v31 }
 0x2aa   : > { %2540 = vmatpush1.bf16.msra.mxu0 %v1833_v40  ;;  %2704 = vmatpush1.bf16.msra.mxu1 %v1835_v42  ;;  %v971_v40 = vld [vmem:[%s7984_s14 + $0xf30] sm:$0xff]  ;;  %v1961_v42 = vunpack.c.l.s8.bf16 %v969_v39 }
 0x2ab   : > { %2541 = vmatprep.subr.bf16.mxu0 %v1850_v43  ;;  %2705 = vmatprep.subr.bf16.mxu1 %v1852_v44  ;;  %v1963_v43 = vunpack.c.l.s8.bf16 %v971_v40  ;;  %v1978_v44 = vunpack.c.h.s8.bf16 %v970_v30 }
 0x2ac   : > { %v8332_v54 = vpop.f32.mrb[0].mxu0  ;;  %v8334_v56 = vpop.f32.mrb[0].mxu1 }
 0x2ad   : > { %v8336_v36 = vpop.f32.mrb[1].mxu0  ;;  %v8338_v57 = vpop.f32.mrb[1].mxu1 }
 0x2ae   : > { %v2241_v58 = vpop.f32.mrb[2].mxu0  ;;  %v2405_v59 = vpop.f32.mrb[2].mxu1  ;;  %2542 = vmatpush1.bf16.msra.mxu0 %v1849_v47  ;;  %2706 = vmatpush1.bf16.msra.mxu1 %v1851_v48  ;;  %v988_v47 = vld [vmem:[%s7984_s14 + $0xfb8] sm:$0xff]  ;;  %v1977_v48 = vunpack.c.h.s8.bf16 %v969_v39 }
 0x2af   : > { %v2242_v1 = vpop.f32.mrb[3].mxu0  ;;  %v2406_v35 = vpop.f32.mrb[3].mxu1  ;;  %2543 = vmatprep.subr.bf16.mxu0 %v1866_v49  ;;  %2707 = vmatprep.subr.bf16.mxu1 %v1868_v50  ;;  %v1979_v49 = vunpack.c.h.s8.bf16 %v971_v40  ;;  %v1994_v50 = vunpack.c.l.s8.bf16 %v986_v46  ;;  %v1996_v52 = vunpack.c.l.s8.bf16 %v988_v47  ;;  %v987_v58 = vld [vmem:[%s7984_s14 + $0xfb0] sm:$0xff]  ;;  %v1993_v59 = vunpack.c.l.s8.bf16 %v985_v53 }
 0x2b0   : > { %v2012_v1 = vunpack.c.h.s8.bf16 %v988_v47  ;;  %v494_v35 = vld [vmem:[%s7984_s14 + $0x48] sm:$0xff]  ;;  %v2011_v4 = vunpack.c.h.s8.bf16 %v987_v58 }
 0x2b1   : > { %v1006_v5 = vunpack.c.l.s8.bf16 %v494_v35  ;;  %v1022_v11 = vunpack.c.h.s8.bf16 %v494_v35 }
 0x2b2   : > { %2544 = vmatpush1.bf16.msra.mxu0 %v1865_v41  ;;  %2708 = vmatpush1.bf16.msra.mxu1 %v1867_v0  ;;  %v1995_v41 = vunpack.c.l.s8.bf16 %v987_v58  ;;  %v2010_v0 = vunpack.c.h.s8.bf16 %v986_v46 }
 0x2b3   : > { %2545 = vmatprep.subr.bf16.mxu0 %v1882_v2  ;;  %2709 = vmatprep.subr.bf16.mxu1 %v1884_v3  ;;  %v496_v2 = vld [vmem:[%s7984_s14 + $0x58] sm:$0xff]  ;;  %v2009_v3 = vunpack.c.h.s8.bf16 %v985_v53 }
 0x2b6   : > { %2546 = vmatpush1.bf16.msra.mxu0 %v1881_v6  ;;  %2710 = vmatpush1.bf16.msra.mxu1 %v1883_v7  ;;  %v1008_v6 = vunpack.c.l.s8.bf16 %v496_v2  ;;  %v493_v7 = vld [vmem:[%s7984_s14 + $0x40] sm:$0xff] }
 0x2b7   : > { %2547 = vmatprep.subr.bf16.mxu0 %v1898_v8  ;;  %2711 = vmatprep.subr.bf16.mxu1 %v1900_v9  ;;  %v495_v8 = vld [vmem:[%s7984_s14 + $0x50] sm:$0xff]  ;;  %v1005_v9 = vunpack.c.l.s8.bf16 %v493_v7 }
 0x2b8   : > { %v1007_v10 = vunpack.c.l.s8.bf16 %v495_v8  ;;  %v1023_v16 = vunpack.c.h.s8.bf16 %v495_v8 }
 0x2ba   : > { %2548 = vmatpush1.bf16.msra.mxu0 %v1897_v12  ;;  %2712 = vmatpush1.bf16.msra.mxu1 %v1899_v13  ;;  %v1024_v12 = vunpack.c.h.s8.bf16 %v496_v2  ;;  %v510_v13 = vld [vmem:[%s7984_s14 + $0xc8] sm:$0xff] }
 0x2bb   : > { %2549 = vmatprep.subr.bf16.mxu0 %v1914_v14  ;;  %2713 = vmatprep.subr.bf16.mxu1 %v1916_v15  ;;  %v512_v14 = vld [vmem:[%s7984_s14 + $0xd8] sm:$0xff]  ;;  %v1021_v15 = vunpack.c.h.s8.bf16 %v493_v7  ;;  %v1038_v17 = vunpack.c.l.s8.bf16 %v510_v13  ;;  %v1054_v24 = vunpack.c.h.s8.bf16 %v510_v13 }
 0x2be   : > { %2550 = vmatpush1.bf16.msra.mxu0 %v1913_v18  ;;  %2714 = vmatpush1.bf16.msra.mxu1 %v1915_v20  ;;  %v1040_v18 = vunpack.c.l.s8.bf16 %v512_v14  ;;  %v509_v20 = vld [vmem:[%s7984_s14 + $0xc0] sm:$0xff] }
 0x2bf   : > { %2551 = vmatprep.subr.bf16.mxu0 %v1930_v21  ;;  %2715 = vmatprep.subr.bf16.mxu1 %v1932_v22  ;;  %v511_v21 = vld [vmem:[%s7984_s14 + $0xd0] sm:$0xff]  ;;  %v1037_v22 = vunpack.c.l.s8.bf16 %v509_v20 }
 0x2c0   : > { %v1039_v23 = vunpack.c.l.s8.bf16 %v511_v21  ;;  %v1055_v30 = vunpack.c.h.s8.bf16 %v511_v21 }
 0x2c2   : > { %2552 = vmatpush1.bf16.msra.mxu0 %v1929_v25  ;;  %2716 = vmatpush1.bf16.msra.mxu1 %v1931_v27  ;;  %v1056_v25 = vunpack.c.h.s8.bf16 %v512_v14  ;;  %v526_v27 = vld [vmem:[%s7984_s14 + $0x148] sm:$0xff] }
 0x2c3   : > { %2553 = vmatprep.subr.bf16.mxu0 %v1946_v28  ;;  %2717 = vmatprep.subr.bf16.mxu1 %v1948_v29  ;;  %v528_v28 = vld [vmem:[%s7984_s14 + $0x158] sm:$0xff]  ;;  %v1053_v29 = vunpack.c.h.s8.bf16 %v509_v20  ;;  %v1070_v31 = vunpack.c.l.s8.bf16 %v526_v27  ;;  %v1086_v40 = vunpack.c.h.s8.bf16 %v526_v27 }
 0x2c6   : > { %2554 = vmatpush1.bf16.msra.mxu0 %v1945_v33  ;;  %2718 = vmatpush1.bf16.msra.mxu1 %v1947_v34  ;;  %v1072_v33 = vunpack.c.l.s8.bf16 %v528_v28  ;;  %v525_v34 = vld [vmem:[%s7984_s14 + $0x140] sm:$0xff] }
 0x2c7   : > { %2555 = vmatprep.subr.bf16.mxu0 %v1962_v37  ;;  %2719 = vmatprep.subr.bf16.mxu1 %v1964_v38  ;;  %v527_v37 = vld [vmem:[%s7984_s14 + $0x150] sm:$0xff]  ;;  %v1069_v38 = vunpack.c.l.s8.bf16 %v525_v34 }
 0x2c8   : > { %v1071_v39 = vunpack.c.l.s8.bf16 %v527_v37  ;;  %v1087_v46 = vunpack.c.h.s8.bf16 %v527_v37 }
 0x2ca   : > { %2556 = vmatpush1.bf16.msra.mxu0 %v1961_v42  ;;  %2720 = vmatpush1.bf16.msra.mxu1 %v1963_v43  ;;  %v1088_v42 = vunpack.c.h.s8.bf16 %v528_v28  ;;  %v542_v43 = vld [vmem:[%s7984_s14 + $0x1c8] sm:$0xff] }
 0x2cb   : > { %2557 = vmatprep.subr.bf16.mxu0 %v1978_v44  ;;  %2721 = vmatprep.subr.bf16.mxu1 %v1980_v45  ;;  %v544_v44 = vld [vmem:[%s7984_s14 + $0x1d8] sm:$0xff]  ;;  %v1085_v45 = vunpack.c.h.s8.bf16 %v525_v34  ;;  %v1102_v47 = vunpack.c.l.s8.bf16 %v542_v43  ;;  %v1118_v58 = vunpack.c.h.s8.bf16 %v542_v43 }
 0x2ce   : > { %2558 = vmatpush1.bf16.msra.mxu0 %v1977_v48  ;;  %2722 = vmatpush1.bf16.msra.mxu1 %v1979_v49  ;;  %v1104_v48 = vunpack.c.l.s8.bf16 %v544_v44  ;;  %v541_v49 = vld [vmem:[%s7984_s14 + $0x1c0] sm:$0xff] }
 0x2cf   : > { %2559 = vmatprep.subr.bf16.mxu0 %v1994_v50  ;;  %2723 = vmatprep.subr.bf16.mxu1 %v1996_v52  ;;  %v543_v50 = vld [vmem:[%s7984_s14 + $0x1d0] sm:$0xff]  ;;  %v1101_v52 = vunpack.c.l.s8.bf16 %v541_v49 }
 0x2d0   : > { %v1103_v53 = vunpack.c.l.s8.bf16 %v543_v50  ;;  %v1119_v35 = vunpack.c.h.s8.bf16 %v543_v50 }
 0x2d2   : > { %2560 = vmatpush1.bf16.msra.mxu0 %v1993_v59  ;;  %2724 = vmatpush1.bf16.msra.mxu1 %v1995_v41  ;;  %v1120_v59 = vunpack.c.h.s8.bf16 %v544_v44  ;;  %v558_v41 = vld [vmem:[%s7984_s14 + $0x248] sm:$0xff] }
 0x2d3   : > { %2561 = vmatprep.subr.bf16.mxu0 %v2010_v0  ;;  %2725 = vmatprep.subr.bf16.mxu1 %v2012_v1  ;;  %v560_v0 = vld [vmem:[%s7984_s14 + $0x258] sm:$0xff]  ;;  %v1117_v1 = vunpack.c.h.s8.bf16 %v541_v49  ;;  %v1134_v2 = vunpack.c.l.s8.bf16 %v558_v41  ;;  %v1150_v8 = vunpack.c.h.s8.bf16 %v558_v41 }
 0x2d6   : > { %2562 = vmatpush1.bf16.msra.mxu0 %v2009_v3  ;;  %2726 = vmatpush1.bf16.msra.mxu1 %v2011_v4  ;;  %v1136_v3 = vunpack.c.l.s8.bf16 %v560_v0  ;;  %v557_v4 = vld [vmem:[%s7984_s14 + $0x240] sm:$0xff] }
 0x2d7   : > { %2736 = vmatprep.subr.bf16.mxu0 %v1006_v5  ;;  %2900 = vmatprep.subr.bf16.mxu1 %v1008_v6  ;;  %v559_v5 = vld [vmem:[%s7984_s14 + $0x250] sm:$0xff]  ;;  %v1133_v6 = vunpack.c.l.s8.bf16 %v557_v4 }
 0x2d8   : > { %v1135_v7 = vunpack.c.l.s8.bf16 %v559_v5  ;;  %v1151_v13 = vunpack.c.h.s8.bf16 %v559_v5 }
 0x2d9   : > { %2564 = vmatmul.mubr.bf16.vlgmr.msra.gmra.mrb[4].mxu0 %v8206_v62  ;;  %2728 = vmatmul.mubr.bf16.vlgmr.msra.gmra.mrb[4].mxu1 %v8206_v62 }
 0x2da   : > { %2737 = vmatpush1.bf16.msra.mxu0 %v1005_v9  ;;  %2901 = vmatpush1.bf16.msra.mxu1 %v1007_v10  ;;  %v1152_v9 = vunpack.c.h.s8.bf16 %v560_v0  ;;  %v574_v10 = vld [vmem:[%s7984_s14 + $0x2c8] sm:$0xff] }
 0x2db   : > { %2738 = vmatprep.subr.bf16.mxu0 %v1022_v11  ;;  %2902 = vmatprep.subr.bf16.mxu1 %v1024_v12  ;;  %v576_v11 = vld [vmem:[%s7984_s14 + $0x2d8] sm:$0xff]  ;;  %v1149_v12 = vunpack.c.h.s8.bf16 %v557_v4  ;;  %v1166_v14 = vunpack.c.l.s8.bf16 %v574_v10  ;;  %v1182_v21 = vunpack.c.h.s8.bf16 %v574_v10 }
 0x2dc   : > { %2768 = vmatprep.mubr.bf16.mxu0 %v8047_v51  ;;  %2932 = vmatprep.mubr.bf16.mxu1 %v8047_v51 }
 0x2de   : > { %2739 = vmatpush1.bf16.msra.mxu0 %v1021_v15  ;;  %2903 = vmatpush1.bf16.msra.mxu1 %v1023_v16  ;;  %v1168_v15 = vunpack.c.l.s8.bf16 %v576_v11  ;;  %v573_v16 = vld [vmem:[%s7984_s14 + $0x2c0] sm:$0xff] }
 0x2df   : > { %2740 = vmatprep.subr.bf16.mxu0 %v1038_v17  ;;  %2904 = vmatprep.subr.bf16.mxu1 %v1040_v18  ;;  %v575_v17 = vld [vmem:[%s7984_s14 + $0x2d0] sm:$0xff]  ;;  %v1165_v18 = vunpack.c.l.s8.bf16 %v573_v16 }
 0x2e0   : > { %v1167_v20 = vunpack.c.l.s8.bf16 %v575_v17  ;;  %v1183_v27 = vunpack.c.h.s8.bf16 %v575_v17 }
 0x2e2   : > { %2741 = vmatpush1.bf16.msra.mxu0 %v1037_v22  ;;  %2905 = vmatpush1.bf16.msra.mxu1 %v1039_v23  ;;  %v1184_v22 = vunpack.c.h.s8.bf16 %v576_v11  ;;  %v590_v23 = vld [vmem:[%s7984_s14 + $0x348] sm:$0xff] }
 0x2e3   : > { %2742 = vmatprep.subr.bf16.mxu0 %v1054_v24  ;;  %2906 = vmatprep.subr.bf16.mxu1 %v1056_v25  ;;  %v592_v24 = vld [vmem:[%s7984_s14 + $0x358] sm:$0xff]  ;;  %v1181_v25 = vunpack.c.h.s8.bf16 %v573_v16  ;;  %v1198_v28 = vunpack.c.l.s8.bf16 %v590_v23  ;;  %v1214_v37 = vunpack.c.h.s8.bf16 %v590_v23 }
 0x2e6   : > { %2743 = vmatpush1.bf16.msra.mxu0 %v1053_v29  ;;  %2907 = vmatpush1.bf16.msra.mxu1 %v1055_v30  ;;  %v1200_v29 = vunpack.c.l.s8.bf16 %v592_v24  ;;  %v589_v30 = vld [vmem:[%s7984_s14 + $0x340] sm:$0xff] }
 0x2e7   : > { %2744 = vmatprep.subr.bf16.mxu0 %v1070_v31  ;;  %2908 = vmatprep.subr.bf16.mxu1 %v1072_v33  ;;  %v591_v31 = vld [vmem:[%s7984_s14 + $0x350] sm:$0xff]  ;;  %v1197_v33 = vunpack.c.l.s8.bf16 %v589_v30 }
 0x2e8   : > { %v1199_v34 = vunpack.c.l.s8.bf16 %v591_v31  ;;  %v1215_v43 = vunpack.c.h.s8.bf16 %v591_v31 }
 0x2ea   : > { %2745 = vmatpush1.bf16.msra.mxu0 %v1069_v38  ;;  %2909 = vmatpush1.bf16.msra.mxu1 %v1071_v39  ;;  %v1216_v38 = vunpack.c.h.s8.bf16 %v592_v24  ;;  %v606_v39 = vld [vmem:[%s7984_s14 + $0x3c8] sm:$0xff] }
 0x2eb   : > { %2746 = vmatprep.subr.bf16.mxu0 %v1086_v40  ;;  %2910 = vmatprep.subr.bf16.mxu1 %v1088_v42  ;;  %v608_v40 = vld [vmem:[%s7984_s14 + $0x3d8] sm:$0xff]  ;;  %v1213_v42 = vunpack.c.h.s8.bf16 %v589_v30  ;;  %v1230_v44 = vunpack.c.l.s8.bf16 %v606_v39  ;;  %v1246_v50 = vunpack.c.h.s8.bf16 %v606_v39 }
 0x2ee   : > { %2747 = vmatpush1.bf16.msra.mxu0 %v1085_v45  ;;  %2911 = vmatpush1.bf16.msra.mxu1 %v1087_v46  ;;  %v1232_v45 = vunpack.c.l.s8.bf16 %v608_v40  ;;  %v605_v46 = vld [vmem:[%s7984_s14 + $0x3c0] sm:$0xff] }
 0x2ef   : > { %2748 = vmatprep.subr.bf16.mxu0 %v1102_v47  ;;  %2912 = vmatprep.subr.bf16.mxu1 %v1104_v48  ;;  %v607_v47 = vld [vmem:[%s7984_s14 + $0x3d0] sm:$0xff]  ;;  %v1229_v48 = vunpack.c.l.s8.bf16 %v605_v46 }
 0x2f0   : > { %v1231_v49 = vunpack.c.l.s8.bf16 %v607_v47  ;;  %v1247_v41 = vunpack.c.h.s8.bf16 %v607_v47 }
 0x2f2   : > { %2749 = vmatpush1.bf16.msra.mxu0 %v1101_v52  ;;  %2913 = vmatpush1.bf16.msra.mxu1 %v1103_v53  ;;  %v1248_v52 = vunpack.c.h.s8.bf16 %v608_v40  ;;  %v622_v53 = vld [vmem:[%s7984_s14 + $0x448] sm:$0xff] }
 0x2f3   : > { %2750 = vmatprep.subr.bf16.mxu0 %v1118_v58  ;;  %2914 = vmatprep.subr.bf16.mxu1 %v1120_v59  ;;  %v624_v58 = vld [vmem:[%s7984_s14 + $0x458] sm:$0xff]  ;;  %v1245_v59 = vunpack.c.h.s8.bf16 %v605_v46  ;;  %v1262_v0 = vunpack.c.l.s8.bf16 %v622_v53  ;;  %v1278_v5 = vunpack.c.h.s8.bf16 %v622_v53 }
 0x2f6   : > { %2751 = vmatpush1.bf16.msra.mxu0 %v1117_v1  ;;  %2915 = vmatpush1.bf16.msra.mxu1 %v1119_v35  ;;  %v1264_v1 = vunpack.c.l.s8.bf16 %v624_v58  ;;  %v621_v35 = vld [vmem:[%s7984_s14 + $0x440] sm:$0xff] }
 0x2f7   : > { %2752 = vmatprep.subr.bf16.mxu0 %v1134_v2  ;;  %2916 = vmatprep.subr.bf16.mxu1 %v1136_v3  ;;  %v623_v2 = vld [vmem:[%s7984_s14 + $0x450] sm:$0xff]  ;;  %v1261_v3 = vunpack.c.l.s8.bf16 %v621_v35 }
 0x2f8   : > { %v1263_v4 = vunpack.c.l.s8.bf16 %v623_v2  ;;  %v1279_v10 = vunpack.c.h.s8.bf16 %v623_v2 }
 0x2fa   : > { %2753 = vmatpush1.bf16.msra.mxu0 %v1133_v6  ;;  %2917 = vmatpush1.bf16.msra.mxu1 %v1135_v7  ;;  %v1280_v6 = vunpack.c.h.s8.bf16 %v624_v58  ;;  %v638_v7 = vld [vmem:[%s7984_s14 + $0x4c8] sm:$0xff] }
 0x2fb   : > { %2754 = vmatprep.subr.bf16.mxu0 %v1150_v8  ;;  %2918 = vmatprep.subr.bf16.mxu1 %v1152_v9  ;;  %v640_v8 = vld [vmem:[%s7984_s14 + $0x4d8] sm:$0xff]  ;;  %v1277_v9 = vunpack.c.h.s8.bf16 %v621_v35  ;;  %v1294_v11 = vunpack.c.l.s8.bf16 %v638_v7  ;;  %v1310_v17 = vunpack.c.h.s8.bf16 %v638_v7 }
 0x2fe   : > { %2755 = vmatpush1.bf16.msra.mxu0 %v1149_v12  ;;  %2919 = vmatpush1.bf16.msra.mxu1 %v1151_v13  ;;  %v1296_v12 = vunpack.c.l.s8.bf16 %v640_v8  ;;  %v637_v13 = vld [vmem:[%s7984_s14 + $0x4c0] sm:$0xff] }
 0x2ff   : > { %2756 = vmatprep.subr.bf16.mxu0 %v1166_v14  ;;  %2920 = vmatprep.subr.bf16.mxu1 %v1168_v15  ;;  %v639_v14 = vld [vmem:[%s7984_s14 + $0x4d0] sm:$0xff]  ;;  %v1293_v15 = vunpack.c.l.s8.bf16 %v637_v13 }
 0x300   : > { %v1295_v16 = vunpack.c.l.s8.bf16 %v639_v14  ;;  %v1311_v23 = vunpack.c.h.s8.bf16 %v639_v14 }
 0x302   : > { %2757 = vmatpush1.bf16.msra.mxu0 %v1165_v18  ;;  %2921 = vmatpush1.bf16.msra.mxu1 %v1167_v20  ;;  %v1312_v18 = vunpack.c.h.s8.bf16 %v640_v8  ;;  %v654_v20 = vld [vmem:[%s7984_s14 + $0x548] sm:$0xff] }
 0x303   : > { %2758 = vmatprep.subr.bf16.mxu0 %v1182_v21  ;;  %2922 = vmatprep.subr.bf16.mxu1 %v1184_v22  ;;  %v656_v21 = vld [vmem:[%s7984_s14 + $0x558] sm:$0xff]  ;;  %v1309_v22 = vunpack.c.h.s8.bf16 %v637_v13  ;;  %v1326_v24 = vunpack.c.l.s8.bf16 %v654_v20  ;;  %v1342_v31 = vunpack.c.h.s8.bf16 %v654_v20 }
 0x306   : > { %2759 = vmatpush1.bf16.msra.mxu0 %v1181_v25  ;;  %2923 = vmatpush1.bf16.msra.mxu1 %v1183_v27  ;;  %v1328_v25 = vunpack.c.l.s8.bf16 %v656_v21  ;;  %v653_v27 = vld [vmem:[%s7984_s14 + $0x540] sm:$0xff] }
 0x307   : > { %2760 = vmatprep.subr.bf16.mxu0 %v1198_v28  ;;  %2924 = vmatprep.subr.bf16.mxu1 %v1200_v29  ;;  %v655_v28 = vld [vmem:[%s7984_s14 + $0x550] sm:$0xff]  ;;  %v1325_v29 = vunpack.c.l.s8.bf16 %v653_v27 }
 0x308   : > { %v1327_v30 = vunpack.c.l.s8.bf16 %v655_v28  ;;  %v1343_v39 = vunpack.c.h.s8.bf16 %v655_v28 }
 0x30a   : > { %2761 = vmatpush1.bf16.msra.mxu0 %v1197_v33  ;;  %2925 = vmatpush1.bf16.msra.mxu1 %v1199_v34  ;;  %v1344_v33 = vunpack.c.h.s8.bf16 %v656_v21  ;;  %v670_v34 = vld [vmem:[%s7984_s14 + $0x5c8] sm:$0xff] }
 0x30b   : > { %2762 = vmatprep.subr.bf16.mxu0 %v1214_v37  ;;  %2926 = vmatprep.subr.bf16.mxu1 %v1216_v38  ;;  %v672_v37 = vld [vmem:[%s7984_s14 + $0x5d8] sm:$0xff]  ;;  %v1341_v38 = vunpack.c.h.s8.bf16 %v653_v27  ;;  %v1358_v40 = vunpack.c.l.s8.bf16 %v670_v34  ;;  %v1374_v47 = vunpack.c.h.s8.bf16 %v670_v34 }
 0x30e   : > { %2763 = vmatpush1.bf16.msra.mxu0 %v1213_v42  ;;  %2927 = vmatpush1.bf16.msra.mxu1 %v1215_v43  ;;  %v1360_v42 = vunpack.c.l.s8.bf16 %v672_v37  ;;  %v669_v43 = vld [vmem:[%s7984_s14 + $0x5c0] sm:$0xff] }
 0x30f   : > { %2764 = vmatprep.subr.bf16.mxu0 %v1230_v44  ;;  %2928 = vmatprep.subr.bf16.mxu1 %v1232_v45  ;;  %v671_v44 = vld [vmem:[%s7984_s14 + $0x5d0] sm:$0xff]  ;;  %v1357_v45 = vunpack.c.l.s8.bf16 %v669_v43 }
 0x310   : > { %v1359_v46 = vunpack.c.l.s8.bf16 %v671_v44  ;;  %v1375_v53 = vunpack.c.h.s8.bf16 %v671_v44 }
 0x312   : > { %2765 = vmatpush1.bf16.msra.mxu0 %v1229_v48  ;;  %2929 = vmatpush1.bf16.msra.mxu1 %v1231_v49  ;;  %v1376_v48 = vunpack.c.h.s8.bf16 %v672_v37  ;;  %v686_v49 = vld [vmem:[%s7984_s14 + $0x648] sm:$0xff] }
 0x313   : > { %2766 = vmatprep.subr.bf16.mxu0 %v1246_v50  ;;  %2930 = vmatprep.subr.bf16.mxu1 %v1248_v52  ;;  %v688_v50 = vld [vmem:[%s7984_s14 + $0x658] sm:$0xff]  ;;  %v1373_v52 = vunpack.c.h.s8.bf16 %v669_v43  ;;  %v1390_v58 = vunpack.c.l.s8.bf16 %v686_v49  ;;  %v1406_v2 = vunpack.c.h.s8.bf16 %v686_v49 }
 0x316   : > { %2767 = vmatpush1.bf16.msra.mxu0 %v1245_v59  ;;  %2931 = vmatpush1.bf16.msra.mxu1 %v1247_v41  ;;  %v1392_v59 = vunpack.c.l.s8.bf16 %v688_v50  ;;  %v685_v41 = vld [vmem:[%s7984_s14 + $0x640] sm:$0xff] }
 0x317   : > { %2777 = vmatprep.subr.bf16.mxu0 %v1262_v0  ;;  %2941 = vmatprep.subr.bf16.mxu1 %v1264_v1  ;;  %v687_v0 = vld [vmem:[%s7984_s14 + $0x650] sm:$0xff]  ;;  %v1389_v1 = vunpack.c.l.s8.bf16 %v685_v41 }
 0x318   : > { %v1391_v35 = vunpack.c.l.s8.bf16 %v687_v0  ;;  %v1407_v7 = vunpack.c.h.s8.bf16 %v687_v0 }
 0x319   : > { %2769 = vmatmul.mubr.bf16.vlgmr.msra.gmra.mrb[8].mxu0 %v8076_v55  ;;  %2933 = vmatmul.mubr.bf16.vlgmr.msra.gmra.mrb[8].mxu1 %v8076_v55 }
 0x31a   : > { %2778 = vmatpush1.bf16.msra.mxu0 %v1261_v3  ;;  %2942 = vmatpush1.bf16.msra.mxu1 %v1263_v4  ;;  %v1408_v3 = vunpack.c.h.s8.bf16 %v688_v50  ;;  %v702_v4 = vld [vmem:[%s7984_s14 + $0x6c8] sm:$0xff] }
 0x31b   : > { %2779 = vmatprep.subr.bf16.mxu0 %v1278_v5  ;;  %2943 = vmatprep.subr.bf16.mxu1 %v1280_v6  ;;  %v704_v5 = vld [vmem:[%s7984_s14 + $0x6d8] sm:$0xff]  ;;  %v1405_v6 = vunpack.c.h.s8.bf16 %v685_v41  ;;  %v1422_v8 = vunpack.c.l.s8.bf16 %v702_v4  ;;  %v1438_v14 = vunpack.c.h.s8.bf16 %v702_v4 }
 0x31c   : > { %2809 = vmatprep.mubr.bf16.mxu0 %v8088_v63  ;;  %2973 = vmatprep.mubr.bf16.mxu1 %v8088_v63 }
 0x31e   : > { %2780 = vmatpush1.bf16.msra.mxu0 %v1277_v9  ;;  %2944 = vmatpush1.bf16.msra.mxu1 %v1279_v10  ;;  %v1424_v9 = vunpack.c.l.s8.bf16 %v704_v5  ;;  %v701_v10 = vld [vmem:[%s7984_s14 + $0x6c0] sm:$0xff] }
 0x31f   : > { %2781 = vmatprep.subr.bf16.mxu0 %v1294_v11  ;;  %2945 = vmatprep.subr.bf16.mxu1 %v1296_v12  ;;  %v703_v11 = vld [vmem:[%s7984_s14 + $0x6d0] sm:$0xff]  ;;  %v1421_v12 = vunpack.c.l.s8.bf16 %v701_v10 }
 0x320   : > { %v1423_v13 = vunpack.c.l.s8.bf16 %v703_v11  ;;  %v1439_v20 = vunpack.c.h.s8.bf16 %v703_v11 }
 0x322   : > { %2782 = vmatpush1.bf16.msra.mxu0 %v1293_v15  ;;  %2946 = vmatpush1.bf16.msra.mxu1 %v1295_v16  ;;  %v1440_v15 = vunpack.c.h.s8.bf16 %v704_v5  ;;  %v718_v16 = vld [vmem:[%s7984_s14 + $0x748] sm:$0xff] }
 0x323   : > { %2783 = vmatprep.subr.bf16.mxu0 %v1310_v17  ;;  %2947 = vmatprep.subr.bf16.mxu1 %v1312_v18  ;;  %v720_v17 = vld [vmem:[%s7984_s14 + $0x758] sm:$0xff]  ;;  %v1437_v18 = vunpack.c.h.s8.bf16 %v701_v10  ;;  %v1454_v21 = vunpack.c.l.s8.bf16 %v718_v16  ;;  %v1470_v28 = vunpack.c.h.s8.bf16 %v718_v16 }
 0x326   : > { %2784 = vmatpush1.bf16.msra.mxu0 %v1309_v22  ;;  %2948 = vmatpush1.bf16.msra.mxu1 %v1311_v23  ;;  %v1456_v22 = vunpack.c.l.s8.bf16 %v720_v17  ;;  %v717_v23 = vld [vmem:[%s7984_s14 + $0x740] sm:$0xff] }
 0x327   : > { %2785 = vmatprep.subr.bf16.mxu0 %v1326_v24  ;;  %2949 = vmatprep.subr.bf16.mxu1 %v1328_v25  ;;  %v719_v24 = vld [vmem:[%s7984_s14 + $0x750] sm:$0xff]  ;;  %v1453_v25 = vunpack.c.l.s8.bf16 %v717_v23 }
 0x328   : > { %v1455_v27 = vunpack.c.l.s8.bf16 %v719_v24  ;;  %v1471_v34 = vunpack.c.h.s8.bf16 %v719_v24 }
 0x32a   : > { %2786 = vmatpush1.bf16.msra.mxu0 %v1325_v29  ;;  %2950 = vmatpush1.bf16.msra.mxu1 %v1327_v30  ;;  %v1472_v29 = vunpack.c.h.s8.bf16 %v720_v17  ;;  %v734_v30 = vld [vmem:[%s7984_s14 + $0x7c8] sm:$0xff] }
 0x32b   : > { %2787 = vmatprep.subr.bf16.mxu0 %v1342_v31  ;;  %2951 = vmatprep.subr.bf16.mxu1 %v1344_v33  ;;  %v736_v31 = vld [vmem:[%s7984_s14 + $0x7d8] sm:$0xff]  ;;  %v1469_v33 = vunpack.c.h.s8.bf16 %v717_v23  ;;  %v1486_v37 = vunpack.c.l.s8.bf16 %v734_v30  ;;  %v1502_v44 = vunpack.c.h.s8.bf16 %v734_v30 }
 0x32e   : > { %2788 = vmatpush1.bf16.msra.mxu0 %v1341_v38  ;;  %2952 = vmatpush1.bf16.msra.mxu1 %v1343_v39  ;;  %v1488_v38 = vunpack.c.l.s8.bf16 %v736_v31  ;;  %v733_v39 = vld [vmem:[%s7984_s14 + $0x7c0] sm:$0xff] }
 0x32f   : > { %2789 = vmatprep.subr.bf16.mxu0 %v1358_v40  ;;  %2953 = vmatprep.subr.bf16.mxu1 %v1360_v42  ;;  %v735_v40 = vld [vmem:[%s7984_s14 + $0x7d0] sm:$0xff]  ;;  %v1485_v42 = vunpack.c.l.s8.bf16 %v733_v39 }
 0x330   : > { %v1487_v43 = vunpack.c.l.s8.bf16 %v735_v40  ;;  %v1503_v49 = vunpack.c.h.s8.bf16 %v735_v40 }
 0x332   : > { %2790 = vmatpush1.bf16.msra.mxu0 %v1357_v45  ;;  %2954 = vmatpush1.bf16.msra.mxu1 %v1359_v46  ;;  %v1504_v45 = vunpack.c.h.s8.bf16 %v736_v31  ;;  %v750_v46 = vld [vmem:[%s7984_s14 + $0x848] sm:$0xff] }
 0x333   : > { %2791 = vmatprep.subr.bf16.mxu0 %v1374_v47  ;;  %2955 = vmatprep.subr.bf16.mxu1 %v1376_v48  ;;  %v752_v47 = vld [vmem:[%s7984_s14 + $0x858] sm:$0xff]  ;;  %v1501_v48 = vunpack.c.h.s8.bf16 %v733_v39  ;;  %v1518_v50 = vunpack.c.l.s8.bf16 %v750_v46  ;;  %v1534_v0 = vunpack.c.h.s8.bf16 %v750_v46 }
 0x336   : > { %2792 = vmatpush1.bf16.msra.mxu0 %v1373_v52  ;;  %2956 = vmatpush1.bf16.msra.mxu1 %v1375_v53  ;;  %v1520_v52 = vunpack.c.l.s8.bf16 %v752_v47  ;;  %v749_v53 = vld [vmem:[%s7984_s14 + $0x840] sm:$0xff] }
 0x337   : > { %2793 = vmatprep.subr.bf16.mxu0 %v1390_v58  ;;  %2957 = vmatprep.subr.bf16.mxu1 %v1392_v59  ;;  %v751_v58 = vld [vmem:[%s7984_s14 + $0x850] sm:$0xff]  ;;  %v1517_v59 = vunpack.c.l.s8.bf16 %v749_v53 }
 0x338   : > { %v1519_v41 = vunpack.c.l.s8.bf16 %v751_v58  ;;  %v1535_v4 = vunpack.c.h.s8.bf16 %v751_v58 }
 0x33a   : > { %2794 = vmatpush1.bf16.msra.mxu0 %v1389_v1  ;;  %2958 = vmatpush1.bf16.msra.mxu1 %v1391_v35  ;;  %v1536_v1 = vunpack.c.h.s8.bf16 %v752_v47  ;;  %v766_v35 = vld [vmem:[%s7984_s14 + $0x8c8] sm:$0xff] }
 0x33b   : > { %2795 = vmatprep.subr.bf16.mxu0 %v1406_v2  ;;  %2959 = vmatprep.subr.bf16.mxu1 %v1408_v3  ;;  %v768_v2 = vld [vmem:[%s7984_s14 + $0x8d8] sm:$0xff]  ;;  %v1533_v3 = vunpack.c.h.s8.bf16 %v749_v53  ;;  %v1550_v5 = vunpack.c.l.s8.bf16 %v766_v35  ;;  %v1566_v11 = vunpack.c.h.s8.bf16 %v766_v35 }
 0x33e   : > { %2796 = vmatpush1.bf16.msra.mxu0 %v1405_v6  ;;  %2960 = vmatpush1.bf16.msra.mxu1 %v1407_v7  ;;  %v1552_v6 = vunpack.c.l.s8.bf16 %v768_v2  ;;  %v765_v7 = vld [vmem:[%s7984_s14 + $0x8c0] sm:$0xff] }
 0x33f   : > { %2797 = vmatprep.subr.bf16.mxu0 %v1422_v8  ;;  %2961 = vmatprep.subr.bf16.mxu1 %v1424_v9  ;;  %v767_v8 = vld [vmem:[%s7984_s14 + $0x8d0] sm:$0xff]  ;;  %v1549_v9 = vunpack.c.l.s8.bf16 %v765_v7 }
 0x340   : > { %v1551_v10 = vunpack.c.l.s8.bf16 %v767_v8  ;;  %v1567_v16 = vunpack.c.h.s8.bf16 %v767_v8 }
 0x342   : > { %2798 = vmatpush1.bf16.msra.mxu0 %v1421_v12  ;;  %2962 = vmatpush1.bf16.msra.mxu1 %v1423_v13  ;;  %v1568_v12 = vunpack.c.h.s8.bf16 %v768_v2  ;;  %v782_v13 = vld [vmem:[%s7984_s14 + $0x948] sm:$0xff] }
 0x343   : > { %2799 = vmatprep.subr.bf16.mxu0 %v1438_v14  ;;  %2963 = vmatprep.subr.bf16.mxu1 %v1440_v15  ;;  %v784_v14 = vld [vmem:[%s7984_s14 + $0x958] sm:$0xff]  ;;  %v1565_v15 = vunpack.c.h.s8.bf16 %v765_v7  ;;  %v1582_v17 = vunpack.c.l.s8.bf16 %v782_v13  ;;  %v1598_v24 = vunpack.c.h.s8.bf16 %v782_v13 }
 0x346   : > { %2800 = vmatpush1.bf16.msra.mxu0 %v1437_v18  ;;  %2964 = vmatpush1.bf16.msra.mxu1 %v1439_v20  ;;  %v1584_v18 = vunpack.c.l.s8.bf16 %v784_v14  ;;  %v781_v20 = vld [vmem:[%s7984_s14 + $0x940] sm:$0xff] }
 0x347   : > { %2801 = vmatprep.subr.bf16.mxu0 %v1454_v21  ;;  %2965 = vmatprep.subr.bf16.mxu1 %v1456_v22  ;;  %v783_v21 = vld [vmem:[%s7984_s14 + $0x950] sm:$0xff]  ;;  %v1581_v22 = vunpack.c.l.s8.bf16 %v781_v20 }
 0x348   : > { %v1583_v23 = vunpack.c.l.s8.bf16 %v783_v21  ;;  %v1599_v30 = vunpack.c.h.s8.bf16 %v783_v21 }
 0x34a   : > { %2802 = vmatpush1.bf16.msra.mxu0 %v1453_v25  ;;  %2966 = vmatpush1.bf16.msra.mxu1 %v1455_v27  ;;  %v1600_v25 = vunpack.c.h.s8.bf16 %v784_v14  ;;  %v798_v27 = vld [vmem:[%s7984_s14 + $0x9c8] sm:$0xff] }
 0x34b   : > { %2803 = vmatprep.subr.bf16.mxu0 %v1470_v28  ;;  %2967 = vmatprep.subr.bf16.mxu1 %v1472_v29  ;;  %v800_v28 = vld [vmem:[%s7984_s14 + $0x9d8] sm:$0xff]  ;;  %v1597_v29 = vunpack.c.h.s8.bf16 %v781_v20  ;;  %v1614_v31 = vunpack.c.l.s8.bf16 %v798_v27  ;;  %v1630_v40 = vunpack.c.h.s8.bf16 %v798_v27 }
 0x34e   : > { %2804 = vmatpush1.bf16.msra.mxu0 %v1469_v33  ;;  %2968 = vmatpush1.bf16.msra.mxu1 %v1471_v34  ;;  %v1616_v33 = vunpack.c.l.s8.bf16 %v800_v28  ;;  %v797_v34 = vld [vmem:[%s7984_s14 + $0x9c0] sm:$0xff] }
 0x34f   : > { %2805 = vmatprep.subr.bf16.mxu0 %v1486_v37  ;;  %2969 = vmatprep.subr.bf16.mxu1 %v1488_v38  ;;  %v799_v37 = vld [vmem:[%s7984_s14 + $0x9d0] sm:$0xff]  ;;  %v1613_v38 = vunpack.c.l.s8.bf16 %v797_v34 }
 0x350   : > { %v1615_v39 = vunpack.c.l.s8.bf16 %v799_v37  ;;  %v1631_v46 = vunpack.c.h.s8.bf16 %v799_v37 }
 0x352   : > { %2806 = vmatpush1.bf16.msra.mxu0 %v1485_v42  ;;  %2970 = vmatpush1.bf16.msra.mxu1 %v1487_v43  ;;  %v1632_v42 = vunpack.c.h.s8.bf16 %v800_v28  ;;  %v814_v43 = vld [vmem:[%s7984_s14 + $0xa48] sm:$0xff] }
 0x353   : > { %2807 = vmatprep.subr.bf16.mxu0 %v1502_v44  ;;  %2971 = vmatprep.subr.bf16.mxu1 %v1504_v45  ;;  %v816_v44 = vld [vmem:[%s7984_s14 + $0xa58] sm:$0xff]  ;;  %v1629_v45 = vunpack.c.h.s8.bf16 %v797_v34  ;;  %v1646_v47 = vunpack.c.l.s8.bf16 %v814_v43  ;;  %v1662_v58 = vunpack.c.h.s8.bf16 %v814_v43 }
 0x356   : > { %2808 = vmatpush1.bf16.msra.mxu0 %v1501_v48  ;;  %2972 = vmatpush1.bf16.msra.mxu1 %v1503_v49  ;;  %v1648_v48 = vunpack.c.l.s8.bf16 %v816_v44  ;;  %v813_v49 = vld [vmem:[%s7984_s14 + $0xa40] sm:$0xff] }
 0x357   : > { %2818 = vmatprep.subr.bf16.mxu0 %v1518_v50  ;;  %2982 = vmatprep.subr.bf16.mxu1 %v1520_v52  ;;  %v815_v50 = vld [vmem:[%s7984_s14 + $0xa50] sm:$0xff]  ;;  %v1645_v52 = vunpack.c.l.s8.bf16 %v813_v49 }
 0x358   : > { %v1647_v53 = vunpack.c.l.s8.bf16 %v815_v50  ;;  %v1663_v35 = vunpack.c.h.s8.bf16 %v815_v50 }
 0x359   : > { %2810 = vmatmul.mubr.bf16.vlgmr.msra.gmra.mrb[8].mxu0 %v8126_v32  ;;  %2974 = vmatmul.mubr.bf16.vlgmr.msra.gmra.mrb[8].mxu1 %v8126_v32 }
 0x35a   : > { %2819 = vmatpush1.bf16.msra.mxu0 %v1517_v59  ;;  %2983 = vmatpush1.bf16.msra.mxu1 %v1519_v41  ;;  %v1664_v59 = vunpack.c.h.s8.bf16 %v816_v44  ;;  %v830_v41 = vld [vmem:[%s7984_s14 + $0xac8] sm:$0xff] }
 0x35b   : > { %2820 = vmatprep.subr.bf16.mxu0 %v1534_v0  ;;  %2984 = vmatprep.subr.bf16.mxu1 %v1536_v1  ;;  %v832_v0 = vld [vmem:[%s7984_s14 + $0xad8] sm:$0xff]  ;;  %v1661_v1 = vunpack.c.h.s8.bf16 %v813_v49  ;;  %v1678_v2 = vunpack.c.l.s8.bf16 %v830_v41  ;;  %v1694_v8 = vunpack.c.h.s8.bf16 %v830_v41 }
 0x35c   : > { %2850 = vmatprep.mubr.bf16.mxu0 %v8079_v60  ;;  %3014 = vmatprep.mubr.bf16.mxu1 %v8079_v60 }
 0x35e   : > { %2821 = vmatpush1.bf16.msra.mxu0 %v1533_v3  ;;  %2985 = vmatpush1.bf16.msra.mxu1 %v1535_v4  ;;  %v1680_v3 = vunpack.c.l.s8.bf16 %v832_v0  ;;  %v829_v4 = vld [vmem:[%s7984_s14 + $0xac0] sm:$0xff] }
 0x35f   : > { %2822 = vmatprep.subr.bf16.mxu0 %v1550_v5  ;;  %2986 = vmatprep.subr.bf16.mxu1 %v1552_v6  ;;  %v831_v5 = vld [vmem:[%s7984_s14 + $0xad0] sm:$0xff]  ;;  %v1677_v6 = vunpack.c.l.s8.bf16 %v829_v4 }
 0x360   : > { %v1679_v7 = vunpack.c.l.s8.bf16 %v831_v5  ;;  %v1695_v13 = vunpack.c.h.s8.bf16 %v831_v5 }
 0x362   : > { %2823 = vmatpush1.bf16.msra.mxu0 %v1549_v9  ;;  %2987 = vmatpush1.bf16.msra.mxu1 %v1551_v10  ;;  %v1696_v9 = vunpack.c.h.s8.bf16 %v832_v0  ;;  %v846_v10 = vld [vmem:[%s7984_s14 + $0xb48] sm:$0xff] }
 0x363   : > { %2824 = vmatprep.subr.bf16.mxu0 %v1566_v11  ;;  %2988 = vmatprep.subr.bf16.mxu1 %v1568_v12  ;;  %v848_v11 = vld [vmem:[%s7984_s14 + $0xb58] sm:$0xff]  ;;  %v1693_v12 = vunpack.c.h.s8.bf16 %v829_v4  ;;  %v1710_v14 = vunpack.c.l.s8.bf16 %v846_v10  ;;  %v1726_v21 = vunpack.c.h.s8.bf16 %v846_v10 }
 0x366   : > { %2825 = vmatpush1.bf16.msra.mxu0 %v1565_v15  ;;  %2989 = vmatpush1.bf16.msra.mxu1 %v1567_v16  ;;  %v1712_v15 = vunpack.c.l.s8.bf16 %v848_v11  ;;  %v845_v16 = vld [vmem:[%s7984_s14 + $0xb40] sm:$0xff] }
 0x367   : > { %2826 = vmatprep.subr.bf16.mxu0 %v1582_v17  ;;  %2990 = vmatprep.subr.bf16.mxu1 %v1584_v18  ;;  %v847_v17 = vld [vmem:[%s7984_s14 + $0xb50] sm:$0xff]  ;;  %v1709_v18 = vunpack.c.l.s8.bf16 %v845_v16 }
 0x368   : > { %v1711_v20 = vunpack.c.l.s8.bf16 %v847_v17  ;;  %v1727_v27 = vunpack.c.h.s8.bf16 %v847_v17 }
 0x36a   : > { %2827 = vmatpush1.bf16.msra.mxu0 %v1581_v22  ;;  %2991 = vmatpush1.bf16.msra.mxu1 %v1583_v23  ;;  %v1728_v22 = vunpack.c.h.s8.bf16 %v848_v11  ;;  %v862_v23 = vld [vmem:[%s7984_s14 + $0xbc8] sm:$0xff] }
 0x36b   : > { %2828 = vmatprep.subr.bf16.mxu0 %v1598_v24  ;;  %2992 = vmatprep.subr.bf16.mxu1 %v1600_v25  ;;  %v864_v24 = vld [vmem:[%s7984_s14 + $0xbd8] sm:$0xff]  ;;  %v1725_v25 = vunpack.c.h.s8.bf16 %v845_v16  ;;  %v1742_v28 = vunpack.c.l.s8.bf16 %v862_v23  ;;  %v1758_v37 = vunpack.c.h.s8.bf16 %v862_v23 }
 0x36e   : > { %2829 = vmatpush1.bf16.msra.mxu0 %v1597_v29  ;;  %2993 = vmatpush1.bf16.msra.mxu1 %v1599_v30  ;;  %v1744_v29 = vunpack.c.l.s8.bf16 %v864_v24  ;;  %v861_v30 = vld [vmem:[%s7984_s14 + $0xbc0] sm:$0xff] }
 0x36f   : > { %2830 = vmatprep.subr.bf16.mxu0 %v1614_v31  ;;  %2994 = vmatprep.subr.bf16.mxu1 %v1616_v33  ;;  %v863_v31 = vld [vmem:[%s7984_s14 + $0xbd0] sm:$0xff]  ;;  %v1741_v33 = vunpack.c.l.s8.bf16 %v861_v30 }
 0x370   : > { %v1743_v34 = vunpack.c.l.s8.bf16 %v863_v31  ;;  %v1759_v43 = vunpack.c.h.s8.bf16 %v863_v31 }
 0x372   : > { %2831 = vmatpush1.bf16.msra.mxu0 %v1613_v38  ;;  %2995 = vmatpush1.bf16.msra.mxu1 %v1615_v39  ;;  %v1760_v38 = vunpack.c.h.s8.bf16 %v864_v24  ;;  %v878_v39 = vld [vmem:[%s7984_s14 + $0xc48] sm:$0xff] }
 0x373   : > { %2832 = vmatprep.subr.bf16.mxu0 %v1630_v40  ;;  %2996 = vmatprep.subr.bf16.mxu1 %v1632_v42  ;;  %v880_v40 = vld [vmem:[%s7984_s14 + $0xc58] sm:$0xff]  ;;  %v1757_v42 = vunpack.c.h.s8.bf16 %v861_v30  ;;  %v1774_v44 = vunpack.c.l.s8.bf16 %v878_v39  ;;  %v1790_v50 = vunpack.c.h.s8.bf16 %v878_v39 }
 0x376   : > { %2833 = vmatpush1.bf16.msra.mxu0 %v1629_v45  ;;  %2997 = vmatpush1.bf16.msra.mxu1 %v1631_v46  ;;  %v1776_v45 = vunpack.c.l.s8.bf16 %v880_v40  ;;  %v877_v46 = vld [vmem:[%s7984_s14 + $0xc40] sm:$0xff] }
 0x377   : > { %2834 = vmatprep.subr.bf16.mxu0 %v1646_v47  ;;  %2998 = vmatprep.subr.bf16.mxu1 %v1648_v48  ;;  %v879_v47 = vld [vmem:[%s7984_s14 + $0xc50] sm:$0xff]  ;;  %v1773_v48 = vunpack.c.l.s8.bf16 %v877_v46 }
 0x378   : > { %v1775_v49 = vunpack.c.l.s8.bf16 %v879_v47  ;;  %v1791_v41 = vunpack.c.h.s8.bf16 %v879_v47 }
 0x37a   : > { %2835 = vmatpush1.bf16.msra.mxu0 %v1645_v52  ;;  %2999 = vmatpush1.bf16.msra.mxu1 %v1647_v53  ;;  %v1792_v52 = vunpack.c.h.s8.bf16 %v880_v40  ;;  %v894_v53 = vld [vmem:[%s7984_s14 + $0xcc8] sm:$0xff] }
 0x37b   : > { %2836 = vmatprep.subr.bf16.mxu0 %v1662_v58  ;;  %3000 = vmatprep.subr.bf16.mxu1 %v1664_v59  ;;  %v896_v58 = vld [vmem:[%s7984_s14 + $0xcd8] sm:$0xff]  ;;  %v1789_v59 = vunpack.c.h.s8.bf16 %v877_v46  ;;  %v1806_v0 = vunpack.c.l.s8.bf16 %v894_v53  ;;  %v1822_v5 = vunpack.c.h.s8.bf16 %v894_v53  ;;  %v943_v53 = vld [vmem:[%s7984_s14 + $0xe50] sm:$0xff] }
 0x37c   : > { %v944_v46 = vld [vmem:[%s7984_s14 + $0xe58] sm:$0xff] }
 0x37e   : > { %2837 = vmatpush1.bf16.msra.mxu0 %v1661_v1  ;;  %3001 = vmatpush1.bf16.msra.mxu1 %v1663_v35  ;;  %v1808_v1 = vunpack.c.l.s8.bf16 %v896_v58  ;;  %v893_v35 = vld [vmem:[%s7984_s14 + $0xcc0] sm:$0xff] }
 0x37f   : > { %2838 = vmatprep.subr.bf16.mxu0 %v1678_v2  ;;  %3002 = vmatprep.subr.bf16.mxu1 %v1680_v3  ;;  %v895_v2 = vld [vmem:[%s7984_s14 + $0xcd0] sm:$0xff]  ;;  %v1805_v3 = vunpack.c.l.s8.bf16 %v893_v35 }
 0x380   : > { %v1807_v4 = vunpack.c.l.s8.bf16 %v895_v2  ;;  %v1823_v10 = vunpack.c.h.s8.bf16 %v895_v2 }
 0x382   : > { %2839 = vmatpush1.bf16.msra.mxu0 %v1677_v6  ;;  %3003 = vmatpush1.bf16.msra.mxu1 %v1679_v7  ;;  %v1824_v6 = vunpack.c.h.s8.bf16 %v896_v58  ;;  %v910_v7 = vld [vmem:[%s7984_s14 + $0xd48] sm:$0xff] }
 0x383   : > { %2840 = vmatprep.subr.bf16.mxu0 %v1694_v8  ;;  %3004 = vmatprep.subr.bf16.mxu1 %v1696_v9  ;;  %v912_v8 = vld [vmem:[%s7984_s14 + $0xd58] sm:$0xff]  ;;  %v1821_v9 = vunpack.c.h.s8.bf16 %v893_v35  ;;  %v1838_v11 = vunpack.c.l.s8.bf16 %v910_v7  ;;  %v1854_v17 = vunpack.c.h.s8.bf16 %v910_v7  ;;  %v959_v7 = vld [vmem:[%s7984_s14 + $0xed0] sm:$0xff] }
 0x384   : > { %v960_v35 = vld [vmem:[%s7984_s14 + $0xed8] sm:$0xff] }
 0x386   : > { %2841 = vmatpush1.bf16.msra.mxu0 %v1693_v12  ;;  %3005 = vmatpush1.bf16.msra.mxu1 %v1695_v13  ;;  %v1840_v12 = vunpack.c.l.s8.bf16 %v912_v8  ;;  %v909_v13 = vld [vmem:[%s7984_s14 + $0xd40] sm:$0xff] }
 0x387   : > { %2842 = vmatprep.subr.bf16.mxu0 %v1710_v14  ;;  %3006 = vmatprep.subr.bf16.mxu1 %v1712_v15  ;;  %v911_v14 = vld [vmem:[%s7984_s14 + $0xd50] sm:$0xff]  ;;  %v1837_v15 = vunpack.c.l.s8.bf16 %v909_v13 }
 0x388   : > { %v1839_v16 = vunpack.c.l.s8.bf16 %v911_v14  ;;  %v1855_v23 = vunpack.c.h.s8.bf16 %v911_v14 }
 0x38a   : > { %2843 = vmatpush1.bf16.msra.mxu0 %v1709_v18  ;;  %3007 = vmatpush1.bf16.msra.mxu1 %v1711_v20  ;;  %v1856_v18 = vunpack.c.h.s8.bf16 %v912_v8  ;;  %v926_v20 = vld [vmem:[%s7984_s14 + $0xdc8] sm:$0xff] }
 0x38b   : > { %2844 = vmatprep.subr.bf16.mxu0 %v1726_v21  ;;  %3008 = vmatprep.subr.bf16.mxu1 %v1728_v22  ;;  %v928_v21 = vld [vmem:[%s7984_s14 + $0xdd8] sm:$0xff]  ;;  %v1853_v22 = vunpack.c.h.s8.bf16 %v909_v13  ;;  %v1870_v24 = vunpack.c.l.s8.bf16 %v926_v20 }
 0x38c   : > { %v976_v13 = vld [vmem:[%s7984_s14 + $0xf58] sm:$0xff] }
 0x38e   : > { %2845 = vmatpush1.bf16.msra.mxu0 %v1725_v25  ;;  %3009 = vmatpush1.bf16.msra.mxu1 %v1727_v27  ;;  %v1872_v25 = vunpack.c.l.s8.bf16 %v928_v21  ;;  %v925_v27 = vld [vmem:[%s7984_s14 + $0xdc0] sm:$0xff] }
 0x38f   : > { %2846 = vmatprep.subr.bf16.mxu0 %v1742_v28  ;;  %3010 = vmatprep.subr.bf16.mxu1 %v1744_v29  ;;  %v927_v28 = vld [vmem:[%s7984_s14 + $0xdd0] sm:$0xff]  ;;  %v1885_v47 = vunpack.c.h.s8.bf16 %v925_v27 }
 0x390   : > { %v1871_v39 = vunpack.c.l.s8.bf16 %v927_v28 }
 0x392   : > { %2847 = vmatpush1.bf16.msra.mxu0 %v1741_v33  ;;  %3011 = vmatpush1.bf16.msra.mxu1 %v1743_v34 }
 0x393   : > { %2848 = vmatprep.subr.bf16.mxu0 %v1758_v37  ;;  %3012 = vmatprep.subr.bf16.mxu1 %v1760_v38  ;;  %v1869_v38 = vunpack.c.l.s8.bf16 %v925_v27  ;;  %v992_v27 = vld [vmem:[%s7984_s14 + $0xfd8] sm:$0xff] }
 0x396   : > { %2849 = vmatpush1.bf16.msra.mxu0 %v1757_v42  ;;  %3013 = vmatpush1.bf16.msra.mxu1 %v1759_v43  ;;  %v1886_v43 = vunpack.c.h.s8.bf16 %v926_v20  ;;  %v975_v20 = vld [vmem:[%s7984_s14 + $0xf50] sm:$0xff] }
 0x397   : > { %2859 = vmatprep.subr.bf16.mxu0 %v1774_v44  ;;  %3023 = vmatprep.subr.bf16.mxu1 %v1776_v45  ;;  %v1888_v44 = vunpack.c.h.s8.bf16 %v928_v21  ;;  %v942_v45 = vld [vmem:[%s7984_s14 + $0xe48] sm:$0xff] }
 0x399   : > { %2851 = vmatmul.mubr.bf16.vlgmr.msra.gmra.mrb[8].mxu0 %v8082_v61  ;;  %3015 = vmatmul.mubr.bf16.vlgmr.msra.gmra.mrb[8].mxu1 %v8082_v61 }
 0x39a   : > { %2860 = vmatpush1.bf16.msra.mxu0 %v1773_v48  ;;  %3024 = vmatpush1.bf16.msra.mxu1 %v1775_v49  ;;  %v1887_v48 = vunpack.c.h.s8.bf16 %v927_v28  ;;  %v1902_v49 = vunpack.c.l.s8.bf16 %v942_v45 }
 0x39b   : > { %2861 = vmatprep.subr.bf16.mxu0 %v1790_v50  ;;  %3025 = vmatprep.subr.bf16.mxu1 %v1792_v52  ;;  %v1904_v50 = vunpack.c.l.s8.bf16 %v944_v46  ;;  %v941_v52 = vld [vmem:[%s7984_s14 + $0xe40] sm:$0xff] }
 0x39c   : > { %2891 = vmatprep.mubr.bf16.mxu0 %v8168_v19  ;;  %3055 = vmatprep.mubr.bf16.mxu1 %v8168_v19  ;;  %v1901_v58 = vunpack.c.l.s8.bf16 %v941_v52  ;;  %v1917_v2 = vunpack.c.h.s8.bf16 %v941_v52 }
 0x39e   : > { %2862 = vmatpush1.bf16.msra.mxu0 %v1789_v59  ;;  %3026 = vmatpush1.bf16.msra.mxu1 %v1791_v41  ;;  %v1903_v59 = vunpack.c.l.s8.bf16 %v943_v53  ;;  %v1918_v41 = vunpack.c.h.s8.bf16 %v942_v45  ;;  %v2016_v45 = vunpack.c.h.s8.bf16 %v992_v27 }
 0x39f   : > { %2863 = vmatprep.subr.bf16.mxu0 %v1806_v0  ;;  %3027 = vmatprep.subr.bf16.mxu1 %v1808_v1  ;;  %v1920_v0 = vunpack.c.h.s8.bf16 %v944_v46  ;;  %v958_v1 = vld [vmem:[%s7984_s14 + $0xec8] sm:$0xff] }
 0x3a0   : > { %v498_v46 = vld [vmem:[%s7984_s14 + $0x68] sm:$0xff] }
 0x3a2   : > { %2864 = vmatpush1.bf16.msra.mxu0 %v1805_v3  ;;  %3028 = vmatpush1.bf16.msra.mxu1 %v1807_v4  ;;  %v1919_v3 = vunpack.c.h.s8.bf16 %v943_v53  ;;  %v1934_v4 = vunpack.c.l.s8.bf16 %v958_v1  ;;  %v497_v53 = vld [vmem:[%s7984_s14 + $0x60] sm:$0xff] }
 0x3a3   : > { %2865 = vmatprep.subr.bf16.mxu0 %v1822_v5  ;;  %3029 = vmatprep.subr.bf16.mxu1 %v1824_v6  ;;  %v1936_v5 = vunpack.c.l.s8.bf16 %v960_v35  ;;  %v957_v6 = vld [vmem:[%s7984_s14 + $0xec0] sm:$0xff] }
 0x3a4   : > { %v1933_v8 = vunpack.c.l.s8.bf16 %v957_v6  ;;  %v1949_v14 = vunpack.c.h.s8.bf16 %v957_v6 }
 0x3a6   : > { %2866 = vmatpush1.bf16.msra.mxu0 %v1821_v9  ;;  %3030 = vmatpush1.bf16.msra.mxu1 %v1823_v10  ;;  %v1935_v9 = vunpack.c.l.s8.bf16 %v959_v7  ;;  %v1950_v10 = vunpack.c.h.s8.bf16 %v958_v1 }
 0x3a7   : > { %2867 = vmatprep.subr.bf16.mxu0 %v1838_v11  ;;  %3031 = vmatprep.subr.bf16.mxu1 %v1840_v12  ;;  %v1952_v11 = vunpack.c.h.s8.bf16 %v960_v35  ;;  %v974_v12 = vld [vmem:[%s7984_s14 + $0xf48] sm:$0xff] }
 0x3a8   : > { %v514_v35 = vld [vmem:[%s7984_s14 + $0xe8] sm:$0xff] }
 0x3aa   : > { %2868 = vmatpush1.bf16.msra.mxu0 %v1837_v15  ;;  %3032 = vmatpush1.bf16.msra.mxu1 %v1839_v16  ;;  %v1951_v15 = vunpack.c.h.s8.bf16 %v959_v7  ;;  %v1966_v16 = vunpack.c.l.s8.bf16 %v974_v12  ;;  %v513_v7 = vld [vmem:[%s7984_s14 + $0xe0] sm:$0xff] }
 0x3ab   : > { %2869 = vmatprep.subr.bf16.mxu0 %v1854_v17  ;;  %3033 = vmatprep.subr.bf16.mxu1 %v1856_v18  ;;  %v1968_v17 = vunpack.c.l.s8.bf16 %v976_v13  ;;  %v973_v18 = vld [vmem:[%s7984_s14 + $0xf40] sm:$0xff] }
 0x3ac   : > { %v8484_v29 = vpop.f32.mrb[4].mxu0  ;;  %v8486_v30 = vpop.f32.mrb[4].mxu1  ;;  %v1965_v21 = vunpack.c.l.s8.bf16 %v973_v18  ;;  %v1981_v28 = vunpack.c.h.s8.bf16 %v973_v18  ;;  %v529_v18 = vld [vmem:[%s7984_s14 + $0x160] sm:$0xff] }
 0x3ad   : > { %v8488_v31 = vpop.f32.mrb[5].mxu0  ;;  %v8490_v33 = vpop.f32.mrb[5].mxu1 }
 0x3ae   : > { %v2569_v34 = vpop.f32.mrb[6].mxu0  ;;  %v2733_v37 = vpop.f32.mrb[6].mxu1  ;;  %2870 = vmatpush1.bf16.msra.mxu0 %v1853_v22  ;;  %3034 = vmatpush1.bf16.msra.mxu1 %v1855_v23  ;;  %v1967_v22 = vunpack.c.l.s8.bf16 %v975_v20  ;;  %v1982_v23 = vunpack.c.h.s8.bf16 %v974_v12 }
 0x3af   : > { %v2570_v40 = vpop.f32.mrb[7].mxu0  ;;  %v2734_v42 = vpop.f32.mrb[7].mxu1  ;;  %2871 = vmatprep.subr.bf16.mxu0 %v1870_v24  ;;  %3035 = vmatprep.subr.bf16.mxu1 %v1872_v25  ;;  %v1984_v24 = vunpack.c.h.s8.bf16 %v976_v13  ;;  %v990_v25 = vld [vmem:[%s7984_s14 + $0xfc8] sm:$0xff]  ;;  %v1983_v34 = vunpack.c.h.s8.bf16 %v975_v20  ;;  %v531_v20 = vld [vmem:[%s7984_s14 + $0x170] sm:$0xff] }
 0x3b0   : > { %v1998_v37 = vunpack.c.l.s8.bf16 %v990_v25  ;;  %v991_v40 = vld [vmem:[%s7984_s14 + $0xfd0] sm:$0xff]  ;;  %v530_v13 = vld [vmem:[%s7984_s14 + $0x168] sm:$0xff] }
 0x3b2   : > { %2872 = vmatpush1.bf16.msra.mxu0 %v1869_v38  ;;  %3036 = vmatpush1.bf16.msra.mxu1 %v1871_v39  ;;  %v2000_v38 = vunpack.c.l.s8.bf16 %v992_v27  ;;  %v989_v39 = vld [vmem:[%s7984_s14 + $0xfc0] sm:$0xff]  ;;  %v548_v27 = vld [vmem:[%s7984_s14 + $0x1f8] sm:$0xff] }
 0x3b3   : > { %2873 = vmatprep.subr.bf16.mxu0 %v1886_v43  ;;  %3037 = vmatprep.subr.bf16.mxu1 %v1888_v44  ;;  %v1997_v42 = vunpack.c.l.s8.bf16 %v989_v39  ;;  %v1999_v43 = vunpack.c.l.s8.bf16 %v991_v40  ;;  %v2014_v44 = vunpack.c.h.s8.bf16 %v990_v25  ;;  %v546_v25 = vld [vmem:[%s7984_s14 + $0x1e8] sm:$0xff] }
 0x3b6   : > { %2874 = vmatpush1.bf16.msra.mxu0 %v1885_v47  ;;  %3038 = vmatpush1.bf16.msra.mxu1 %v1887_v48  ;;  %v500_v47 = vld [vmem:[%s7984_s14 + $0x78] sm:$0xff]  ;;  %v2013_v48 = vunpack.c.h.s8.bf16 %v989_v39  ;;  %v545_v39 = vld [vmem:[%s7984_s14 + $0x1e0] sm:$0xff] }
 0x3b7   : > { %2875 = vmatprep.subr.bf16.mxu0 %v1902_v49  ;;  %3039 = vmatprep.subr.bf16.mxu1 %v1904_v50  ;;  %v2015_v49 = vunpack.c.h.s8.bf16 %v991_v40  ;;  %v1010_v50 = vunpack.c.l.s8.bf16 %v498_v46  ;;  %v1012_v52 = vunpack.c.l.s8.bf16 %v500_v47  ;;  %v1028_v1 = vunpack.c.h.s8.bf16 %v500_v47  ;;  %v547_v40 = vld [vmem:[%s7984_s14 + $0x1f0] sm:$0xff]  ;;  %v564_v47 = vld [vmem:[%s7984_s14 + $0x278] sm:$0xff] }
 0x3ba   : > { %2876 = vmatpush1.bf16.msra.mxu0 %v1901_v58  ;;  %3040 = vmatpush1.bf16.msra.mxu1 %v1903_v59  ;;  %v499_v58 = vld [vmem:[%s7984_s14 + $0x70] sm:$0xff]  ;;  %v1009_v59 = vunpack.c.l.s8.bf16 %v497_v53 }
 0x3bb   : > { %2877 = vmatprep.subr.bf16.mxu0 %v1918_v41  ;;  %3041 = vmatprep.subr.bf16.mxu1 %v1920_v0  ;;  %v1011_v41 = vunpack.c.l.s8.bf16 %v499_v58  ;;  %v1026_v0 = vunpack.c.h.s8.bf16 %v498_v46  ;;  %v562_v46 = vld [vmem:[%s7984_s14 + $0x268] sm:$0xff] }
 0x3be   : > { %2878 = vmatpush1.bf16.msra.mxu0 %v1917_v2  ;;  %3042 = vmatpush1.bf16.msra.mxu1 %v1919_v3  ;;  %v516_v2 = vld [vmem:[%s7984_s14 + $0xf8] sm:$0xff]  ;;  %v1025_v3 = vunpack.c.h.s8.bf16 %v497_v53  ;;  %v561_v53 = vld [vmem:[%s7984_s14 + $0x260] sm:$0xff] }
 0x3bf   : > { %2879 = vmatprep.subr.bf16.mxu0 %v1934_v4  ;;  %3043 = vmatprep.subr.bf16.mxu1 %v1936_v5  ;;  %v1027_v4 = vunpack.c.h.s8.bf16 %v499_v58  ;;  %v1042_v5 = vunpack.c.l.s8.bf16 %v514_v35  ;;  %v1044_v6 = vunpack.c.l.s8.bf16 %v516_v2  ;;  %v1060_v12 = vunpack.c.h.s8.bf16 %v516_v2  ;;  %v563_v58 = vld [vmem:[%s7984_s14 + $0x270] sm:$0xff]  ;;  %v580_v2 = vld [vmem:[%s7984_s14 + $0x2f8] sm:$0xff] }
 0x3c2   : > { %2880 = vmatpush1.bf16.msra.mxu0 %v1933_v8  ;;  %3044 = vmatpush1.bf16.msra.mxu1 %v1935_v9  ;;  %v515_v8 = vld [vmem:[%s7984_s14 + $0xf0] sm:$0xff]  ;;  %v1041_v9 = vunpack.c.l.s8.bf16 %v513_v7 }
 0x3c3   : > { %2881 = vmatprep.subr.bf16.mxu0 %v1950_v10  ;;  %3045 = vmatprep.subr.bf16.mxu1 %v1952_v11  ;;  %v1043_v10 = vunpack.c.l.s8.bf16 %v515_v8  ;;  %v1058_v11 = vunpack.c.h.s8.bf16 %v514_v35  ;;  %v578_v35 = vld [vmem:[%s7984_s14 + $0x2e8] sm:$0xff] }
 0x3c6   : > { %2882 = vmatpush1.bf16.msra.mxu0 %v1949_v14  ;;  %3046 = vmatpush1.bf16.msra.mxu1 %v1951_v15  ;;  %v532_v14 = vld [vmem:[%s7984_s14 + $0x178] sm:$0xff]  ;;  %v1057_v15 = vunpack.c.h.s8.bf16 %v513_v7  ;;  %v577_v7 = vld [vmem:[%s7984_s14 + $0x2e0] sm:$0xff] }
 0x3c7   : > { %2883 = vmatprep.subr.bf16.mxu0 %v1966_v16  ;;  %3047 = vmatprep.subr.bf16.mxu1 %v1968_v17  ;;  %v1059_v16 = vunpack.c.h.s8.bf16 %v515_v8  ;;  %v1076_v17 = vunpack.c.l.s8.bf16 %v532_v14  ;;  %v579_v8 = vld [vmem:[%s7984_s14 + $0x2f0] sm:$0xff] }
 0x3ca   : > { %2884 = vmatpush1.bf16.msra.mxu0 %v1965_v21  ;;  %3048 = vmatpush1.bf16.msra.mxu1 %v1967_v22  ;;  %v1073_v21 = vunpack.c.l.s8.bf16 %v529_v18  ;;  %v1075_v22 = vunpack.c.l.s8.bf16 %v531_v20 }
 0x3cb   : > { %2885 = vmatprep.subr.bf16.mxu0 %v1982_v23  ;;  %3049 = vmatprep.subr.bf16.mxu1 %v1984_v24  ;;  %v1090_v23 = vunpack.c.h.s8.bf16 %v530_v13  ;;  %v1092_v24 = vunpack.c.h.s8.bf16 %v532_v14  ;;  %v596_v14 = vld [vmem:[%s7984_s14 + $0x378] sm:$0xff] }
 0x3ce   : > { %2886 = vmatpush1.bf16.msra.mxu0 %v1981_v28  ;;  %3050 = vmatpush1.bf16.msra.mxu1 %v1983_v34  ;;  %v1089_v28 = vunpack.c.h.s8.bf16 %v529_v18  ;;  %v1091_v34 = vunpack.c.h.s8.bf16 %v531_v20  ;;  %v593_v18 = vld [vmem:[%s7984_s14 + $0x360] sm:$0xff]  ;;  %v595_v20 = vld [vmem:[%s7984_s14 + $0x370] sm:$0xff] }
 0x3cf   : > { %2887 = vmatprep.subr.bf16.mxu0 %v1998_v37  ;;  %3051 = vmatprep.subr.bf16.mxu1 %v2000_v38  ;;  %v1106_v37 = vunpack.c.l.s8.bf16 %v546_v25  ;;  %v1108_v38 = vunpack.c.l.s8.bf16 %v548_v27 }
 0x3d2   : > { %2888 = vmatpush1.bf16.msra.mxu0 %v1997_v42  ;;  %3052 = vmatpush1.bf16.msra.mxu1 %v1999_v43  ;;  %v1105_v42 = vunpack.c.l.s8.bf16 %v545_v39  ;;  %v1107_v43 = vunpack.c.l.s8.bf16 %v547_v40 }
 0x3d3   : > { %2889 = vmatprep.subr.bf16.mxu0 %v2014_v44  ;;  %3053 = vmatprep.subr.bf16.mxu1 %v2016_v45  ;;  %v1122_v44 = vunpack.c.h.s8.bf16 %v546_v25  ;;  %v1124_v45 = vunpack.c.h.s8.bf16 %v548_v27  ;;  %v610_v25 = vld [vmem:[%s7984_s14 + $0x3e8] sm:$0xff]  ;;  %v612_v27 = vld [vmem:[%s7984_s14 + $0x3f8] sm:$0xff] }
 0x3d6   : > { %2890 = vmatpush1.bf16.msra.mxu0 %v2013_v48  ;;  %3054 = vmatpush1.bf16.msra.mxu1 %v2015_v49  ;;  %v1121_v48 = vunpack.c.h.s8.bf16 %v545_v39  ;;  %v1123_v49 = vunpack.c.h.s8.bf16 %v547_v40  ;;  %v609_v39 = vld [vmem:[%s7984_s14 + $0x3e0] sm:$0xff]  ;;  %v611_v40 = vld [vmem:[%s7984_s14 + $0x3f0] sm:$0xff] }
 0x3d7   : > { %3064 = vmatprep.subr.bf16.mxu0 %v1010_v50  ;;  %3228 = vmatprep.subr.bf16.mxu1 %v1012_v52  ;;  %v1138_v50 = vunpack.c.l.s8.bf16 %v562_v46  ;;  %v1140_v52 = vunpack.c.l.s8.bf16 %v564_v47 }
 0x3d9   : > { %2892 = vmatmul.mubr.bf16.vlgmr.msra.gmra.mrb[8].mxu0 %v8206_v62  ;;  %3056 = vmatmul.mubr.bf16.vlgmr.msra.gmra.mrb[8].mxu1 %v8206_v62 }
 0x3da   : > { %3065 = vmatpush1.bf16.msra.mxu0 %v1009_v59  ;;  %3229 = vmatpush1.bf16.msra.mxu1 %v1011_v41  ;;  %v1137_v59 = vunpack.c.l.s8.bf16 %v561_v53  ;;  %v1139_v41 = vunpack.c.l.s8.bf16 %v563_v58 }
 0x3db   : > { %3066 = vmatprep.subr.bf16.mxu0 %v1026_v0  ;;  %3230 = vmatprep.subr.bf16.mxu1 %v1028_v1  ;;  %v1154_v0 = vunpack.c.h.s8.bf16 %v562_v46  ;;  %v1156_v1 = vunpack.c.h.s8.bf16 %v564_v47  ;;  %v626_v46 = vld [vmem:[%s7984_s14 + $0x468] sm:$0xff]  ;;  %v628_v47 = vld [vmem:[%s7984_s14 + $0x478] sm:$0xff] }
 0x3dc   : > { %3096 = vmatprep.mubr.bf16.mxu0 %v8047_v51  ;;  %3260 = vmatprep.mubr.bf16.mxu1 %v8047_v51  ;;  %v1074_v51 = vunpack.c.l.s8.bf16 %v530_v13  ;;  %v594_v13 = vld [vmem:[%s7984_s14 + $0x368] sm:$0xff] }
 0x3de   : > { %3067 = vmatpush1.bf16.msra.mxu0 %v1025_v3  ;;  %3231 = vmatpush1.bf16.msra.mxu1 %v1027_v4  ;;  %v1153_v3 = vunpack.c.h.s8.bf16 %v561_v53  ;;  %v1155_v4 = vunpack.c.h.s8.bf16 %v563_v58  ;;  %v625_v53 = vld [vmem:[%s7984_s14 + $0x460] sm:$0xff]  ;;  %v627_v58 = vld [vmem:[%s7984_s14 + $0x470] sm:$0xff] }
 0x3df   : > { %3068 = vmatprep.subr.bf16.mxu0 %v1042_v5  ;;  %3232 = vmatprep.subr.bf16.mxu1 %v1044_v6  ;;  %v1170_v5 = vunpack.c.l.s8.bf16 %v578_v35  ;;  %v1172_v6 = vunpack.c.l.s8.bf16 %v580_v2 }
 0x3e2   : > { %3069 = vmatpush1.bf16.msra.mxu0 %v1041_v9  ;;  %3233 = vmatpush1.bf16.msra.mxu1 %v1043_v10  ;;  %v1169_v9 = vunpack.c.l.s8.bf16 %v577_v7  ;;  %v1171_v10 = vunpack.c.l.s8.bf16 %v579_v8 }
 0x3e3   : > { %3070 = vmatprep.subr.bf16.mxu0 %v1058_v11  ;;  %3234 = vmatprep.subr.bf16.mxu1 %v1060_v12  ;;  %v1186_v11 = vunpack.c.h.s8.bf16 %v578_v35  ;;  %v1188_v12 = vunpack.c.h.s8.bf16 %v580_v2  ;;  %v642_v35 = vld [vmem:[%s7984_s14 + $0x4e8] sm:$0xff]  ;;  %v644_v2 = vld [vmem:[%s7984_s14 + $0x4f8] sm:$0xff] }
 0x3e6   : > { %3071 = vmatpush1.bf16.msra.mxu0 %v1057_v15  ;;  %3235 = vmatpush1.bf16.msra.mxu1 %v1059_v16  ;;  %v1185_v15 = vunpack.c.h.s8.bf16 %v577_v7  ;;  %v1187_v16 = vunpack.c.h.s8.bf16 %v579_v8  ;;  %v641_v7 = vld [vmem:[%s7984_s14 + $0x4e0] sm:$0xff]  ;;  %v643_v8 = vld [vmem:[%s7984_s14 + $0x4f0] sm:$0xff] }
 0x3e7   : > { %3072 = vmatprep.subr.bf16.mxu0 %v1074_v51  ;;  %3236 = vmatprep.subr.bf16.mxu1 %v1076_v17  ;;  %v1202_v51 = vunpack.c.l.s8.bf16 %v594_v13  ;;  %v1204_v17 = vunpack.c.l.s8.bf16 %v596_v14 }
 0x3ea   : > { %3073 = vmatpush1.bf16.msra.mxu0 %v1073_v21  ;;  %3237 = vmatpush1.bf16.msra.mxu1 %v1075_v22  ;;  %v1201_v21 = vunpack.c.l.s8.bf16 %v593_v18  ;;  %v1203_v22 = vunpack.c.l.s8.bf16 %v595_v20 }
 0x3eb   : > { %3074 = vmatprep.subr.bf16.mxu0 %v1090_v23  ;;  %3238 = vmatprep.subr.bf16.mxu1 %v1092_v24  ;;  %v1218_v23 = vunpack.c.h.s8.bf16 %v594_v13  ;;  %v1220_v24 = vunpack.c.h.s8.bf16 %v596_v14  ;;  %v660_v13 = vld [vmem:[%s7984_s14 + $0x578] sm:$0xff]  ;;  %v1313_v14 = vunpack.c.h.s8.bf16 %v641_v7 }
 0x3ee   : > { %3075 = vmatpush1.bf16.msra.mxu0 %v1089_v28  ;;  %3239 = vmatpush1.bf16.msra.mxu1 %v1091_v34  ;;  %v1217_v28 = vunpack.c.h.s8.bf16 %v593_v18  ;;  %v1219_v34 = vunpack.c.h.s8.bf16 %v595_v20 }
 0x3ef   : > { %3076 = vmatprep.subr.bf16.mxu0 %v1106_v37  ;;  %3240 = vmatprep.subr.bf16.mxu1 %v1108_v38  ;;  %v1234_v37 = vunpack.c.l.s8.bf16 %v610_v25  ;;  %v1236_v38 = vunpack.c.l.s8.bf16 %v612_v27 }
 0x3f2   : > { %3077 = vmatpush1.bf16.msra.mxu0 %v1105_v42  ;;  %3241 = vmatpush1.bf16.msra.mxu1 %v1107_v43  ;;  %v1233_v42 = vunpack.c.l.s8.bf16 %v609_v39  ;;  %v1235_v43 = vunpack.c.l.s8.bf16 %v611_v40 }
 0x3f3   : > { %3078 = vmatprep.subr.bf16.mxu0 %v1122_v44  ;;  %3242 = vmatprep.subr.bf16.mxu1 %v1124_v45  ;;  %v1250_v44 = vunpack.c.h.s8.bf16 %v610_v25  ;;  %v1252_v45 = vunpack.c.h.s8.bf16 %v612_v27 }
 0x3f6   : > { %3079 = vmatpush1.bf16.msra.mxu0 %v1121_v48  ;;  %3243 = vmatpush1.bf16.msra.mxu1 %v1123_v49  ;;  %v1249_v48 = vunpack.c.h.s8.bf16 %v609_v39  ;;  %v1251_v49 = vunpack.c.h.s8.bf16 %v611_v40 }
 0x3f7   : > { %3080 = vmatprep.subr.bf16.mxu0 %v1138_v50  ;;  %3244 = vmatprep.subr.bf16.mxu1 %v1140_v52  ;;  %v1266_v50 = vunpack.c.l.s8.bf16 %v626_v46  ;;  %v1268_v52 = vunpack.c.l.s8.bf16 %v628_v47 }
 0x3fa   : > { %3081 = vmatpush1.bf16.msra.mxu0 %v1137_v59  ;;  %3245 = vmatpush1.bf16.msra.mxu1 %v1139_v41  ;;  %v1265_v59 = vunpack.c.l.s8.bf16 %v625_v53  ;;  %v1267_v41 = vunpack.c.l.s8.bf16 %v627_v58 }
 0x3fb   : > { %3082 = vmatprep.subr.bf16.mxu0 %v1154_v0  ;;  %3246 = vmatprep.subr.bf16.mxu1 %v1156_v1  ;;  %v1282_v0 = vunpack.c.h.s8.bf16 %v626_v46  ;;  %v1284_v1 = vunpack.c.h.s8.bf16 %v628_v47 }
 0x3fe   : > { %3083 = vmatpush1.bf16.msra.mxu0 %v1153_v3  ;;  %3247 = vmatpush1.bf16.msra.mxu1 %v1155_v4  ;;  %v1281_v3 = vunpack.c.h.s8.bf16 %v625_v53  ;;  %v1283_v4 = vunpack.c.h.s8.bf16 %v627_v58 }
 0x3ff   : > { %3084 = vmatprep.subr.bf16.mxu0 %v1170_v5  ;;  %3248 = vmatprep.subr.bf16.mxu1 %v1172_v6  ;;  %v1298_v5 = vunpack.c.l.s8.bf16 %v642_v35  ;;  %v1300_v6 = vunpack.c.l.s8.bf16 %v644_v2 }
 0x402   : > { %3085 = vmatpush1.bf16.msra.mxu0 %v1169_v9  ;;  %3249 = vmatpush1.bf16.msra.mxu1 %v1171_v10  ;;  %v1297_v9 = vunpack.c.l.s8.bf16 %v641_v7  ;;  %v1314_v10 = vunpack.c.h.s8.bf16 %v642_v35 }
 0x403   : > { %3086 = vmatprep.subr.bf16.mxu0 %v1186_v11  ;;  %3250 = vmatprep.subr.bf16.mxu1 %v1188_v12  ;;  %v1316_v11 = vunpack.c.h.s8.bf16 %v644_v2  ;;  %v658_v12 = vld [vmem:[%s7984_s14 + $0x568] sm:$0xff] }
 0x406   : > { %3087 = vmatpush1.bf16.msra.mxu0 %v1185_v15  ;;  %3251 = vmatpush1.bf16.msra.mxu1 %v1187_v16  ;;  %v1315_v15 = vunpack.c.h.s8.bf16 %v643_v8  ;;  %v1332_v16 = vunpack.c.l.s8.bf16 %v660_v13 }
 0x407   : > { %3088 = vmatprep.subr.bf16.mxu0 %v1202_v51  ;;  %3252 = vmatprep.subr.bf16.mxu1 %v1204_v17  ;;  %v657_v51 = vld [vmem:[%s7984_s14 + $0x560] sm:$0xff]  ;;  %v659_v17 = vld [vmem:[%s7984_s14 + $0x570] sm:$0xff] }
 0x408   : > { %v1329_v18 = vunpack.c.l.s8.bf16 %v657_v51  ;;  %v1331_v20 = vunpack.c.l.s8.bf16 %v659_v17  ;;  %v1345_v25 = vunpack.c.h.s8.bf16 %v657_v51  ;;  %v1347_v27 = vunpack.c.h.s8.bf16 %v659_v17 }
 0x40a   : > { %3089 = vmatpush1.bf16.msra.mxu0 %v1201_v21  ;;  %3253 = vmatpush1.bf16.msra.mxu1 %v1203_v22  ;;  %v1346_v21 = vunpack.c.h.s8.bf16 %v658_v12  ;;  %v1348_v22 = vunpack.c.h.s8.bf16 %v660_v13 }
 0x40b   : > { %3090 = vmatprep.subr.bf16.mxu0 %v1218_v23  ;;  %3254 = vmatprep.subr.bf16.mxu1 %v1220_v24  ;;  %v674_v23 = vld [vmem:[%s7984_s14 + $0x5e8] sm:$0xff]  ;;  %v676_v24 = vld [vmem:[%s7984_s14 + $0x5f8] sm:$0xff] }
 0x40e   : > { %3091 = vmatpush1.bf16.msra.mxu0 %v1217_v28  ;;  %3255 = vmatpush1.bf16.msra.mxu1 %v1219_v34  ;;  %v1362_v28 = vunpack.c.l.s8.bf16 %v674_v23  ;;  %v1364_v34 = vunpack.c.l.s8.bf16 %v676_v24 }
 0x40f   : > { %3092 = vmatprep.subr.bf16.mxu0 %v1234_v37  ;;  %3256 = vmatprep.subr.bf16.mxu1 %v1236_v38  ;;  %v673_v37 = vld [vmem:[%s7984_s14 + $0x5e0] sm:$0xff]  ;;  %v675_v38 = vld [vmem:[%s7984_s14 + $0x5f0] sm:$0xff] }
 0x410   : > { %v1361_v39 = vunpack.c.l.s8.bf16 %v673_v37  ;;  %v1363_v40 = vunpack.c.l.s8.bf16 %v675_v38  ;;  %v1377_v46 = vunpack.c.h.s8.bf16 %v673_v37  ;;  %v1379_v47 = vunpack.c.h.s8.bf16 %v675_v38 }
 0x412   : > { %3093 = vmatpush1.bf16.msra.mxu0 %v1233_v42  ;;  %3257 = vmatpush1.bf16.msra.mxu1 %v1235_v43  ;;  %v1378_v42 = vunpack.c.h.s8.bf16 %v674_v23  ;;  %v1380_v43 = vunpack.c.h.s8.bf16 %v676_v24 }
 0x413   : > { %3094 = vmatprep.subr.bf16.mxu0 %v1250_v44  ;;  %3258 = vmatprep.subr.bf16.mxu1 %v1252_v45  ;;  %v690_v44 = vld [vmem:[%s7984_s14 + $0x668] sm:$0xff]  ;;  %v692_v45 = vld [vmem:[%s7984_s14 + $0x678] sm:$0xff] }
 0x416   : > { %3095 = vmatpush1.bf16.msra.mxu0 %v1249_v48  ;;  %3259 = vmatpush1.bf16.msra.mxu1 %v1251_v49  ;;  %v1394_v48 = vunpack.c.l.s8.bf16 %v690_v44  ;;  %v1396_v49 = vunpack.c.l.s8.bf16 %v692_v45 }
 0x417   : > { %3105 = vmatprep.subr.bf16.mxu0 %v1266_v50  ;;  %3269 = vmatprep.subr.bf16.mxu1 %v1268_v52  ;;  %v689_v50 = vld [vmem:[%s7984_s14 + $0x660] sm:$0xff]  ;;  %v691_v52 = vld [vmem:[%s7984_s14 + $0x670] sm:$0xff] }
 0x418   : > { %v1393_v53 = vunpack.c.l.s8.bf16 %v689_v50  ;;  %v1395_v58 = vunpack.c.l.s8.bf16 %v691_v52  ;;  %v1409_v35 = vunpack.c.h.s8.bf16 %v689_v50  ;;  %v1411_v2 = vunpack.c.h.s8.bf16 %v691_v52 }
 0x419   : > { %3097 = vmatmul.mubr.bf16.vlgmr.msra.gmra.mrb[12].mxu0 %v8076_v55  ;;  %3261 = vmatmul.mubr.bf16.vlgmr.msra.gmra.mrb[12].mxu1 %v8076_v55  ;;  %v1299_v55 = vunpack.c.l.s8.bf16 %v643_v8 }
 0x41a   : > { %3106 = vmatpush1.bf16.msra.mxu0 %v1265_v59  ;;  %3270 = vmatpush1.bf16.msra.mxu1 %v1267_v41  ;;  %v1410_v59 = vunpack.c.h.s8.bf16 %v690_v44  ;;  %v1412_v41 = vunpack.c.h.s8.bf16 %v692_v45 }
 0x41b   : > { %3107 = vmatprep.subr.bf16.mxu0 %v1282_v0  ;;  %3271 = vmatprep.subr.bf16.mxu1 %v1284_v1  ;;  %v706_v0 = vld [vmem:[%s7984_s14 + $0x6e8] sm:$0xff]  ;;  %v708_v1 = vld [vmem:[%s7984_s14 + $0x6f8] sm:$0xff] }
 0x41c   : > { %3137 = vmatprep.mubr.bf16.mxu0 %v8088_v63  ;;  %3301 = vmatprep.mubr.bf16.mxu1 %v8088_v63  ;;  %v1330_v63 = vunpack.c.l.s8.bf16 %v658_v12 }
 0x41e   : > { %3108 = vmatpush1.bf16.msra.mxu0 %v1281_v3  ;;  %3272 = vmatpush1.bf16.msra.mxu1 %v1283_v4  ;;  %v1426_v3 = vunpack.c.l.s8.bf16 %v706_v0  ;;  %v1428_v4 = vunpack.c.l.s8.bf16 %v708_v1 }
 0x41f   : > { %3109 = vmatprep.subr.bf16.mxu0 %v1298_v5  ;;  %3273 = vmatprep.subr.bf16.mxu1 %v1300_v6  ;;  %v705_v5 = vld [vmem:[%s7984_s14 + $0x6e0] sm:$0xff]  ;;  %v707_v6 = vld [vmem:[%s7984_s14 + $0x6f0] sm:$0xff] }
 0x420   : > { %v1425_v7 = vunpack.c.l.s8.bf16 %v705_v5  ;;  %v1427_v8 = vunpack.c.l.s8.bf16 %v707_v6  ;;  %v1441_v12 = vunpack.c.h.s8.bf16 %v705_v5  ;;  %v1443_v13 = vunpack.c.h.s8.bf16 %v707_v6 }
 0x422   : > { %3110 = vmatpush1.bf16.msra.mxu0 %v1297_v9  ;;  %3274 = vmatpush1.bf16.msra.mxu1 %v1299_v55  ;;  %v1442_v9 = vunpack.c.h.s8.bf16 %v706_v0  ;;  %v1444_v55 = vunpack.c.h.s8.bf16 %v708_v1 }
 0x423   : > { %3111 = vmatprep.subr.bf16.mxu0 %v1314_v10  ;;  %3275 = vmatprep.subr.bf16.mxu1 %v1316_v11  ;;  %v722_v10 = vld [vmem:[%s7984_s14 + $0x768] sm:$0xff]  ;;  %v724_v11 = vld [vmem:[%s7984_s14 + $0x778] sm:$0xff] }
 0x426   : > { %3112 = vmatpush1.bf16.msra.mxu0 %v1313_v14  ;;  %3276 = vmatpush1.bf16.msra.mxu1 %v1315_v15  ;;  %v1458_v14 = vunpack.c.l.s8.bf16 %v722_v10  ;;  %v1460_v15 = vunpack.c.l.s8.bf16 %v724_v11 }
 0x427   : > { %3113 = vmatprep.subr.bf16.mxu0 %v1330_v63  ;;  %3277 = vmatprep.subr.bf16.mxu1 %v1332_v16  ;;  %v721_v63 = vld [vmem:[%s7984_s14 + $0x760] sm:$0xff]  ;;  %v723_v16 = vld [vmem:[%s7984_s14 + $0x770] sm:$0xff] }
 0x428   : > { %v1457_v51 = vunpack.c.l.s8.bf16 %v721_v63  ;;  %v1459_v17 = vunpack.c.l.s8.bf16 %v723_v16  ;;  %v1473_v23 = vunpack.c.h.s8.bf16 %v721_v63  ;;  %v1475_v24 = vunpack.c.h.s8.bf16 %v723_v16 }
 0x42a   : > { %3114 = vmatpush1.bf16.msra.mxu0 %v1329_v18  ;;  %3278 = vmatpush1.bf16.msra.mxu1 %v1331_v20  ;;  %v1474_v18 = vunpack.c.h.s8.bf16 %v722_v10  ;;  %v1476_v20 = vunpack.c.h.s8.bf16 %v724_v11 }
 0x42b   : > { %3115 = vmatprep.subr.bf16.mxu0 %v1346_v21  ;;  %3279 = vmatprep.subr.bf16.mxu1 %v1348_v22  ;;  %v738_v21 = vld [vmem:[%s7984_s14 + $0x7e8] sm:$0xff]  ;;  %v740_v22 = vld [vmem:[%s7984_s14 + $0x7f8] sm:$0xff] }
 0x42e   : > { %3116 = vmatpush1.bf16.msra.mxu0 %v1345_v25  ;;  %3280 = vmatpush1.bf16.msra.mxu1 %v1347_v27  ;;  %v1490_v25 = vunpack.c.l.s8.bf16 %v738_v21  ;;  %v1492_v27 = vunpack.c.l.s8.bf16 %v740_v22 }
 0x42f   : > { %3117 = vmatprep.subr.bf16.mxu0 %v1362_v28  ;;  %3281 = vmatprep.subr.bf16.mxu1 %v1364_v34  ;;  %v737_v28 = vld [vmem:[%s7984_s14 + $0x7e0] sm:$0xff]  ;;  %v739_v34 = vld [vmem:[%s7984_s14 + $0x7f0] sm:$0xff] }
 0x430   : > { %v1489_v37 = vunpack.c.l.s8.bf16 %v737_v28  ;;  %v1491_v38 = vunpack.c.l.s8.bf16 %v739_v34  ;;  %v1505_v44 = vunpack.c.h.s8.bf16 %v737_v28  ;;  %v1507_v45 = vunpack.c.h.s8.bf16 %v739_v34 }
 0x432   : > { %3118 = vmatpush1.bf16.msra.mxu0 %v1361_v39  ;;  %3282 = vmatpush1.bf16.msra.mxu1 %v1363_v40  ;;  %v1506_v39 = vunpack.c.h.s8.bf16 %v738_v21  ;;  %v1508_v40 = vunpack.c.h.s8.bf16 %v740_v22 }
 0x433   : > { %3119 = vmatprep.subr.bf16.mxu0 %v1378_v42  ;;  %3283 = vmatprep.subr.bf16.mxu1 %v1380_v43  ;;  %v754_v42 = vld [vmem:[%s7984_s14 + $0x868] sm:$0xff]  ;;  %v756_v43 = vld [vmem:[%s7984_s14 + $0x878] sm:$0xff] }
 0x436   : > { %3120 = vmatpush1.bf16.msra.mxu0 %v1377_v46  ;;  %3284 = vmatpush1.bf16.msra.mxu1 %v1379_v47  ;;  %v1522_v46 = vunpack.c.l.s8.bf16 %v754_v42  ;;  %v1524_v47 = vunpack.c.l.s8.bf16 %v756_v43 }
 0x437   : > { %3121 = vmatprep.subr.bf16.mxu0 %v1394_v48  ;;  %3285 = vmatprep.subr.bf16.mxu1 %v1396_v49  ;;  %v753_v48 = vld [vmem:[%s7984_s14 + $0x860] sm:$0xff]  ;;  %v755_v49 = vld [vmem:[%s7984_s14 + $0x870] sm:$0xff] }
 0x438   : > { %v1521_v50 = vunpack.c.l.s8.bf16 %v753_v48  ;;  %v1523_v52 = vunpack.c.l.s8.bf16 %v755_v49  ;;  %v1537_v0 = vunpack.c.h.s8.bf16 %v753_v48  ;;  %v1539_v1 = vunpack.c.h.s8.bf16 %v755_v49 }
 0x43a   : > { %3122 = vmatpush1.bf16.msra.mxu0 %v1393_v53  ;;  %3286 = vmatpush1.bf16.msra.mxu1 %v1395_v58  ;;  %v1538_v53 = vunpack.c.h.s8.bf16 %v754_v42  ;;  %v1540_v58 = vunpack.c.h.s8.bf16 %v756_v43 }
 0x43b   : > { %3123 = vmatprep.subr.bf16.mxu0 %v1410_v59  ;;  %3287 = vmatprep.subr.bf16.mxu1 %v1412_v41  ;;  %v770_v59 = vld [vmem:[%s7984_s14 + $0x8e8] sm:$0xff]  ;;  %v772_v41 = vld [vmem:[%s7984_s14 + $0x8f8] sm:$0xff] }
 0x43c   : > { %v1570_v6 = vunpack.c.h.s8.bf16 %v770_v59 }
 0x43e   : > { %3124 = vmatpush1.bf16.msra.mxu0 %v1409_v35  ;;  %3288 = vmatpush1.bf16.msra.mxu1 %v1411_v2  ;;  %v1554_v35 = vunpack.c.l.s8.bf16 %v770_v59  ;;  %v1556_v2 = vunpack.c.l.s8.bf16 %v772_v41 }
 0x43f   : > { %3125 = vmatprep.subr.bf16.mxu0 %v1426_v3  ;;  %3289 = vmatprep.subr.bf16.mxu1 %v1428_v4  ;;  %v769_v3 = vld [vmem:[%s7984_s14 + $0x8e0] sm:$0xff]  ;;  %v771_v4 = vld [vmem:[%s7984_s14 + $0x8f0] sm:$0xff] }
 0x440   : > { %v1553_v5 = vunpack.c.l.s8.bf16 %v769_v3  ;;  %v1571_v10 = vunpack.c.h.s8.bf16 %v771_v4 }
 0x442   : > { %3126 = vmatpush1.bf16.msra.mxu0 %v1425_v7  ;;  %3290 = vmatpush1.bf16.msra.mxu1 %v1427_v8  ;;  %v1572_v7 = vunpack.c.h.s8.bf16 %v772_v41  ;;  %v786_v8 = vld [vmem:[%s7984_s14 + $0x968] sm:$0xff] }
 0x443   : > { %3127 = vmatprep.subr.bf16.mxu0 %v1442_v9  ;;  %3291 = vmatprep.subr.bf16.mxu1 %v1444_v55  ;;  %v788_v9 = vld [vmem:[%s7984_s14 + $0x978] sm:$0xff]  ;;  %v1569_v55 = vunpack.c.h.s8.bf16 %v769_v3  ;;  %v1602_v63 = vunpack.c.h.s8.bf16 %v786_v8 }
 0x444   : > { %v1588_v11 = vunpack.c.l.s8.bf16 %v788_v9  ;;  %v1604_v16 = vunpack.c.h.s8.bf16 %v788_v9 }
 0x446   : > { %3128 = vmatpush1.bf16.msra.mxu0 %v1441_v12  ;;  %3292 = vmatpush1.bf16.msra.mxu1 %v1443_v13  ;;  %v785_v12 = vld [vmem:[%s7984_s14 + $0x960] sm:$0xff]  ;;  %v787_v13 = vld [vmem:[%s7984_s14 + $0x970] sm:$0xff] }
 0x447   : > { %3129 = vmatprep.subr.bf16.mxu0 %v1458_v14  ;;  %3293 = vmatprep.subr.bf16.mxu1 %v1460_v15  ;;  %v1585_v14 = vunpack.c.l.s8.bf16 %v785_v12  ;;  %v1587_v15 = vunpack.c.l.s8.bf16 %v787_v13 }
 0x44a   : > { %3130 = vmatpush1.bf16.msra.mxu0 %v1457_v51  ;;  %3294 = vmatpush1.bf16.msra.mxu1 %v1459_v17  ;;  %v802_v51 = vld [vmem:[%s7984_s14 + $0x9e8] sm:$0xff]  ;;  %v804_v17 = vld [vmem:[%s7984_s14 + $0x9f8] sm:$0xff] }
 0x44b   : > { %3131 = vmatprep.subr.bf16.mxu0 %v1474_v18  ;;  %3295 = vmatprep.subr.bf16.mxu1 %v1476_v20  ;;  %v1601_v18 = vunpack.c.h.s8.bf16 %v785_v12  ;;  %v1603_v20 = vunpack.c.h.s8.bf16 %v787_v13  ;;  %v1618_v21 = vunpack.c.l.s8.bf16 %v802_v51  ;;  %v1620_v22 = vunpack.c.l.s8.bf16 %v804_v17 }
 0x44c   : > { %v1634_v28 = vunpack.c.h.s8.bf16 %v802_v51  ;;  %v1636_v34 = vunpack.c.h.s8.bf16 %v804_v17 }
 0x44e   : > { %3132 = vmatpush1.bf16.msra.mxu0 %v1473_v23  ;;  %3296 = vmatpush1.bf16.msra.mxu1 %v1475_v24  ;;  %v801_v23 = vld [vmem:[%s7984_s14 + $0x9e0] sm:$0xff]  ;;  %v803_v24 = vld [vmem:[%s7984_s14 + $0x9f0] sm:$0xff] }
 0x44f   : > { %3133 = vmatprep.subr.bf16.mxu0 %v1490_v25  ;;  %3297 = vmatprep.subr.bf16.mxu1 %v1492_v27  ;;  %v1617_v25 = vunpack.c.l.s8.bf16 %v801_v23  ;;  %v1619_v27 = vunpack.c.l.s8.bf16 %v803_v24 }
 0x452   : > { %3134 = vmatpush1.bf16.msra.mxu0 %v1489_v37  ;;  %3298 = vmatpush1.bf16.msra.mxu1 %v1491_v38  ;;  %v818_v37 = vld [vmem:[%s7984_s14 + $0xa68] sm:$0xff]  ;;  %v820_v38 = vld [vmem:[%s7984_s14 + $0xa78] sm:$0xff] }
 0x453   : > { %3135 = vmatprep.subr.bf16.mxu0 %v1506_v39  ;;  %3299 = vmatprep.subr.bf16.mxu1 %v1508_v40  ;;  %v1633_v39 = vunpack.c.h.s8.bf16 %v801_v23  ;;  %v1635_v40 = vunpack.c.h.s8.bf16 %v803_v24  ;;  %v1650_v42 = vunpack.c.l.s8.bf16 %v818_v37  ;;  %v1652_v43 = vunpack.c.l.s8.bf16 %v820_v38 }
 0x454   : > { %v1666_v48 = vunpack.c.h.s8.bf16 %v818_v37  ;;  %v1668_v49 = vunpack.c.h.s8.bf16 %v820_v38 }
 0x456   : > { %3136 = vmatpush1.bf16.msra.mxu0 %v1505_v44  ;;  %3300 = vmatpush1.bf16.msra.mxu1 %v1507_v45  ;;  %v817_v44 = vld [vmem:[%s7984_s14 + $0xa60] sm:$0xff]  ;;  %v819_v45 = vld [vmem:[%s7984_s14 + $0xa70] sm:$0xff] }
 0x457   : > { %3146 = vmatprep.subr.bf16.mxu0 %v1522_v46  ;;  %3310 = vmatprep.subr.bf16.mxu1 %v1524_v47  ;;  %v1649_v46 = vunpack.c.l.s8.bf16 %v817_v44  ;;  %v1651_v47 = vunpack.c.l.s8.bf16 %v819_v45 }
 0x459   : > { %3138 = vmatmul.mubr.bf16.vlgmr.msra.gmra.mrb[12].mxu0 %v8126_v32  ;;  %3302 = vmatmul.mubr.bf16.vlgmr.msra.gmra.mrb[12].mxu1 %v8126_v32  ;;  %v1555_v32 = vunpack.c.l.s8.bf16 %v771_v4 }
 0x45a   : > { %3147 = vmatpush1.bf16.msra.mxu0 %v1521_v50  ;;  %3311 = vmatpush1.bf16.msra.mxu1 %v1523_v52  ;;  %v834_v50 = vld [vmem:[%s7984_s14 + $0xae8] sm:$0xff]  ;;  %v836_v52 = vld [vmem:[%s7984_s14 + $0xaf8] sm:$0xff] }
 0x45b   : > { %3148 = vmatprep.subr.bf16.mxu0 %v1538_v53  ;;  %3312 = vmatprep.subr.bf16.mxu1 %v1540_v58  ;;  %v1665_v53 = vunpack.c.h.s8.bf16 %v817_v44  ;;  %v1667_v58 = vunpack.c.h.s8.bf16 %v819_v45  ;;  %v1682_v59 = vunpack.c.l.s8.bf16 %v834_v50  ;;  %v1684_v41 = vunpack.c.l.s8.bf16 %v836_v52 }
 0x45c   : > { %3178 = vmatprep.mubr.bf16.mxu0 %v8079_v60  ;;  %3342 = vmatprep.mubr.bf16.mxu1 %v8079_v60  ;;  %v1586_v60 = vunpack.c.l.s8.bf16 %v786_v8  ;;  %v1698_v3 = vunpack.c.h.s8.bf16 %v834_v50  ;;  %v1700_v4 = vunpack.c.h.s8.bf16 %v836_v52 }
 0x45e   : > { %3149 = vmatpush1.bf16.msra.mxu0 %v1537_v0  ;;  %3313 = vmatpush1.bf16.msra.mxu1 %v1539_v1  ;;  %v833_v0 = vld [vmem:[%s7984_s14 + $0xae0] sm:$0xff]  ;;  %v835_v1 = vld [vmem:[%s7984_s14 + $0xaf0] sm:$0xff] }
 0x45f   : > { %3150 = vmatprep.subr.bf16.mxu0 %v1554_v35  ;;  %3314 = vmatprep.subr.bf16.mxu1 %v1556_v2  ;;  %v1681_v35 = vunpack.c.l.s8.bf16 %v833_v0  ;;  %v1683_v2 = vunpack.c.l.s8.bf16 %v835_v1 }
 0x462   : > { %3151 = vmatpush1.bf16.msra.mxu0 %v1553_v5  ;;  %3315 = vmatpush1.bf16.msra.mxu1 %v1555_v32  ;;  %v850_v5 = vld [vmem:[%s7984_s14 + $0xb68] sm:$0xff]  ;;  %v852_v32 = vld [vmem:[%s7984_s14 + $0xb78] sm:$0xff] }
 0x463   : > { %3152 = vmatprep.subr.bf16.mxu0 %v1570_v6  ;;  %3316 = vmatprep.subr.bf16.mxu1 %v1572_v7  ;;  %v1697_v6 = vunpack.c.h.s8.bf16 %v833_v0  ;;  %v1699_v7 = vunpack.c.h.s8.bf16 %v835_v1  ;;  %v1714_v8 = vunpack.c.l.s8.bf16 %v850_v5  ;;  %v1716_v9 = vunpack.c.l.s8.bf16 %v852_v32  ;;  %v914_v1 = vld [vmem:[%s7984_s14 + $0xd68] sm:$0xff] }
 0x464   : > { %v1730_v12 = vunpack.c.h.s8.bf16 %v850_v5  ;;  %v1732_v13 = vunpack.c.h.s8.bf16 %v852_v32  ;;  %v913_v5 = vld [vmem:[%s7984_s14 + $0xd60] sm:$0xff]  ;;  %v915_v32 = vld [vmem:[%s7984_s14 + $0xd70] sm:$0xff] }
 0x466   : > { %3153 = vmatpush1.bf16.msra.mxu0 %v1569_v55  ;;  %3317 = vmatpush1.bf16.msra.mxu1 %v1571_v10  ;;  %v849_v55 = vld [vmem:[%s7984_s14 + $0xb60] sm:$0xff]  ;;  %v851_v10 = vld [vmem:[%s7984_s14 + $0xb70] sm:$0xff] }
 0x467   : > { %3154 = vmatprep.subr.bf16.mxu0 %v1586_v60  ;;  %3318 = vmatprep.subr.bf16.mxu1 %v1588_v11  ;;  %v1713_v60 = vunpack.c.l.s8.bf16 %v849_v55  ;;  %v1715_v11 = vunpack.c.l.s8.bf16 %v851_v10 }
 0x46a   : > { %3155 = vmatpush1.bf16.msra.mxu0 %v1585_v14  ;;  %3319 = vmatpush1.bf16.msra.mxu1 %v1587_v15  ;;  %v866_v14 = vld [vmem:[%s7984_s14 + $0xbe8] sm:$0xff]  ;;  %v868_v15 = vld [vmem:[%s7984_s14 + $0xbf8] sm:$0xff] }
 0x46b   : > { %3156 = vmatprep.subr.bf16.mxu0 %v1602_v63  ;;  %3320 = vmatprep.subr.bf16.mxu1 %v1604_v16  ;;  %v1729_v63 = vunpack.c.h.s8.bf16 %v849_v55  ;;  %v1731_v16 = vunpack.c.h.s8.bf16 %v851_v10  ;;  %v1746_v51 = vunpack.c.l.s8.bf16 %v866_v14  ;;  %v1748_v17 = vunpack.c.l.s8.bf16 %v868_v15 }
 0x46c   : > { %v1762_v23 = vunpack.c.h.s8.bf16 %v866_v14  ;;  %v1764_v24 = vunpack.c.h.s8.bf16 %v868_v15  ;;  %v1858_v55 = vunpack.c.h.s8.bf16 %v914_v1  ;;  %v1859_v14 = vunpack.c.h.s8.bf16 %v915_v32  ;;  %v8643_v15 = vld [vmem:[%s7998_s2] sm:$0xff] }
 0x46e   : > { %3157 = vmatpush1.bf16.msra.mxu0 %v1601_v18  ;;  %3321 = vmatpush1.bf16.msra.mxu1 %v1603_v20  ;;  %v865_v18 = vld [vmem:[%s7984_s14 + $0xbe0] sm:$0xff]  ;;  %v867_v20 = vld [vmem:[%s7984_s14 + $0xbf0] sm:$0xff] }
 0x46f   : > { %3158 = vmatprep.subr.bf16.mxu0 %v1618_v21  ;;  %3322 = vmatprep.subr.bf16.mxu1 %v1620_v22  ;;  %v1745_v21 = vunpack.c.l.s8.bf16 %v865_v18  ;;  %v1747_v22 = vunpack.c.l.s8.bf16 %v867_v20 }
 0x472   : > { %3159 = vmatpush1.bf16.msra.mxu0 %v1617_v25  ;;  %3323 = vmatpush1.bf16.msra.mxu1 %v1619_v27  ;;  %v882_v25 = vld [vmem:[%s7984_s14 + $0xc68] sm:$0xff]  ;;  %v884_v27 = vld [vmem:[%s7984_s14 + $0xc78] sm:$0xff] }
 0x473   : > { %3160 = vmatprep.subr.bf16.mxu0 %v1634_v28  ;;  %3324 = vmatprep.subr.bf16.mxu1 %v1636_v34  ;;  %v1761_v28 = vunpack.c.h.s8.bf16 %v865_v18  ;;  %v1763_v34 = vunpack.c.h.s8.bf16 %v867_v20  ;;  %v1778_v37 = vunpack.c.l.s8.bf16 %v882_v25  ;;  %v1780_v38 = vunpack.c.l.s8.bf16 %v884_v27 }
 0x474   : > { %v1794_v44 = vunpack.c.h.s8.bf16 %v882_v25  ;;  %v1796_v45 = vunpack.c.h.s8.bf16 %v884_v27 }
 0x476   : > { %3161 = vmatpush1.bf16.msra.mxu0 %v1633_v39  ;;  %3325 = vmatpush1.bf16.msra.mxu1 %v1635_v40  ;;  %v881_v39 = vld [vmem:[%s7984_s14 + $0xc60] sm:$0xff]  ;;  %v883_v40 = vld [vmem:[%s7984_s14 + $0xc70] sm:$0xff] }
 0x477   : > { %3162 = vmatprep.subr.bf16.mxu0 %v1650_v42  ;;  %3326 = vmatprep.subr.bf16.mxu1 %v1652_v43  ;;  %v1777_v42 = vunpack.c.l.s8.bf16 %v881_v39  ;;  %v1779_v43 = vunpack.c.l.s8.bf16 %v883_v40 }
 0x47a   : > { %3163 = vmatpush1.bf16.msra.mxu0 %v1649_v46  ;;  %3327 = vmatpush1.bf16.msra.mxu1 %v1651_v47  ;;  %v898_v46 = vld [vmem:[%s7984_s14 + $0xce8] sm:$0xff]  ;;  %v900_v47 = vld [vmem:[%s7984_s14 + $0xcf8] sm:$0xff] }
 0x47b   : > { %3164 = vmatprep.subr.bf16.mxu0 %v1666_v48  ;;  %3328 = vmatprep.subr.bf16.mxu1 %v1668_v49  ;;  %v1793_v48 = vunpack.c.h.s8.bf16 %v881_v39  ;;  %v1795_v49 = vunpack.c.h.s8.bf16 %v883_v40  ;;  %v1810_v50 = vunpack.c.l.s8.bf16 %v898_v46  ;;  %v1812_v52 = vunpack.c.l.s8.bf16 %v900_v47 }
 0x47c   : > { %v1828_v0 = vunpack.c.h.s8.bf16 %v900_v47 }
 0x47e   : > { %3165 = vmatpush1.bf16.msra.mxu0 %v1665_v53  ;;  %3329 = vmatpush1.bf16.msra.mxu1 %v1667_v58  ;;  %v897_v53 = vld [vmem:[%s7984_s14 + $0xce0] sm:$0xff]  ;;  %v899_v58 = vld [vmem:[%s7984_s14 + $0xcf0] sm:$0xff] }
 0x47f   : > { %3166 = vmatprep.subr.bf16.mxu0 %v1682_v59  ;;  %3330 = vmatprep.subr.bf16.mxu1 %v1684_v41  ;;  %v1809_v59 = vunpack.c.l.s8.bf16 %v897_v53  ;;  %v1826_v41 = vunpack.c.h.s8.bf16 %v898_v46 }
 0x482   : > { %3167 = vmatpush1.bf16.msra.mxu0 %v1681_v35  ;;  %3331 = vmatpush1.bf16.msra.mxu1 %v1683_v2  ;;  %v916_v35 = vld [vmem:[%s7984_s14 + $0xd78] sm:$0xff]  ;;  %v1825_v2 = vunpack.c.h.s8.bf16 %v897_v53 }
 0x483   : > { %3168 = vmatprep.subr.bf16.mxu0 %v1698_v3  ;;  %3332 = vmatprep.subr.bf16.mxu1 %v1700_v4  ;;  %v1827_v3 = vunpack.c.h.s8.bf16 %v899_v58  ;;  %v1844_v4 = vunpack.c.l.s8.bf16 %v916_v35  ;;  %v1860_v10 = vunpack.c.h.s8.bf16 %v916_v35 }
 0x486   : > { %3169 = vmatpush1.bf16.msra.mxu0 %v1697_v6  ;;  %3333 = vmatpush1.bf16.msra.mxu1 %v1699_v7  ;;  %v8633_v6 = vsub.s32 1, %v8022_v26  ;;  %v1841_v7 = vunpack.c.l.s8.bf16 %v913_v5 }
 0x487   : > { %3170 = vmatprep.subr.bf16.mxu0 %v1714_v8  ;;  %3334 = vmatprep.subr.bf16.mxu1 %v1716_v9  ;;  %v1843_v8 = vunpack.c.l.s8.bf16 %v915_v32  ;;  %v8636_v9 = vld [vmem:[%s7992_s10] sm:$0xff] }
 0x48a   : > { %3171 = vmatpush1.bf16.msra.mxu0 %v1713_v60  ;;  %3335 = vmatpush1.bf16.msra.mxu1 %v1715_v11  ;;  %v930_v60 = vld [vmem:[%s7984_s14 + $0xde8] sm:$0xff]  ;;  %v932_v11 = vld [vmem:[%s7984_s14 + $0xdf8] sm:$0xff] }
 0x48b   : > { %3172 = vmatprep.subr.bf16.mxu0 %v1730_v12  ;;  %3336 = vmatprep.subr.bf16.mxu1 %v1732_v13  ;;  %v3403_v12 = vrot.slane %v8636_v9, %v8633_v6  ;;  %v1857_v13 = vunpack.c.h.s8.bf16 %v913_v5  ;;  %v1890_v39 = vunpack.c.h.s8.bf16 %v930_v60  ;;  %v1892_v40 = vunpack.c.h.s8.bf16 %v932_v11 }
 0x48e   : > { %3173 = vmatpush1.bf16.msra.mxu0 %v1729_v63  ;;  %3337 = vmatpush1.bf16.msra.mxu1 %v1731_v16  ;;  %v1874_v63 = vunpack.c.l.s8.bf16 %v930_v60  ;;  %v1876_v16 = vunpack.c.l.s8.bf16 %v932_v11 }
 0x48f   : > { %3174 = vmatprep.subr.bf16.mxu0 %v1746_v51  ;;  %3338 = vmatprep.subr.bf16.mxu1 %v1748_v17  ;;  %v929_v51 = vld [vmem:[%s7984_s14 + $0xde0] sm:$0xff]  ;;  %v931_v17 = vld [vmem:[%s7984_s14 + $0xdf0] sm:$0xff] }
 0x492   : > { %3175 = vmatpush1.bf16.msra.mxu0 %v1745_v21  ;;  %3339 = vmatpush1.bf16.msra.mxu1 %v1747_v22 }
 0x493   : > { %3176 = vmatprep.subr.bf16.mxu0 %v1762_v23  ;;  %3340 = vmatprep.subr.bf16.mxu1 %v1764_v24  ;;  %v3477_v23 = vmul.f32 %v3403_v12, %v8336_v36  ;;  %v3503_v24 = vrot.slane %v8643_v15, %v8633_v6 }
 0x495   : > { %v3577_v36 = vadd.f32 %v3503_v24, %v3477_v23 }
 0x496   : > { %3177 = vmatpush1.bf16.msra.mxu0 %v1761_v28  ;;  %3341 = vmatpush1.bf16.msra.mxu1 %v1763_v34  ;;  %v1873_v28 = vunpack.c.l.s8.bf16 %v929_v51  ;;  %v1875_v34 = vunpack.c.l.s8.bf16 %v931_v17 }
 0x497   : > { %3187 = vmatprep.subr.bf16.mxu0 %v1778_v37  ;;  %3351 = vmatprep.subr.bf16.mxu1 %v1780_v38 }
 0x499   : > { %3179 = vmatmul.mubr.bf16.vlgmr.msra.gmra.mrb[12].mxu0 %v8082_v61  ;;  %3343 = vmatmul.mubr.bf16.vlgmr.msra.gmra.mrb[12].mxu1 %v8082_v61  ;;  %v1811_v61 = vunpack.c.l.s8.bf16 %v899_v58 }
 0x49a   : > { %3188 = vmatpush1.bf16.msra.mxu0 %v1777_v42  ;;  %3352 = vmatpush1.bf16.msra.mxu1 %v1779_v43  ;;  %v946_v42 = vld [vmem:[%s7984_s14 + $0xe68] sm:$0xff]  ;;  %v948_v43 = vld [vmem:[%s7984_s14 + $0xe78] sm:$0xff] }
 0x49b   : > { %3189 = vmatprep.subr.bf16.mxu0 %v1794_v44  ;;  %3353 = vmatprep.subr.bf16.mxu1 %v1796_v45  ;;  %v1889_v44 = vunpack.c.h.s8.bf16 %v929_v51  ;;  %v1891_v45 = vunpack.c.h.s8.bf16 %v931_v17  ;;  %v1906_v46 = vunpack.c.l.s8.bf16 %v946_v42  ;;  %v1908_v47 = vunpack.c.l.s8.bf16 %v948_v43 }
 0x49c   : > { %3219 = vmatprep.mubr.bf16.mxu0 %v8168_v19  ;;  %3383 = vmatprep.mubr.bf16.mxu1 %v8168_v19  ;;  %v1842_v19 = vunpack.c.l.s8.bf16 %v914_v1  ;;  %v1922_v58 = vunpack.c.h.s8.bf16 %v946_v42 }
 0x49e   : > { %3190 = vmatpush1.bf16.msra.mxu0 %v1793_v48  ;;  %3354 = vmatpush1.bf16.msra.mxu1 %v1795_v49  ;;  %v945_v48 = vld [vmem:[%s7984_s14 + $0xe60] sm:$0xff]  ;;  %v947_v49 = vld [vmem:[%s7984_s14 + $0xe70] sm:$0xff] }
 0x49f   : > { %3191 = vmatprep.subr.bf16.mxu0 %v1810_v50  ;;  %3355 = vmatprep.subr.bf16.mxu1 %v1812_v52  ;;  %v7008_v50 = vmul.f32 -1.442695, %v3577_v36  ;;  %v1905_v52 = vunpack.c.l.s8.bf16 %v945_v48  ;;  %v1907_v53 = vunpack.c.l.s8.bf16 %v947_v49  ;;  %v1923_v1 = vunpack.c.h.s8.bf16 %v947_v49 }
 0x4a1   : > { %7345 = vpow2.f32 %v7008_v50 }
 0x4a2   : > { %3192 = vmatpush1.bf16.msra.mxu0 %v1809_v59  ;;  %3356 = vmatpush1.bf16.msra.mxu1 %v1811_v61  ;;  %v1924_v59 = vunpack.c.h.s8.bf16 %v948_v43  ;;  %v962_v61 = vld [vmem:[%s7984_s14 + $0xee8] sm:$0xff] }
 0x4a3   : > { %3193 = vmatprep.subr.bf16.mxu0 %v1826_v41  ;;  %3357 = vmatprep.subr.bf16.mxu1 %v1828_v0  ;;  %v964_v41 = vld [vmem:[%s7984_s14 + $0xef8] sm:$0xff]  ;;  %v1921_v0 = vunpack.c.h.s8.bf16 %v945_v48  ;;  %v1938_v35 = vunpack.c.l.s8.bf16 %v962_v61  ;;  %v1954_v32 = vunpack.c.h.s8.bf16 %v962_v61 }
 0x4a6   : > { %3194 = vmatpush1.bf16.msra.mxu0 %v1825_v2  ;;  %3358 = vmatpush1.bf16.msra.mxu1 %v1827_v3  ;;  %v1940_v2 = vunpack.c.l.s8.bf16 %v964_v41  ;;  %v961_v3 = vld [vmem:[%s7984_s14 + $0xee0] sm:$0xff] }
 0x4a7   : > { %3195 = vmatprep.subr.bf16.mxu0 %v1842_v19  ;;  %3359 = vmatprep.subr.bf16.mxu1 %v1844_v4  ;;  %v963_v19 = vld [vmem:[%s7984_s14 + $0xef0] sm:$0xff]  ;;  %v1937_v4 = vunpack.c.l.s8.bf16 %v961_v3 }
 0x4a8   : > { %v1939_v5 = vunpack.c.l.s8.bf16 %v963_v19  ;;  %v1955_v60 = vunpack.c.h.s8.bf16 %v963_v19 }
 0x4aa   : > { %3196 = vmatpush1.bf16.msra.mxu0 %v1841_v7  ;;  %3360 = vmatpush1.bf16.msra.mxu1 %v1843_v8  ;;  %v1956_v7 = vunpack.c.h.s8.bf16 %v964_v41  ;;  %v978_v8 = vld [vmem:[%s7984_s14 + $0xf68] sm:$0xff] }
 0x4ab   : > { %3197 = vmatprep.subr.bf16.mxu0 %v1858_v55  ;;  %3361 = vmatprep.subr.bf16.mxu1 %v1860_v10  ;;  %v980_v55 = vld [vmem:[%s7984_s14 + $0xf78] sm:$0xff]  ;;  %v1953_v10 = vunpack.c.h.s8.bf16 %v961_v3  ;;  %v1970_v11 = vunpack.c.l.s8.bf16 %v978_v8  ;;  %v1986_v23 = vunpack.c.h.s8.bf16 %v978_v8 }
 0x4ac   : > { %v8647_v18 = vpop.f32.mrb[8].mxu0  ;;  %v8649_v20 = vpop.f32.mrb[8].mxu1  ;;  %v1972_v12 = vunpack.c.l.s8.bf16 %v980_v55  ;;  %v1988_v24 = vunpack.c.h.s8.bf16 %v980_v55 }
 0x4ad   : > { %v8651_v21 = vpop.f32.mrb[9].mxu0  ;;  %v8653_v22 = vpop.f32.mrb[9].mxu1 }
 0x4ae   : > { %v2897_v25 = vpop.f32.mrb[10].mxu0  ;;  %v3061_v27 = vpop.f32.mrb[10].mxu1  ;;  %3198 = vmatpush1.bf16.msra.mxu0 %v1857_v13  ;;  %3362 = vmatpush1.bf16.msra.mxu1 %v1859_v14  ;;  %v977_v13 = vld [vmem:[%s7984_s14 + $0xf60] sm:$0xff]  ;;  %v979_v14 = vld [vmem:[%s7984_s14 + $0xf70] sm:$0xff] }
 0x4af   : > { %v2898_v37 = vpop.f32.mrb[11].mxu0  ;;  %v3062_v38 = vpop.f32.mrb[11].mxu1  ;;  %3199 = vmatprep.subr.bf16.mxu0 %v1874_v63  ;;  %3363 = vmatprep.subr.bf16.mxu1 %v1876_v16  ;;  %v1969_v16 = vunpack.c.l.s8.bf16 %v977_v13  ;;  %v1971_v51 = vunpack.c.l.s8.bf16 %v979_v14  ;;  %v994_v25 = vld [vmem:[%s7984_s14 + $0xfe8] sm:$0xff]  ;;  %v996_v27 = vld [vmem:[%s7984_s14 + $0xff8] sm:$0xff] }
 0x4b0   : > { %v7346_v63 = vpop.eup %7345  ;;  %v2002_v37 = vunpack.c.l.s8.bf16 %v994_v25  ;;  %v2004_v38 = vunpack.c.l.s8.bf16 %v996_v27  ;;  %v2018_v36 = vunpack.c.h.s8.bf16 %v994_v25 }
 0x4b1   : > { %v3641_v17 = vadd.f32 1.0, %v7346_v63  ;;  %v3704_v63 = vld [vmem:[%s8000_s27 + $0x80] sm:$0xff] }
 0x4b2   : > { %3200 = vmatpush1.bf16.msra.mxu0 %v1873_v28  ;;  %3364 = vmatpush1.bf16.msra.mxu1 %v1875_v34  ;;  %v1985_v28 = vunpack.c.h.s8.bf16 %v977_v13  ;;  %v1987_v34 = vunpack.c.h.s8.bf16 %v979_v14 }
 0x4b3   : > { %3201 = vmatprep.subr.bf16.mxu0 %v1890_v39  ;;  %3365 = vmatprep.subr.bf16.mxu1 %v1892_v40  ;;  %7347 = vrcp.f32 %v3641_v17  ;;  %v993_v39 = vld [vmem:[%s7984_s14 + $0xfe0] sm:$0xff]  ;;  %v995_v40 = vld [vmem:[%s7984_s14 + $0xff0] sm:$0xff]  ;;  %v8693_v17 = vsub.s32 0, %v8022_v26 }
 0x4b4   : > { %v2001_v42 = vunpack.c.l.s8.bf16 %v993_v39  ;;  %v2003_v43 = vunpack.c.l.s8.bf16 %v995_v40  ;;  %v2019_v48 = vunpack.c.h.s8.bf16 %v995_v40 }
 0x4b6   : > { %3202 = vmatpush1.bf16.msra.mxu0 %v1889_v44  ;;  %3366 = vmatpush1.bf16.msra.mxu1 %v1891_v45  ;;  %v2020_v44 = vunpack.c.h.s8.bf16 %v996_v27  ;;  %v3689_v45 = vld [vmem:[%s8000_s27 + $0x8] sm:$0xff] }
 0x4b7   : > { %3203 = vmatprep.subr.bf16.mxu0 %v1906_v46  ;;  %3367 = vmatprep.subr.bf16.mxu1 %v1908_v47  ;;  %v3691_v46 = vld [vmem:[%s8000_s27 + $0x18] sm:$0xff]  ;;  %v2017_v47 = vunpack.c.h.s8.bf16 %v993_v39  ;;  %v4201_v49 = vunpack.c.l.s8.bf16 %v3689_v45  ;;  %v4240_v39 = vunpack.c.h.s8.bf16 %v3704_v63 }
 0x4b8   : > { %v4203_v50 = vunpack.c.l.s8.bf16 %v3691_v46 }
 0x4ba   : > { %3204 = vmatpush1.bf16.msra.mxu0 %v1905_v52  ;;  %3368 = vmatpush1.bf16.msra.mxu1 %v1907_v53  ;;  %v3688_v52 = vld [vmem:[%s8000_s27] sm:$0xff]  ;;  %v3690_v53 = vld [vmem:[%s8000_s27 + $0x10] sm:$0xff] }
 0x4bb   : > { %3205 = vmatprep.subr.bf16.mxu0 %v1922_v58  ;;  %3369 = vmatprep.subr.bf16.mxu1 %v1924_v59  ;;  %v4200_v59 = vunpack.c.l.s8.bf16 %v3688_v52  ;;  %v4202_v61 = vunpack.c.l.s8.bf16 %v3690_v53  ;;  %v4208_v3 = vunpack.c.h.s8.bf16 %v3688_v52  ;;  %v4210_v19 = vunpack.c.h.s8.bf16 %v3690_v53 }
 0x4bd   : > { %v7348_v58 = vpop.eup %7347 }
 0x4be   : > { %3206 = vmatpush1.bf16.msra.mxu0 %v1921_v0  ;;  %3370 = vmatpush1.bf16.msra.mxu1 %v1923_v1  ;;  %v8678_v41 = vpack.c.bf16 %v7348_v58, %v7348_v58  ;;  %v4209_v0 = vunpack.c.h.s8.bf16 %v3689_v45  ;;  %v4211_v1 = vunpack.c.h.s8.bf16 %v3691_v46  ;;  %v3714_v45 = vld [vmem:[%s8000_s27 + $0xd0] sm:$0xff] }
 0x4bf   : > { %3207 = vmatprep.subr.bf16.mxu0 %v1938_v35  ;;  %3371 = vmatprep.subr.bf16.mxu1 %v1940_v2  ;;  %v3697_v35 = vld [vmem:[%s8000_s27 + $0x48] sm:$0xff]  ;;  %v3699_v2 = vld [vmem:[%s8000_s27 + $0x58] sm:$0xff]  ;;  %v4250_v52 = vunpack.c.l.s8.bf16 %v3714_v45 }
 0x4c0   : > { %v4225_v55 = vunpack.c.h.s8.bf16 %v3697_v35 }
 0x4c2   : > { %3208 = vmatpush1.bf16.msra.mxu0 %v1937_v4  ;;  %3372 = vmatpush1.bf16.msra.mxu1 %v1939_v5  ;;  %v4217_v4 = vunpack.c.l.s8.bf16 %v3697_v35  ;;  %v3696_v5 = vld [vmem:[%s8000_s27 + $0x40] sm:$0xff] }
 0x4c3   : > { %3209 = vmatprep.subr.bf16.mxu0 %v1954_v32  ;;  %3373 = vmatprep.subr.bf16.mxu1 %v1956_v7  ;;  %v4219_v32 = vunpack.c.l.s8.bf16 %v3699_v2  ;;  %v3698_v7 = vld [vmem:[%s8000_s27 + $0x50] sm:$0xff] }
 0x4c4   : > { %v4218_v8 = vunpack.c.l.s8.bf16 %v3698_v7  ;;  %v4226_v13 = vunpack.c.h.s8.bf16 %v3698_v7 }
 0x4c6   : > { %3210 = vmatpush1.bf16.msra.mxu0 %v1953_v10  ;;  %3374 = vmatpush1.bf16.msra.mxu1 %v1955_v60  ;;  %v4227_v10 = vunpack.c.h.s8.bf16 %v3699_v2  ;;  %v3705_v60 = vld [vmem:[%s8000_s27 + $0x88] sm:$0xff]  ;;  %v3720_v2 = vld [vmem:[%s8000_s27 + $0x100] sm:$0xff] }
 0x4c7   : > { %3211 = vmatprep.subr.bf16.mxu0 %v1970_v11  ;;  %3375 = vmatprep.subr.bf16.mxu1 %v1972_v12  ;;  %v3707_v11 = vld [vmem:[%s8000_s27 + $0x98] sm:$0xff]  ;;  %v4224_v12 = vunpack.c.h.s8.bf16 %v3696_v5  ;;  %v4233_v14 = vunpack.c.l.s8.bf16 %v3705_v60  ;;  %v4241_v27 = vunpack.c.h.s8.bf16 %v3705_v60  ;;  %v4272_v60 = vunpack.c.h.s8.bf16 %v3720_v2 }
 0x4ca   : > { %3212 = vmatpush1.bf16.msra.mxu0 %v1969_v16  ;;  %3376 = vmatpush1.bf16.msra.mxu1 %v1971_v51  ;;  %v4235_v16 = vunpack.c.l.s8.bf16 %v3707_v11  ;;  %v3706_v51 = vld [vmem:[%s8000_s27 + $0x90] sm:$0xff] }
 0x4cb   : > { %3213 = vmatprep.subr.bf16.mxu0 %v1986_v23  ;;  %3377 = vmatprep.subr.bf16.mxu1 %v1988_v24  ;;  %v4232_v23 = vunpack.c.l.s8.bf16 %v3704_v63  ;;  %v8696_v24 = vsub.s32 3, %v8022_v26  ;;  %v4234_v25 = vunpack.c.l.s8.bf16 %v3706_v51  ;;  %v3730_v63 = vld [vmem:[%s8000_s27 + $0x150] sm:$0xff] }
 0x4cd   : > { %v3411_v40 = vrot.slane %v8636_v9, %v8696_v24 }
 0x4ce   : > { %3214 = vmatpush1.bf16.msra.mxu0 %v1985_v28  ;;  %3378 = vmatpush1.bf16.msra.mxu1 %v1987_v34  ;;  %v4243_v28 = vunpack.c.h.s8.bf16 %v3707_v11  ;;  %v3713_v34 = vld [vmem:[%s8000_s27 + $0xc8] sm:$0xff] }
 0x4cf   : > { %3215 = vmatprep.subr.bf16.mxu0 %v2002_v37  ;;  %3379 = vmatprep.subr.bf16.mxu1 %v2004_v38  ;;  %v3399_v37 = vrot.slane %v8636_v9, %v8693_v17  ;;  %v3715_v38 = vld [vmem:[%s8000_s27 + $0xd8] sm:$0xff]  ;;  %v4257_v53 = vunpack.c.h.s8.bf16 %v3713_v34 }
 0x4d0   : > { %v4259_v58 = vunpack.c.h.s8.bf16 %v3715_v38 }
 0x4d1   : > { %v3476_v46 = vmul.f32 %v3399_v37, %v8332_v54 }
 0x4d2   : > { %3216 = vmatpush1.bf16.msra.mxu0 %v2001_v42  ;;  %3380 = vmatpush1.bf16.msra.mxu1 %v2003_v43  ;;  %v4242_v42 = vunpack.c.h.s8.bf16 %v3706_v51  ;;  %v4249_v43 = vunpack.c.l.s8.bf16 %v3713_v34  ;;  %v4282_v51 = vunpack.c.l.s8.bf16 %v3730_v63 }
 0x4d3   : > { %3217 = vmatprep.subr.bf16.mxu0 %v2018_v36  ;;  %3381 = vmatprep.subr.bf16.mxu1 %v2020_v44  ;;  %v3712_v36 = vld [vmem:[%s8000_s27 + $0xc0] sm:$0xff]  ;;  %v4251_v44 = vunpack.c.l.s8.bf16 %v3715_v38  ;;  %v4290_v38 = vunpack.c.h.s8.bf16 %v3730_v63 }
 0x4d6   : > { %3218 = vmatpush1.bf16.msra.mxu0 %v2017_v47  ;;  %3382 = vmatpush1.bf16.msra.mxu1 %v2019_v48  ;;  %v3499_v47 = vrot.slane %v8643_v15, %v8693_v17  ;;  %v4248_v48 = vunpack.c.l.s8.bf16 %v3712_v36 }
 0x4d7   : > { %5240 = vmatprep.subr.bf16.mxu0 %v4201_v49  ;;  %5568 = vmatprep.subr.bf16.mxu1 %v4203_v50  ;;  %v3479_v49 = vmul.f32 %v3411_v40, %v8338_v57  ;;  %v3511_v50 = vrot.slane %v8643_v15, %v8696_v24  ;;  %v4258_v57 = vunpack.c.h.s8.bf16 %v3714_v45  ;;  %v3736_v40 = vld [vmem:[%s8000_s27 + $0x180] sm:$0xff] }
 0x4d8   : > { %v3576_v54 = vadd.f32 %v3499_v47, %v3476_v46  ;;  %v4296_v45 = vunpack.c.l.s8.bf16 %v3736_v40 }
 0x4d9   : > { %3220 = vmatmul.mubr.bf16.vlgmr.msra.gmra.mrb[12].mxu0 %v8206_v62  ;;  %3384 = vmatmul.mubr.bf16.vlgmr.msra.gmra.mrb[12].mxu1 %v8206_v62  ;;  %v4216_v62 = vunpack.c.l.s8.bf16 %v3696_v5  ;;  %v4264_v5 = vunpack.c.l.s8.bf16 %v3720_v2 }
 0x4da   : > { %5241 = vmatpush1.bf16.msra.mxu0 %v4200_v59  ;;  %5272 = vmatprep.mubr.bf16.mxu0 %v8678_v41  ;;  %v3721_v59 = vld [vmem:[%s8000_s27 + $0x108] sm:$0xff] }
 0x4db   : > { %5569 = vmatpush1.bf16.msra.mxu1 %v4202_v61  ;;  %5600 = vmatprep.mubr.bf16.mxu1 %v8678_v41  ;;  %v3723_v61 = vld [vmem:[%s8000_s27 + $0x118] sm:$0xff]  ;;  %v4265_v35 = vunpack.c.l.s8.bf16 %v3721_v59 }
 0x4dc   : > { %5242 = vmatprep.subr.bf16.mxu0 %v4209_v0  ;;  %5570 = vmatprep.subr.bf16.mxu1 %v4211_v1  ;;  %v4256_v0 = vunpack.c.h.s8.bf16 %v3712_v36  ;;  %v3579_v1 = vadd.f32 %v3511_v50, %v3479_v49  ;;  %v3745_v50 = vld [vmem:[%s8000_s27 + $0x1c8] sm:$0xff] }
 0x4de   : > { %5243 = vmatpush1.bf16.msra.mxu0 %v4208_v3  ;;  %v4267_v3 = vunpack.c.l.s8.bf16 %v3723_v61 }
 0x4df   : > { %5571 = vmatpush1.bf16.msra.mxu1 %v4210_v19  ;;  %5244 = vmatprep.subr.bf16.mxu0 %v4217_v4  ;;  %v3722_v19 = vld [vmem:[%s8000_s27 + $0x110] sm:$0xff]  ;;  %v7007_v4 = vmul.f32 -1.442695, %v3576_v54  ;;  %v3744_v54 = vld [vmem:[%s8000_s27 + $0x1c0] sm:$0xff] }
 0x4e0   : > { %5572 = vmatprep.subr.bf16.mxu1 %v4219_v32  ;;  %v7010_v32 = vmul.f32 -1.442695, %v3579_v1  ;;  %v4266_v7 = vunpack.c.l.s8.bf16 %v3722_v19  ;;  %v4274_v11 = vunpack.c.h.s8.bf16 %v3722_v19  ;;  %v4312_v1 = vunpack.c.l.s8.bf16 %v3744_v54  ;;  %v3755_v19 = vld [vmem:[%s8000_s27 + $0x218] sm:$0xff] }
 0x4e1   : > { %7349 = vpow2.f32 %v7007_v4  ;;  %v4320_v4 = vunpack.c.h.s8.bf16 %v3744_v54 }
 0x4e2   : > { %5245 = vmatpush1.bf16.msra.mxu0 %v4216_v62  ;;  %v4273_v62 = vunpack.c.h.s8.bf16 %v3721_v59  ;;  %7351 = vpow2.f32 %v7010_v32  ;;  %v4313_v59 = vunpack.c.l.s8.bf16 %v3745_v50 }
 0x4e3   : > { %5573 = vmatpush1.bf16.msra.mxu1 %v4218_v8  ;;  %5246 = vmatprep.subr.bf16.mxu0 %v4225_v55  ;;  %v4275_v8 = vunpack.c.h.s8.bf16 %v3723_v61  ;;  %v3729_v55 = vld [vmem:[%s8000_s27 + $0x148] sm:$0xff] }
 0x4e4   : > { %5574 = vmatprep.subr.bf16.mxu1 %v4227_v10  ;;  %v3731_v10 = vld [vmem:[%s8000_s27 + $0x158] sm:$0xff] }
 0x4e6   : > { %5247 = vmatpush1.bf16.msra.mxu0 %v4224_v12  ;;  %v4281_v12 = vunpack.c.l.s8.bf16 %v3729_v55 }
 0x4e7   : > { %5575 = vmatpush1.bf16.msra.mxu1 %v4226_v13  ;;  %5248 = vmatprep.subr.bf16.mxu0 %v4233_v14  ;;  %v3728_v13 = vld [vmem:[%s8000_s27 + $0x140] sm:$0xff]  ;;  %v4283_v14 = vunpack.c.l.s8.bf16 %v3731_v10 }
 0x4e8   : > { %5576 = vmatprep.subr.bf16.mxu1 %v4235_v16  ;;  %v4280_v16 = vunpack.c.l.s8.bf16 %v3728_v13  ;;  %v4288_v34 = vunpack.c.h.s8.bf16 %v3728_v13 }
 0x4ea   : > { %5249 = vmatpush1.bf16.msra.mxu0 %v4232_v23  ;;  %v4289_v23 = vunpack.c.h.s8.bf16 %v3729_v55  ;;  %v3754_v55 = vld [vmem:[%s8000_s27 + $0x210] sm:$0xff] }
 0x4eb   : > { %5577 = vmatpush1.bf16.msra.mxu1 %v4234_v25  ;;  %5250 = vmatprep.subr.bf16.mxu0 %v4241_v27  ;;  %v4291_v25 = vunpack.c.h.s8.bf16 %v3731_v10  ;;  %v3737_v27 = vld [vmem:[%s8000_s27 + $0x188] sm:$0xff]  ;;  %v7350_v37 = vpop.eup %7349 }
 0x4ec   : > { %5578 = vmatprep.subr.bf16.mxu1 %v4243_v28  ;;  %v3739_v28 = vld [vmem:[%s8000_s27 + $0x198] sm:$0xff]  ;;  %v7352_v36 = vpop.eup %7351  ;;  %v4305_v47 = vunpack.c.h.s8.bf16 %v3737_v27 }
 0x4ed   : > { %v4307_v49 = vunpack.c.h.s8.bf16 %v3739_v28 }
 0x4ee   : > { %5251 = vmatpush1.bf16.msra.mxu0 %v4240_v39  ;;  %v4297_v39 = vunpack.c.l.s8.bf16 %v3737_v27 }
 0x4ef   : > { %5579 = vmatpush1.bf16.msra.mxu1 %v4242_v42  ;;  %5252 = vmatprep.subr.bf16.mxu0 %v4249_v43  ;;  %v4299_v42 = vunpack.c.l.s8.bf16 %v3739_v28  ;;  %v3738_v43 = vld [vmem:[%s8000_s27 + $0x190] sm:$0xff]  ;;  %v3760_v28 = vld [vmem:[%s8000_s27 + $0x240] sm:$0xff] }
 0x4f0   : > { %5580 = vmatprep.subr.bf16.mxu1 %v4251_v44  ;;  %v3640_v44 = vadd.f32 1.0, %v7350_v37  ;;  %v4298_v46 = vunpack.c.l.s8.bf16 %v3738_v43  ;;  %v3762_v37 = vld [vmem:[%s8000_s27 + $0x250] sm:$0xff] }
 0x4f2   : > { %5253 = vmatpush1.bf16.msra.mxu0 %v4248_v48  ;;  %v3643_v48 = vadd.f32 1.0, %v7352_v36  ;;  %7353 = vrcp.f32 %v3640_v44  ;;  %v3771_v36 = vld [vmem:[%s8000_s27 + $0x298] sm:$0xff]  ;;  %v4352_v44 = vunpack.c.h.s8.bf16 %v3760_v28 }
 0x4f3   : > { %5581 = vmatpush1.bf16.msra.mxu1 %v4250_v52  ;;  %5254 = vmatprep.subr.bf16.mxu0 %v4257_v53  ;;  %v3747_v52 = vld [vmem:[%s8000_s27 + $0x1d8] sm:$0xff]  ;;  %v4304_v53 = vunpack.c.h.s8.bf16 %v3736_v40  ;;  %v4371_v54 = vunpack.c.h.s8.bf16 %v3771_v36 }
 0x4f4   : > { %5582 = vmatprep.subr.bf16.mxu1 %v4259_v58  ;;  %v4306_v58 = vunpack.c.h.s8.bf16 %v3738_v43  ;;  %7355 = vrcp.f32 %v3643_v48  ;;  %v4315_v61 = vunpack.c.l.s8.bf16 %v3747_v52  ;;  %v4323_v2 = vunpack.c.h.s8.bf16 %v3747_v52  ;;  %v3769_v43 = vld [vmem:[%s8000_s27 + $0x288] sm:$0xff] }
 0x4f5   : > { %v4363_v48 = vunpack.c.l.s8.bf16 %v3771_v36 }
 0x4f6   : > { %5255 = vmatpush1.bf16.msra.mxu0 %v4256_v0  ;;  %v3746_v0 = vld [vmem:[%s8000_s27 + $0x1d0] sm:$0xff] }
 0x4f7   : > { %5583 = vmatpush1.bf16.msra.mxu1 %v4258_v57  ;;  %5256 = vmatprep.subr.bf16.mxu0 %v4265_v35  ;;  %v4314_v57 = vunpack.c.l.s8.bf16 %v3746_v0  ;;  %v4321_v35 = vunpack.c.h.s8.bf16 %v3745_v50  ;;  %v8749_v50 = vsub.s32 2, %v8022_v26 }
 0x4f8   : > { %5584 = vmatprep.subr.bf16.mxu1 %v4267_v3  ;;  %v3753_v3 = vld [vmem:[%s8000_s27 + $0x208] sm:$0xff] }
 0x4f9   : > { %v4329_v32 = vunpack.c.l.s8.bf16 %v3753_v3  ;;  %v4337_v13 = vunpack.c.h.s8.bf16 %v3753_v3 }
 0x4fa   : > { %5257 = vmatpush1.bf16.msra.mxu0 %v4264_v5  ;;  %v4322_v5 = vunpack.c.h.s8.bf16 %v3746_v0  ;;  %v3407_v0 = vrot.slane %v8636_v9, %v8749_v50 }
 0x4fb   : > { %5585 = vmatpush1.bf16.msra.mxu1 %v4266_v7  ;;  %5258 = vmatprep.subr.bf16.mxu0 %v4273_v62  ;;  %v3752_v7 = vld [vmem:[%s8000_s27 + $0x200] sm:$0xff] }
 0x4fc   : > { %5586 = vmatprep.subr.bf16.mxu1 %v4275_v8  ;;  %v7354_v62 = vpop.eup %7353  ;;  %v4331_v8 = vunpack.c.l.s8.bf16 %v3755_v19 }
 0x4fe   : > { %5259 = vmatpush1.bf16.msra.mxu0 %v4272_v60  ;;  %v7356_v10 = vpop.eup %7355  ;;  %v4328_v60 = vunpack.c.l.s8.bf16 %v3752_v7 }
 0x4ff   : > { %5587 = vmatpush1.bf16.msra.mxu1 %v4274_v11  ;;  %5260 = vmatprep.subr.bf16.mxu0 %v4281_v12  ;;  %v8732_v11 = vpack.c.bf16 %v7354_v62, %v7354_v62  ;;  %v4330_v12 = vunpack.c.l.s8.bf16 %v3754_v55  ;;  %v8736_v63 = vpack.c.bf16 %v7356_v10, %v7356_v10 }
 0x500   : > { %5588 = vmatprep.subr.bf16.mxu1 %v4283_v14  ;;  %v3761_v14 = vld [vmem:[%s8000_s27 + $0x248] sm:$0xff] }
 0x501   : > { %v4345_v27 = vunpack.c.l.s8.bf16 %v3761_v14  ;;  %v4353_v40 = vunpack.c.h.s8.bf16 %v3761_v14 }
 0x502   : > { %5261 = vmatpush1.bf16.msra.mxu0 %v4280_v16  ;;  %v4339_v16 = vunpack.c.h.s8.bf16 %v3755_v19  ;;  %v3776_v19 = vld [vmem:[%s8000_s27 + $0x2c0] sm:$0xff] }
 0x503   : > { %5589 = vmatpush1.bf16.msra.mxu1 %v4282_v51  ;;  %5262 = vmatprep.subr.bf16.mxu0 %v4289_v23  ;;  %v3763_v51 = vld [vmem:[%s8000_s27 + $0x258] sm:$0xff]  ;;  %v4336_v23 = vunpack.c.h.s8.bf16 %v3752_v7  ;;  %v3507_v7 = vrot.slane %v8643_v15, %v8749_v50  ;;  %v4376_v62 = vunpack.c.l.s8.bf16 %v3776_v19  ;;  %v4384_v14 = vunpack.c.h.s8.bf16 %v3776_v19 }
 0x504   : > { %5590 = vmatprep.subr.bf16.mxu1 %v4291_v25  ;;  %v4338_v25 = vunpack.c.h.s8.bf16 %v3754_v55 }
 0x506   : > { %5263 = vmatpush1.bf16.msra.mxu0 %v4288_v34  ;;  %v4347_v34 = vunpack.c.l.s8.bf16 %v3763_v51 }
 0x507   : > { %5591 = vmatpush1.bf16.msra.mxu1 %v4290_v38  ;;  %5264 = vmatprep.subr.bf16.mxu0 %v4297_v39  ;;  %v4344_v38 = vunpack.c.l.s8.bf16 %v3760_v28  ;;  %v4346_v39 = vunpack.c.l.s8.bf16 %v3762_v37 }
 0x508   : > { %5592 = vmatprep.subr.bf16.mxu1 %v4299_v42  ;;  %v4355_v42 = vunpack.c.h.s8.bf16 %v3763_v51 }
 0x50a   : > { %5265 = vmatpush1.bf16.msra.mxu0 %v4296_v45  ;;  %v4354_v45 = vunpack.c.h.s8.bf16 %v3762_v37 }
 0x50b   : > { %5593 = vmatpush1.bf16.msra.mxu1 %v4298_v46  ;;  %5266 = vmatprep.subr.bf16.mxu0 %v4305_v47  ;;  %v4361_v46 = vunpack.c.l.s8.bf16 %v3769_v43  ;;  %v3768_v47 = vld [vmem:[%s8000_s27 + $0x280] sm:$0xff] }
 0x50c   : > { %5594 = vmatprep.subr.bf16.mxu1 %v4307_v49  ;;  %v3770_v49 = vld [vmem:[%s8000_s27 + $0x290] sm:$0xff]  ;;  %v4360_v52 = vunpack.c.l.s8.bf16 %v3768_v47 }
 0x50e   : > { %5267 = vmatpush1.bf16.msra.mxu0 %v4304_v53  ;;  %v8752_v53 = vsub.s32 5, %v8022_v26 }
 0x50f   : > { %5595 = vmatpush1.bf16.msra.mxu1 %v4306_v58  ;;  %5268 = vmatprep.subr.bf16.mxu0 %v4313_v59  ;;  %v4362_v58 = vunpack.c.l.s8.bf16 %v3770_v49  ;;  %v4369_v59 = vunpack.c.h.s8.bf16 %v3769_v43 }
 0x510   : > { %5596 = vmatprep.subr.bf16.mxu1 %v4315_v61  ;;  %v3777_v61 = vld [vmem:[%s8000_s27 + $0x2c8] sm:$0xff] }
 0x511   : > { %v4377_v3 = vunpack.c.l.s8.bf16 %v3777_v61  ;;  %v4385_v10 = vunpack.c.h.s8.bf16 %v3777_v61 }
 0x512   : > { %5269 = vmatpush1.bf16.msra.mxu0 %v4312_v1  ;;  %v3779_v1 = vld [vmem:[%s8000_s27 + $0x2d8] sm:$0xff] }
 0x513   : > { %5597 = vmatpush1.bf16.msra.mxu1 %v4314_v57  ;;  %5270 = vmatprep.subr.bf16.mxu0 %v4321_v35  ;;  %v4368_v57 = vunpack.c.h.s8.bf16 %v3768_v47  ;;  %v3419_v35 = vrot.slane %v8636_v9, %v8752_v53  ;;  %v3519_v9 = vrot.slane %v8643_v15, %v8752_v53  ;;  %v3784_v15 = vld [vmem:[%s8000_s27 + $0x300] sm:$0xff]  ;;  %v3794_v47 = vld [vmem:[%s8000_s27 + $0x350] sm:$0xff] }
 0x514   : > { %5598 = vmatprep.subr.bf16.mxu1 %v4323_v2  ;;  %v4370_v2 = vunpack.c.h.s8.bf16 %v3770_v49  ;;  %v4392_v28 = vunpack.c.l.s8.bf16 %v3784_v15  ;;  %v4400_v43 = vunpack.c.h.s8.bf16 %v3784_v15  ;;  %v4410_v49 = vunpack.c.l.s8.bf16 %v3794_v47 }
 0x516   : > { %5271 = vmatpush1.bf16.msra.mxu0 %v4320_v4  ;;  %v4379_v4 = vunpack.c.l.s8.bf16 %v3779_v1 }
 0x517   : > { %5599 = vmatpush1.bf16.msra.mxu1 %v4322_v5  ;;  %5281 = vmatprep.subr.bf16.mxu0 %v4329_v32  ;;  %v3778_v5 = vld [vmem:[%s8000_s27 + $0x2d0] sm:$0xff]  ;;  %v3478_v32 = vmul.f32 %v3407_v0, %v8334_v56 }
 0x518   : > { %5609 = vmatprep.subr.bf16.mxu1 %v4331_v8  ;;  %v3481_v8 = vmul.f32 %v3419_v35, %v8488_v31  ;;  %v4378_v55 = vunpack.c.l.s8.bf16 %v3778_v5  ;;  %v4386_v31 = vunpack.c.h.s8.bf16 %v3778_v5  ;;  %v3800_v35 = vld [vmem:[%s8000_s27 + $0x380] sm:$0xff] }
 0x519   : > { %5273 = vmatmul.mubr.bf16.vlgmr.msra.gmra.mrb[16].mxu0 %v8732_v11  ;;  %v3578_v56 = vadd.f32 %v3507_v7, %v3478_v32  ;;  %v4424_v5 = vunpack.c.l.s8.bf16 %v3800_v35 }
 0x51a   : > { %5601 = vmatmul.mubr.bf16.vlgmr.msra.gmra.mrb[16].mxu1 %v8732_v11  ;;  %5282 = vmatpush1.bf16.msra.mxu0 %v4328_v60  ;;  %v4387_v60 = vunpack.c.h.s8.bf16 %v3779_v1  ;;  %v4418_v1 = vunpack.c.h.s8.bf16 %v3794_v47 }
 0x51b   : > { %5313 = vmatprep.mubr.bf16.mxu0 %v8736_v63  ;;  %5610 = vmatpush1.bf16.msra.mxu1 %v4330_v12  ;;  %v3785_v12 = vld [vmem:[%s8000_s27 + $0x308] sm:$0xff] }
 0x51c   : > { %5641 = vmatprep.mubr.bf16.mxu1 %v8736_v63  ;;  %5283 = vmatprep.subr.bf16.mxu0 %v4337_v13  ;;  %v3787_v13 = vld [vmem:[%s8000_s27 + $0x318] sm:$0xff]  ;;  %v4393_v51 = vunpack.c.l.s8.bf16 %v3785_v12 }
 0x51d   : > { %5611 = vmatprep.subr.bf16.mxu1 %v4339_v16  ;;  %v3581_v16 = vadd.f32 %v3519_v9, %v3481_v8  ;;  %v3809_v9 = vld [vmem:[%s8000_s27 + $0x3c8] sm:$0xff] }
 0x51e   : > { %5284 = vmatpush1.bf16.msra.mxu0 %v4336_v23  ;;  %v4395_v23 = vunpack.c.l.s8.bf16 %v3787_v13 }
 0x51f   : > { %5612 = vmatpush1.bf16.msra.mxu1 %v4338_v25  ;;  %5285 = vmatprep.subr.bf16.mxu0 %v4345_v27  ;;  %v3786_v25 = vld [vmem:[%s8000_s27 + $0x310] sm:$0xff]  ;;  %v7009_v27 = vmul.f32 -1.442695, %v3578_v56  ;;  %v3808_v56 = vld [vmem:[%s8000_s27 + $0x3c0] sm:$0xff] }
 0x520   : > { %5613 = vmatprep.subr.bf16.mxu1 %v4347_v34  ;;  %v7012_v34 = vmul.f32 -1.442695, %v3581_v16  ;;  %v4394_v37 = vunpack.c.l.s8.bf16 %v3786_v25  ;;  %v4402_v36 = vunpack.c.h.s8.bf16 %v3786_v25  ;;  %v4440_v16 = vunpack.c.l.s8.bf16 %v3808_v56  ;;  %v3819_v25 = vld [vmem:[%s8000_s27 + $0x418] sm:$0xff] }
 0x521   : > { %7357 = vpow2.f32 %v7009_v27  ;;  %v4448_v27 = vunpack.c.h.s8.bf16 %v3808_v56 }
 0x522   : > { %5286 = vmatpush1.bf16.msra.mxu0 %v4344_v38  ;;  %v4401_v38 = vunpack.c.h.s8.bf16 %v3785_v12  ;;  %7359 = vpow2.f32 %v7012_v34  ;;  %v4441_v12 = vunpack.c.l.s8.bf16 %v3809_v9 }
 0x523   : > { %5614 = vmatpush1.bf16.msra.mxu1 %v4346_v39  ;;  %5287 = vmatprep.subr.bf16.mxu0 %v4353_v40  ;;  %v4403_v39 = vunpack.c.h.s8.bf16 %v3787_v13  ;;  %v3793_v40 = vld [vmem:[%s8000_s27 + $0x348] sm:$0xff] }
 0x524   : > { %5615 = vmatprep.subr.bf16.mxu1 %v4355_v42  ;;  %v3795_v42 = vld [vmem:[%s8000_s27 + $0x358] sm:$0xff] }
 0x526   : > { %5288 = vmatpush1.bf16.msra.mxu0 %v4352_v44  ;;  %v4409_v44 = vunpack.c.l.s8.bf16 %v3793_v40 }
 0x527   : > { %5616 = vmatpush1.bf16.msra.mxu1 %v4354_v45  ;;  %5289 = vmatprep.subr.bf16.mxu0 %v4361_v46  ;;  %v3792_v45 = vld [vmem:[%s8000_s27 + $0x340] sm:$0xff]  ;;  %v4411_v46 = vunpack.c.l.s8.bf16 %v3795_v42 }
 0x528   : > { %5617 = vmatprep.subr.bf16.mxu1 %v4363_v48  ;;  %v4408_v48 = vunpack.c.l.s8.bf16 %v3792_v45  ;;  %v4416_v61 = vunpack.c.h.s8.bf16 %v3792_v45 }
 0x52a   : > { %5290 = vmatpush1.bf16.msra.mxu0 %v4360_v52  ;;  %v4417_v52 = vunpack.c.h.s8.bf16 %v3793_v40  ;;  %v3818_v40 = vld [vmem:[%s8000_s27 + $0x410] sm:$0xff] }
 0x52b   : > { %5618 = vmatpush1.bf16.msra.mxu1 %v4362_v58  ;;  %5291 = vmatprep.subr.bf16.mxu0 %v4369_v59  ;;  %v4419_v58 = vunpack.c.h.s8.bf16 %v3795_v42  ;;  %v3801_v59 = vld [vmem:[%s8000_s27 + $0x388] sm:$0xff]  ;;  %v7358_v0 = vpop.eup %7357 }
 0x52c   : > { %5619 = vmatprep.subr.bf16.mxu1 %v4371_v54  ;;  %v3803_v54 = vld [vmem:[%s8000_s27 + $0x398] sm:$0xff]  ;;  %v7360_v19 = vpop.eup %7359  ;;  %v4433_v7 = vunpack.c.h.s8.bf16 %v3801_v59 }
 0x52d   : > { %v4435_v8 = vunpack.c.h.s8.bf16 %v3803_v54 }
 0x52e   : > { %5292 = vmatpush1.bf16.msra.mxu0 %v4368_v57  ;;  %v4425_v57 = vunpack.c.l.s8.bf16 %v3801_v59 }
 0x52f   : > { %5620 = vmatpush1.bf16.msra.mxu1 %v4370_v2  ;;  %5293 = vmatprep.subr.bf16.mxu0 %v4377_v3  ;;  %v4427_v2 = vunpack.c.l.s8.bf16 %v3803_v54  ;;  %v3802_v3 = vld [vmem:[%s8000_s27 + $0x390] sm:$0xff]  ;;  %v3824_v54 = vld [vmem:[%s8000_s27 + $0x440] sm:$0xff] }
 0x530   : > { %5621 = vmatprep.subr.bf16.mxu1 %v4379_v4  ;;  %v3642_v4 = vadd.f32 1.0, %v7358_v0  ;;  %v4426_v32 = vunpack.c.l.s8.bf16 %v3802_v3  ;;  %v3826_v0 = vld [vmem:[%s8000_s27 + $0x450] sm:$0xff] }
 0x532   : > { %5294 = vmatpush1.bf16.msra.mxu0 %v4376_v62  ;;  %v3645_v62 = vadd.f32 1.0, %v7360_v19  ;;  %7361 = vrcp.f32 %v3642_v4  ;;  %v3835_v19 = vld [vmem:[%s8000_s27 + $0x498] sm:$0xff]  ;;  %v4480_v4 = vunpack.c.h.s8.bf16 %v3824_v54 }
 0x533   : > { %5622 = vmatpush1.bf16.msra.mxu1 %v4378_v55  ;;  %5295 = vmatprep.subr.bf16.mxu0 %v4385_v10  ;;  %v3811_v55 = vld [vmem:[%s8000_s27 + $0x3d8] sm:$0xff]  ;;  %v4432_v10 = vunpack.c.h.s8.bf16 %v3800_v35  ;;  %v4499_v56 = vunpack.c.h.s8.bf16 %v3835_v19 }
 0x534   : > { %5623 = vmatprep.subr.bf16.mxu1 %v4387_v60  ;;  %v4434_v60 = vunpack.c.h.s8.bf16 %v3802_v3  ;;  %7363 = vrcp.f32 %v3645_v62  ;;  %v4443_v13 = vunpack.c.l.s8.bf16 %v3811_v55  ;;  %v4451_v15 = vunpack.c.h.s8.bf16 %v3811_v55  ;;  %v3833_v3 = vld [vmem:[%s8000_s27 + $0x488] sm:$0xff] }
 0x535   : > { %v4491_v62 = vunpack.c.l.s8.bf16 %v3835_v19 }
 0x536   : > { %5296 = vmatpush1.bf16.msra.mxu0 %v4384_v14  ;;  %v3810_v14 = vld [vmem:[%s8000_s27 + $0x3d0] sm:$0xff] }
 0x537   : > { %5624 = vmatpush1.bf16.msra.mxu1 %v4386_v31  ;;  %5297 = vmatprep.subr.bf16.mxu0 %v4393_v51  ;;  %v4442_v31 = vunpack.c.l.s8.bf16 %v3810_v14  ;;  %v4449_v51 = vunpack.c.h.s8.bf16 %v3809_v9  ;;  %v8805_v9 = vsub.s32 4, %v8022_v26 }
 0x538   : > { %5625 = vmatprep.subr.bf16.mxu1 %v4395_v23  ;;  %v3817_v23 = vld [vmem:[%s8000_s27 + $0x408] sm:$0xff] }
 0x539   : > { %v4457_v34 = vunpack.c.l.s8.bf16 %v3817_v23  ;;  %v4465_v45 = vunpack.c.h.s8.bf16 %v3817_v23 }
 0x53a   : > { %5298 = vmatpush1.bf16.msra.mxu0 %v4392_v28  ;;  %v4450_v28 = vunpack.c.h.s8.bf16 %v3810_v14  ;;  %v8812_v14 = vld [vmem:[%s7992_s10] sm:$0xff] }
 0x53b   : > { %5626 = vmatpush1.bf16.msra.mxu1 %v4394_v37  ;;  %5299 = vmatprep.subr.bf16.mxu0 %v4401_v38  ;;  %v3816_v37 = vld [vmem:[%s8000_s27 + $0x400] sm:$0xff] }
 0x53c   : > { %5627 = vmatprep.subr.bf16.mxu1 %v4403_v39  ;;  %v7362_v38 = vpop.eup %7361  ;;  %v4459_v39 = vunpack.c.l.s8.bf16 %v3819_v25 }
 0x53e   : > { %5300 = vmatpush1.bf16.msra.mxu0 %v4400_v43  ;;  %v7364_v42 = vpop.eup %7363  ;;  %v4456_v43 = vunpack.c.l.s8.bf16 %v3816_v37 }
 0x53f   : > { %5628 = vmatpush1.bf16.msra.mxu1 %v4402_v36  ;;  %5301 = vmatprep.subr.bf16.mxu0 %v4409_v44  ;;  %v8788_v36 = vpack.c.bf16 %v7362_v38, %v7362_v38  ;;  %v4458_v44 = vunpack.c.l.s8.bf16 %v3818_v40  ;;  %v8792_v47 = vpack.c.bf16 %v7364_v42, %v7364_v42  ;;  %v8823_v38 = vld [vmem:[%s7998_s2] sm:$0xff] }
 0x540   : > { %5629 = vmatprep.subr.bf16.mxu1 %v4411_v46  ;;  %v3825_v46 = vld [vmem:[%s8000_s27 + $0x448] sm:$0xff] }
 0x541   : > { %v4473_v59 = vunpack.c.l.s8.bf16 %v3825_v46  ;;  %v4481_v35 = vunpack.c.h.s8.bf16 %v3825_v46  ;;  %v3849_v46 = vld [vmem:[%s8000_s27 + $0x508] sm:$0xff] }
 0x542   : > { %5302 = vmatpush1.bf16.msra.mxu0 %v4408_v48  ;;  %v4467_v48 = vunpack.c.h.s8.bf16 %v3819_v25 }
 0x543   : > { %5630 = vmatpush1.bf16.msra.mxu1 %v4410_v49  ;;  %5303 = vmatprep.subr.bf16.mxu0 %v4417_v52  ;;  %v3827_v49 = vld [vmem:[%s8000_s27 + $0x458] sm:$0xff]  ;;  %v4464_v52 = vunpack.c.h.s8.bf16 %v3816_v37 }
 0x544   : > { %5631 = vmatprep.subr.bf16.mxu1 %v4419_v58  ;;  %v4466_v58 = vunpack.c.h.s8.bf16 %v3818_v40 }
 0x546   : > { %5304 = vmatpush1.bf16.msra.mxu0 %v4416_v61  ;;  %v4475_v61 = vunpack.c.l.s8.bf16 %v3827_v49 }
 0x547   : > { %5632 = vmatpush1.bf16.msra.mxu1 %v4418_v1  ;;  %5305 = vmatprep.subr.bf16.mxu0 %v4425_v57  ;;  %v4472_v1 = vunpack.c.l.s8.bf16 %v3824_v54  ;;  %v4474_v57 = vunpack.c.l.s8.bf16 %v3826_v0  ;;  %v3848_v54 = vld [vmem:[%s8000_s27 + $0x500] sm:$0xff] }
 0x548   : > { %5633 = vmatprep.subr.bf16.mxu1 %v4427_v2  ;;  %v4483_v2 = vunpack.c.h.s8.bf16 %v3827_v49  ;;  %v3851_v49 = vld [vmem:[%s8000_s27 + $0x518] sm:$0xff] }
 0x549   : > { %v4531_v19 = vunpack.c.h.s8.bf16 %v3851_v49 }
 0x54a   : > { %5306 = vmatpush1.bf16.msra.mxu0 %v4424_v5  ;;  %v4482_v5 = vunpack.c.h.s8.bf16 %v3826_v0  ;;  %v3850_v0 = vld [vmem:[%s8000_s27 + $0x510] sm:$0xff] }
 0x54b   : > { %5634 = vmatpush1.bf16.msra.mxu1 %v4426_v32  ;;  %5307 = vmatprep.subr.bf16.mxu0 %v4433_v7  ;;  %v4489_v32 = vunpack.c.l.s8.bf16 %v3833_v3  ;;  %v3832_v7 = vld [vmem:[%s8000_s27 + $0x480] sm:$0xff] }
 0x54c   : > { %5635 = vmatprep.subr.bf16.mxu1 %v4435_v8  ;;  %v3834_v8 = vld [vmem:[%s8000_s27 + $0x490] sm:$0xff]  ;;  %v4488_v55 = vunpack.c.l.s8.bf16 %v3832_v7 }
 0x54d   : > { %v4498_v23 = vunpack.c.h.s8.bf16 %v3834_v8 }
 0x54e   : > { %5308 = vmatpush1.bf16.msra.mxu0 %v4432_v10  ;;  %v8808_v10 = vsub.s32 7, %v8022_v26 }
 0x54f   : > { %5636 = vmatpush1.bf16.msra.mxu1 %v4434_v60  ;;  %5309 = vmatprep.subr.bf16.mxu0 %v4441_v12  ;;  %v4490_v60 = vunpack.c.l.s8.bf16 %v3834_v8  ;;  %v4497_v12 = vunpack.c.h.s8.bf16 %v3833_v3  ;;  %v4529_v3 = vunpack.c.h.s8.bf16 %v3849_v46  ;;  %v3856_v8 = vld [vmem:[%s8000_s27 + $0x540] sm:$0xff] }
 0x550   : > { %5637 = vmatprep.subr.bf16.mxu1 %v4443_v13  ;;  %v3841_v13 = vld [vmem:[%s8000_s27 + $0x4c8] sm:$0xff] }
 0x551   : > { %v4505_v25 = vunpack.c.l.s8.bf16 %v3841_v13 }
 0x552   : > { %5310 = vmatpush1.bf16.msra.mxu0 %v4440_v16  ;;  %v3415_v16 = vrot.slane %v8812_v14, %v8805_v9 }
 0x553   : > { %5638 = vmatpush1.bf16.msra.mxu1 %v4442_v31  ;;  %5311 = vmatprep.subr.bf16.mxu0 %v4449_v51  ;;  %v3843_v31 = vld [vmem:[%s8000_s27 + $0x4d8] sm:$0xff]  ;;  %v4496_v51 = vunpack.c.h.s8.bf16 %v3832_v7  ;;  %v4530_v7 = vunpack.c.h.s8.bf16 %v3850_v0 }
 0x554   : > { %5639 = vmatprep.subr.bf16.mxu1 %v4451_v15  ;;  %v3427_v15 = vrot.slane %v8812_v14, %v8808_v10  ;;  %v3480_v37 = vmul.f32 %v3415_v16, %v8484_v29  ;;  %v4515_v29 = vunpack.c.h.s8.bf16 %v3843_v31 }
 0x556   : > { %5312 = vmatpush1.bf16.msra.mxu0 %v4448_v27  ;;  %v3840_v27 = vld [vmem:[%s8000_s27 + $0x4c0] sm:$0xff]  ;;  %v3483_v42 = vmul.f32 %v3427_v15, %v8490_v33  ;;  %v4544_v15 = vunpack.c.h.s8.bf16 %v3856_v8 }
 0x557   : > { %5640 = vmatpush1.bf16.msra.mxu1 %v4450_v28  ;;  %5322 = vmatprep.subr.bf16.mxu0 %v4457_v34  ;;  %v4507_v28 = vunpack.c.l.s8.bf16 %v3843_v31  ;;  %v3842_v34 = vld [vmem:[%s8000_s27 + $0x4d0] sm:$0xff]  ;;  %v4504_v40 = vunpack.c.l.s8.bf16 %v3840_v27  ;;  %v3865_v31 = vld [vmem:[%s8000_s27 + $0x588] sm:$0xff] }
 0x558   : > { %5650 = vmatprep.subr.bf16.mxu1 %v4459_v39  ;;  %v3515_v39 = vrot.slane %v8823_v38, %v8805_v9  ;;  %v4514_v33 = vunpack.c.h.s8.bf16 %v3842_v34 }
 0x559   : > { %5314 = vmatmul.mubr.bf16.vlgmr.msra.gmra.mrb[16].mxu0 %v8788_v36 }
 0x55a   : > { %5642 = vmatmul.mubr.bf16.vlgmr.msra.gmra.mrb[16].mxu1 %v8788_v36  ;;  %5323 = vmatpush1.bf16.msra.mxu0 %v4456_v43  ;;  %v3527_v43 = vrot.slane %v8823_v38, %v8808_v10 }
 0x55b   : > { %5354 = vmatprep.mubr.bf16.mxu0 %v8792_v47  ;;  %5651 = vmatpush1.bf16.msra.mxu1 %v4458_v44  ;;  %v4506_v44 = vunpack.c.l.s8.bf16 %v3842_v34 }
 0x55c   : > { %5682 = vmatprep.mubr.bf16.mxu1 %v8792_v47  ;;  %5324 = vmatprep.subr.bf16.mxu0 %v4465_v45  ;;  %v4513_v45 = vunpack.c.h.s8.bf16 %v3841_v13 }
 0x55d   : > { %5652 = vmatprep.subr.bf16.mxu1 %v4467_v48  ;;  %v3580_v48 = vadd.f32 %v3515_v39, %v3480_v37  ;;  %v3866_v37 = vld [vmem:[%s8000_s27 + $0x590] sm:$0xff] }
 0x55e   : > { %5325 = vmatpush1.bf16.msra.mxu0 %v4464_v52  ;;  %v4512_v52 = vunpack.c.h.s8.bf16 %v3840_v27  ;;  %v4553_v27 = vunpack.c.l.s8.bf16 %v3865_v31 }
 0x55f   : > { %5653 = vmatpush1.bf16.msra.mxu1 %v4466_v58  ;;  %5326 = vmatprep.subr.bf16.mxu0 %v4473_v59  ;;  %v3583_v58 = vadd.f32 %v3527_v43, %v3483_v42  ;;  %v4521_v59 = vunpack.c.l.s8.bf16 %v3849_v46  ;;  %v4554_v43 = vunpack.c.l.s8.bf16 %v3866_v37  ;;  %v3873_v46 = vld [vmem:[%s8000_s27 + $0x5c8] sm:$0xff] }
 0x560   : > { %5654 = vmatprep.subr.bf16.mxu1 %v4475_v61  ;;  %v4523_v61 = vunpack.c.l.s8.bf16 %v3851_v49 }
 0x562   : > { %5327 = vmatpush1.bf16.msra.mxu0 %v4472_v1  ;;  %v7011_v1 = vmul.f32 -1.442695, %v3580_v48  ;;  %v3875_v48 = vld [vmem:[%s8000_s27 + $0x5d8] sm:$0xff] }
 0x563   : > { %5655 = vmatpush1.bf16.msra.mxu1 %v4474_v57  ;;  %5328 = vmatprep.subr.bf16.mxu0 %v4481_v35  ;;  %v4520_v57 = vunpack.c.l.s8.bf16 %v3848_v54  ;;  %v7014_v35 = vmul.f32 -1.442695, %v3583_v58  ;;  %v4569_v58 = vunpack.c.l.s8.bf16 %v3873_v46 }
 0x564   : > { %5656 = vmatprep.subr.bf16.mxu1 %v4483_v2  ;;  %v4522_v2 = vunpack.c.l.s8.bf16 %v3850_v0  ;;  %7365 = vpow2.f32 %v7011_v1  ;;  %v4577_v1 = vunpack.c.h.s8.bf16 %v3873_v46 }
 0x565   : > { %7367 = vpow2.f32 %v7014_v35  ;;  %v3881_v35 = vld [vmem:[%s8000_s27 + $0x608] sm:$0xff] }
 0x566   : > { %5329 = vmatpush1.bf16.msra.mxu0 %v4480_v4  ;;  %v3857_v4 = vld [vmem:[%s8000_s27 + $0x548] sm:$0xff] }
 0x567   : > { %5657 = vmatpush1.bf16.msra.mxu1 %v4482_v5  ;;  %5330 = vmatprep.subr.bf16.mxu0 %v4489_v32  ;;  %v3859_v5 = vld [vmem:[%s8000_s27 + $0x558] sm:$0xff]  ;;  %v4528_v32 = vunpack.c.h.s8.bf16 %v3848_v54  ;;  %v4545_v13 = vunpack.c.h.s8.bf16 %v3857_v4  ;;  %v3874_v54 = vld [vmem:[%s8000_s27 + $0x5d0] sm:$0xff] }
 0x568   : > { %5658 = vmatprep.subr.bf16.mxu1 %v4491_v62  ;;  %v4537_v62 = vunpack.c.l.s8.bf16 %v3857_v4  ;;  %v4547_v16 = vunpack.c.h.s8.bf16 %v3859_v5  ;;  %v4570_v0 = vunpack.c.l.s8.bf16 %v3874_v54  ;;  %v4585_v4 = vunpack.c.l.s8.bf16 %v3881_v35 }
 0x56a   : > { %5331 = vmatpush1.bf16.msra.mxu0 %v4488_v55  ;;  %v4539_v55 = vunpack.c.l.s8.bf16 %v3859_v5  ;;  %v3880_v5 = vld [vmem:[%s8000_s27 + $0x600] sm:$0xff] }
 0x56b   : > { %5659 = vmatpush1.bf16.msra.mxu1 %v4490_v60  ;;  %5332 = vmatprep.subr.bf16.mxu0 %v4497_v12  ;;  %v3858_v60 = vld [vmem:[%s8000_s27 + $0x550] sm:$0xff]  ;;  %v4536_v12 = vunpack.c.l.s8.bf16 %v3856_v8 }
 0x56c   : > { %5660 = vmatprep.subr.bf16.mxu1 %v4499_v56  ;;  %v4538_v56 = vunpack.c.l.s8.bf16 %v3858_v60 }
 0x56e   : > { %5333 = vmatpush1.bf16.msra.mxu0 %v4496_v51  ;;  %v3867_v51 = vld [vmem:[%s8000_s27 + $0x598] sm:$0xff] }
 0x56f   : > { %5661 = vmatpush1.bf16.msra.mxu1 %v4498_v23  ;;  %5334 = vmatprep.subr.bf16.mxu0 %v4505_v25  ;;  %v7366_v23 = vpop.eup %7365  ;;  %v4546_v25 = vunpack.c.h.s8.bf16 %v3858_v60  ;;  %v4555_v34 = vunpack.c.l.s8.bf16 %v3867_v51 }
 0x570   : > { %5662 = vmatprep.subr.bf16.mxu1 %v4507_v28  ;;  %v3864_v28 = vld [vmem:[%s8000_s27 + $0x580] sm:$0xff]  ;;  %v7368_v39 = vpop.eup %7367 }
 0x571   : > { %v4552_v42 = vunpack.c.l.s8.bf16 %v3864_v28  ;;  %v4560_v49 = vunpack.c.h.s8.bf16 %v3864_v28 }
 0x572   : > { %5335 = vmatpush1.bf16.msra.mxu0 %v4504_v40  ;;  %v3644_v40 = vadd.f32 1.0, %v7366_v23 }
 0x573   : > { %5663 = vmatpush1.bf16.msra.mxu1 %v4506_v44  ;;  %5336 = vmatprep.subr.bf16.mxu0 %v4513_v45  ;;  %v4561_v44 = vunpack.c.h.s8.bf16 %v3865_v31  ;;  %v3647_v45 = vadd.f32 1.0, %v7368_v39 }
 0x574   : > { %5664 = vmatprep.subr.bf16.mxu1 %v4515_v29  ;;  %v4563_v29 = vunpack.c.h.s8.bf16 %v3867_v51  ;;  %7369 = vrcp.f32 %v3644_v40  ;;  %v3891_v51 = vld [vmem:[%s8000_s27 + $0x658] sm:$0xff] }
 0x575   : > { %7371 = vrcp.f32 %v3647_v45  ;;  %v4603_v28 = vunpack.c.l.s8.bf16 %v3891_v51 }
 0x576   : > { %5337 = vmatpush1.bf16.msra.mxu0 %v4512_v52  ;;  %v4562_v52 = vunpack.c.h.s8.bf16 %v3866_v37 }
 0x577   : > { %5665 = vmatpush1.bf16.msra.mxu1 %v4514_v33  ;;  %5338 = vmatprep.subr.bf16.mxu0 %v4521_v59  ;;  %v3872_v33 = vld [vmem:[%s8000_s27 + $0x5c0] sm:$0xff]  ;;  %v4571_v59 = vunpack.c.l.s8.bf16 %v3875_v48 }
 0x578   : > { %5666 = vmatprep.subr.bf16.mxu1 %v4523_v61  ;;  %v4568_v61 = vunpack.c.l.s8.bf16 %v3872_v33 }
 0x57a   : > { %5339 = vmatpush1.bf16.msra.mxu0 %v4520_v57  ;;  %v4579_v57 = vunpack.c.h.s8.bf16 %v3875_v48  ;;  %v3896_v48 = vld [vmem:[%s8000_s27 + $0x680] sm:$0xff] }
 0x57b   : > { %5667 = vmatpush1.bf16.msra.mxu1 %v4522_v2  ;;  %5340 = vmatprep.subr.bf16.mxu0 %v4529_v3  ;;  %v3883_v2 = vld [vmem:[%s8000_s27 + $0x618] sm:$0xff]  ;;  %v4576_v3 = vunpack.c.h.s8.bf16 %v3872_v33  ;;  %v4616_v33 = vunpack.c.l.s8.bf16 %v3896_v48 }
 0x57c   : > { %5668 = vmatprep.subr.bf16.mxu1 %v4531_v19  ;;  %v4578_v19 = vunpack.c.h.s8.bf16 %v3874_v54  ;;  %v4595_v31 = vunpack.c.h.s8.bf16 %v3883_v2 }
 0x57e   : > { %5341 = vmatpush1.bf16.msra.mxu0 %v4528_v32  ;;  %v7370_v32 = vpop.eup %7369 }
 0x57f   : > { %5669 = vmatpush1.bf16.msra.mxu1 %v4530_v7  ;;  %5342 = vmatprep.subr.bf16.mxu0 %v4537_v62  ;;  %v4587_v7 = vunpack.c.l.s8.bf16 %v3883_v2  ;;  %v3882_v62 = vld [vmem:[%s8000_s27 + $0x610] sm:$0xff]  ;;  %v7372_v8 = vpop.eup %7371  ;;  %v8850_v60 = vpack.c.bf16 %v7370_v32, %v7370_v32  ;;  %v4624_v2 = vunpack.c.h.s8.bf16 %v3896_v48  ;;  %v8880_v32 = vld [vmem:[%s7998_s2 + $0x8] sm:$0xff] }
 0x580   : > { %5670 = vmatprep.subr.bf16.mxu1 %v4539_v55  ;;  %v4584_v55 = vunpack.c.l.s8.bf16 %v3880_v5  ;;  %v4594_v23 = vunpack.c.h.s8.bf16 %v3882_v62 }
 0x582   : > { %5343 = vmatpush1.bf16.msra.mxu0 %v4536_v12  ;;  %v4586_v12 = vunpack.c.l.s8.bf16 %v3882_v62 }
 0x583   : > { %5671 = vmatpush1.bf16.msra.mxu1 %v4538_v56  ;;  %5344 = vmatprep.subr.bf16.mxu0 %v4545_v13  ;;  %v4593_v56 = vunpack.c.h.s8.bf16 %v3881_v35  ;;  %v3889_v13 = vld [vmem:[%s8000_s27 + $0x648] sm:$0xff]  ;;  %v3907_v35 = vld [vmem:[%s8000_s27 + $0x6d8] sm:$0xff] }
 0x584   : > { %5672 = vmatprep.subr.bf16.mxu1 %v4547_v16  ;;  %v8854_v16 = vpack.c.bf16 %v7372_v8, %v7372_v8  ;;  %v4609_v40 = vunpack.c.h.s8.bf16 %v3889_v13  ;;  %v4635_v8 = vunpack.c.l.s8.bf16 %v3907_v35 }
 0x586   : > { %5345 = vmatpush1.bf16.msra.mxu0 %v4544_v15  ;;  %v4592_v15 = vunpack.c.h.s8.bf16 %v3880_v5  ;;  %v3904_v5 = vld [vmem:[%s8000_s27 + $0x6c0] sm:$0xff] }
 0x587   : > { %5673 = vmatpush1.bf16.msra.mxu1 %v4546_v25  ;;  %5346 = vmatprep.subr.bf16.mxu0 %v4553_v27  ;;  %v4601_v25 = vunpack.c.l.s8.bf16 %v3889_v13  ;;  %v3888_v27 = vld [vmem:[%s8000_s27 + $0x640] sm:$0xff] }
 0x588   : > { %5674 = vmatprep.subr.bf16.mxu1 %v4555_v34  ;;  %v3890_v34 = vld [vmem:[%s8000_s27 + $0x650] sm:$0xff]  ;;  %v4600_v37 = vunpack.c.l.s8.bf16 %v3888_v27  ;;  %v4608_v45 = vunpack.c.h.s8.bf16 %v3888_v27 }
 0x589   : > { %v4602_v39 = vunpack.c.l.s8.bf16 %v3890_v34 }
 0x58a   : > { %5347 = vmatpush1.bf16.msra.mxu0 %v4552_v42  ;;  %v4611_v42 = vunpack.c.h.s8.bf16 %v3891_v51 }
 0x58b   : > { %5675 = vmatpush1.bf16.msra.mxu1 %v4554_v43  ;;  %5348 = vmatprep.subr.bf16.mxu0 %v4561_v44  ;;  %v3897_v43 = vld [vmem:[%s8000_s27 + $0x688] sm:$0xff]  ;;  %v3899_v44 = vld [vmem:[%s8000_s27 + $0x698] sm:$0xff] }
 0x58c   : > { %5676 = vmatprep.subr.bf16.mxu1 %v4563_v29  ;;  %v4610_v29 = vunpack.c.h.s8.bf16 %v3890_v34  ;;  %v4617_v46 = vunpack.c.l.s8.bf16 %v3897_v43  ;;  %v4625_v54 = vunpack.c.h.s8.bf16 %v3897_v43  ;;  %v4643_v34 = vunpack.c.h.s8.bf16 %v3907_v35 }
 0x58e   : > { %5349 = vmatpush1.bf16.msra.mxu0 %v4560_v49  ;;  %v4619_v49 = vunpack.c.l.s8.bf16 %v3899_v44 }
 0x58f   : > { %5677 = vmatpush1.bf16.msra.mxu1 %v4562_v52  ;;  %5350 = vmatprep.subr.bf16.mxu0 %v4569_v58  ;;  %v3898_v52 = vld [vmem:[%s8000_s27 + $0x690] sm:$0xff]  ;;  %v8867_v58 = vsub.s32 6, %v8022_v26 }
 0x590   : > { %5678 = vmatprep.subr.bf16.mxu1 %v4571_v59  ;;  %v4618_v59 = vunpack.c.l.s8.bf16 %v3898_v52 }
 0x592   : > { %5351 = vmatpush1.bf16.msra.mxu0 %v4568_v61  ;;  %v8870_v61 = vld [vmem:[%s7992_s10 + $0x8] sm:$0xff] }
 0x593   : > { %5679 = vmatpush1.bf16.msra.mxu1 %v4570_v0  ;;  %5352 = vmatprep.subr.bf16.mxu0 %v4577_v1  ;;  %v4627_v0 = vunpack.c.h.s8.bf16 %v3899_v44  ;;  %v3905_v1 = vld [vmem:[%s8000_s27 + $0x6c8] sm:$0xff] }
 0x594   : > { %5680 = vmatprep.subr.bf16.mxu1 %v4579_v57  ;;  %v3423_v57 = vrot.slane %v8812_v14, %v8867_v58  ;;  %v3906_v14 = vld [vmem:[%s8000_s27 + $0x6d0] sm:$0xff] }
 0x596   : > { %5353 = vmatpush1.bf16.msra.mxu0 %v4576_v3  ;;  %v3435_v3 = vrot.slane %v8870_v61, %v8633_v6 }
 0x597   : > { %5681 = vmatpush1.bf16.msra.mxu1 %v4578_v19  ;;  %5363 = vmatprep.subr.bf16.mxu0 %v4585_v4  ;;  %v4626_v19 = vunpack.c.h.s8.bf16 %v3898_v52  ;;  %v4633_v4 = vunpack.c.l.s8.bf16 %v3905_v1 }
 0x598   : > { %5691 = vmatprep.subr.bf16.mxu1 %v4587_v7 }
 0x599   : > { %5355 = vmatmul.mubr.bf16.vlgmr.msra.gmra.mrb[16].mxu0 %v8850_v60 }
 0x59a   : > { %5683 = vmatmul.mubr.bf16.vlgmr.msra.gmra.mrb[16].mxu1 %v8850_v60  ;;  %5364 = vmatpush1.bf16.msra.mxu0 %v4584_v55  ;;  %v3482_v55 = vmul.f32 %v3423_v57, %v8486_v30 }
 0x59b   : > { %5395 = vmatprep.mubr.bf16.mxu0 %v8854_v16  ;;  %5692 = vmatpush1.bf16.msra.mxu1 %v4586_v12  ;;  %v3523_v12 = vrot.slane %v8823_v38, %v8867_v58  ;;  %v4634_v38 = vunpack.c.l.s8.bf16 %v3906_v14 }
 0x59c   : > { %5723 = vmatprep.mubr.bf16.mxu1 %v8854_v16  ;;  %5365 = vmatprep.subr.bf16.mxu0 %v4593_v56 }
 0x59d   : > { %5693 = vmatprep.subr.bf16.mxu1 %v4595_v31 }
 0x59e   : > { %5366 = vmatpush1.bf16.msra.mxu0 %v4592_v15  ;;  %v4632_v15 = vunpack.c.l.s8.bf16 %v3904_v5 }
 0x59f   : > { %5694 = vmatpush1.bf16.msra.mxu1 %v4594_v23  ;;  %5367 = vmatprep.subr.bf16.mxu0 %v4601_v25  ;;  %v3485_v23 = vmul.f32 %v3435_v3, %v8651_v21  ;;  %v3535_v25 = vrot.slane %v8880_v32, %v8633_v6  ;;  %v4642_v21 = vunpack.c.h.s8.bf16 %v3906_v14  ;;  %v3920_v3 = vld [vmem:[%s8000_s27 + $0x740] sm:$0xff] }
 0x5a0   : > { %5695 = vmatprep.subr.bf16.mxu1 %v4603_v28  ;;  %v4641_v28 = vunpack.c.h.s8.bf16 %v3905_v1  ;;  %v3923_v1 = vld [vmem:[%s8000_s27 + $0x758] sm:$0xff] }
 0x5a1   : > { %v3585_v43 = vadd.f32 %v3535_v25, %v3485_v23 }
 0x5a2   : > { %5368 = vmatpush1.bf16.msra.mxu0 %v4600_v37  ;;  %v3913_v37 = vld [vmem:[%s8000_s27 + $0x708] sm:$0xff] }
 0x5a3   : > { %5696 = vmatpush1.bf16.msra.mxu1 %v4602_v39  ;;  %5369 = vmatprep.subr.bf16.mxu0 %v4609_v40  ;;  %v3582_v39 = vadd.f32 %v3523_v12, %v3482_v55  ;;  %v3915_v40 = vld [vmem:[%s8000_s27 + $0x718] sm:$0xff]  ;;  %v4649_v44 = vunpack.c.l.s8.bf16 %v3913_v37  ;;  %v7016_v52 = vmul.f32 -1.442695, %v3585_v43  ;;  %v4675_v55 = vunpack.c.h.s8.bf16 %v3923_v1  ;;  %v3929_v12 = vld [vmem:[%s8000_s27 + $0x788] sm:$0xff] }
 0x5a4   : > { %5697 = vmatprep.subr.bf16.mxu1 %v4611_v42  ;;  %v4640_v42 = vunpack.c.h.s8.bf16 %v3904_v5  ;;  %v4664_v5 = vunpack.c.l.s8.bf16 %v3920_v3  ;;  %v4681_v25 = vunpack.c.l.s8.bf16 %v3929_v12 }
 0x5a5   : > { %v7013_v48 = vmul.f32 -1.442695, %v3582_v39 }
 0x5a6   : > { %5370 = vmatpush1.bf16.msra.mxu0 %v4608_v45  ;;  %v3912_v45 = vld [vmem:[%s8000_s27 + $0x700] sm:$0xff] }
 0x5a7   : > { %5698 = vmatpush1.bf16.msra.mxu1 %v4610_v29  ;;  %5371 = vmatprep.subr.bf16.mxu0 %v4617_v46  ;;  %v4651_v29 = vunpack.c.l.s8.bf16 %v3915_v40  ;;  %v3914_v46 = vld [vmem:[%s8000_s27 + $0x710] sm:$0xff]  ;;  %7373 = vpow2.f32 %v7013_v48  ;;  %v4656_v57 = vunpack.c.h.s8.bf16 %v3912_v45  ;;  %v3936_v48 = vld [vmem:[%s8000_s27 + $0x7c0] sm:$0xff] }
 0x5a8   : > { %5699 = vmatprep.subr.bf16.mxu1 %v4619_v49  ;;  %v4648_v49 = vunpack.c.l.s8.bf16 %v3912_v45  ;;  %7375 = vpow2.f32 %v7016_v52  ;;  %v4658_v35 = vunpack.c.h.s8.bf16 %v3914_v46  ;;  %v3938_v52 = vld [vmem:[%s8000_s27 + $0x7d0] sm:$0xff] }
 0x5aa   : > { %5372 = vmatpush1.bf16.msra.mxu0 %v4616_v33  ;;  %v4650_v33 = vunpack.c.l.s8.bf16 %v3914_v46 }
 0x5ab   : > { %5700 = vmatpush1.bf16.msra.mxu1 %v4618_v59  ;;  %5373 = vmatprep.subr.bf16.mxu0 %v4625_v54  ;;  %v4657_v59 = vunpack.c.h.s8.bf16 %v3913_v37  ;;  %v4659_v54 = vunpack.c.h.s8.bf16 %v3915_v40  ;;  %v4689_v40 = vunpack.c.h.s8.bf16 %v3929_v12 }
 0x5ac   : > { %v8882_v7 = vpop.f32.mrb[12].mxu0  ;;  %v8884_v62 = vpop.f32.mrb[12].mxu1  ;;  %5701 = vmatprep.subr.bf16.mxu1 %v4627_v0  ;;  %v3921_v0 = vld [vmem:[%s8000_s27 + $0x748] sm:$0xff] }
 0x5ad   : > { %v8890_v56 = vpop.f32.mrb[13].mxu0  ;;  %v8892_v13 = vpop.f32.mrb[13].mxu1  ;;  %v4673_v14 = vunpack.c.h.s8.bf16 %v3921_v0 }
 0x5ae   : > { %v3225_v31 = vpop.f32.mrb[14].mxu0  ;;  %v3389_v51 = vpop.f32.mrb[14].mxu1  ;;  %5374 = vmatpush1.bf16.msra.mxu0 %v4624_v2  ;;  %v4665_v2 = vunpack.c.l.s8.bf16 %v3921_v0 }
 0x5af   : > { %5702 = vmatpush1.bf16.msra.mxu1 %v4626_v19  ;;  %v3226_v30 = vpop.f32.mrb[15].mxu0  ;;  %v3390_v27 = vpop.f32.mrb[15].mxu1  ;;  %5375 = vmatprep.subr.bf16.mxu0 %v4633_v4  ;;  %v4667_v19 = vunpack.c.l.s8.bf16 %v3923_v1  ;;  %v3922_v4 = vld [vmem:[%s8000_s27 + $0x750] sm:$0xff]  ;;  %v3931_v31 = vld [vmem:[%s8000_s27 + $0x798] sm:$0xff]  ;;  %v4672_v51 = vunpack.c.h.s8.bf16 %v3920_v3  ;;  %v3945_v1 = vld [vmem:[%s8000_s27 + $0x808] sm:$0xff] }
 0x5b0   : > { %5703 = vmatprep.subr.bf16.mxu1 %v4635_v8  ;;  %v4666_v8 = vunpack.c.l.s8.bf16 %v3922_v4  ;;  %v4674_v23 = vunpack.c.h.s8.bf16 %v3922_v4  ;;  %v3928_v30 = vld [vmem:[%s8000_s27 + $0x780] sm:$0xff]  ;;  %v4683_v27 = vunpack.c.l.s8.bf16 %v3931_v31  ;;  %v4691_v43 = vunpack.c.h.s8.bf16 %v3931_v31 }
 0x5b1   : > { %v4680_v37 = vunpack.c.l.s8.bf16 %v3928_v30  ;;  %v4688_v45 = vunpack.c.h.s8.bf16 %v3928_v30  ;;  %v4713_v3 = vunpack.c.l.s8.bf16 %v3945_v1  ;;  %v3955_v30 = vld [vmem:[%s8000_s27 + $0x858] sm:$0xff] }
 0x5b2   : > { %5376 = vmatpush1.bf16.msra.mxu0 %v4632_v15  ;;  %v7374_v15 = vpop.eup %7373 }
 0x5b3   : > { %5704 = vmatpush1.bf16.msra.mxu1 %v4634_v38  ;;  %5377 = vmatprep.subr.bf16.mxu0 %v4641_v28  ;;  %v3930_v38 = vld [vmem:[%s8000_s27 + $0x790] sm:$0xff]  ;;  %v7376_v28 = vpop.eup %7375 }
 0x5b4   : > { %5705 = vmatprep.subr.bf16.mxu1 %v4643_v34  ;;  %v3646_v34 = vadd.f32 1.0, %v7374_v15  ;;  %v4682_v39 = vunpack.c.l.s8.bf16 %v3930_v38  ;;  %v3953_v15 = vld [vmem:[%s8000_s27 + $0x848] sm:$0xff] }
 0x5b6   : > { %5378 = vmatpush1.bf16.msra.mxu0 %v4640_v42  ;;  %v3649_v42 = vadd.f32 1.0, %v7376_v28  ;;  %7377 = vrcp.f32 %v3646_v34  ;;  %v4729_v28 = vunpack.c.l.s8.bf16 %v3953_v15  ;;  %v3952_v34 = vld [vmem:[%s8000_s27 + $0x840] sm:$0xff] }
 0x5b7   : > { %5706 = vmatpush1.bf16.msra.mxu1 %v4642_v21  ;;  %5379 = vmatprep.subr.bf16.mxu0 %v4649_v44  ;;  %v3937_v21 = vld [vmem:[%s8000_s27 + $0x7c8] sm:$0xff]  ;;  %v3939_v44 = vld [vmem:[%s8000_s27 + $0x7d8] sm:$0xff] }
 0x5b8   : > { %5707 = vmatprep.subr.bf16.mxu1 %v4651_v29  ;;  %v4690_v29 = vunpack.c.h.s8.bf16 %v3930_v38  ;;  %v4697_v46 = vunpack.c.l.s8.bf16 %v3937_v21  ;;  %7379 = vrcp.f32 %v3649_v42  ;;  %v4707_v0 = vunpack.c.h.s8.bf16 %v3939_v44 }
 0x5ba   : > { %5380 = vmatpush1.bf16.msra.mxu0 %v4648_v49  ;;  %v4699_v49 = vunpack.c.l.s8.bf16 %v3939_v44  ;;  %v3961_v44 = vld [vmem:[%s8000_s27 + $0x888] sm:$0xff] }
 0x5bb   : > { %5708 = vmatpush1.bf16.msra.mxu1 %v4650_v33  ;;  %5381 = vmatprep.subr.bf16.mxu0 %v4657_v59  ;;  %v4696_v33 = vunpack.c.l.s8.bf16 %v3936_v48  ;;  %v4698_v59 = vunpack.c.l.s8.bf16 %v3938_v52 }
 0x5bc   : > { %5709 = vmatprep.subr.bf16.mxu1 %v4659_v54  ;;  %v4705_v54 = vunpack.c.h.s8.bf16 %v3937_v21  ;;  %v4739_v21 = vunpack.c.h.s8.bf16 %v3955_v30 }
 0x5be   : > { %5382 = vmatpush1.bf16.msra.mxu0 %v4656_v57  ;;  %v3947_v57 = vld [vmem:[%s8000_s27 + $0x818] sm:$0xff] }
 0x5bf   : > { %5710 = vmatpush1.bf16.msra.mxu1 %v4658_v35  ;;  %5383 = vmatprep.subr.bf16.mxu0 %v4665_v2  ;;  %v4704_v35 = vunpack.c.h.s8.bf16 %v3936_v48  ;;  %v4706_v2 = vunpack.c.h.s8.bf16 %v3938_v52  ;;  %v4745_v48 = vunpack.c.l.s8.bf16 %v3961_v44 }
 0x5c0   : > { %5711 = vmatprep.subr.bf16.mxu1 %v4667_v19  ;;  %v3944_v19 = vld [vmem:[%s8000_s27 + $0x800] sm:$0xff]  ;;  %v7378_v4 = vpop.eup %7377 }
 0x5c1   : > { %v8917_v12 = vpack.c.bf16 %v7378_v4, %v7378_v4 }
 0x5c2   : > { %5384 = vmatpush1.bf16.msra.mxu0 %v4664_v5  ;;  %v4715_v5 = vunpack.c.l.s8.bf16 %v3947_v57 }
 0x5c3   : > { %5712 = vmatpush1.bf16.msra.mxu1 %v4666_v8  ;;  %5385 = vmatprep.subr.bf16.mxu0 %v4673_v14  ;;  %v3946_v8 = vld [vmem:[%s8000_s27 + $0x810] sm:$0xff]  ;;  %v7380_v14 = vpop.eup %7379 }
 0x5c4   : > { %5713 = vmatprep.subr.bf16.mxu1 %v4675_v55  ;;  %v4712_v55 = vunpack.c.l.s8.bf16 %v3944_v19  ;;  %v4714_v31 = vunpack.c.l.s8.bf16 %v3946_v8  ;;  %v4722_v38 = vunpack.c.h.s8.bf16 %v3946_v8  ;;  %v3968_v8 = vld [vmem:[%s8000_s27 + $0x8c0] sm:$0xff] }
 0x5c6   : > { %5386 = vmatpush1.bf16.msra.mxu0 %v4672_v51  ;;  %v4721_v51 = vunpack.c.h.s8.bf16 %v3945_v1 }
 0x5c7   : > { %5714 = vmatpush1.bf16.msra.mxu1 %v4674_v23  ;;  %5387 = vmatprep.subr.bf16.mxu0 %v4681_v25  ;;  %v8921_v23 = vpack.c.bf16 %v7380_v14, %v7380_v14  ;;  %v4723_v25 = vunpack.c.h.s8.bf16 %v3947_v57  ;;  %v3969_v57 = vld [vmem:[%s8000_s27 + $0x8c8] sm:$0xff] }
 0x5c8   : > { %5715 = vmatprep.subr.bf16.mxu1 %v4683_v27  ;;  %v4720_v27 = vunpack.c.h.s8.bf16 %v3944_v19  ;;  %v3443_v19 = vrot.slane %v8870_v61, %v8696_v24 }
 0x5ca   : > { %5388 = vmatpush1.bf16.msra.mxu0 %v4680_v37  ;;  %v4731_v37 = vunpack.c.l.s8.bf16 %v3955_v30  ;;  %v3543_v30 = vrot.slane %v8880_v32, %v8696_v24 }
 0x5cb   : > { %5716 = vmatpush1.bf16.msra.mxu1 %v4682_v39  ;;  %5389 = vmatprep.subr.bf16.mxu0 %v4689_v40  ;;  %v3954_v39 = vld [vmem:[%s8000_s27 + $0x850] sm:$0xff]  ;;  %v4728_v40 = vunpack.c.l.s8.bf16 %v3952_v34 }
 0x5cc   : > { %5717 = vmatprep.subr.bf16.mxu1 %v4691_v43  ;;  %v4730_v42 = vunpack.c.l.s8.bf16 %v3954_v39  ;;  %v4737_v43 = vunpack.c.h.s8.bf16 %v3953_v15  ;;  %v4760_v15 = vunpack.c.l.s8.bf16 %v3968_v8 }
 0x5ce   : > { %5390 = vmatpush1.bf16.msra.mxu0 %v4688_v45  ;;  %v3963_v45 = vld [vmem:[%s8000_s27 + $0x898] sm:$0xff] }
 0x5cf   : > { %5718 = vmatpush1.bf16.msra.mxu1 %v4690_v29  ;;  %5391 = vmatprep.subr.bf16.mxu0 %v4697_v46  ;;  %v4736_v29 = vunpack.c.h.s8.bf16 %v3952_v34  ;;  %v4738_v46 = vunpack.c.h.s8.bf16 %v3954_v39  ;;  %v4747_v52 = vunpack.c.l.s8.bf16 %v3963_v45  ;;  %v4755_v1 = vunpack.c.h.s8.bf16 %v3963_v45  ;;  %v3977_v34 = vld [vmem:[%s8000_s27 + $0x908] sm:$0xff] }
 0x5d0   : > { %5719 = vmatprep.subr.bf16.mxu1 %v4699_v49  ;;  %v3960_v49 = vld [vmem:[%s8000_s27 + $0x880] sm:$0xff]  ;;  %v4768_v39 = vunpack.c.h.s8.bf16 %v3968_v8  ;;  %v3993_v8 = vld [vmem:[%s8000_s27 + $0x988] sm:$0xff] }
 0x5d2   : > { %5392 = vmatpush1.bf16.msra.mxu0 %v4696_v33  ;;  %v3962_v33 = vld [vmem:[%s8000_s27 + $0x890] sm:$0xff] }
 0x5d3   : > { %5720 = vmatpush1.bf16.msra.mxu1 %v4698_v59  ;;  %5393 = vmatprep.subr.bf16.mxu0 %v4705_v54  ;;  %v4744_v59 = vunpack.c.l.s8.bf16 %v3960_v49  ;;  %v4746_v54 = vunpack.c.l.s8.bf16 %v3962_v33  ;;  %v4754_v4 = vunpack.c.h.s8.bf16 %v3962_v33  ;;  %v3985_v33 = vld [vmem:[%s8000_s27 + $0x948] sm:$0xff] }
 0x5d4   : > { %5721 = vmatprep.subr.bf16.mxu1 %v4707_v0  ;;  %v4753_v0 = vunpack.c.h.s8.bf16 %v3961_v44  ;;  %v3978_v44 = vld [vmem:[%s8000_s27 + $0x910] sm:$0xff] }
 0x5d6   : > { %5394 = vmatpush1.bf16.msra.mxu0 %v4704_v35  ;;  %v3431_v35 = vrot.slane %v8870_v61, %v8693_v17 }
 0x5d7   : > { %5722 = vmatpush1.bf16.msra.mxu1 %v4706_v2  ;;  %5404 = vmatprep.subr.bf16.mxu0 %v4713_v3  ;;  %v3971_v2 = vld [vmem:[%s8000_s27 + $0x8d8] sm:$0xff]  ;;  %v4752_v3 = vunpack.c.h.s8.bf16 %v3960_v49  ;;  %v4785_v49 = vunpack.c.h.s8.bf16 %v3977_v34 }
 0x5d8   : > { %5732 = vmatprep.subr.bf16.mxu1 %v4715_v5  ;;  %v4761_v5 = vunpack.c.l.s8.bf16 %v3969_v57  ;;  %v4763_v14 = vunpack.c.l.s8.bf16 %v3971_v2 }
 0x5d9   : > { %5396 = vmatmul.mubr.bf16.vlgmr.msra.gmra.mrb[16].mxu0 %v8917_v12 }
 0x5da   : > { %5724 = vmatmul.mubr.bf16.vlgmr.msra.gmra.mrb[16].mxu1 %v8917_v12  ;;  %5405 = vmatpush1.bf16.msra.mxu0 %v4712_v55  ;;  %v3970_v55 = vld [vmem:[%s8000_s27 + $0x8d0] sm:$0xff] }
 0x5db   : > { %5436 = vmatprep.mubr.bf16.mxu0 %v8921_v23  ;;  %5733 = vmatpush1.bf16.msra.mxu1 %v4714_v31  ;;  %v3484_v31 = vmul.f32 %v3431_v35, %v8647_v18 }
 0x5dc   : > { %5764 = vmatprep.mubr.bf16.mxu1 %v8921_v23  ;;  %5406 = vmatprep.subr.bf16.mxu0 %v4721_v51  ;;  %v3531_v51 = vrot.slane %v8880_v32, %v8693_v17 }
 0x5dd   : > { %5734 = vmatprep.subr.bf16.mxu1 %v4723_v25  ;;  %v3487_v25 = vmul.f32 %v3443_v19, %v8653_v22  ;;  %v4770_v22 = vunpack.c.h.s8.bf16 %v3970_v55 }
 0x5de   : > { %5407 = vmatpush1.bf16.msra.mxu0 %v4720_v27  ;;  %v4762_v27 = vunpack.c.l.s8.bf16 %v3970_v55  ;;  %v3584_v18 = vadd.f32 %v3531_v51, %v3484_v31 }
 0x5df   : > { %5735 = vmatpush1.bf16.msra.mxu1 %v4722_v38  ;;  %5408 = vmatprep.subr.bf16.mxu0 %v4729_v28  ;;  %v4769_v38 = vunpack.c.h.s8.bf16 %v3969_v57  ;;  %v4771_v28 = vunpack.c.h.s8.bf16 %v3971_v2  ;;  %v3984_v57 = vld [vmem:[%s8000_s27 + $0x940] sm:$0xff]  ;;  %v3986_v2 = vld [vmem:[%s8000_s27 + $0x950] sm:$0xff] }
 0x5e0   : > { %5736 = vmatprep.subr.bf16.mxu1 %v4731_v37  ;;  %v3979_v37 = vld [vmem:[%s8000_s27 + $0x918] sm:$0xff]  ;;  %v7015_v45 = vmul.f32 -1.442695, %v3584_v18  ;;  %v4794_v19 = vunpack.c.l.s8.bf16 %v3986_v2  ;;  %v4800_v55 = vunpack.c.h.s8.bf16 %v3984_v57  ;;  %v4802_v51 = vunpack.c.h.s8.bf16 %v3986_v2 }
 0x5e2   : > { %5409 = vmatpush1.bf16.msra.mxu0 %v4728_v40  ;;  %v3587_v40 = vadd.f32 %v3543_v30, %v3487_v25  ;;  %7381 = vpow2.f32 %v7015_v45  ;;  %v3992_v25 = vld [vmem:[%s8000_s27 + $0x980] sm:$0xff] }
 0x5e3   : > { %5737 = vmatpush1.bf16.msra.mxu1 %v4730_v42  ;;  %5410 = vmatprep.subr.bf16.mxu0 %v4737_v43  ;;  %v4777_v42 = vunpack.c.l.s8.bf16 %v3977_v34  ;;  %v3976_v43 = vld [vmem:[%s8000_s27 + $0x900] sm:$0xff]  ;;  %v4808_v34 = vunpack.c.l.s8.bf16 %v3992_v25 }
 0x5e4   : > { %5738 = vmatprep.subr.bf16.mxu1 %v4739_v21  ;;  %v4779_v21 = vunpack.c.l.s8.bf16 %v3979_v37  ;;  %v4000_v45 = vld [vmem:[%s8000_s27 + $0x9c0] sm:$0xff] }
 0x5e6   : > { %5411 = vmatpush1.bf16.msra.mxu0 %v4736_v29  ;;  %v4776_v29 = vunpack.c.l.s8.bf16 %v3976_v43 }
 0x5e7   : > { %5739 = vmatpush1.bf16.msra.mxu1 %v4738_v46  ;;  %5412 = vmatprep.subr.bf16.mxu0 %v4745_v48  ;;  %v7018_v46 = vmul.f32 -1.442695, %v3587_v40  ;;  %v4778_v48 = vunpack.c.l.s8.bf16 %v3978_v44 }
 0x5e8   : > { %5740 = vmatprep.subr.bf16.mxu1 %v4747_v52  ;;  %v4787_v52 = vunpack.c.h.s8.bf16 %v3979_v37  ;;  %v4817_v37 = vunpack.c.h.s8.bf16 %v3993_v8 }
 0x5e9   : > { %7383 = vpow2.f32 %v7018_v46  ;;  %v4002_v46 = vld [vmem:[%s8000_s27 + $0x9d0] sm:$0xff] }
 0x5ea   : > { %5413 = vmatpush1.bf16.msra.mxu0 %v4744_v59  ;;  %v3987_v59 = vld [vmem:[%s8000_s27 + $0x958] sm:$0xff] }
 0x5eb   : > { %5741 = vmatpush1.bf16.msra.mxu1 %v4746_v54  ;;  %5414 = vmatprep.subr.bf16.mxu0 %v4753_v0  ;;  %v4784_v54 = vunpack.c.h.s8.bf16 %v3976_v43  ;;  %v4786_v0 = vunpack.c.h.s8.bf16 %v3978_v44  ;;  %v4795_v35 = vunpack.c.l.s8.bf16 %v3987_v59  ;;  %v4816_v43 = vunpack.c.h.s8.bf16 %v3992_v25  ;;  %v4019_v25 = vld [vmem:[%s8000_s27 + $0xa58] sm:$0xff] }
 0x5ec   : > { %5742 = vmatprep.subr.bf16.mxu1 %v4755_v1  ;;  %v4793_v1 = vunpack.c.l.s8.bf16 %v3985_v33  ;;  %v7382_v31 = vpop.eup %7381 }
 0x5ee   : > { %5415 = vmatpush1.bf16.msra.mxu0 %v4752_v3  ;;  %v4792_v3 = vunpack.c.l.s8.bf16 %v3984_v57 }
 0x5ef   : > { %5743 = vmatpush1.bf16.msra.mxu1 %v4754_v4  ;;  %5416 = vmatprep.subr.bf16.mxu0 %v4761_v5  ;;  %v4801_v4 = vunpack.c.h.s8.bf16 %v3985_v33  ;;  %v4803_v5 = vunpack.c.h.s8.bf16 %v3987_v59  ;;  %v4009_v59 = vld [vmem:[%s8000_s27 + $0xa08] sm:$0xff] }
 0x5f0   : > { %5744 = vmatprep.subr.bf16.mxu1 %v4763_v14  ;;  %v3995_v14 = vld [vmem:[%s8000_s27 + $0x998] sm:$0xff]  ;;  %v4841_v57 = vunpack.c.l.s8.bf16 %v4009_v59 }
 0x5f1   : > { %v4811_v30 = vunpack.c.l.s8.bf16 %v3995_v14  ;;  %v4819_v40 = vunpack.c.h.s8.bf16 %v3995_v14 }
 0x5f2   : > { %5417 = vmatpush1.bf16.msra.mxu0 %v4760_v15  ;;  %v4809_v15 = vunpack.c.l.s8.bf16 %v3993_v8 }
 0x5f3   : > { %5745 = vmatpush1.bf16.msra.mxu1 %v4762_v27  ;;  %5418 = vmatprep.subr.bf16.mxu0 %v4769_v38  ;;  %v3994_v27 = vld [vmem:[%s8000_s27 + $0x990] sm:$0xff]  ;;  %v7384_v38 = vpop.eup %7383 }
 0x5f4   : > { %5746 = vmatprep.subr.bf16.mxu1 %v4771_v28  ;;  %v3648_v28 = vadd.f32 1.0, %v7382_v31  ;;  %v4810_v18 = vunpack.c.l.s8.bf16 %v3994_v27  ;;  %v4017_v31 = vld [vmem:[%s8000_s27 + $0xa48] sm:$0xff] }
 0x5f6   : > { %5419 = vmatpush1.bf16.msra.mxu0 %v4768_v39  ;;  %v3651_v39 = vadd.f32 1.0, %v7384_v38  ;;  %7385 = vrcp.f32 %v3648_v28  ;;  %v4857_v38 = vunpack.c.l.s8.bf16 %v4017_v31  ;;  %v4016_v28 = vld [vmem:[%s8000_s27 + $0xa40] sm:$0xff] }
 0x5f7   : > { %5747 = vmatpush1.bf16.msra.mxu1 %v4770_v22  ;;  %5420 = vmatprep.subr.bf16.mxu0 %v4777_v42  ;;  %v4001_v22 = vld [vmem:[%s8000_s27 + $0x9c8] sm:$0xff]  ;;  %v4003_v42 = vld [vmem:[%s8000_s27 + $0x9d8] sm:$0xff] }
 0x5f8   : > { %5748 = vmatprep.subr.bf16.mxu1 %v4779_v21  ;;  %v4818_v21 = vunpack.c.h.s8.bf16 %v3994_v27  ;;  %v4825_v44 = vunpack.c.l.s8.bf16 %v4001_v22  ;;  %7387 = vrcp.f32 %v3651_v39  ;;  %v4835_v33 = vunpack.c.h.s8.bf16 %v4003_v42 }
 0x5fa   : > { %5421 = vmatpush1.bf16.msra.mxu0 %v4776_v29  ;;  %v4827_v29 = vunpack.c.l.s8.bf16 %v4003_v42  ;;  %v4025_v42 = vld [vmem:[%s8000_s27 + $0xa88] sm:$0xff] }
 0x5fb   : > { %5749 = vmatpush1.bf16.msra.mxu1 %v4778_v48  ;;  %5422 = vmatprep.subr.bf16.mxu0 %v4785_v49  ;;  %v4824_v48 = vunpack.c.l.s8.bf16 %v4000_v45  ;;  %v4826_v49 = vunpack.c.l.s8.bf16 %v4002_v46 }
 0x5fc   : > { %5750 = vmatprep.subr.bf16.mxu1 %v4787_v52  ;;  %v4833_v52 = vunpack.c.h.s8.bf16 %v4001_v22  ;;  %v4867_v22 = vunpack.c.h.s8.bf16 %v4019_v25 }
 0x5fe   : > { %5423 = vmatpush1.bf16.msra.mxu0 %v4784_v54  ;;  %v4011_v54 = vld [vmem:[%s8000_s27 + $0xa18] sm:$0xff] }
 0x5ff   : > { %5751 = vmatpush1.bf16.msra.mxu1 %v4786_v0  ;;  %5424 = vmatprep.subr.bf16.mxu0 %v4793_v1  ;;  %v4832_v0 = vunpack.c.h.s8.bf16 %v4000_v45  ;;  %v4834_v1 = vunpack.c.h.s8.bf16 %v4002_v46  ;;  %v4873_v45 = vunpack.c.l.s8.bf16 %v4025_v42 }
 0x600   : > { %5752 = vmatprep.subr.bf16.mxu1 %v4795_v35  ;;  %v4008_v35 = vld [vmem:[%s8000_s27 + $0xa00] sm:$0xff]  ;;  %v7386_v2 = vpop.eup %7385 }
 0x601   : > { %v8967_v8 = vpack.c.bf16 %v7386_v2, %v7386_v2 }
 0x602   : > { %5425 = vmatpush1.bf16.msra.mxu0 %v4792_v3  ;;  %v4843_v3 = vunpack.c.l.s8.bf16 %v4011_v54 }
 0x603   : > { %5753 = vmatpush1.bf16.msra.mxu1 %v4794_v19  ;;  %5426 = vmatprep.subr.bf16.mxu0 %v4801_v4  ;;  %v4010_v19 = vld [vmem:[%s8000_s27 + $0xa10] sm:$0xff]  ;;  %v7388_v4 = vpop.eup %7387 }
 0x604   : > { %5754 = vmatprep.subr.bf16.mxu1 %v4803_v5  ;;  %v4840_v5 = vunpack.c.l.s8.bf16 %v4008_v35  ;;  %v4842_v14 = vunpack.c.l.s8.bf16 %v4010_v19  ;;  %v4850_v27 = vunpack.c.h.s8.bf16 %v4010_v19  ;;  %v4032_v19 = vld [vmem:[%s8000_s27 + $0xac0] sm:$0xff] }
 0x606   : > { %5427 = vmatpush1.bf16.msra.mxu0 %v4800_v55  ;;  %v4849_v55 = vunpack.c.h.s8.bf16 %v4009_v59 }
 0x607   : > { %5755 = vmatpush1.bf16.msra.mxu1 %v4802_v51  ;;  %5428 = vmatprep.subr.bf16.mxu0 %v4809_v15  ;;  %v8971_v51 = vpack.c.bf16 %v7388_v4, %v7388_v4  ;;  %v4851_v15 = vunpack.c.h.s8.bf16 %v4011_v54  ;;  %v4033_v54 = vld [vmem:[%s8000_s27 + $0xac8] sm:$0xff] }
 0x608   : > { %5756 = vmatprep.subr.bf16.mxu1 %v4811_v30  ;;  %v4848_v30 = vunpack.c.h.s8.bf16 %v4008_v35  ;;  %v3451_v35 = vrot.slane %v8870_v61, %v8752_v53 }
 0x60a   : > { %5429 = vmatpush1.bf16.msra.mxu0 %v4808_v34  ;;  %v4859_v34 = vunpack.c.l.s8.bf16 %v4019_v25 }
 0x60b   : > { %5757 = vmatpush1.bf16.msra.mxu1 %v4810_v18  ;;  %5430 = vmatprep.subr.bf16.mxu0 %v4817_v37  ;;  %v4018_v18 = vld [vmem:[%s8000_s27 + $0xa50] sm:$0xff]  ;;  %v4856_v37 = vunpack.c.l.s8.bf16 %v4016_v28 }
 0x60c   : > { %5758 = vmatprep.subr.bf16.mxu1 %v4819_v40  ;;  %v4858_v39 = vunpack.c.l.s8.bf16 %v4018_v18  ;;  %v4865_v40 = vunpack.c.h.s8.bf16 %v4017_v31  ;;  %v4888_v31 = vunpack.c.l.s8.bf16 %v4032_v19 }
 0x60e   : > { %5431 = vmatpush1.bf16.msra.mxu0 %v4816_v43  ;;  %v4027_v43 = vld [vmem:[%s8000_s27 + $0xa98] sm:$0xff] }
 0x60f   : > { %5759 = vmatpush1.bf16.msra.mxu1 %v4818_v21  ;;  %5432 = vmatprep.subr.bf16.mxu0 %v4825_v44  ;;  %v4864_v21 = vunpack.c.h.s8.bf16 %v4016_v28  ;;  %v4866_v44 = vunpack.c.h.s8.bf16 %v4018_v18  ;;  %v4875_v46 = vunpack.c.l.s8.bf16 %v4027_v43  ;;  %v4883_v59 = vunpack.c.h.s8.bf16 %v4027_v43  ;;  %v4043_v28 = vld [vmem:[%s8000_s27 + $0xb18] sm:$0xff] }
 0x610   : > { %5760 = vmatprep.subr.bf16.mxu1 %v4827_v29  ;;  %v4024_v29 = vld [vmem:[%s8000_s27 + $0xa80] sm:$0xff] }
 0x612   : > { %5433 = vmatpush1.bf16.msra.mxu0 %v4824_v48  ;;  %v4026_v48 = vld [vmem:[%s8000_s27 + $0xa90] sm:$0xff] }
 0x613   : > { %5761 = vmatpush1.bf16.msra.mxu1 %v4826_v49  ;;  %5434 = vmatprep.subr.bf16.mxu0 %v4833_v52  ;;  %v4872_v49 = vunpack.c.l.s8.bf16 %v4024_v29  ;;  %v4874_v52 = vunpack.c.l.s8.bf16 %v4026_v48  ;;  %v4882_v2 = vunpack.c.h.s8.bf16 %v4026_v48 }
 0x614   : > { %5762 = vmatprep.subr.bf16.mxu1 %v4835_v33  ;;  %v4881_v33 = vunpack.c.h.s8.bf16 %v4025_v42 }
 0x616   : > { %5435 = vmatpush1.bf16.msra.mxu0 %v4832_v0  ;;  %v3439_v0 = vrot.slane %v8870_v61, %v8749_v50  ;;  %v3551_v61 = vrot.slane %v8880_v32, %v8752_v53 }
 0x617   : > { %5763 = vmatpush1.bf16.msra.mxu1 %v4834_v1  ;;  %5445 = vmatprep.subr.bf16.mxu0 %v4841_v57  ;;  %v4035_v1 = vld [vmem:[%s8000_s27 + $0xad8] sm:$0xff]  ;;  %v4880_v57 = vunpack.c.h.s8.bf16 %v4024_v29  ;;  %v4049_v29 = vld [vmem:[%s8000_s27 + $0xb48] sm:$0xff] }
 0x618   : > { %5773 = vmatprep.subr.bf16.mxu1 %v4843_v3  ;;  %v4889_v3 = vunpack.c.l.s8.bf16 %v4033_v54  ;;  %v4891_v4 = vunpack.c.l.s8.bf16 %v4035_v1 }
 0x619   : > { %5437 = vmatmul.mubr.bf16.vlgmr.msra.gmra.mrb[16].mxu0 %v8967_v8 }
 0x61a   : > { %5765 = vmatmul.mubr.bf16.vlgmr.msra.gmra.mrb[16].mxu1 %v8967_v8  ;;  %5446 = vmatpush1.bf16.msra.mxu0 %v4840_v5  ;;  %v4034_v5 = vld [vmem:[%s8000_s27 + $0xad0] sm:$0xff] }
 0x61b   : > { %5477 = vmatprep.mubr.bf16.mxu0 %v8971_v51  ;;  %5774 = vmatpush1.bf16.msra.mxu1 %v4842_v14  ;;  %v3486_v14 = vmul.f32 %v3439_v0, %v8649_v20  ;;  %v4890_v25 = vunpack.c.l.s8.bf16 %v4034_v5 }
 0x61c   : > { %5805 = vmatprep.mubr.bf16.mxu1 %v8971_v51  ;;  %5447 = vmatprep.subr.bf16.mxu0 %v4849_v55  ;;  %v3539_v55 = vrot.slane %v8880_v32, %v8749_v50  ;;  %v4040_v32 = vld [vmem:[%s8000_s27 + $0xb00] sm:$0xff] }
 0x61d   : > { %5775 = vmatprep.subr.bf16.mxu1 %v4851_v15  ;;  %v3489_v15 = vmul.f32 %v3451_v35, %v8890_v56  ;;  %v4898_v56 = vunpack.c.h.s8.bf16 %v4034_v5  ;;  %v4904_v42 = vunpack.c.l.s8.bf16 %v4040_v32  ;;  %v4912_v48 = vunpack.c.h.s8.bf16 %v4040_v32 }
 0x61e   : > { %5448 = vmatpush1.bf16.msra.mxu0 %v4848_v30  ;;  %v4897_v30 = vunpack.c.h.s8.bf16 %v4033_v54  ;;  %v3586_v20 = vadd.f32 %v3539_v55, %v3486_v14  ;;  %v4050_v54 = vld [vmem:[%s8000_s27 + $0xb50] sm:$0xff]  ;;  %v4056_v55 = vld [vmem:[%s8000_s27 + $0xb80] sm:$0xff] }
 0x61f   : > { %5776 = vmatpush1.bf16.msra.mxu1 %v4850_v27  ;;  %5449 = vmatprep.subr.bf16.mxu0 %v4857_v38  ;;  %v4899_v27 = vunpack.c.h.s8.bf16 %v4035_v1  ;;  %v4041_v38 = vld [vmem:[%s8000_s27 + $0xb08] sm:$0xff]  ;;  %v3589_v18 = vadd.f32 %v3551_v61, %v3489_v15  ;;  %v4922_v1 = vunpack.c.l.s8.bf16 %v4050_v54  ;;  %v4930_v5 = vunpack.c.h.s8.bf16 %v4050_v54  ;;  %v4058_v15 = vld [vmem:[%s8000_s27 + $0xb90] sm:$0xff] }
 0x620   : > { %5777 = vmatprep.subr.bf16.mxu1 %v4859_v34  ;;  %v4896_v34 = vunpack.c.h.s8.bf16 %v4032_v19  ;;  %v4074_v54 = vld [vmem:[%s8000_s27 + $0xc10] sm:$0xff] }
 0x621   : > { %v7020_v43 = vmul.f32 -1.442695, %v3589_v18  ;;  %v4067_v18 = vld [vmem:[%s8000_s27 + $0xbd8] sm:$0xff] }
 0x622   : > { %5450 = vmatpush1.bf16.msra.mxu0 %v4856_v37  ;;  %v4905_v37 = vunpack.c.l.s8.bf16 %v4041_v38 }
 0x623   : > { %5778 = vmatpush1.bf16.msra.mxu1 %v4858_v39  ;;  %5451 = vmatprep.subr.bf16.mxu0 %v4865_v40  ;;  %v4907_v39 = vunpack.c.l.s8.bf16 %v4043_v28  ;;  %v4042_v40 = vld [vmem:[%s8000_s27 + $0xb10] sm:$0xff] }
 0x624   : > { %5779 = vmatprep.subr.bf16.mxu1 %v4867_v22  ;;  %v7017_v22 = vmul.f32 -1.442695, %v3586_v20 }
 0x626   : > { %5452 = vmatpush1.bf16.msra.mxu0 %v4864_v21  ;;  %v4906_v21 = vunpack.c.l.s8.bf16 %v4042_v40  ;;  %7389 = vpow2.f32 %v7017_v22  ;;  %v4066_v22 = vld [vmem:[%s8000_s27 + $0xbd0] sm:$0xff] }
 0x627   : > { %5780 = vmatpush1.bf16.msra.mxu1 %v4866_v44  ;;  %5453 = vmatprep.subr.bf16.mxu0 %v4873_v45  ;;  %v4913_v44 = vunpack.c.h.s8.bf16 %v4041_v38  ;;  %v4915_v45 = vunpack.c.h.s8.bf16 %v4043_v28  ;;  %7391 = vpow2.f32 %v7020_v43  ;;  %v4954_v43 = vunpack.c.l.s8.bf16 %v4066_v22 }
 0x628   : > { %5781 = vmatprep.subr.bf16.mxu1 %v4875_v46  ;;  %v4051_v46 = vld [vmem:[%s8000_s27 + $0xb58] sm:$0xff] }
 0x629   : > { %v4931_v35 = vunpack.c.h.s8.bf16 %v4051_v46 }
 0x62a   : > { %5454 = vmatpush1.bf16.msra.mxu0 %v4872_v49  ;;  %v4914_v49 = vunpack.c.h.s8.bf16 %v4042_v40  ;;  %v4955_v40 = vunpack.c.l.s8.bf16 %v4067_v18 }
 0x62b   : > { %5782 = vmatpush1.bf16.msra.mxu1 %v4874_v52  ;;  %5455 = vmatprep.subr.bf16.mxu0 %v4881_v33  ;;  %v4921_v52 = vunpack.c.l.s8.bf16 %v4049_v29  ;;  %v4048_v33 = vld [vmem:[%s8000_s27 + $0xb40] sm:$0xff] }
 0x62c   : > { %5783 = vmatprep.subr.bf16.mxu1 %v4883_v59  ;;  %v4923_v59 = vunpack.c.l.s8.bf16 %v4051_v46  ;;  %v4920_v0 = vunpack.c.l.s8.bf16 %v4048_v33  ;;  %v4928_v19 = vunpack.c.h.s8.bf16 %v4048_v33 }
 0x62e   : > { %5456 = vmatpush1.bf16.msra.mxu0 %v4880_v57  ;;  %v4929_v57 = vunpack.c.h.s8.bf16 %v4049_v29  ;;  %v4075_v29 = vld [vmem:[%s8000_s27 + $0xc18] sm:$0xff] }
 0x62f   : > { %5784 = vmatpush1.bf16.msra.mxu1 %v4882_v2  ;;  %5457 = vmatprep.subr.bf16.mxu0 %v4889_v3  ;;  %v4057_v2 = vld [vmem:[%s8000_s27 + $0xb88] sm:$0xff]  ;;  %v4059_v3 = vld [vmem:[%s8000_s27 + $0xb98] sm:$0xff] }
 0x630   : > { %5785 = vmatprep.subr.bf16.mxu1 %v4891_v4  ;;  %v7390_v4 = vpop.eup %7389  ;;  %v4937_v14 = vunpack.c.l.s8.bf16 %v4057_v2  ;;  %v4945_v38 = vunpack.c.h.s8.bf16 %v4057_v2  ;;  %v4947_v28 = vunpack.c.h.s8.bf16 %v4059_v3 }
 0x631   : > { %v7392_v61 = vpop.eup %7391 }
 0x632   : > { %5458 = vmatpush1.bf16.msra.mxu0 %v4888_v31  ;;  %v4939_v31 = vunpack.c.l.s8.bf16 %v4059_v3  ;;  %v3653_v20 = vadd.f32 1.0, %v7392_v61  ;;  %v4081_v3 = vld [vmem:[%s8000_s27 + $0xc48] sm:$0xff] }
 0x633   : > { %5786 = vmatpush1.bf16.msra.mxu1 %v4890_v25  ;;  %5459 = vmatprep.subr.bf16.mxu0 %v4897_v30  ;;  %v3650_v25 = vadd.f32 1.0, %v7390_v4  ;;  %v4936_v30 = vunpack.c.l.s8.bf16 %v4056_v55  ;;  %v4979_v4 = vunpack.c.h.s8.bf16 %v4075_v29 }
 0x634   : > { %5787 = vmatprep.subr.bf16.mxu1 %v4899_v27  ;;  %v4938_v27 = vunpack.c.l.s8.bf16 %v4058_v15 }
 0x635   : > { %7393 = vrcp.f32 %v3650_v25  ;;  %v4082_v25 = vld [vmem:[%s8000_s27 + $0xc50] sm:$0xff] }
 0x636   : > { %5460 = vmatpush1.bf16.msra.mxu0 %v4896_v34  ;;  %v4065_v34 = vld [vmem:[%s8000_s27 + $0xbc8] sm:$0xff]  ;;  %7395 = vrcp.f32 %v3653_v20 }
 0x637   : > { %5788 = vmatpush1.bf16.msra.mxu1 %v4898_v56  ;;  %5461 = vmatprep.subr.bf16.mxu0 %v4905_v37  ;;  %v4944_v56 = vunpack.c.h.s8.bf16 %v4056_v55  ;;  %v4946_v37 = vunpack.c.h.s8.bf16 %v4058_v15  ;;  %v4953_v32 = vunpack.c.l.s8.bf16 %v4065_v34  ;;  %v4978_v55 = vunpack.c.h.s8.bf16 %v4074_v54  ;;  %v4080_v15 = vld [vmem:[%s8000_s27 + $0xc40] sm:$0xff] }
 0x638   : > { %5789 = vmatprep.subr.bf16.mxu1 %v4907_v39  ;;  %v4064_v39 = vld [vmem:[%s8000_s27 + $0xbc0] sm:$0xff] }
 0x639   : > { %v4960_v46 = vunpack.c.h.s8.bf16 %v4064_v39 }
 0x63a   : > { %5462 = vmatpush1.bf16.msra.mxu0 %v4904_v42  ;;  %v4952_v42 = vunpack.c.l.s8.bf16 %v4064_v39 }
 0x63b   : > { %5790 = vmatpush1.bf16.msra.mxu1 %v4906_v21  ;;  %5463 = vmatprep.subr.bf16.mxu0 %v4913_v44  ;;  %v4961_v21 = vunpack.c.h.s8.bf16 %v4065_v34  ;;  %v4963_v44 = vunpack.c.h.s8.bf16 %v4067_v18  ;;  %v4091_v34 = vld [vmem:[%s8000_s27 + $0xc98] sm:$0xff]  ;;  %v4992_v18 = vunpack.c.h.s8.bf16 %v4080_v15 }
 0x63c   : > { %5791 = vmatprep.subr.bf16.mxu1 %v4915_v45  ;;  %v4073_v45 = vld [vmem:[%s8000_s27 + $0xc08] sm:$0xff]  ;;  %v5003_v39 = vunpack.c.l.s8.bf16 %v4091_v34 }
 0x63d   : > { %v4977_v2 = vunpack.c.h.s8.bf16 %v4073_v45 }
 0x63e   : > { %5464 = vmatpush1.bf16.msra.mxu0 %v4912_v48  ;;  %v4962_v48 = vunpack.c.h.s8.bf16 %v4066_v22 }
 0x63f   : > { %5792 = vmatpush1.bf16.msra.mxu1 %v4914_v49  ;;  %5465 = vmatprep.subr.bf16.mxu0 %v4921_v52  ;;  %v4969_v49 = vunpack.c.l.s8.bf16 %v4073_v45  ;;  %v4072_v52 = vld [vmem:[%s8000_s27 + $0xc00] sm:$0xff]  ;;  %v7394_v33 = vpop.eup %7393  ;;  %v9035_v45 = vld [vmem:[%s7992_s10 + $0x8] sm:$0xff] }
 0x640   : > { %5793 = vmatprep.subr.bf16.mxu1 %v4923_v59  ;;  %v4971_v59 = vunpack.c.l.s8.bf16 %v4075_v29  ;;  %v3447_v29 = vrot.slane %v9035_v45, %v8805_v9 }
 0x642   : > { %5466 = vmatpush1.bf16.msra.mxu0 %v4920_v0  ;;  %v7396_v0 = vpop.eup %7395 }
 0x643   : > { %5794 = vmatpush1.bf16.msra.mxu1 %v4922_v1  ;;  %5467 = vmatprep.subr.bf16.mxu0 %v4929_v57  ;;  %v4968_v1 = vunpack.c.l.s8.bf16 %v4072_v52  ;;  %v9017_v57 = vpack.c.bf16 %v7394_v33, %v7394_v33 }
 0x644   : > { %5795 = vmatprep.subr.bf16.mxu1 %v4931_v35  ;;  %v4970_v35 = vunpack.c.l.s8.bf16 %v4074_v54 }
 0x646   : > { %5468 = vmatpush1.bf16.msra.mxu0 %v4928_v19  ;;  %v9021_v19 = vpack.c.bf16 %v7396_v0, %v7396_v0  ;;  %v4098_v0 = vld [vmem:[%s8000_s27 + $0xcd0] sm:$0xff] }
 0x647   : > { %5796 = vmatpush1.bf16.msra.mxu1 %v4930_v5  ;;  %5469 = vmatprep.subr.bf16.mxu0 %v4937_v14  ;;  %v4083_v5 = vld [vmem:[%s8000_s27 + $0xc58] sm:$0xff]  ;;  %v4976_v14 = vunpack.c.h.s8.bf16 %v4072_v52 }
 0x648   : > { %5797 = vmatprep.subr.bf16.mxu1 %v4939_v31  ;;  %v4985_v31 = vunpack.c.l.s8.bf16 %v4081_v3  ;;  %v4987_v61 = vunpack.c.l.s8.bf16 %v4083_v5  ;;  %v4995_v20 = vunpack.c.h.s8.bf16 %v4083_v5 }
 0x64a   : > { %5470 = vmatpush1.bf16.msra.mxu0 %v4936_v30  ;;  %v4984_v30 = vunpack.c.l.s8.bf16 %v4080_v15 }
 0x64b   : > { %5798 = vmatpush1.bf16.msra.mxu1 %v4938_v27  ;;  %5471 = vmatprep.subr.bf16.mxu0 %v4945_v38  ;;  %v4986_v27 = vunpack.c.l.s8.bf16 %v4082_v25  ;;  %v4993_v38 = vunpack.c.h.s8.bf16 %v4081_v3 }
 0x64c   : > { %5799 = vmatprep.subr.bf16.mxu1 %v4947_v28  ;;  %v4089_v28 = vld [vmem:[%s8000_s27 + $0xc88] sm:$0xff] }
 0x64e   : > { %5472 = vmatpush1.bf16.msra.mxu0 %v4944_v56  ;;  %v4994_v56 = vunpack.c.h.s8.bf16 %v4082_v25 }
 0x64f   : > { %5800 = vmatpush1.bf16.msra.mxu1 %v4946_v37  ;;  %5473 = vmatprep.subr.bf16.mxu0 %v4953_v32  ;;  %v5001_v37 = vunpack.c.l.s8.bf16 %v4089_v28  ;;  %v4088_v32 = vld [vmem:[%s8000_s27 + $0xc80] sm:$0xff] }
 0x650   : > { %5801 = vmatprep.subr.bf16.mxu1 %v4955_v40  ;;  %v4090_v40 = vld [vmem:[%s8000_s27 + $0xc90] sm:$0xff]  ;;  %v5000_v22 = vunpack.c.l.s8.bf16 %v4088_v32 }
 0x651   : > { %v5010_v52 = vunpack.c.h.s8.bf16 %v4090_v40 }
 0x652   : > { %5474 = vmatpush1.bf16.msra.mxu0 %v4952_v42  ;;  %v5002_v42 = vunpack.c.l.s8.bf16 %v4090_v40  ;;  %v4113_v40 = vld [vmem:[%s8000_s27 + $0xd48] sm:$0xff] }
 0x653   : > { %5802 = vmatpush1.bf16.msra.mxu1 %v4954_v43  ;;  %5475 = vmatprep.subr.bf16.mxu0 %v4961_v21  ;;  %v5009_v43 = vunpack.c.h.s8.bf16 %v4089_v28  ;;  %v5011_v21 = vunpack.c.h.s8.bf16 %v4091_v34  ;;  %v4106_v28 = vld [vmem:[%s8000_s27 + $0xd10] sm:$0xff] }
 0x654   : > { %5803 = vmatprep.subr.bf16.mxu1 %v4963_v44  ;;  %v4097_v44 = vld [vmem:[%s8000_s27 + $0xcc8] sm:$0xff] }
 0x655   : > { %v5017_v33 = vunpack.c.l.s8.bf16 %v4097_v44 }
 0x656   : > { %5476 = vmatpush1.bf16.msra.mxu0 %v4960_v46  ;;  %v4099_v46 = vld [vmem:[%s8000_s27 + $0xcd8] sm:$0xff] }
 0x657   : > { %5804 = vmatpush1.bf16.msra.mxu1 %v4962_v48  ;;  %5486 = vmatprep.subr.bf16.mxu0 %v4969_v49  ;;  %v5008_v48 = vunpack.c.h.s8.bf16 %v4088_v32  ;;  %v3459_v49 = vrot.slane %v9035_v45, %v8808_v10  ;;  %v5019_v54 = vunpack.c.l.s8.bf16 %v4099_v46 }
 0x658   : > { %5814 = vmatprep.subr.bf16.mxu1 %v4971_v59  ;;  %v4096_v59 = vld [vmem:[%s8000_s27 + $0xcc0] sm:$0xff] }
 0x659   : > { %5478 = vmatmul.mubr.bf16.vlgmr.msra.gmra.mrb[16].mxu0 %v9017_v57  ;;  %v5016_v3 = vunpack.c.l.s8.bf16 %v4096_v59  ;;  %v5024_v25 = vunpack.c.h.s8.bf16 %v4096_v59  ;;  %v4121_v59 = vld [vmem:[%s8000_s27 + $0xd88] sm:$0xff] }
 0x65a   : > { %5806 = vmatmul.mubr.bf16.vlgmr.msra.gmra.mrb[16].mxu1 %v9017_v57  ;;  %5487 = vmatpush1.bf16.msra.mxu0 %v4968_v1  ;;  %v3488_v1 = vmul.f32 %v3447_v29, %v8882_v7  ;;  %v5027_v7 = vunpack.c.h.s8.bf16 %v4099_v46  ;;  %v4114_v46 = vld [vmem:[%s8000_s27 + $0xd50] sm:$0xff] }
 0x65b   : > { %5518 = vmatprep.mubr.bf16.mxu0 %v9021_v19  ;;  %5815 = vmatpush1.bf16.msra.mxu1 %v4970_v35  ;;  %v9046_v35 = vld [vmem:[%s7998_s2 + $0x8] sm:$0xff] }
 0x65c   : > { %5846 = vmatprep.mubr.bf16.mxu1 %v9021_v19  ;;  %5488 = vmatprep.subr.bf16.mxu0 %v4977_v2  ;;  %v3547_v2 = vrot.slane %v9046_v35, %v8805_v9  ;;  %v3559_v5 = vrot.slane %v9046_v35, %v8808_v10 }
 0x65d   : > { %5816 = vmatprep.subr.bf16.mxu1 %v4979_v4  ;;  %v3491_v4 = vmul.f32 %v3459_v49, %v8892_v13  ;;  %v5026_v13 = vunpack.c.h.s8.bf16 %v4098_v0  ;;  %v5050_v49 = vunpack.c.l.s8.bf16 %v4114_v46 }
 0x65e   : > { %5489 = vmatpush1.bf16.msra.mxu0 %v4976_v14  ;;  %v5018_v14 = vunpack.c.l.s8.bf16 %v4098_v0  ;;  %v3588_v15 = vadd.f32 %v3547_v2, %v3488_v1  ;;  %v5058_v2 = vunpack.c.h.s8.bf16 %v4114_v46 }
 0x65f   : > { %5817 = vmatpush1.bf16.msra.mxu1 %v4978_v55  ;;  %5490 = vmatprep.subr.bf16.mxu0 %v4985_v31  ;;  %v5025_v55 = vunpack.c.h.s8.bf16 %v4097_v44  ;;  %v4105_v31 = vld [vmem:[%s8000_s27 + $0xd08] sm:$0xff]  ;;  %v4112_v44 = vld [vmem:[%s8000_s27 + $0xd40] sm:$0xff] }
 0x660   : > { %5818 = vmatprep.subr.bf16.mxu1 %v4987_v61  ;;  %v4107_v61 = vld [vmem:[%s8000_s27 + $0xd18] sm:$0xff]  ;;  %v7019_v34 = vmul.f32 -1.442695, %v3588_v15  ;;  %v5041_v32 = vunpack.c.h.s8.bf16 %v4105_v31  ;;  %v5056_v0 = vunpack.c.h.s8.bf16 %v4112_v44 }
 0x662   : > { %5491 = vmatpush1.bf16.msra.mxu0 %v4984_v30  ;;  %v3591_v30 = vadd.f32 %v3559_v5, %v3491_v4  ;;  %7397 = vpow2.f32 %v7019_v34  ;;  %v4120_v4 = vld [vmem:[%s8000_s27 + $0xd80] sm:$0xff] }
 0x663   : > { %5819 = vmatpush1.bf16.msra.mxu1 %v4986_v27  ;;  %5492 = vmatprep.subr.bf16.mxu0 %v4993_v38  ;;  %v5033_v27 = vunpack.c.l.s8.bf16 %v4105_v31  ;;  %v4104_v38 = vld [vmem:[%s8000_s27 + $0xd00] sm:$0xff]  ;;  %v5064_v31 = vunpack.c.l.s8.bf16 %v4120_v4 }
 0x664   : > { %5820 = vmatprep.subr.bf16.mxu1 %v4995_v20  ;;  %v5035_v20 = vunpack.c.l.s8.bf16 %v4107_v61  ;;  %v4128_v34 = vld [vmem:[%s8000_s27 + $0xdc0] sm:$0xff] }
 0x666   : > { %5493 = vmatpush1.bf16.msra.mxu0 %v4992_v18  ;;  %v5032_v18 = vunpack.c.l.s8.bf16 %v4104_v38 }
 0x667   : > { %5821 = vmatpush1.bf16.msra.mxu1 %v4994_v56  ;;  %5494 = vmatprep.subr.bf16.mxu0 %v5001_v37  ;;  %v7022_v56 = vmul.f32 -1.442695, %v3591_v30  ;;  %v5034_v37 = vunpack.c.l.s8.bf16 %v4106_v28 }
 0x668   : > { %5822 = vmatprep.subr.bf16.mxu1 %v5003_v39  ;;  %v5043_v39 = vunpack.c.h.s8.bf16 %v4107_v61  ;;  %v5073_v61 = vunpack.c.h.s8.bf16 %v4121_v59 }
 0x669   : > { %7399 = vpow2.f32 %v7022_v56  ;;  %v4130_v56 = vld [vmem:[%s8000_s27 + $0xdd0] sm:$0xff] }
 0x66a   : > { %5495 = vmatpush1.bf16.msra.mxu0 %v5000_v22  ;;  %v4115_v22 = vld [vmem:[%s8000_s27 + $0xd58] sm:$0xff] }
 0x66b   : > { %5823 = vmatpush1.bf16.msra.mxu1 %v5002_v42  ;;  %5496 = vmatprep.subr.bf16.mxu0 %v5009_v43  ;;  %v5040_v42 = vunpack.c.h.s8.bf16 %v4104_v38  ;;  %v5042_v43 = vunpack.c.h.s8.bf16 %v4106_v28  ;;  %v5051_v29 = vunpack.c.l.s8.bf16 %v4115_v22  ;;  %v5072_v38 = vunpack.c.h.s8.bf16 %v4120_v4  ;;  %v4147_v4 = vld [vmem:[%s8000_s27 + $0xe58] sm:$0xff] }
 0x66c   : > { %5824 = vmatprep.subr.bf16.mxu1 %v5011_v21  ;;  %v5049_v21 = vunpack.c.l.s8.bf16 %v4113_v40  ;;  %v7398_v1 = vpop.eup %7397 }
 0x66e   : > { %5497 = vmatpush1.bf16.msra.mxu0 %v5008_v48  ;;  %v5048_v48 = vunpack.c.l.s8.bf16 %v4112_v44 }
 0x66f   : > { %5825 = vmatpush1.bf16.msra.mxu1 %v5010_v52  ;;  %5498 = vmatprep.subr.bf16.mxu0 %v5017_v33  ;;  %v5057_v52 = vunpack.c.h.s8.bf16 %v4113_v40  ;;  %v5059_v33 = vunpack.c.h.s8.bf16 %v4115_v22  ;;  %v4137_v22 = vld [vmem:[%s8000_s27 + $0xe08] sm:$0xff] }
 0x670   : > { %5826 = vmatprep.subr.bf16.mxu1 %v5019_v54  ;;  %v4123_v54 = vld [vmem:[%s8000_s27 + $0xd98] sm:$0xff]  ;;  %v5097_v44 = vunpack.c.l.s8.bf16 %v4137_v22 }
 0x671   : > { %v5067_v5 = vunpack.c.l.s8.bf16 %v4123_v54  ;;  %v5075_v30 = vunpack.c.h.s8.bf16 %v4123_v54 }
 0x672   : > { %5499 = vmatpush1.bf16.msra.mxu0 %v5016_v3  ;;  %v5065_v3 = vunpack.c.l.s8.bf16 %v4121_v59 }
 0x673   : > { %5827 = vmatpush1.bf16.msra.mxu1 %v5018_v14  ;;  %5500 = vmatprep.subr.bf16.mxu0 %v5025_v55  ;;  %v4122_v14 = vld [vmem:[%s8000_s27 + $0xd90] sm:$0xff]  ;;  %v7400_v55 = vpop.eup %7399 }
 0x674   : > { %5828 = vmatprep.subr.bf16.mxu1 %v5027_v7  ;;  %v3652_v7 = vadd.f32 1.0, %v7398_v1  ;;  %v5066_v15 = vunpack.c.l.s8.bf16 %v4122_v14  ;;  %v4145_v1 = vld [vmem:[%s8000_s27 + $0xe48] sm:$0xff] }
 0x676   : > { %5501 = vmatpush1.bf16.msra.mxu0 %v5024_v25  ;;  %v3655_v25 = vadd.f32 1.0, %v7400_v55  ;;  %7401 = vrcp.f32 %v3652_v7  ;;  %v5113_v55 = vunpack.c.l.s8.bf16 %v4145_v1  ;;  %v4144_v7 = vld [vmem:[%s8000_s27 + $0xe40] sm:$0xff] }
 0x677   : > { %5829 = vmatpush1.bf16.msra.mxu1 %v5026_v13  ;;  %5502 = vmatprep.subr.bf16.mxu0 %v5033_v27  ;;  %v4129_v13 = vld [vmem:[%s8000_s27 + $0xdc8] sm:$0xff]  ;;  %v4131_v27 = vld [vmem:[%s8000_s27 + $0xdd8] sm:$0xff] }
 0x678   : > { %5830 = vmatprep.subr.bf16.mxu1 %v5035_v20  ;;  %v5074_v20 = vunpack.c.h.s8.bf16 %v4122_v14  ;;  %v5081_v28 = vunpack.c.l.s8.bf16 %v4129_v13  ;;  %7403 = vrcp.f32 %v3655_v25  ;;  %v5091_v40 = vunpack.c.h.s8.bf16 %v4131_v27 }
 0x67a   : > { %5503 = vmatpush1.bf16.msra.mxu0 %v5032_v18  ;;  %v5083_v18 = vunpack.c.l.s8.bf16 %v4131_v27  ;;  %v4153_v27 = vld [vmem:[%s8000_s27 + $0xe88] sm:$0xff] }
 0x67b   : > { %5831 = vmatpush1.bf16.msra.mxu1 %v5034_v37  ;;  %5504 = vmatprep.subr.bf16.mxu0 %v5041_v32  ;;  %v5080_v37 = vunpack.c.l.s8.bf16 %v4128_v34  ;;  %v5082_v32 = vunpack.c.l.s8.bf16 %v4130_v56 }
 0x67c   : > { %5832 = vmatprep.subr.bf16.mxu1 %v5043_v39  ;;  %v5089_v39 = vunpack.c.h.s8.bf16 %v4129_v13  ;;  %v5123_v13 = vunpack.c.h.s8.bf16 %v4147_v4 }
 0x67e   : > { %5505 = vmatpush1.bf16.msra.mxu0 %v5040_v42  ;;  %v4139_v42 = vld [vmem:[%s8000_s27 + $0xe18] sm:$0xff] }
 0x67f   : > { %5833 = vmatpush1.bf16.msra.mxu1 %v5042_v43  ;;  %5506 = vmatprep.subr.bf16.mxu0 %v5049_v21  ;;  %v5088_v43 = vunpack.c.h.s8.bf16 %v4128_v34  ;;  %v5090_v21 = vunpack.c.h.s8.bf16 %v4130_v56  ;;  %v5129_v34 = vunpack.c.l.s8.bf16 %v4153_v27 }
 0x680   : > { %5834 = vmatprep.subr.bf16.mxu1 %v5051_v29  ;;  %v4136_v29 = vld [vmem:[%s8000_s27 + $0xe00] sm:$0xff]  ;;  %v7402_v46 = vpop.eup %7401 }
 0x681   : > { %v9073_v59 = vpack.c.bf16 %v7402_v46, %v7402_v46 }
 0x682   : > { %5507 = vmatpush1.bf16.msra.mxu0 %v5048_v48  ;;  %v5099_v48 = vunpack.c.l.s8.bf16 %v4139_v42 }
 0x683   : > { %5835 = vmatpush1.bf16.msra.mxu1 %v5050_v49  ;;  %5508 = vmatprep.subr.bf16.mxu0 %v5057_v52  ;;  %v4138_v49 = vld [vmem:[%s8000_s27 + $0xe10] sm:$0xff]  ;;  %v7404_v52 = vpop.eup %7403 }
 0x684   : > { %5836 = vmatprep.subr.bf16.mxu1 %v5059_v33  ;;  %v5096_v33 = vunpack.c.l.s8.bf16 %v4136_v29  ;;  %v5098_v54 = vunpack.c.l.s8.bf16 %v4138_v49  ;;  %v5106_v14 = vunpack.c.h.s8.bf16 %v4138_v49 }
 0x686   : > { %5509 = vmatpush1.bf16.msra.mxu0 %v5056_v0  ;;  %v5105_v0 = vunpack.c.h.s8.bf16 %v4137_v22 }
 0x687   : > { %5837 = vmatpush1.bf16.msra.mxu1 %v5058_v2  ;;  %5510 = vmatprep.subr.bf16.mxu0 %v5065_v3  ;;  %v9077_v2 = vpack.c.bf16 %v7404_v52, %v7404_v52  ;;  %v5107_v3 = vunpack.c.h.s8.bf16 %v4139_v42  ;;  %v4161_v42 = vld [vmem:[%s8000_s27 + $0xec8] sm:$0xff]  ;;  %v4162_v52 = vld [vmem:[%s8000_s27 + $0xed0] sm:$0xff] }
 0x688   : > { %5838 = vmatprep.subr.bf16.mxu1 %v5067_v5  ;;  %v5104_v5 = vunpack.c.h.s8.bf16 %v4136_v29  ;;  %v5145_v46 = vunpack.c.l.s8.bf16 %v4161_v42 }
 0x68a   : > { %5511 = vmatpush1.bf16.msra.mxu0 %v5064_v31  ;;  %v5115_v31 = vunpack.c.l.s8.bf16 %v4147_v4  ;;  %v4169_v4 = vld [vmem:[%s8000_s27 + $0xf08] sm:$0xff] }
 0x68b   : > { %5839 = vmatpush1.bf16.msra.mxu1 %v5066_v15  ;;  %5512 = vmatprep.subr.bf16.mxu0 %v5073_v61  ;;  %v4146_v15 = vld [vmem:[%s8000_s27 + $0xe50] sm:$0xff]  ;;  %v5112_v61 = vunpack.c.l.s8.bf16 %v4144_v7 }
 0x68c   : > { %5840 = vmatprep.subr.bf16.mxu1 %v5075_v30  ;;  %v5114_v25 = vunpack.c.l.s8.bf16 %v4146_v15  ;;  %v5121_v30 = vunpack.c.h.s8.bf16 %v4145_v1  ;;  %v5153_v1 = vunpack.c.h.s8.bf16 %v4161_v42 }
 0x68e   : > { %5513 = vmatpush1.bf16.msra.mxu0 %v5072_v38  ;;  %v4155_v38 = vld [vmem:[%s8000_s27 + $0xe98] sm:$0xff] }
 0x68f   : > { %5841 = vmatpush1.bf16.msra.mxu1 %v5074_v20  ;;  %5514 = vmatprep.subr.bf16.mxu0 %v5081_v28  ;;  %v5120_v20 = vunpack.c.h.s8.bf16 %v4144_v7  ;;  %v5122_v28 = vunpack.c.h.s8.bf16 %v4146_v15  ;;  %v5131_v56 = vunpack.c.l.s8.bf16 %v4155_v38  ;;  %v5139_v22 = vunpack.c.h.s8.bf16 %v4155_v38  ;;  %v4168_v7 = vld [vmem:[%s8000_s27 + $0xf00] sm:$0xff]  ;;  %v4170_v15 = vld [vmem:[%s8000_s27 + $0xf10] sm:$0xff]  ;;  %v4177_v38 = vld [vmem:[%s8000_s27 + $0xf48] sm:$0xff] }
 0x690   : > { %5842 = vmatprep.subr.bf16.mxu1 %v5083_v18  ;;  %v4152_v18 = vld [vmem:[%s8000_s27 + $0xe80] sm:$0xff] }
 0x692   : > { %5515 = vmatpush1.bf16.msra.mxu0 %v5080_v37  ;;  %v4154_v37 = vld [vmem:[%s8000_s27 + $0xe90] sm:$0xff] }
 0x693   : > { %5843 = vmatpush1.bf16.msra.mxu1 %v5082_v32  ;;  %5516 = vmatprep.subr.bf16.mxu0 %v5089_v39  ;;  %v5128_v32 = vunpack.c.l.s8.bf16 %v4152_v18  ;;  %v5130_v39 = vunpack.c.l.s8.bf16 %v4154_v37  ;;  %v5138_v29 = vunpack.c.h.s8.bf16 %v4154_v37 }
 0x694   : > { %5844 = vmatprep.subr.bf16.mxu1 %v5091_v40  ;;  %v5137_v40 = vunpack.c.h.s8.bf16 %v4153_v27 }
 0x696   : > { %5517 = vmatpush1.bf16.msra.mxu0 %v5088_v43  ;;  %v3455_v43 = vrot.slane %v9035_v45, %v8867_v58 }
 0x697   : > { %5845 = vmatpush1.bf16.msra.mxu1 %v5090_v21  ;;  %5527 = vmatprep.subr.bf16.mxu0 %v5097_v44  ;;  %v4163_v21 = vld [vmem:[%s8000_s27 + $0xed8] sm:$0xff]  ;;  %v5136_v44 = vunpack.c.h.s8.bf16 %v4152_v18  ;;  %v5177_v18 = vunpack.c.l.s8.bf16 %v4177_v38 }
 0x698   : > { %5855 = vmatprep.subr.bf16.mxu1 %v5099_v48  ;;  %v4160_v48 = vld [vmem:[%s8000_s27 + $0xec0] sm:$0xff]  ;;  %v5147_v49 = vunpack.c.l.s8.bf16 %v4163_v21 }
 0x699   : > { %5519 = vmatmul.mubr.bf16.vlgmr.msra.gmra.mrb[16].mxu0 %v9073_v59  ;;  %v5144_v45 = vunpack.c.l.s8.bf16 %v4160_v48 }
 0x69a   : > { %5847 = vmatmul.mubr.bf16.vlgmr.msra.gmra.mrb[16].mxu1 %v9073_v59  ;;  %5528 = vmatpush1.bf16.msra.mxu0 %v5096_v33  ;;  %v3490_v33 = vmul.f32 %v3455_v43, %v8884_v62  ;;  %v5154_v62 = vunpack.c.h.s8.bf16 %v4162_v52  ;;  %v4185_v43 = vld [vmem:[%s8000_s27 + $0xf88] sm:$0xff] }
 0x69b   : > { %5559 = vmatprep.mubr.bf16.mxu0 %v9077_v2  ;;  %5856 = vmatpush1.bf16.msra.mxu1 %v5098_v54  ;;  %v3555_v54 = vrot.slane %v9046_v35, %v8867_v58  ;;  %v5161_v35 = vunpack.c.l.s8.bf16 %v4169_v4 }
 0x69c   : > { %5887 = vmatprep.mubr.bf16.mxu1 %v9077_v2  ;;  %5529 = vmatprep.subr.bf16.mxu0 %v5105_v0  ;;  %v5146_v0 = vunpack.c.l.s8.bf16 %v4162_v52 }
 0x69d   : > { %5857 = vmatprep.subr.bf16.mxu1 %v5107_v3  ;;  %v5155_v3 = vunpack.c.h.s8.bf16 %v4163_v21  ;;  %v4187_v21 = vld [vmem:[%s8000_s27 + $0xf98] sm:$0xff] }
 0x69e   : > { %5530 = vmatpush1.bf16.msra.mxu0 %v5104_v5  ;;  %v3590_v5 = vadd.f32 %v3555_v54, %v3490_v33  ;;  %v5195_v52 = vunpack.c.l.s8.bf16 %v4187_v21  ;;  %v4186_v33 = vld [vmem:[%s8000_s27 + $0xf90] sm:$0xff] }
 0x69f   : > { %5858 = vmatpush1.bf16.msra.mxu1 %v5106_v14  ;;  %5531 = vmatprep.subr.bf16.mxu0 %v5113_v55  ;;  %v4171_v14 = vld [vmem:[%s8000_s27 + $0xf18] sm:$0xff]  ;;  %v5152_v55 = vunpack.c.h.s8.bf16 %v4160_v48  ;;  %v5193_v48 = vunpack.c.l.s8.bf16 %v4185_v43 }
 0x6a0   : > { %5859 = vmatprep.subr.bf16.mxu1 %v5115_v31  ;;  %v5163_v31 = vunpack.c.l.s8.bf16 %v4171_v14  ;;  %v5171_v27 = vunpack.c.h.s8.bf16 %v4171_v14 }
 0x6a2   : > { %5532 = vmatpush1.bf16.msra.mxu0 %v5112_v61  ;;  %v7021_v61 = vmul.f32 -1.442695, %v3590_v5  ;;  %v4195_v5 = vld [vmem:[%s8000_s27 + $0xfd8] sm:$0xff] }
 0x6a3   : > { %5860 = vmatpush1.bf16.msra.mxu1 %v5114_v25  ;;  %5533 = vmatprep.subr.bf16.mxu0 %v5121_v30  ;;  %v5160_v25 = vunpack.c.l.s8.bf16 %v4168_v7  ;;  %v5162_v30 = vunpack.c.l.s8.bf16 %v4170_v15 }
 0x6a4   : > { %5861 = vmatprep.subr.bf16.mxu1 %v5123_v13  ;;  %v5169_v13 = vunpack.c.h.s8.bf16 %v4169_v4  ;;  %7405 = vpow2.f32 %v7021_v61  ;;  %v4193_v4 = vld [vmem:[%s8000_s27 + $0xfc8] sm:$0xff] }
 0x6a6   : > { %5534 = vmatpush1.bf16.msra.mxu0 %v5120_v20  ;;  %v4179_v20 = vld [vmem:[%s8000_s27 + $0xf58] sm:$0xff] }
 0x6a7   : > { %5862 = vmatpush1.bf16.msra.mxu1 %v5122_v28  ;;  %5535 = vmatprep.subr.bf16.mxu0 %v5129_v34  ;;  %v5168_v28 = vunpack.c.h.s8.bf16 %v4168_v7  ;;  %v5170_v34 = vunpack.c.h.s8.bf16 %v4170_v15  ;;  %v5179_v37 = vunpack.c.l.s8.bf16 %v4179_v20  ;;  %v5187_v42 = vunpack.c.h.s8.bf16 %v4179_v20 }
 0x6a8   : > { %5863 = vmatprep.subr.bf16.mxu1 %v5131_v56  ;;  %v4176_v56 = vld [vmem:[%s8000_s27 + $0xf40] sm:$0xff]  ;;  %v5211_v7 = vunpack.c.l.s8.bf16 %v4195_v5 }
 0x6aa   : > { %5536 = vmatpush1.bf16.msra.mxu0 %v5128_v32  ;;  %v4178_v32 = vld [vmem:[%s8000_s27 + $0xf50] sm:$0xff] }
 0x6ab   : > { %5864 = vmatpush1.bf16.msra.mxu1 %v5130_v39  ;;  %5537 = vmatprep.subr.bf16.mxu0 %v5137_v40  ;;  %v5176_v39 = vunpack.c.l.s8.bf16 %v4176_v56  ;;  %v5178_v40 = vunpack.c.l.s8.bf16 %v4178_v32 }
 0x6ac   : > { %5865 = vmatprep.subr.bf16.mxu1 %v5139_v22  ;;  %v5185_v22 = vunpack.c.h.s8.bf16 %v4177_v38 }
 0x6ae   : > { %5538 = vmatpush1.bf16.msra.mxu0 %v5136_v44  ;;  %v5184_v44 = vunpack.c.h.s8.bf16 %v4176_v56 }
 0x6af   : > { %5866 = vmatpush1.bf16.msra.mxu1 %v5138_v29  ;;  %5539 = vmatprep.subr.bf16.mxu0 %v5145_v46  ;;  %v7406_v29 = vpop.eup %7405  ;;  %v5186_v46 = vunpack.c.h.s8.bf16 %v4178_v32 }
 0x6b0   : > { %5867 = vmatprep.subr.bf16.mxu1 %v5147_v49  ;;  %v4184_v49 = vld [vmem:[%s8000_s27 + $0xf80] sm:$0xff]  ;;  %v3654_v54 = vadd.f32 1.0, %v7406_v29 }
 0x6b1   : > { %v5200_v14 = vunpack.c.h.s8.bf16 %v4184_v49 }
 0x6b2   : > { %5540 = vmatpush1.bf16.msra.mxu0 %v5144_v45  ;;  %v5192_v45 = vunpack.c.l.s8.bf16 %v4184_v49  ;;  %7407 = vrcp.f32 %v3654_v54 }
 0x6b3   : > { %5868 = vmatpush1.bf16.msra.mxu1 %v5146_v0  ;;  %5541 = vmatprep.subr.bf16.mxu0 %v5153_v1  ;;  %v5194_v0 = vunpack.c.l.s8.bf16 %v4186_v33  ;;  %v5201_v1 = vunpack.c.h.s8.bf16 %v4185_v43 }
 0x6b4   : > { %5869 = vmatprep.subr.bf16.mxu1 %v5155_v3  ;;  %v5203_v3 = vunpack.c.h.s8.bf16 %v4187_v21  ;;  %v3703_v21 = vld [vmem:[%s8000_s27 + $0x78] sm:$0xff] }
 0x6b5   : > { %v4223_v49 = vunpack.c.l.s8.bf16 %v3703_v21 }
 0x6b6   : > { %5542 = vmatpush1.bf16.msra.mxu0 %v5152_v55  ;;  %v5202_v55 = vunpack.c.h.s8.bf16 %v4186_v33 }
 0x6b7   : > { %5870 = vmatpush1.bf16.msra.mxu1 %v5154_v62  ;;  %5543 = vmatprep.subr.bf16.mxu0 %v5161_v35  ;;  %v5209_v62 = vunpack.c.l.s8.bf16 %v4193_v4  ;;  %v4192_v35 = vld [vmem:[%s8000_s27 + $0xfc0] sm:$0xff] }
 0x6b8   : > { %5871 = vmatprep.subr.bf16.mxu1 %v5163_v31  ;;  %v4194_v31 = vld [vmem:[%s8000_s27 + $0xfd0] sm:$0xff]  ;;  %v5208_v15 = vunpack.c.l.s8.bf16 %v4192_v35  ;;  %v5216_v38 = vunpack.c.h.s8.bf16 %v4192_v35 }
 0x6b9   : > { %v5210_v61 = vunpack.c.l.s8.bf16 %v4194_v31  ;;  %v5218_v20 = vunpack.c.h.s8.bf16 %v4194_v31 }
 0x6ba   : > { %5544 = vmatpush1.bf16.msra.mxu0 %v5160_v25  ;;  %v5217_v25 = vunpack.c.h.s8.bf16 %v4193_v4 }
 0x6bb   : > { %5872 = vmatpush1.bf16.msra.mxu1 %v5162_v30  ;;  %5545 = vmatprep.subr.bf16.mxu0 %v5169_v13  ;;  %v5219_v30 = vunpack.c.h.s8.bf16 %v4195_v5  ;;  %v3693_v13 = vld [vmem:[%s8000_s27 + $0x28] sm:$0xff] }
 0x6bc   : > { %5873 = vmatprep.subr.bf16.mxu1 %v5171_v27  ;;  %v3695_v27 = vld [vmem:[%s8000_s27 + $0x38] sm:$0xff] }
 0x6bd   : > { %v4207_v56 = vunpack.c.l.s8.bf16 %v3695_v27  ;;  %v4215_v43 = vunpack.c.h.s8.bf16 %v3695_v27 }
 0x6be   : > { %5546 = vmatpush1.bf16.msra.mxu0 %v5168_v28  ;;  %v4205_v28 = vunpack.c.l.s8.bf16 %v3693_v13 }
 0x6bf   : > { %5874 = vmatpush1.bf16.msra.mxu1 %v5170_v34  ;;  %5547 = vmatprep.subr.bf16.mxu0 %v5177_v18  ;;  %v3692_v34 = vld [vmem:[%s8000_s27 + $0x20] sm:$0xff]  ;;  %v7408_v18 = vpop.eup %7407 }
 0x6c0   : > { %5875 = vmatprep.subr.bf16.mxu1 %v5179_v37  ;;  %v3694_v37 = vld [vmem:[%s8000_s27 + $0x30] sm:$0xff]  ;;  %v4204_v32 = vunpack.c.l.s8.bf16 %v3692_v34 }
 0x6c1   : > { %v4214_v29 = vunpack.c.h.s8.bf16 %v3694_v37 }
 0x6c2   : > { %5548 = vmatpush1.bf16.msra.mxu0 %v5176_v39  ;;  %v9118_v39 = vpack.c.bf16 %v7408_v18, %v7408_v18 }
 0x6c3   : > { %5876 = vmatpush1.bf16.msra.mxu1 %v5178_v40  ;;  %5549 = vmatprep.subr.bf16.mxu0 %v5185_v22  ;;  %v4206_v40 = vunpack.c.l.s8.bf16 %v3694_v37  ;;  %v4213_v22 = vunpack.c.h.s8.bf16 %v3693_v13 }
 0x6c4   : > { %5877 = vmatprep.subr.bf16.mxu1 %v5187_v42  ;;  %v3701_v42 = vld [vmem:[%s8000_s27 + $0x68] sm:$0xff] }
 0x6c6   : > { %5550 = vmatpush1.bf16.msra.mxu0 %v5184_v44  ;;  %v4212_v44 = vunpack.c.h.s8.bf16 %v3692_v34 }
 0x6c7   : > { %5878 = vmatpush1.bf16.msra.mxu1 %v5186_v46  ;;  %5551 = vmatprep.subr.bf16.mxu0 %v5193_v48  ;;  %v4221_v46 = vunpack.c.l.s8.bf16 %v3701_v42  ;;  %v3700_v48 = vld [vmem:[%s8000_s27 + $0x60] sm:$0xff] }
 0x6c8   : > { %5879 = vmatprep.subr.bf16.mxu1 %v5195_v52  ;;  %v3702_v52 = vld [vmem:[%s8000_s27 + $0x70] sm:$0xff]  ;;  %v4220_v33 = vunpack.c.l.s8.bf16 %v3700_v48  ;;  %v4228_v4 = vunpack.c.h.s8.bf16 %v3700_v48 }
 0x6c9   : > { %v4222_v54 = vunpack.c.l.s8.bf16 %v3702_v52 }
 0x6ca   : > { %5552 = vmatpush1.bf16.msra.mxu0 %v5192_v45  ;;  %v4229_v45 = vunpack.c.h.s8.bf16 %v3701_v42 }
 0x6cb   : > { %5880 = vmatpush1.bf16.msra.mxu1 %v5194_v0  ;;  %5553 = vmatprep.subr.bf16.mxu0 %v5201_v1  ;;  %v4231_v0 = vunpack.c.h.s8.bf16 %v3703_v21  ;;  %v3709_v1 = vld [vmem:[%s8000_s27 + $0xa8] sm:$0xff]  ;;  %v3724_v21 = vld [vmem:[%s8000_s27 + $0x120] sm:$0xff] }
 0x6cc   : > { %5881 = vmatprep.subr.bf16.mxu1 %v5203_v3  ;;  %v3711_v3 = vld [vmem:[%s8000_s27 + $0xb8] sm:$0xff]  ;;  %v4237_v5 = vunpack.c.l.s8.bf16 %v3709_v1  ;;  %v4245_v31 = vunpack.c.h.s8.bf16 %v3709_v1 }
 0x6ce   : > { %5554 = vmatpush1.bf16.msra.mxu0 %v5200_v14  ;;  %v3708_v14 = vld [vmem:[%s8000_s27 + $0xa0] sm:$0xff] }
 0x6cf   : > { %5882 = vmatpush1.bf16.msra.mxu1 %v5202_v55  ;;  %5555 = vmatprep.subr.bf16.mxu0 %v5209_v62  ;;  %v4239_v55 = vunpack.c.l.s8.bf16 %v3711_v3  ;;  %v3710_v62 = vld [vmem:[%s8000_s27 + $0xb0] sm:$0xff]  ;;  %v4236_v35 = vunpack.c.l.s8.bf16 %v3708_v14 }
 0x6d0   : > { %5883 = vmatprep.subr.bf16.mxu1 %v5211_v7  ;;  %v4238_v7 = vunpack.c.l.s8.bf16 %v3710_v62  ;;  %v4246_v13 = vunpack.c.h.s8.bf16 %v3710_v62 }
 0x6d2   : > { %5556 = vmatpush1.bf16.msra.mxu0 %v5208_v15  ;;  %v4247_v15 = vunpack.c.h.s8.bf16 %v3711_v3  ;;  %v3732_v3 = vld [vmem:[%s8000_s27 + $0x160] sm:$0xff] }
 0x6d3   : > { %5884 = vmatpush1.bf16.msra.mxu1 %v5210_v61  ;;  %5557 = vmatprep.subr.bf16.mxu0 %v5217_v25  ;;  %v3717_v61 = vld [vmem:[%s8000_s27 + $0xe8] sm:$0xff]  ;;  %v3719_v25 = vld [vmem:[%s8000_s27 + $0xf8] sm:$0xff] }
 0x6d4   : > { %5885 = vmatprep.subr.bf16.mxu1 %v5219_v30  ;;  %v4244_v30 = vunpack.c.h.s8.bf16 %v3708_v14  ;;  %v4253_v27 = vunpack.c.l.s8.bf16 %v3717_v61  ;;  %v4263_v37 = vunpack.c.h.s8.bf16 %v3719_v25 }
 0x6d6   : > { %5558 = vmatpush1.bf16.msra.mxu0 %v5216_v38  ;;  %v3716_v38 = vld [vmem:[%s8000_s27 + $0xe0] sm:$0xff] }
 0x6d7   : > { %5886 = vmatpush1.bf16.msra.mxu1 %v5218_v20  ;;  %5896 = vmatprep.subr.bf16.mxu0 %v4205_v28  ;;  %v4255_v20 = vunpack.c.l.s8.bf16 %v3719_v25  ;;  %v3718_v28 = vld [vmem:[%s8000_s27 + $0xf0] sm:$0xff]  ;;  %v4252_v34 = vunpack.c.l.s8.bf16 %v3716_v38  ;;  %v3740_v25 = vld [vmem:[%s8000_s27 + $0x1a0] sm:$0xff] }
 0x6d8   : > { %6224 = vmatprep.subr.bf16.mxu1 %v4207_v56  ;;  %v4254_v18 = vunpack.c.l.s8.bf16 %v3718_v28  ;;  %v4261_v56 = vunpack.c.h.s8.bf16 %v3717_v61  ;;  %v4262_v42 = vunpack.c.h.s8.bf16 %v3718_v28 }
 0x6d9   : > { %5560 = vmatmul.mubr.bf16.vlgmr.msra.gmra.mrb[16].mxu0 %v9118_v39 }
 0x6da   : > { %5888 = vmatmul.mubr.bf16.vlgmr.msra.gmra.mrb[16].mxu1 %v9118_v39  ;;  %5897 = vmatpush1.bf16.msra.mxu0 %v4204_v32  ;;  %v3725_v32 = vld [vmem:[%s8000_s27 + $0x128] sm:$0xff] }
 0x6db   : > { %5928 = vmatprep.mubr.bf16.mxu0 %v8678_v41  ;;  %6225 = vmatpush1.bf16.msra.mxu1 %v4206_v40  ;;  %v3727_v40 = vld [vmem:[%s8000_s27 + $0x138] sm:$0xff] }
 0x6dc   : > { %6256 = vmatprep.mubr.bf16.mxu1 %v8678_v41  ;;  %5898 = vmatprep.subr.bf16.mxu0 %v4213_v22  ;;  %v4230_v41 = vunpack.c.h.s8.bf16 %v3702_v52  ;;  %v4260_v22 = vunpack.c.h.s8.bf16 %v3716_v38  ;;  %v4279_v52 = vunpack.c.h.s8.bf16 %v3727_v40 }
 0x6dd   : > { %6226 = vmatprep.subr.bf16.mxu1 %v4215_v43  ;;  %v4269_v43 = vunpack.c.l.s8.bf16 %v3725_v32 }
 0x6de   : > { %5899 = vmatpush1.bf16.msra.mxu0 %v4212_v44  ;;  %v4271_v44 = vunpack.c.l.s8.bf16 %v3727_v40  ;;  %v3748_v40 = vld [vmem:[%s8000_s27 + $0x1e0] sm:$0xff] }
 0x6df   : > { %6227 = vmatpush1.bf16.msra.mxu1 %v4214_v29  ;;  %5900 = vmatprep.subr.bf16.mxu0 %v4221_v46  ;;  %v3726_v29 = vld [vmem:[%s8000_s27 + $0x130] sm:$0xff]  ;;  %v4268_v46 = vunpack.c.l.s8.bf16 %v3724_v21 }
 0x6e0   : > { %6228 = vmatprep.subr.bf16.mxu1 %v4223_v49  ;;  %v4270_v48 = vunpack.c.l.s8.bf16 %v3726_v29  ;;  %v4277_v49 = vunpack.c.h.s8.bf16 %v3725_v32 }
 0x6e2   : > { %5901 = vmatpush1.bf16.msra.mxu0 %v4220_v33  ;;  %v3733_v33 = vld [vmem:[%s8000_s27 + $0x168] sm:$0xff] }
 0x6e3   : > { %6229 = vmatpush1.bf16.msra.mxu1 %v4222_v54  ;;  %5902 = vmatprep.subr.bf16.mxu0 %v4229_v45  ;;  %v3735_v54 = vld [vmem:[%s8000_s27 + $0x178] sm:$0xff]  ;;  %v4276_v45 = vunpack.c.h.s8.bf16 %v3724_v21  ;;  %v4285_v1 = vunpack.c.l.s8.bf16 %v3733_v33 }
 0x6e4   : > { %6230 = vmatprep.subr.bf16.mxu1 %v4231_v0  ;;  %v4278_v0 = vunpack.c.h.s8.bf16 %v3726_v29  ;;  %v4295_v62 = vunpack.c.h.s8.bf16 %v3735_v54 }
 0x6e6   : > { %5903 = vmatpush1.bf16.msra.mxu0 %v4228_v4  ;;  %v4287_v4 = vunpack.c.l.s8.bf16 %v3735_v54  ;;  %v3756_v54 = vld [vmem:[%s8000_s27 + $0x220] sm:$0xff] }
 0x6e7   : > { %6231 = vmatpush1.bf16.msra.mxu1 %v4230_v41  ;;  %5904 = vmatprep.subr.bf16.mxu0 %v4237_v5  ;;  %v3734_v41 = vld [vmem:[%s8000_s27 + $0x170] sm:$0xff]  ;;  %v4284_v5 = vunpack.c.l.s8.bf16 %v3732_v3 }
 0x6e8   : > { %6232 = vmatprep.subr.bf16.mxu1 %v4239_v55  ;;  %v4286_v14 = vunpack.c.l.s8.bf16 %v3734_v41  ;;  %v4293_v55 = vunpack.c.h.s8.bf16 %v3733_v33 }
 0x6ea   : > { %5905 = vmatpush1.bf16.msra.mxu0 %v4236_v35  ;;  %v3741_v35 = vld [vmem:[%s8000_s27 + $0x1a8] sm:$0xff] }
 0x6eb   : > { %6233 = vmatpush1.bf16.msra.mxu1 %v4238_v7  ;;  %5906 = vmatprep.subr.bf16.mxu0 %v4245_v31  ;;  %v3743_v7 = vld [vmem:[%s8000_s27 + $0x1b8] sm:$0xff]  ;;  %v4292_v31 = vunpack.c.h.s8.bf16 %v3732_v3  ;;  %v4301_v61 = vunpack.c.l.s8.bf16 %v3741_v35 }
 0x6ec   : > { %6234 = vmatprep.subr.bf16.mxu1 %v4247_v15  ;;  %v4294_v15 = vunpack.c.h.s8.bf16 %v3734_v41  ;;  %v4311_v28 = vunpack.c.h.s8.bf16 %v3743_v7  ;;  %v3765_v41 = vld [vmem:[%s8000_s27 + $0x268] sm:$0xff] }
 0x6ee   : > { %5907 = vmatpush1.bf16.msra.mxu0 %v4244_v30  ;;  %v4303_v30 = vunpack.c.l.s8.bf16 %v3743_v7  ;;  %v3764_v7 = vld [vmem:[%s8000_s27 + $0x260] sm:$0xff] }
 0x6ef   : > { %6235 = vmatpush1.bf16.msra.mxu1 %v4246_v13  ;;  %5908 = vmatprep.subr.bf16.mxu0 %v4253_v27  ;;  %v3742_v13 = vld [vmem:[%s8000_s27 + $0x1b0] sm:$0xff]  ;;  %v4300_v27 = vunpack.c.l.s8.bf16 %v3740_v25 }
 0x6f0   : > { %6236 = vmatprep.subr.bf16.mxu1 %v4255_v20  ;;  %v4302_v38 = vunpack.c.l.s8.bf16 %v3742_v13  ;;  %v4309_v20 = vunpack.c.h.s8.bf16 %v3741_v35  ;;  %v4349_v35 = vunpack.c.l.s8.bf16 %v3765_v41 }
 0x6f2   : > { %5909 = vmatpush1.bf16.msra.mxu0 %v4252_v34  ;;  %v3749_v34 = vld [vmem:[%s8000_s27 + $0x1e8] sm:$0xff] }
 0x6f3   : > { %6237 = vmatpush1.bf16.msra.mxu1 %v4254_v18  ;;  %5910 = vmatprep.subr.bf16.mxu0 %v4261_v56  ;;  %v3751_v18 = vld [vmem:[%s8000_s27 + $0x1f8] sm:$0xff]  ;;  %v4308_v56 = vunpack.c.h.s8.bf16 %v3740_v25  ;;  %v4317_v32 = vunpack.c.l.s8.bf16 %v3749_v34  ;;  %v4357_v25 = vunpack.c.h.s8.bf16 %v3765_v41  ;;  %v3788_v41 = vld [vmem:[%s8000_s27 + $0x320] sm:$0xff] }
 0x6f4   : > { %6238 = vmatprep.subr.bf16.mxu1 %v4263_v37  ;;  %v4310_v37 = vunpack.c.h.s8.bf16 %v3742_v13  ;;  %v4327_v29 = vunpack.c.h.s8.bf16 %v3751_v18  ;;  %v3773_v13 = vld [vmem:[%s8000_s27 + $0x2a8] sm:$0xff] }
 0x6f6   : > { %5911 = vmatpush1.bf16.msra.mxu0 %v4260_v22  ;;  %v4319_v22 = vunpack.c.l.s8.bf16 %v3751_v18  ;;  %v3774_v18 = vld [vmem:[%s8000_s27 + $0x2b0] sm:$0xff] }
 0x6f7   : > { %6239 = vmatpush1.bf16.msra.mxu1 %v4262_v42  ;;  %5912 = vmatprep.subr.bf16.mxu0 %v4269_v43  ;;  %v3750_v42 = vld [vmem:[%s8000_s27 + $0x1f0] sm:$0xff]  ;;  %v4316_v43 = vunpack.c.l.s8.bf16 %v3748_v40 }
 0x6f8   : > { %6240 = vmatprep.subr.bf16.mxu1 %v4271_v44  ;;  %v4318_v21 = vunpack.c.l.s8.bf16 %v3750_v42  ;;  %v4325_v44 = vunpack.c.h.s8.bf16 %v3749_v34 }
 0x6fa   : > { %5913 = vmatpush1.bf16.msra.mxu0 %v4268_v46  ;;  %v3757_v46 = vld [vmem:[%s8000_s27 + $0x228] sm:$0xff] }
 0x6fb   : > { %6241 = vmatpush1.bf16.msra.mxu1 %v4270_v48  ;;  %5914 = vmatprep.subr.bf16.mxu0 %v4277_v49  ;;  %v3759_v48 = vld [vmem:[%s8000_s27 + $0x238] sm:$0xff]  ;;  %v4324_v49 = vunpack.c.h.s8.bf16 %v3748_v40  ;;  %v4333_v33 = vunpack.c.l.s8.bf16 %v3757_v46 }
 0x6fc   : > { %6242 = vmatprep.subr.bf16.mxu1 %v4279_v52  ;;  %v4326_v52 = vunpack.c.h.s8.bf16 %v3750_v42  ;;  %v3783_v42 = vld [vmem:[%s8000_s27 + $0x2f8] sm:$0xff] }
 0x6fe   : > { %5915 = vmatpush1.bf16.msra.mxu0 %v4276_v45  ;;  %v4335_v45 = vunpack.c.l.s8.bf16 %v3759_v48 }
 0x6ff   : > { %6243 = vmatpush1.bf16.msra.mxu1 %v4278_v0  ;;  %5916 = vmatprep.subr.bf16.mxu0 %v4285_v1  ;;  %v3758_v0 = vld [vmem:[%s8000_s27 + $0x230] sm:$0xff]  ;;  %v4332_v1 = vunpack.c.l.s8.bf16 %v3756_v54 }
 0x700   : > { %6244 = vmatprep.subr.bf16.mxu1 %v4287_v4  ;;  %v4334_v3 = vunpack.c.l.s8.bf16 %v3758_v0  ;;  %v4341_v4 = vunpack.c.h.s8.bf16 %v3757_v46  ;;  %v4383_v46 = vunpack.c.l.s8.bf16 %v3783_v42 }
 0x702   : > { %5917 = vmatpush1.bf16.msra.mxu0 %v4284_v5  ;;  %v4343_v5 = vunpack.c.h.s8.bf16 %v3759_v48  ;;  %v3782_v48 = vld [vmem:[%s8000_s27 + $0x2f0] sm:$0xff] }
 0x703   : > { %6245 = vmatpush1.bf16.msra.mxu1 %v4286_v14  ;;  %5918 = vmatprep.subr.bf16.mxu0 %v4293_v55  ;;  %v3767_v14 = vld [vmem:[%s8000_s27 + $0x278] sm:$0xff]  ;;  %v4340_v55 = vunpack.c.h.s8.bf16 %v3756_v54  ;;  %v4391_v54 = vunpack.c.h.s8.bf16 %v3783_v42  ;;  %v3806_v42 = vld [vmem:[%s8000_s27 + $0x3b0] sm:$0xff] }
 0x704   : > { %6246 = vmatprep.subr.bf16.mxu1 %v4295_v62  ;;  %v4342_v62 = vunpack.c.h.s8.bf16 %v3758_v0  ;;  %v3791_v0 = vld [vmem:[%s8000_s27 + $0x338] sm:$0xff] }
 0x706   : > { %5919 = vmatpush1.bf16.msra.mxu0 %v4292_v31  ;;  %v4351_v31 = vunpack.c.l.s8.bf16 %v3767_v14 }
 0x707   : > { %6247 = vmatpush1.bf16.msra.mxu1 %v4294_v15  ;;  %5920 = vmatprep.subr.bf16.mxu0 %v4301_v61  ;;  %v3766_v15 = vld [vmem:[%s8000_s27 + $0x270] sm:$0xff]  ;;  %v4348_v61 = vunpack.c.l.s8.bf16 %v3764_v7 }
 0x708   : > { %6248 = vmatprep.subr.bf16.mxu1 %v4303_v30  ;;  %v4359_v30 = vunpack.c.h.s8.bf16 %v3767_v14  ;;  %v3790_v14 = vld [vmem:[%s8000_s27 + $0x330] sm:$0xff] }
 0x70a   : > { %5921 = vmatpush1.bf16.msra.mxu0 %v4300_v27  ;;  %v3775_v27 = vld [vmem:[%s8000_s27 + $0x2b8] sm:$0xff] }
 0x70b   : > { %6249 = vmatpush1.bf16.msra.mxu1 %v4302_v38  ;;  %5922 = vmatprep.subr.bf16.mxu0 %v4309_v20  ;;  %v4356_v38 = vunpack.c.h.s8.bf16 %v3764_v7  ;;  %v4365_v20 = vunpack.c.l.s8.bf16 %v3773_v13  ;;  %v4367_v34 = vunpack.c.l.s8.bf16 %v3775_v27  ;;  %v4375_v40 = vunpack.c.h.s8.bf16 %v3775_v27  ;;  %v3798_v27 = vld [vmem:[%s8000_s27 + $0x370] sm:$0xff] }
 0x70c   : > { %6250 = vmatprep.subr.bf16.mxu1 %v4311_v28  ;;  %v3772_v28 = vld [vmem:[%s8000_s27 + $0x2a0] sm:$0xff]  ;;  %v4407_v7 = vunpack.c.h.s8.bf16 %v3791_v0 }
 0x70e   : > { %5923 = vmatpush1.bf16.msra.mxu0 %v4308_v56  ;;  %v4364_v56 = vunpack.c.l.s8.bf16 %v3772_v28 }
 0x70f   : > { %6251 = vmatpush1.bf16.msra.mxu1 %v4310_v37  ;;  %5924 = vmatprep.subr.bf16.mxu0 %v4317_v32  ;;  %v4366_v37 = vunpack.c.l.s8.bf16 %v3774_v18  ;;  %v4373_v32 = vunpack.c.h.s8.bf16 %v3773_v13 }
 0x710   : > { %6252 = vmatprep.subr.bf16.mxu1 %v4319_v22  ;;  %v3781_v22 = vld [vmem:[%s8000_s27 + $0x2e8] sm:$0xff] }
 0x712   : > { %5925 = vmatpush1.bf16.msra.mxu0 %v4316_v43  ;;  %v4372_v43 = vunpack.c.h.s8.bf16 %v3772_v28 }
 0x713   : > { %6253 = vmatpush1.bf16.msra.mxu1 %v4318_v21  ;;  %5926 = vmatprep.subr.bf16.mxu0 %v4325_v44  ;;  %v4374_v21 = vunpack.c.h.s8.bf16 %v3774_v18  ;;  %v4381_v44 = vunpack.c.l.s8.bf16 %v3781_v22  ;;  %v3807_v18 = vld [vmem:[%s8000_s27 + $0x3b8] sm:$0xff] }
 0x714   : > { %6254 = vmatprep.subr.bf16.mxu1 %v4327_v29  ;;  %v3780_v29 = vld [vmem:[%s8000_s27 + $0x2e0] sm:$0xff] }
 0x716   : > { %5927 = vmatpush1.bf16.msra.mxu0 %v4324_v49  ;;  %v4380_v49 = vunpack.c.l.s8.bf16 %v3780_v29 }
 0x717   : > { %6255 = vmatpush1.bf16.msra.mxu1 %v4326_v52  ;;  %5937 = vmatprep.subr.bf16.mxu0 %v4333_v33  ;;  %v4382_v52 = vunpack.c.l.s8.bf16 %v3782_v48  ;;  %v4389_v33 = vunpack.c.h.s8.bf16 %v3781_v22  ;;  %v4431_v22 = vunpack.c.l.s8.bf16 %v3807_v18 }
 0x718   : > { %6265 = vmatprep.subr.bf16.mxu1 %v4335_v45  ;;  %v3789_v45 = vld [vmem:[%s8000_s27 + $0x328] sm:$0xff] }
 0x719   : > { %5929 = vmatmul.mubr.bf16.vlgmr.msra.gmra.mrb[20].mxu0 %v8732_v11 }
 0x71a   : > { %6257 = vmatmul.mubr.bf16.vlgmr.msra.gmra.mrb[20].mxu1 %v8732_v11  ;;  %5938 = vmatpush1.bf16.msra.mxu0 %v4332_v1  ;;  %v4350_v11 = vunpack.c.l.s8.bf16 %v3766_v15  ;;  %v4388_v1 = vunpack.c.h.s8.bf16 %v3780_v29  ;;  %v4439_v29 = vunpack.c.h.s8.bf16 %v3807_v18  ;;  %v3830_v18 = vld [vmem:[%s8000_s27 + $0x470] sm:$0xff] }
 0x71b   : > { %5969 = vmatprep.mubr.bf16.mxu0 %v8736_v63  ;;  %6266 = vmatpush1.bf16.msra.mxu1 %v4334_v3  ;;  %v4390_v3 = vunpack.c.h.s8.bf16 %v3782_v48  ;;  %v3815_v48 = vld [vmem:[%s8000_s27 + $0x3f8] sm:$0xff] }
 0x71c   : > { %6297 = vmatprep.mubr.bf16.mxu1 %v8736_v63  ;;  %5939 = vmatprep.subr.bf16.mxu0 %v4341_v4  ;;  %v4358_v63 = vunpack.c.h.s8.bf16 %v3766_v15  ;;  %v4397_v4 = vunpack.c.l.s8.bf16 %v3789_v45  ;;  %v3799_v15 = vld [vmem:[%s8000_s27 + $0x378] sm:$0xff] }
 0x71d   : > { %6267 = vmatprep.subr.bf16.mxu1 %v4343_v5  ;;  %v4399_v5 = vunpack.c.l.s8.bf16 %v3791_v0  ;;  %v4415_v13 = vunpack.c.l.s8.bf16 %v3799_v15  ;;  %v4423_v28 = vunpack.c.h.s8.bf16 %v3799_v15  ;;  %v3814_v0 = vld [vmem:[%s8000_s27 + $0x3f0] sm:$0xff] }
 0x71e   : > { %5940 = vmatpush1.bf16.msra.mxu0 %v4340_v55  ;;  %v4396_v55 = vunpack.c.l.s8.bf16 %v3788_v41  ;;  %v3822_v15 = vld [vmem:[%s8000_s27 + $0x430] sm:$0xff] }
 0x71f   : > { %6268 = vmatpush1.bf16.msra.mxu1 %v4342_v62  ;;  %5941 = vmatprep.subr.bf16.mxu0 %v4349_v35  ;;  %v4398_v62 = vunpack.c.l.s8.bf16 %v3790_v14  ;;  %v4405_v35 = vunpack.c.h.s8.bf16 %v3789_v45  ;;  %v4447_v45 = vunpack.c.l.s8.bf16 %v3815_v48 }
 0x720   : > { %6269 = vmatprep.subr.bf16.mxu1 %v4351_v31  ;;  %v3797_v31 = vld [vmem:[%s8000_s27 + $0x368] sm:$0xff] }
 0x722   : > { %5942 = vmatpush1.bf16.msra.mxu0 %v4348_v61  ;;  %v4404_v61 = vunpack.c.h.s8.bf16 %v3788_v41  ;;  %v4455_v41 = vunpack.c.h.s8.bf16 %v3815_v48 }
 0x723   : > { %6270 = vmatpush1.bf16.msra.mxu1 %v4350_v11  ;;  %5943 = vmatprep.subr.bf16.mxu0 %v4357_v25  ;;  %v4406_v11 = vunpack.c.h.s8.bf16 %v3790_v14  ;;  %v4413_v25 = vunpack.c.l.s8.bf16 %v3797_v31  ;;  %v3823_v14 = vld [vmem:[%s8000_s27 + $0x438] sm:$0xff] }
 0x724   : > { %6271 = vmatprep.subr.bf16.mxu1 %v4359_v30  ;;  %v3796_v30 = vld [vmem:[%s8000_s27 + $0x360] sm:$0xff] }
 0x726   : > { %5944 = vmatpush1.bf16.msra.mxu0 %v4356_v38  ;;  %v4412_v38 = vunpack.c.l.s8.bf16 %v3796_v30 }
 0x727   : > { %6272 = vmatpush1.bf16.msra.mxu1 %v4358_v63  ;;  %5945 = vmatprep.subr.bf16.mxu0 %v4365_v20  ;;  %v4414_v63 = vunpack.c.l.s8.bf16 %v3798_v27  ;;  %v4421_v20 = vunpack.c.h.s8.bf16 %v3797_v31  ;;  %v4463_v31 = vunpack.c.l.s8.bf16 %v3823_v14 }
 0x728   : > { %6273 = vmatprep.subr.bf16.mxu1 %v4367_v34  ;;  %v3805_v34 = vld [vmem:[%s8000_s27 + $0x3a8] sm:$0xff] }
 0x72a   : > { %5946 = vmatpush1.bf16.msra.mxu0 %v4364_v56  ;;  %v4420_v56 = vunpack.c.h.s8.bf16 %v3796_v30  ;;  %v3829_v30 = vld [vmem:[%s8000_s27 + $0x468] sm:$0xff] }
 0x72b   : > { %6274 = vmatpush1.bf16.msra.mxu1 %v4366_v37  ;;  %5947 = vmatprep.subr.bf16.mxu0 %v4373_v32  ;;  %v4422_v37 = vunpack.c.h.s8.bf16 %v3798_v27  ;;  %v4429_v32 = vunpack.c.l.s8.bf16 %v3805_v34  ;;  %v3831_v27 = vld [vmem:[%s8000_s27 + $0x478] sm:$0xff] }
 0x72c   : > { %6275 = vmatprep.subr.bf16.mxu1 %v4375_v40  ;;  %v3804_v40 = vld [vmem:[%s8000_s27 + $0x3a0] sm:$0xff] }
 0x72e   : > { %5948 = vmatpush1.bf16.msra.mxu0 %v4372_v43  ;;  %v4428_v43 = vunpack.c.l.s8.bf16 %v3804_v40 }
 0x72f   : > { %6276 = vmatpush1.bf16.msra.mxu1 %v4374_v21  ;;  %5949 = vmatprep.subr.bf16.mxu0 %v4381_v44  ;;  %v4430_v21 = vunpack.c.l.s8.bf16 %v3806_v42  ;;  %v4437_v44 = vunpack.c.h.s8.bf16 %v3805_v34  ;;  %v4479_v34 = vunpack.c.l.s8.bf16 %v3831_v27 }
 0x730   : > { %6277 = vmatprep.subr.bf16.mxu1 %v4383_v46  ;;  %v3813_v46 = vld [vmem:[%s8000_s27 + $0x3e8] sm:$0xff] }
 0x732   : > { %5950 = vmatpush1.bf16.msra.mxu0 %v4380_v49  ;;  %v4436_v49 = vunpack.c.h.s8.bf16 %v3804_v40  ;;  %v3837_v40 = vld [vmem:[%s8000_s27 + $0x4a8] sm:$0xff] }
 0x733   : > { %6278 = vmatpush1.bf16.msra.mxu1 %v4382_v52  ;;  %5951 = vmatprep.subr.bf16.mxu0 %v4389_v33  ;;  %v4438_v52 = vunpack.c.h.s8.bf16 %v3806_v42  ;;  %v4445_v33 = vunpack.c.l.s8.bf16 %v3813_v46 }
 0x734   : > { %6279 = vmatprep.subr.bf16.mxu1 %v4391_v54  ;;  %v3812_v54 = vld [vmem:[%s8000_s27 + $0x3e0] sm:$0xff] }
 0x736   : > { %5952 = vmatpush1.bf16.msra.mxu0 %v4388_v1  ;;  %v4444_v1 = vunpack.c.l.s8.bf16 %v3812_v54 }
 0x737   : > { %6280 = vmatpush1.bf16.msra.mxu1 %v4390_v3  ;;  %5953 = vmatprep.subr.bf16.mxu0 %v4397_v4  ;;  %v4446_v3 = vunpack.c.l.s8.bf16 %v3814_v0  ;;  %v4453_v4 = vunpack.c.h.s8.bf16 %v3813_v46 }
 0x738   : > { %6281 = vmatprep.subr.bf16.mxu1 %v4399_v5  ;;  %v3821_v5 = vld [vmem:[%s8000_s27 + $0x428] sm:$0xff] }
 0x73a   : > { %5954 = vmatpush1.bf16.msra.mxu0 %v4396_v55  ;;  %v4452_v55 = vunpack.c.h.s8.bf16 %v3812_v54  ;;  %v3847_v54 = vld [vmem:[%s8000_s27 + $0x4f8] sm:$0xff] }
 0x73b   : > { %6282 = vmatpush1.bf16.msra.mxu1 %v4398_v62  ;;  %5955 = vmatprep.subr.bf16.mxu0 %v4405_v35  ;;  %v4454_v62 = vunpack.c.h.s8.bf16 %v3814_v0  ;;  %v4461_v35 = vunpack.c.l.s8.bf16 %v3821_v5 }
 0x73c   : > { %6283 = vmatprep.subr.bf16.mxu1 %v4407_v7  ;;  %v3820_v7 = vld [vmem:[%s8000_s27 + $0x420] sm:$0xff] }
 0x73e   : > { %5956 = vmatpush1.bf16.msra.mxu0 %v4404_v61  ;;  %v4460_v61 = vunpack.c.l.s8.bf16 %v3820_v7 }
 0x73f   : > { %6284 = vmatpush1.bf16.msra.mxu1 %v4406_v11  ;;  %5957 = vmatprep.subr.bf16.mxu0 %v4413_v25  ;;  %v4462_v11 = vunpack.c.l.s8.bf16 %v3822_v15  ;;  %v4469_v25 = vunpack.c.h.s8.bf16 %v3821_v5 }
 0x740   : > { %6285 = vmatprep.subr.bf16.mxu1 %v4415_v13  ;;  %v4471_v13 = vunpack.c.h.s8.bf16 %v3823_v14 }
 0x742   : > { %5958 = vmatpush1.bf16.msra.mxu0 %v4412_v38  ;;  %v4468_v38 = vunpack.c.h.s8.bf16 %v3820_v7  ;;  %v3855_v7 = vld [vmem:[%s8000_s27 + $0x538] sm:$0xff] }
 0x743   : > { %6286 = vmatpush1.bf16.msra.mxu1 %v4414_v63  ;;  %5959 = vmatprep.subr.bf16.mxu0 %v4421_v20  ;;  %v4470_v63 = vunpack.c.h.s8.bf16 %v3822_v15  ;;  %v4477_v20 = vunpack.c.l.s8.bf16 %v3829_v30 }
 0x744   : > { %6287 = vmatprep.subr.bf16.mxu1 %v4423_v28  ;;  %v3828_v28 = vld [vmem:[%s8000_s27 + $0x460] sm:$0xff] }
 0x745   : > { %v4484_v42 = vunpack.c.h.s8.bf16 %v3828_v28 }
 0x746   : > { %5960 = vmatpush1.bf16.msra.mxu0 %v4420_v56  ;;  %v4476_v56 = vunpack.c.l.s8.bf16 %v3828_v28  ;;  %v3863_v28 = vld [vmem:[%s8000_s27 + $0x578] sm:$0xff] }
 0x747   : > { %6288 = vmatpush1.bf16.msra.mxu1 %v4422_v37  ;;  %5961 = vmatprep.subr.bf16.mxu0 %v4429_v32  ;;  %v4485_v37 = vunpack.c.h.s8.bf16 %v3829_v30  ;;  %v4487_v32 = vunpack.c.h.s8.bf16 %v3831_v27  ;;  %v3854_v30 = vld [vmem:[%s8000_s27 + $0x530] sm:$0xff] }
 0x748   : > { %6289 = vmatprep.subr.bf16.mxu1 %v4431_v22  ;;  %v3839_v22 = vld [vmem:[%s8000_s27 + $0x4b8] sm:$0xff]  ;;  %v4526_v27 = vunpack.c.l.s8.bf16 %v3854_v30 }
 0x74a   : > { %5962 = vmatpush1.bf16.msra.mxu0 %v4428_v43  ;;  %v4493_v43 = vunpack.c.l.s8.bf16 %v3837_v40 }
 0x74b   : > { %6290 = vmatpush1.bf16.msra.mxu1 %v4430_v21  ;;  %5963 = vmatprep.subr.bf16.mxu0 %v4437_v44  ;;  %v3836_v21 = vld [vmem:[%s8000_s27 + $0x4a0] sm:$0xff]  ;;  %v4495_v44 = vunpack.c.l.s8.bf16 %v3839_v22 }
 0x74c   : > { %6291 = vmatprep.subr.bf16.mxu1 %v4439_v29  ;;  %v3838_v29 = vld [vmem:[%s8000_s27 + $0x4b0] sm:$0xff]  ;;  %v4492_v46 = vunpack.c.l.s8.bf16 %v3836_v21 }
 0x74d   : > { %v4494_v48 = vunpack.c.l.s8.bf16 %v3838_v29  ;;  %v4502_v0 = vunpack.c.h.s8.bf16 %v3838_v29 }
 0x74e   : > { %5964 = vmatpush1.bf16.msra.mxu0 %v4436_v49  ;;  %v4501_v49 = vunpack.c.h.s8.bf16 %v3837_v40 }
 0x74f   : > { %6292 = vmatpush1.bf16.msra.mxu1 %v4438_v52  ;;  %5965 = vmatprep.subr.bf16.mxu0 %v4445_v33  ;;  %v4503_v52 = vunpack.c.h.s8.bf16 %v3839_v22  ;;  %v3845_v33 = vld [vmem:[%s8000_s27 + $0x4e8] sm:$0xff] }
 0x750   : > { %6293 = vmatprep.subr.bf16.mxu1 %v4447_v45  ;;  %v4500_v45 = vunpack.c.h.s8.bf16 %v3836_v21  ;;  %v3871_v21 = vld [vmem:[%s8000_s27 + $0x5b8] sm:$0xff] }
 0x752   : > { %5966 = vmatpush1.bf16.msra.mxu0 %v4444_v1  ;;  %v4509_v1 = vunpack.c.l.s8.bf16 %v3845_v33 }
 0x753   : > { %6294 = vmatpush1.bf16.msra.mxu1 %v4446_v3  ;;  %5967 = vmatprep.subr.bf16.mxu0 %v4453_v4  ;;  %v3844_v3 = vld [vmem:[%s8000_s27 + $0x4e0] sm:$0xff]  ;;  %v4511_v4 = vunpack.c.l.s8.bf16 %v3847_v54 }
 0x754   : > { %6295 = vmatprep.subr.bf16.mxu1 %v4455_v41  ;;  %v3846_v41 = vld [vmem:[%s8000_s27 + $0x4f0] sm:$0xff]  ;;  %v4508_v5 = vunpack.c.l.s8.bf16 %v3844_v3 }
 0x755   : > { %v4510_v14 = vunpack.c.l.s8.bf16 %v3846_v41  ;;  %v4518_v15 = vunpack.c.h.s8.bf16 %v3846_v41 }
 0x756   : > { %5968 = vmatpush1.bf16.msra.mxu0 %v4452_v55  ;;  %v4517_v55 = vunpack.c.h.s8.bf16 %v3845_v33 }
 0x757   : > { %6296 = vmatpush1.bf16.msra.mxu1 %v4454_v62  ;;  %5978 = vmatprep.subr.bf16.mxu0 %v4461_v35  ;;  %v4519_v62 = vunpack.c.h.s8.bf16 %v3847_v54  ;;  %v3853_v35 = vld [vmem:[%s8000_s27 + $0x528] sm:$0xff] }
 0x758   : > { %6306 = vmatprep.subr.bf16.mxu1 %v4463_v31  ;;  %v4516_v31 = vunpack.c.h.s8.bf16 %v3844_v3  ;;  %v3879_v3 = vld [vmem:[%s8000_s27 + $0x5f8] sm:$0xff] }
 0x759   : > { %5970 = vmatmul.mubr.bf16.vlgmr.msra.gmra.mrb[20].mxu0 %v8788_v36 }
 0x75a   : > { %6298 = vmatmul.mubr.bf16.vlgmr.msra.gmra.mrb[20].mxu1 %v8788_v36  ;;  %5979 = vmatpush1.bf16.msra.mxu0 %v4460_v61  ;;  %v4478_v36 = vunpack.c.l.s8.bf16 %v3830_v18  ;;  %v4525_v61 = vunpack.c.l.s8.bf16 %v3853_v35 }
 0x75b   : > { %6010 = vmatprep.mubr.bf16.mxu0 %v8792_v47  ;;  %6307 = vmatpush1.bf16.msra.mxu1 %v4462_v11  ;;  %v3852_v11 = vld [vmem:[%s8000_s27 + $0x520] sm:$0xff] }
 0x75c   : > { %6338 = vmatprep.mubr.bf16.mxu1 %v8792_v47  ;;  %5980 = vmatprep.subr.bf16.mxu0 %v4469_v25  ;;  %v4486_v47 = vunpack.c.h.s8.bf16 %v3830_v18  ;;  %v4527_v25 = vunpack.c.l.s8.bf16 %v3855_v7  ;;  %v4534_v18 = vunpack.c.h.s8.bf16 %v3854_v30 }
 0x75d   : > { %6308 = vmatprep.subr.bf16.mxu1 %v4471_v13  ;;  %v4524_v13 = vunpack.c.l.s8.bf16 %v3852_v11 }
 0x75e   : > { %5981 = vmatpush1.bf16.msra.mxu0 %v4468_v38  ;;  %v4533_v38 = vunpack.c.h.s8.bf16 %v3853_v35 }
 0x75f   : > { %6309 = vmatpush1.bf16.msra.mxu1 %v4470_v63  ;;  %5982 = vmatprep.subr.bf16.mxu0 %v4477_v20  ;;  %v4535_v63 = vunpack.c.h.s8.bf16 %v3855_v7  ;;  %v3861_v20 = vld [vmem:[%s8000_s27 + $0x568] sm:$0xff] }
 0x760   : > { %6310 = vmatprep.subr.bf16.mxu1 %v4479_v34  ;;  %v4532_v34 = vunpack.c.h.s8.bf16 %v3852_v11  ;;  %v3887_v11 = vld [vmem:[%s8000_s27 + $0x638] sm:$0xff] }
 0x762   : > { %5983 = vmatpush1.bf16.msra.mxu0 %v4476_v56  ;;  %v4541_v56 = vunpack.c.l.s8.bf16 %v3861_v20 }
 0x763   : > { %6311 = vmatpush1.bf16.msra.mxu1 %v4478_v36  ;;  %5984 = vmatprep.subr.bf16.mxu0 %v4485_v37  ;;  %v3860_v36 = vld [vmem:[%s8000_s27 + $0x560] sm:$0xff]  ;;  %v4543_v37 = vunpack.c.l.s8.bf16 %v3863_v28 }
 0x764   : > { %6312 = vmatprep.subr.bf16.mxu1 %v4487_v32  ;;  %v3862_v32 = vld [vmem:[%s8000_s27 + $0x570] sm:$0xff]  ;;  %v4540_v40 = vunpack.c.l.s8.bf16 %v3860_v36 }
 0x765   : > { %v4542_v22 = vunpack.c.l.s8.bf16 %v3862_v32  ;;  %v4550_v29 = vunpack.c.h.s8.bf16 %v3862_v32 }
 0x766   : > { %5985 = vmatpush1.bf16.msra.mxu0 %v4484_v42  ;;  %v4549_v42 = vunpack.c.h.s8.bf16 %v3861_v20 }
 0x767   : > { %6313 = vmatpush1.bf16.msra.mxu1 %v4486_v47  ;;  %5986 = vmatprep.subr.bf16.mxu0 %v4493_v43  ;;  %v4551_v47 = vunpack.c.h.s8.bf16 %v3863_v28  ;;  %v3869_v43 = vld [vmem:[%s8000_s27 + $0x5a8] sm:$0xff] }
 0x768   : > { %6314 = vmatprep.subr.bf16.mxu1 %v4495_v44  ;;  %v4548_v44 = vunpack.c.h.s8.bf16 %v3860_v36  ;;  %v3895_v36 = vld [vmem:[%s8000_s27 + $0x678] sm:$0xff] }
 0x76a   : > { %5987 = vmatpush1.bf16.msra.mxu0 %v4492_v46  ;;  %v4557_v46 = vunpack.c.l.s8.bf16 %v3869_v43 }
 0x76b   : > { %6315 = vmatpush1.bf16.msra.mxu1 %v4494_v48  ;;  %5988 = vmatprep.subr.bf16.mxu0 %v4501_v49  ;;  %v3868_v48 = vld [vmem:[%s8000_s27 + $0x5a0] sm:$0xff]  ;;  %v4559_v49 = vunpack.c.l.s8.bf16 %v3871_v21 }
 0x76c   : > { %6316 = vmatprep.subr.bf16.mxu1 %v4503_v52  ;;  %v3870_v52 = vld [vmem:[%s8000_s27 + $0x5b0] sm:$0xff]  ;;  %v4556_v33 = vunpack.c.l.s8.bf16 %v3868_v48 }
 0x76d   : > { %v4558_v54 = vunpack.c.l.s8.bf16 %v3870_v52  ;;  %v4566_v41 = vunpack.c.h.s8.bf16 %v3870_v52  ;;  %v3900_v52 = vld [vmem:[%s8000_s27 + $0x6a0] sm:$0xff] }
 0x76e   : > { %5989 = vmatpush1.bf16.msra.mxu0 %v4500_v45  ;;  %v4565_v45 = vunpack.c.h.s8.bf16 %v3869_v43 }
 0x76f   : > { %6317 = vmatpush1.bf16.msra.mxu1 %v4502_v0  ;;  %5990 = vmatprep.subr.bf16.mxu0 %v4509_v1  ;;  %v4567_v0 = vunpack.c.h.s8.bf16 %v3871_v21  ;;  %v3877_v1 = vld [vmem:[%s8000_s27 + $0x5e8] sm:$0xff] }
 0x770   : > { %6318 = vmatprep.subr.bf16.mxu1 %v4511_v4  ;;  %v4564_v4 = vunpack.c.h.s8.bf16 %v3868_v48 }
 0x772   : > { %5991 = vmatpush1.bf16.msra.mxu0 %v4508_v5  ;;  %v4573_v5 = vunpack.c.l.s8.bf16 %v3877_v1 }
 0x773   : > { %6319 = vmatpush1.bf16.msra.mxu1 %v4510_v14  ;;  %5992 = vmatprep.subr.bf16.mxu0 %v4517_v55  ;;  %v3876_v14 = vld [vmem:[%s8000_s27 + $0x5e0] sm:$0xff]  ;;  %v4575_v55 = vunpack.c.l.s8.bf16 %v3879_v3 }
 0x774   : > { %6320 = vmatprep.subr.bf16.mxu1 %v4519_v62  ;;  %v3878_v62 = vld [vmem:[%s8000_s27 + $0x5f0] sm:$0xff]  ;;  %v4572_v35 = vunpack.c.l.s8.bf16 %v3876_v14 }
 0x775   : > { %v4574_v7 = vunpack.c.l.s8.bf16 %v3878_v62  ;;  %v4582_v30 = vunpack.c.h.s8.bf16 %v3878_v62  ;;  %v3908_v62 = vld [vmem:[%s8000_s27 + $0x6e0] sm:$0xff] }
 0x776   : > { %5993 = vmatpush1.bf16.msra.mxu0 %v4516_v31  ;;  %v4581_v31 = vunpack.c.h.s8.bf16 %v3877_v1 }
 0x777   : > { %6321 = vmatpush1.bf16.msra.mxu1 %v4518_v15  ;;  %5994 = vmatprep.subr.bf16.mxu0 %v4525_v61  ;;  %v4583_v15 = vunpack.c.h.s8.bf16 %v3879_v3  ;;  %v3885_v61 = vld [vmem:[%s8000_s27 + $0x628] sm:$0xff] }
 0x778   : > { %6322 = vmatprep.subr.bf16.mxu1 %v4527_v25  ;;  %v4580_v25 = vunpack.c.h.s8.bf16 %v3876_v14 }
 0x77a   : > { %5995 = vmatpush1.bf16.msra.mxu0 %v4524_v13  ;;  %v4589_v13 = vunpack.c.l.s8.bf16 %v3885_v61 }
 0x77b   : > { %6323 = vmatpush1.bf16.msra.mxu1 %v4526_v27  ;;  %5996 = vmatprep.subr.bf16.mxu0 %v4533_v38  ;;  %v3884_v27 = vld [vmem:[%s8000_s27 + $0x620] sm:$0xff]  ;;  %v4591_v38 = vunpack.c.l.s8.bf16 %v3887_v11 }
 0x77c   : > { %6324 = vmatprep.subr.bf16.mxu1 %v4535_v63  ;;  %v3886_v63 = vld [vmem:[%s8000_s27 + $0x630] sm:$0xff]  ;;  %v4588_v20 = vunpack.c.l.s8.bf16 %v3884_v27 }
 0x77d   : > { %v4590_v28 = vunpack.c.l.s8.bf16 %v3886_v63  ;;  %v4598_v32 = vunpack.c.h.s8.bf16 %v3886_v63 }
 0x77e   : > { %5997 = vmatpush1.bf16.msra.mxu0 %v4532_v34  ;;  %v4597_v34 = vunpack.c.h.s8.bf16 %v3885_v61 }
 0x77f   : > { %6325 = vmatpush1.bf16.msra.mxu1 %v4534_v18  ;;  %5998 = vmatprep.subr.bf16.mxu0 %v4541_v56  ;;  %v3893_v18 = vld [vmem:[%s8000_s27 + $0x668] sm:$0xff]  ;;  %v4599_v56 = vunpack.c.h.s8.bf16 %v3887_v11 }
 0x780   : > { %6326 = vmatprep.subr.bf16.mxu1 %v4543_v37  ;;  %v4596_v37 = vunpack.c.h.s8.bf16 %v3884_v27  ;;  %v4613_v21 = vunpack.c.h.s8.bf16 %v3893_v18 }
 0x782   : > { %5999 = vmatpush1.bf16.msra.mxu0 %v4540_v40  ;;  %v4605_v40 = vunpack.c.l.s8.bf16 %v3893_v18  ;;  %v3919_v18 = vld [vmem:[%s8000_s27 + $0x738] sm:$0xff] }
 0x783   : > { %6327 = vmatpush1.bf16.msra.mxu1 %v4542_v22  ;;  %6000 = vmatprep.subr.bf16.mxu0 %v4549_v42  ;;  %v3892_v22 = vld [vmem:[%s8000_s27 + $0x660] sm:$0xff]  ;;  %v4607_v42 = vunpack.c.l.s8.bf16 %v3895_v36 }
 0x784   : > { %6328 = vmatprep.subr.bf16.mxu1 %v4551_v47  ;;  %v3894_v47 = vld [vmem:[%s8000_s27 + $0x670] sm:$0xff]  ;;  %v4604_v43 = vunpack.c.l.s8.bf16 %v3892_v22  ;;  %v4612_v48 = vunpack.c.h.s8.bf16 %v3892_v22 }
 0x785   : > { %v3918_v22 = vld [vmem:[%s8000_s27 + $0x730] sm:$0xff] }
 0x786   : > { %6001 = vmatpush1.bf16.msra.mxu0 %v4548_v44  ;;  %v4615_v44 = vunpack.c.h.s8.bf16 %v3895_v36 }
 0x787   : > { %6329 = vmatpush1.bf16.msra.mxu1 %v4550_v29  ;;  %6002 = vmatprep.subr.bf16.mxu0 %v4557_v46  ;;  %v3901_v29 = vld [vmem:[%s8000_s27 + $0x6a8] sm:$0xff]  ;;  %v3903_v46 = vld [vmem:[%s8000_s27 + $0x6b8] sm:$0xff] }
 0x788   : > { %6330 = vmatprep.subr.bf16.mxu1 %v4559_v49  ;;  %v4621_v49 = vunpack.c.l.s8.bf16 %v3901_v29  ;;  %v4629_v1 = vunpack.c.h.s8.bf16 %v3901_v29  ;;  %v4631_v3 = vunpack.c.h.s8.bf16 %v3903_v46 }
 0x78a   : > { %6003 = vmatpush1.bf16.msra.mxu0 %v4556_v33  ;;  %v4623_v33 = vunpack.c.l.s8.bf16 %v3903_v46  ;;  %v4662_v46 = vunpack.c.h.s8.bf16 %v3918_v22 }
 0x78b   : > { %6331 = vmatpush1.bf16.msra.mxu1 %v4558_v54  ;;  %6004 = vmatprep.subr.bf16.mxu0 %v4565_v45  ;;  %v3902_v54 = vld [vmem:[%s8000_s27 + $0x6b0] sm:$0xff]  ;;  %v4620_v45 = vunpack.c.l.s8.bf16 %v3900_v52 }
 0x78c   : > { %6332 = vmatprep.subr.bf16.mxu1 %v4567_v0  ;;  %v4622_v0 = vunpack.c.l.s8.bf16 %v3902_v54  ;;  %v4630_v14 = vunpack.c.h.s8.bf16 %v3902_v54 }
 0x78e   : > { %6005 = vmatpush1.bf16.msra.mxu0 %v4564_v4  ;;  %v3909_v4 = vld [vmem:[%s8000_s27 + $0x6e8] sm:$0xff] }
 0x78f   : > { %6333 = vmatpush1.bf16.msra.mxu1 %v4566_v41  ;;  %6006 = vmatprep.subr.bf16.mxu0 %v4573_v5  ;;  %v3911_v41 = vld [vmem:[%s8000_s27 + $0x6f8] sm:$0xff]  ;;  %v4628_v5 = vunpack.c.h.s8.bf16 %v3900_v52  ;;  %v4645_v63 = vunpack.c.h.s8.bf16 %v3909_v4  ;;  %v3926_v52 = vld [vmem:[%s8000_s27 + $0x770] sm:$0xff] }
 0x790   : > { %6334 = vmatprep.subr.bf16.mxu1 %v4575_v55  ;;  %v4637_v55 = vunpack.c.l.s8.bf16 %v3909_v4  ;;  %v4670_v54 = vunpack.c.l.s8.bf16 %v3926_v52 }
 0x792   : > { %6007 = vmatpush1.bf16.msra.mxu0 %v4572_v35 }
 0x793   : > { %6335 = vmatpush1.bf16.msra.mxu1 %v4574_v7  ;;  %6008 = vmatprep.subr.bf16.mxu0 %v4581_v31  ;;  %v4639_v7 = vunpack.c.l.s8.bf16 %v3911_v41  ;;  %v3910_v31 = vld [vmem:[%s8000_s27 + $0x6f0] sm:$0xff] }
 0x794   : > { %6336 = vmatprep.subr.bf16.mxu1 %v4583_v15  ;;  %v4646_v36 = vunpack.c.h.s8.bf16 %v3910_v31 }
 0x796   : > { %6009 = vmatpush1.bf16.msra.mxu0 %v4580_v25 }
 0x797   : > { %6337 = vmatpush1.bf16.msra.mxu1 %v4582_v30  ;;  %6019 = vmatprep.subr.bf16.mxu0 %v4589_v13  ;;  %v4636_v30 = vunpack.c.l.s8.bf16 %v3908_v62 }
 0x798   : > { %6347 = vmatprep.subr.bf16.mxu1 %v4591_v38  ;;  %v4638_v38 = vunpack.c.l.s8.bf16 %v3910_v31 }
 0x799   : > { %6011 = vmatmul.mubr.bf16.vlgmr.msra.gmra.mrb[20].mxu0 %v8850_v60 }
 0x79a   : > { %6339 = vmatmul.mubr.bf16.vlgmr.msra.gmra.mrb[20].mxu1 %v8850_v60  ;;  %6020 = vmatpush1.bf16.msra.mxu0 %v4588_v20  ;;  %v4606_v60 = vunpack.c.l.s8.bf16 %v3894_v47 }
 0x79b   : > { %6051 = vmatprep.mubr.bf16.mxu0 %v8854_v16  ;;  %6348 = vmatpush1.bf16.msra.mxu1 %v4590_v28  ;;  %v4647_v28 = vunpack.c.h.s8.bf16 %v3911_v41  ;;  %v4678_v41 = vunpack.c.h.s8.bf16 %v3926_v52  ;;  %v3959_v52 = vld [vmem:[%s8000_s27 + $0x878] sm:$0xff] }
 0x79c   : > { %6379 = vmatprep.mubr.bf16.mxu1 %v8854_v16  ;;  %6021 = vmatprep.subr.bf16.mxu0 %v4597_v34  ;;  %v4614_v16 = vunpack.c.h.s8.bf16 %v3894_v47  ;;  %v3917_v34 = vld [vmem:[%s8000_s27 + $0x728] sm:$0xff]  ;;  %v4654_v47 = vunpack.c.l.s8.bf16 %v3918_v22  ;;  %v3951_v22 = vld [vmem:[%s8000_s27 + $0x838] sm:$0xff] }
 0x79d   : > { %6349 = vmatprep.subr.bf16.mxu1 %v4599_v56  ;;  %v4644_v56 = vunpack.c.h.s8.bf16 %v3908_v62  ;;  %v3934_v62 = vld [vmem:[%s8000_s27 + $0x7b0] sm:$0xff] }
 0x79e   : > { %6022 = vmatpush1.bf16.msra.mxu0 %v4596_v37  ;;  %v4653_v37 = vunpack.c.l.s8.bf16 %v3917_v34  ;;  %v4686_v31 = vunpack.c.l.s8.bf16 %v3934_v62 }
 0x79f   : > { %6350 = vmatpush1.bf16.msra.mxu1 %v4598_v32  ;;  %6023 = vmatprep.subr.bf16.mxu0 %v4605_v40  ;;  %v3916_v32 = vld [vmem:[%s8000_s27 + $0x720] sm:$0xff]  ;;  %v4655_v40 = vunpack.c.l.s8.bf16 %v3919_v18 }
 0x7a0   : > { %6351 = vmatprep.subr.bf16.mxu1 %v4607_v42  ;;  %v4652_v42 = vunpack.c.l.s8.bf16 %v3916_v32  ;;  %v4660_v29 = vunpack.c.h.s8.bf16 %v3916_v32 }
 0x7a2   : > { %6024 = vmatpush1.bf16.msra.mxu0 %v4604_v43  ;;  %v4661_v43 = vunpack.c.h.s8.bf16 %v3917_v34 }
 0x7a3   : > { %6352 = vmatpush1.bf16.msra.mxu1 %v4606_v60  ;;  %6025 = vmatprep.subr.bf16.mxu0 %v4613_v21  ;;  %v4663_v60 = vunpack.c.h.s8.bf16 %v3919_v18  ;;  %v3925_v21 = vld [vmem:[%s8000_s27 + $0x768] sm:$0xff]  ;;  %v3942_v18 = vld [vmem:[%s8000_s27 + $0x7f0] sm:$0xff] }
 0x7a4   : > { %6353 = vmatprep.subr.bf16.mxu1 %v4615_v44  ;;  %v3927_v44 = vld [vmem:[%s8000_s27 + $0x778] sm:$0xff] }
 0x7a6   : > { %6026 = vmatpush1.bf16.msra.mxu0 %v4612_v48  ;;  %v4669_v48 = vunpack.c.l.s8.bf16 %v3925_v21 }
 0x7a7   : > { %6354 = vmatpush1.bf16.msra.mxu1 %v4614_v16  ;;  %6027 = vmatprep.subr.bf16.mxu0 %v4621_v49  ;;  %v3924_v16 = vld [vmem:[%s8000_s27 + $0x760] sm:$0xff]  ;;  %v4671_v49 = vunpack.c.l.s8.bf16 %v3927_v44 }
 0x7a8   : > { %6355 = vmatprep.subr.bf16.mxu1 %v4623_v33  ;;  %v4668_v33 = vunpack.c.l.s8.bf16 %v3924_v16  ;;  %v4676_v4 = vunpack.c.h.s8.bf16 %v3924_v16  ;;  %v3957_v16 = vld [vmem:[%s8000_s27 + $0x868] sm:$0xff] }
 0x7aa   : > { %6028 = vmatpush1.bf16.msra.mxu0 %v4620_v45  ;;  %v4677_v45 = vunpack.c.h.s8.bf16 %v3925_v21  ;;  %v4719_v21 = vunpack.c.l.s8.bf16 %v3951_v22 }
 0x7ab   : > { %6356 = vmatpush1.bf16.msra.mxu1 %v4622_v0  ;;  %6029 = vmatprep.subr.bf16.mxu0 %v4629_v1  ;;  %v4679_v0 = vunpack.c.h.s8.bf16 %v3927_v44  ;;  %v3933_v1 = vld [vmem:[%s8000_s27 + $0x7a8] sm:$0xff]  ;;  %v3950_v44 = vld [vmem:[%s8000_s27 + $0x830] sm:$0xff] }
 0x7ac   : > { %v9243_v35 = vpop.f32.mrb[16].mxu0  ;;  %6357 = vmatprep.subr.bf16.mxu1 %v4631_v3  ;;  %v3935_v3 = vld [vmem:[%s8000_s27 + $0x7b8] sm:$0xff] }
 0x7ad   : > { %v9246_v15 = vpop.f32.mrb[16].mxu1  ;;  %v9248_v61 = vpop.f32.mrb[17].mxu0 }
 0x7ae   : > { %v9250_v11 = vpop.f32.mrb[17].mxu1  ;;  %v5565_v25 = vpop.f32.mrb[18].mxu0  ;;  %6030 = vmatpush1.bf16.msra.mxu0 %v4628_v5  ;;  %v4685_v5 = vunpack.c.l.s8.bf16 %v3933_v1 }
 0x7af   : > { %v5893_v13 = vpop.f32.mrb[18].mxu1  ;;  %6358 = vmatpush1.bf16.msra.mxu1 %v4630_v14  ;;  %v5566_v27 = vpop.f32.mrb[19].mxu0  ;;  %6031 = vmatprep.subr.bf16.mxu0 %v4637_v55  ;;  %v3932_v14 = vld [vmem:[%s8000_s27 + $0x7a0] sm:$0xff]  ;;  %v4687_v55 = vunpack.c.l.s8.bf16 %v3935_v3  ;;  %v4693_v25 = vunpack.c.h.s8.bf16 %v3933_v1  ;;  %v4735_v1 = vunpack.c.l.s8.bf16 %v3959_v52 }
 0x7b0   : > { %v5894_v20 = vpop.f32.mrb[19].mxu1  ;;  %6359 = vmatprep.subr.bf16.mxu1 %v4639_v7  ;;  %v4684_v7 = vunpack.c.l.s8.bf16 %v3932_v14  ;;  %v3941_v13 = vld [vmem:[%s8000_s27 + $0x7e8] sm:$0xff]  ;;  %v3943_v27 = vld [vmem:[%s8000_s27 + $0x7f8] sm:$0xff] }
 0x7b1   : > { %v4701_v20 = vunpack.c.l.s8.bf16 %v3941_v13  ;;  %v4703_v34 = vunpack.c.l.s8.bf16 %v3943_v27  ;;  %v4711_v32 = vunpack.c.h.s8.bf16 %v3943_v27 }
 0x7b2   : > { %6032 = vmatpush1.bf16.msra.mxu0 %v4636_v30  ;;  %v4695_v30 = vunpack.c.h.s8.bf16 %v3935_v3  ;;  %v3958_v3 = vld [vmem:[%s8000_s27 + $0x870] sm:$0xff] }
 0x7b3   : > { %6360 = vmatpush1.bf16.msra.mxu1 %v4638_v38  ;;  %6033 = vmatprep.subr.bf16.mxu0 %v4645_v63  ;;  %v4692_v38 = vunpack.c.h.s8.bf16 %v3932_v14  ;;  %v4694_v63 = vunpack.c.h.s8.bf16 %v3934_v62  ;;  %v3965_v14 = vld [vmem:[%s8000_s27 + $0x8a8] sm:$0xff] }
 0x7b4   : > { %6361 = vmatprep.subr.bf16.mxu1 %v4647_v28  ;;  %v3940_v28 = vld [vmem:[%s8000_s27 + $0x7e0] sm:$0xff] }
 0x7b6   : > { %6034 = vmatpush1.bf16.msra.mxu0 %v4644_v56  ;;  %v4700_v56 = vunpack.c.l.s8.bf16 %v3940_v28 }
 0x7b7   : > { %6362 = vmatpush1.bf16.msra.mxu1 %v4646_v36  ;;  %6035 = vmatprep.subr.bf16.mxu0 %v4653_v37  ;;  %v4702_v36 = vunpack.c.l.s8.bf16 %v3942_v18  ;;  %v4709_v37 = vunpack.c.h.s8.bf16 %v3941_v13 }
 0x7b8   : > { %6363 = vmatprep.subr.bf16.mxu1 %v4655_v40  ;;  %v3949_v40 = vld [vmem:[%s8000_s27 + $0x828] sm:$0xff] }
 0x7ba   : > { %6036 = vmatpush1.bf16.msra.mxu0 %v4652_v42  ;;  %v4708_v42 = vunpack.c.h.s8.bf16 %v3940_v28  ;;  %v3975_v28 = vld [vmem:[%s8000_s27 + $0x8f8] sm:$0xff] }
 0x7bb   : > { %6364 = vmatpush1.bf16.msra.mxu1 %v4654_v47  ;;  %6037 = vmatprep.subr.bf16.mxu0 %v4661_v43  ;;  %v4710_v47 = vunpack.c.h.s8.bf16 %v3942_v18  ;;  %v4717_v43 = vunpack.c.l.s8.bf16 %v3949_v40 }
 0x7bc   : > { %6365 = vmatprep.subr.bf16.mxu1 %v4663_v60  ;;  %v3948_v60 = vld [vmem:[%s8000_s27 + $0x820] sm:$0xff] }
 0x7be   : > { %6038 = vmatpush1.bf16.msra.mxu0 %v4660_v29  ;;  %v4716_v29 = vunpack.c.l.s8.bf16 %v3948_v60 }
 0x7bf   : > { %6366 = vmatpush1.bf16.msra.mxu1 %v4662_v46  ;;  %6039 = vmatprep.subr.bf16.mxu0 %v4669_v48  ;;  %v4718_v46 = vunpack.c.l.s8.bf16 %v3950_v44  ;;  %v4725_v48 = vunpack.c.h.s8.bf16 %v3949_v40 }
 0x7c0   : > { %6367 = vmatprep.subr.bf16.mxu1 %v4671_v49  ;;  %v4727_v49 = vunpack.c.h.s8.bf16 %v3951_v22 }
 0x7c2   : > { %6040 = vmatpush1.bf16.msra.mxu0 %v4668_v33  ;;  %v4724_v33 = vunpack.c.h.s8.bf16 %v3948_v60  ;;  %v3983_v60 = vld [vmem:[%s8000_s27 + $0x938] sm:$0xff] }
 0x7c3   : > { %6368 = vmatpush1.bf16.msra.mxu1 %v4670_v54  ;;  %6041 = vmatprep.subr.bf16.mxu0 %v4677_v45  ;;  %v4726_v54 = vunpack.c.h.s8.bf16 %v3950_v44  ;;  %v4733_v45 = vunpack.c.l.s8.bf16 %v3957_v16 }
 0x7c4   : > { %6369 = vmatprep.subr.bf16.mxu1 %v4679_v0  ;;  %v3956_v0 = vld [vmem:[%s8000_s27 + $0x860] sm:$0xff] }
 0x7c5   : > { %v4740_v62 = vunpack.c.h.s8.bf16 %v3956_v0 }
 0x7c6   : > { %6042 = vmatpush1.bf16.msra.mxu0 %v4676_v4  ;;  %v4732_v4 = vunpack.c.l.s8.bf16 %v3956_v0  ;;  %v3991_v0 = vld [vmem:[%s8000_s27 + $0x978] sm:$0xff] }
 0x7c7   : > { %6370 = vmatpush1.bf16.msra.mxu1 %v4678_v41  ;;  %6043 = vmatprep.subr.bf16.mxu0 %v4685_v5  ;;  %v4741_v41 = vunpack.c.h.s8.bf16 %v3957_v16  ;;  %v4743_v5 = vunpack.c.h.s8.bf16 %v3959_v52  ;;  %v3982_v16 = vld [vmem:[%s8000_s27 + $0x930] sm:$0xff] }
 0x7c8   : > { %6371 = vmatprep.subr.bf16.mxu1 %v4687_v55  ;;  %v3967_v55 = vld [vmem:[%s8000_s27 + $0x8b8] sm:$0xff]  ;;  %v4782_v52 = vunpack.c.l.s8.bf16 %v3982_v16 }
 0x7ca   : > { %6044 = vmatpush1.bf16.msra.mxu0 %v4684_v7  ;;  %v4749_v7 = vunpack.c.l.s8.bf16 %v3965_v14 }
 0x7cb   : > { %6372 = vmatpush1.bf16.msra.mxu1 %v4686_v31  ;;  %6045 = vmatprep.subr.bf16.mxu0 %v4693_v25  ;;  %v3964_v31 = vld [vmem:[%s8000_s27 + $0x8a0] sm:$0xff]  ;;  %v4751_v25 = vunpack.c.l.s8.bf16 %v3967_v55 }
 0x7cc   : > { %6373 = vmatprep.subr.bf16.mxu1 %v4695_v30  ;;  %v3966_v30 = vld [vmem:[%s8000_s27 + $0x8b0] sm:$0xff]  ;;  %v4748_v13 = vunpack.c.l.s8.bf16 %v3964_v31 }
 0x7cd   : > { %v4750_v27 = vunpack.c.l.s8.bf16 %v3966_v30  ;;  %v4758_v18 = vunpack.c.h.s8.bf16 %v3966_v30 }
 0x7ce   : > { %6046 = vmatpush1.bf16.msra.mxu0 %v4692_v38  ;;  %v4757_v38 = vunpack.c.h.s8.bf16 %v3965_v14 }
 0x7cf   : > { %6374 = vmatpush1.bf16.msra.mxu1 %v4694_v63  ;;  %6047 = vmatprep.subr.bf16.mxu0 %v4701_v20  ;;  %v4759_v63 = vunpack.c.h.s8.bf16 %v3967_v55  ;;  %v3973_v20 = vld [vmem:[%s8000_s27 + $0x8e8] sm:$0xff] }
 0x7d0   : > { %6375 = vmatprep.subr.bf16.mxu1 %v4703_v34  ;;  %v4756_v34 = vunpack.c.h.s8.bf16 %v3964_v31  ;;  %v3999_v31 = vld [vmem:[%s8000_s27 + $0x9b8] sm:$0xff] }
 0x7d2   : > { %6048 = vmatpush1.bf16.msra.mxu0 %v4700_v56  ;;  %v4765_v56 = vunpack.c.l.s8.bf16 %v3973_v20 }
 0x7d3   : > { %6376 = vmatpush1.bf16.msra.mxu1 %v4702_v36  ;;  %6049 = vmatprep.subr.bf16.mxu0 %v4709_v37  ;;  %v3972_v36 = vld [vmem:[%s8000_s27 + $0x8e0] sm:$0xff]  ;;  %v4767_v37 = vunpack.c.l.s8.bf16 %v3975_v28 }
 0x7d4   : > { %6377 = vmatprep.subr.bf16.mxu1 %v4711_v32  ;;  %v3974_v32 = vld [vmem:[%s8000_s27 + $0x8f0] sm:$0xff]  ;;  %v4764_v40 = vunpack.c.l.s8.bf16 %v3972_v36 }
 0x7d5   : > { %v4766_v22 = vunpack.c.l.s8.bf16 %v3974_v32  ;;  %v4774_v44 = vunpack.c.h.s8.bf16 %v3974_v32 }
 0x7d6   : > { %6050 = vmatpush1.bf16.msra.mxu0 %v4708_v42  ;;  %v4773_v42 = vunpack.c.h.s8.bf16 %v3973_v20 }
 0x7d7   : > { %6378 = vmatpush1.bf16.msra.mxu1 %v4710_v47  ;;  %6060 = vmatprep.subr.bf16.mxu0 %v4717_v43  ;;  %v4775_v47 = vunpack.c.h.s8.bf16 %v3975_v28  ;;  %v3981_v43 = vld [vmem:[%s8000_s27 + $0x928] sm:$0xff] }
 0x7d8   : > { %6388 = vmatprep.subr.bf16.mxu1 %v4719_v21  ;;  %v4772_v21 = vunpack.c.h.s8.bf16 %v3972_v36  ;;  %v4007_v36 = vld [vmem:[%s8000_s27 + $0x9f8] sm:$0xff] }
 0x7d9   : > { %6052 = vmatmul.mubr.bf16.vlgmr.msra.gmra.mrb[20].mxu0 %v8917_v12 }
 0x7da   : > { %6380 = vmatmul.mubr.bf16.vlgmr.msra.gmra.mrb[20].mxu1 %v8917_v12  ;;  %6061 = vmatpush1.bf16.msra.mxu0 %v4716_v29  ;;  %v4734_v12 = vunpack.c.l.s8.bf16 %v3958_v3  ;;  %v4781_v29 = vunpack.c.l.s8.bf16 %v3981_v43 }
 0x7db   : > { %6092 = vmatprep.mubr.bf16.mxu0 %v8921_v23  ;;  %6389 = vmatpush1.bf16.msra.mxu1 %v4718_v46  ;;  %v3980_v46 = vld [vmem:[%s8000_s27 + $0x920] sm:$0xff] }
 0x7dc   : > { %6420 = vmatprep.mubr.bf16.mxu1 %v8921_v23  ;;  %6062 = vmatprep.subr.bf16.mxu0 %v4725_v48  ;;  %v4742_v23 = vunpack.c.h.s8.bf16 %v3958_v3  ;;  %v4783_v48 = vunpack.c.l.s8.bf16 %v3983_v60  ;;  %v4790_v3 = vunpack.c.h.s8.bf16 %v3982_v16 }
 0x7dd   : > { %6390 = vmatprep.subr.bf16.mxu1 %v4727_v49  ;;  %v4780_v49 = vunpack.c.l.s8.bf16 %v3980_v46 }
 0x7de   : > { %6063 = vmatpush1.bf16.msra.mxu0 %v4724_v33  ;;  %v4789_v33 = vunpack.c.h.s8.bf16 %v3981_v43 }
 0x7df   : > { %6391 = vmatpush1.bf16.msra.mxu1 %v4726_v54  ;;  %6064 = vmatprep.subr.bf16.mxu0 %v4733_v45  ;;  %v4791_v54 = vunpack.c.h.s8.bf16 %v3983_v60  ;;  %v3989_v45 = vld [vmem:[%s8000_s27 + $0x968] sm:$0xff] }
 0x7e0   : > { %6392 = vmatprep.subr.bf16.mxu1 %v4735_v1  ;;  %v4788_v1 = vunpack.c.h.s8.bf16 %v3980_v46  ;;  %v4015_v46 = vld [vmem:[%s8000_s27 + $0xa38] sm:$0xff] }
 0x7e2   : > { %6065 = vmatpush1.bf16.msra.mxu0 %v4732_v4  ;;  %v4797_v4 = vunpack.c.l.s8.bf16 %v3989_v45 }
 0x7e3   : > { %6393 = vmatpush1.bf16.msra.mxu1 %v4734_v12  ;;  %6066 = vmatprep.subr.bf16.mxu0 %v4741_v41  ;;  %v3988_v12 = vld [vmem:[%s8000_s27 + $0x960] sm:$0xff]  ;;  %v4799_v41 = vunpack.c.l.s8.bf16 %v3991_v0 }
 0x7e4   : > { %6394 = vmatprep.subr.bf16.mxu1 %v4743_v5  ;;  %v3990_v5 = vld [vmem:[%s8000_s27 + $0x970] sm:$0xff]  ;;  %v4796_v14 = vunpack.c.l.s8.bf16 %v3988_v12 }
 0x7e5   : > { %v4798_v55 = vunpack.c.l.s8.bf16 %v3990_v5  ;;  %v4806_v30 = vunpack.c.h.s8.bf16 %v3990_v5 }
 0x7e6   : > { %6067 = vmatpush1.bf16.msra.mxu0 %v4740_v62  ;;  %v4805_v62 = vunpack.c.h.s8.bf16 %v3989_v45 }
 0x7e7   : > { %6395 = vmatpush1.bf16.msra.mxu1 %v4742_v23  ;;  %6068 = vmatprep.subr.bf16.mxu0 %v4749_v7  ;;  %v4807_v23 = vunpack.c.h.s8.bf16 %v3991_v0  ;;  %v3997_v7 = vld [vmem:[%s8000_s27 + $0x9a8] sm:$0xff] }
 0x7e8   : > { %6396 = vmatprep.subr.bf16.mxu1 %v4751_v25  ;;  %v4804_v25 = vunpack.c.h.s8.bf16 %v3988_v12  ;;  %v4023_v12 = vld [vmem:[%s8000_s27 + $0xa78] sm:$0xff] }
 0x7ea   : > { %6069 = vmatpush1.bf16.msra.mxu0 %v4748_v13  ;;  %v4813_v13 = vunpack.c.l.s8.bf16 %v3997_v7 }
 0x7eb   : > { %6397 = vmatpush1.bf16.msra.mxu1 %v4750_v27  ;;  %6070 = vmatprep.subr.bf16.mxu0 %v4757_v38  ;;  %v3996_v27 = vld [vmem:[%s8000_s27 + $0x9a0] sm:$0xff]  ;;  %v4815_v38 = vunpack.c.l.s8.bf16 %v3999_v31 }
 0x7ec   : > { %6398 = vmatprep.subr.bf16.mxu1 %v4759_v63  ;;  %v3998_v63 = vld [vmem:[%s8000_s27 + $0x9b0] sm:$0xff]  ;;  %v4812_v20 = vunpack.c.l.s8.bf16 %v3996_v27 }
 0x7ed   : > { %v4814_v28 = vunpack.c.l.s8.bf16 %v3998_v63  ;;  %v4822_v32 = vunpack.c.h.s8.bf16 %v3998_v63  ;;  %v4028_v63 = vld [vmem:[%s8000_s27 + $0xaa0] sm:$0xff] }
 0x7ee   : > { %6071 = vmatpush1.bf16.msra.mxu0 %v4756_v34  ;;  %v4821_v34 = vunpack.c.h.s8.bf16 %v3997_v7 }
 0x7ef   : > { %6399 = vmatpush1.bf16.msra.mxu1 %v4758_v18  ;;  %6072 = vmatprep.subr.bf16.mxu0 %v4765_v56  ;;  %v4823_v18 = vunpack.c.h.s8.bf16 %v3999_v31  ;;  %v4005_v56 = vld [vmem:[%s8000_s27 + $0x9e8] sm:$0xff] }
 0x7f0   : > { %6400 = vmatprep.subr.bf16.mxu1 %v4767_v37  ;;  %v4820_v37 = vunpack.c.h.s8.bf16 %v3996_v27 }
 0x7f2   : > { %6073 = vmatpush1.bf16.msra.mxu0 %v4764_v40  ;;  %v4829_v40 = vunpack.c.l.s8.bf16 %v4005_v56 }
 0x7f3   : > { %6401 = vmatpush1.bf16.msra.mxu1 %v4766_v22  ;;  %6074 = vmatprep.subr.bf16.mxu0 %v4773_v42  ;;  %v4004_v22 = vld [vmem:[%s8000_s27 + $0x9e0] sm:$0xff]  ;;  %v4831_v42 = vunpack.c.l.s8.bf16 %v4007_v36 }
 0x7f4   : > { %6402 = vmatprep.subr.bf16.mxu1 %v4775_v47  ;;  %v4006_v47 = vld [vmem:[%s8000_s27 + $0x9f0] sm:$0xff]  ;;  %v4828_v43 = vunpack.c.l.s8.bf16 %v4004_v22 }
 0x7f5   : > { %v4830_v60 = vunpack.c.l.s8.bf16 %v4006_v47  ;;  %v4838_v16 = vunpack.c.h.s8.bf16 %v4006_v47  ;;  %v4036_v47 = vld [vmem:[%s8000_s27 + $0xae0] sm:$0xff] }
 0x7f6   : > { %6075 = vmatpush1.bf16.msra.mxu0 %v4772_v21  ;;  %v4837_v21 = vunpack.c.h.s8.bf16 %v4005_v56 }
 0x7f7   : > { %6403 = vmatpush1.bf16.msra.mxu1 %v4774_v44  ;;  %6076 = vmatprep.subr.bf16.mxu0 %v4781_v29  ;;  %v4839_v44 = vunpack.c.h.s8.bf16 %v4007_v36  ;;  %v4013_v29 = vld [vmem:[%s8000_s27 + $0xa28] sm:$0xff] }
 0x7f8   : > { %6404 = vmatprep.subr.bf16.mxu1 %v4783_v48  ;;  %v4836_v48 = vunpack.c.h.s8.bf16 %v4004_v22 }
 0x7fa   : > { %6077 = vmatpush1.bf16.msra.mxu0 %v4780_v49  ;;  %v4845_v49 = vunpack.c.l.s8.bf16 %v4013_v29 }
 0x7fb   : > { %6405 = vmatpush1.bf16.msra.mxu1 %v4782_v52  ;;  %6078 = vmatprep.subr.bf16.mxu0 %v4789_v33  ;;  %v4012_v52 = vld [vmem:[%s8000_s27 + $0xa20] sm:$0xff]  ;;  %v4847_v33 = vunpack.c.l.s8.bf16 %v4015_v46 }
 0x7fc   : > { %6406 = vmatprep.subr.bf16.mxu1 %v4791_v54  ;;  %v4014_v54 = vld [vmem:[%s8000_s27 + $0xa30] sm:$0xff]  ;;  %v4844_v45 = vunpack.c.l.s8.bf16 %v4012_v52 }
 0x7fd   : > { %v4846_v0 = vunpack.c.l.s8.bf16 %v4014_v54  ;;  %v4854_v5 = vunpack.c.h.s8.bf16 %v4014_v54  ;;  %v4044_v54 = vld [vmem:[%s8000_s27 + $0xb20] sm:$0xff] }
 0x7fe   : > { %6079 = vmatpush1.bf16.msra.mxu0 %v4788_v1  ;;  %v4853_v1 = vunpack.c.h.s8.bf16 %v4013_v29 }
 0x7ff   : > { %6407 = vmatpush1.bf16.msra.mxu1 %v4790_v3  ;;  %6080 = vmatprep.subr.bf16.mxu0 %v4797_v4  ;;  %v4021_v3 = vld [vmem:[%s8000_s27 + $0xa68] sm:$0xff]  ;;  %v4855_v4 = vunpack.c.h.s8.bf16 %v4015_v46 }
 0x800   : > { %6408 = vmatprep.subr.bf16.mxu1 %v4799_v41  ;;  %v4852_v41 = vunpack.c.h.s8.bf16 %v4012_v52  ;;  %v4869_v31 = vunpack.c.h.s8.bf16 %v4021_v3 }
 0x802   : > { %6081 = vmatpush1.bf16.msra.mxu0 %v4796_v14  ;;  %v4861_v14 = vunpack.c.l.s8.bf16 %v4021_v3 }
 0x803   : > { %6409 = vmatpush1.bf16.msra.mxu1 %v4798_v55  ;;  %6082 = vmatprep.subr.bf16.mxu0 %v4805_v62  ;;  %v4020_v55 = vld [vmem:[%s8000_s27 + $0xa60] sm:$0xff]  ;;  %v4863_v62 = vunpack.c.l.s8.bf16 %v4023_v12 }
 0x804   : > { %6410 = vmatprep.subr.bf16.mxu1 %v4807_v23  ;;  %v4022_v23 = vld [vmem:[%s8000_s27 + $0xa70] sm:$0xff]  ;;  %v4860_v7 = vunpack.c.l.s8.bf16 %v4020_v55  ;;  %v4868_v27 = vunpack.c.h.s8.bf16 %v4020_v55 }
 0x806   : > { %6083 = vmatpush1.bf16.msra.mxu0 %v4804_v25  ;;  %v4871_v25 = vunpack.c.h.s8.bf16 %v4023_v12 }
 0x807   : > { %6411 = vmatpush1.bf16.msra.mxu1 %v4806_v30  ;;  %6084 = vmatprep.subr.bf16.mxu0 %v4813_v13  ;;  %v4029_v30 = vld [vmem:[%s8000_s27 + $0xaa8] sm:$0xff]  ;;  %v4031_v13 = vld [vmem:[%s8000_s27 + $0xab8] sm:$0xff] }
 0x808   : > { %6412 = vmatprep.subr.bf16.mxu1 %v4815_v38  ;;  %v4877_v38 = vunpack.c.l.s8.bf16 %v4029_v30  ;;  %v4885_v56 = vunpack.c.h.s8.bf16 %v4029_v30  ;;  %v4887_v36 = vunpack.c.h.s8.bf16 %v4031_v13 }
 0x80a   : > { %6085 = vmatpush1.bf16.msra.mxu0 %v4812_v20  ;;  %v4879_v20 = vunpack.c.l.s8.bf16 %v4031_v13 }
 0x80b   : > { %6413 = vmatpush1.bf16.msra.mxu1 %v4814_v28  ;;  %6086 = vmatprep.subr.bf16.mxu0 %v4821_v34  ;;  %v4030_v28 = vld [vmem:[%s8000_s27 + $0xab0] sm:$0xff]  ;;  %v4876_v34 = vunpack.c.l.s8.bf16 %v4028_v63 }
 0x80c   : > { %6414 = vmatprep.subr.bf16.mxu1 %v4823_v18  ;;  %v4878_v18 = vunpack.c.l.s8.bf16 %v4030_v28  ;;  %v4886_v22 = vunpack.c.h.s8.bf16 %v4030_v28  ;;  %v4060_v28 = vld [vmem:[%s8000_s27 + $0xba0] sm:$0xff] }
 0x80e   : > { %6087 = vmatpush1.bf16.msra.mxu0 %v4820_v37  ;;  %v4037_v37 = vld [vmem:[%s8000_s27 + $0xae8] sm:$0xff] }
 0x80f   : > { %6415 = vmatpush1.bf16.msra.mxu1 %v4822_v32  ;;  %6088 = vmatprep.subr.bf16.mxu0 %v4829_v40  ;;  %v4039_v32 = vld [vmem:[%s8000_s27 + $0xaf8] sm:$0xff]  ;;  %v4884_v40 = vunpack.c.h.s8.bf16 %v4028_v63  ;;  %v4901_v29 = vunpack.c.h.s8.bf16 %v4037_v37 }
 0x810   : > { %6416 = vmatprep.subr.bf16.mxu1 %v4831_v42  ;;  %v4893_v42 = vunpack.c.l.s8.bf16 %v4037_v37  ;;  %v4903_v46 = vunpack.c.h.s8.bf16 %v4039_v32 }
 0x812   : > { %6089 = vmatpush1.bf16.msra.mxu0 %v4828_v43  ;;  %v4895_v43 = vunpack.c.l.s8.bf16 %v4039_v32 }
 0x813   : > { %6417 = vmatpush1.bf16.msra.mxu1 %v4830_v60  ;;  %6090 = vmatprep.subr.bf16.mxu0 %v4837_v21  ;;  %v4038_v60 = vld [vmem:[%s8000_s27 + $0xaf0] sm:$0xff]  ;;  %v4892_v21 = vunpack.c.l.s8.bf16 %v4036_v47 }
 0x814   : > { %6418 = vmatprep.subr.bf16.mxu1 %v4839_v44  ;;  %v4894_v44 = vunpack.c.l.s8.bf16 %v4038_v60  ;;  %v4902_v52 = vunpack.c.h.s8.bf16 %v4038_v60  ;;  %v4068_v60 = vld [vmem:[%s8000_s27 + $0xbe0] sm:$0xff] }
 0x816   : > { %6091 = vmatpush1.bf16.msra.mxu0 %v4836_v48  ;;  %v4045_v48 = vld [vmem:[%s8000_s27 + $0xb28] sm:$0xff] }
 0x817   : > { %6419 = vmatpush1.bf16.msra.mxu1 %v4838_v16  ;;  %6101 = vmatprep.subr.bf16.mxu0 %v4845_v49  ;;  %v4047_v16 = vld [vmem:[%s8000_s27 + $0xb38] sm:$0xff]  ;;  %v4900_v49 = vunpack.c.h.s8.bf16 %v4036_v47 }
 0x818   : > { %6429 = vmatprep.subr.bf16.mxu1 %v4847_v33  ;;  %v4909_v33 = vunpack.c.l.s8.bf16 %v4045_v48  ;;  %v4919_v12 = vunpack.c.h.s8.bf16 %v4047_v16 }
 0x819   : > { %6093 = vmatmul.mubr.bf16.vlgmr.msra.gmra.mrb[20].mxu0 %v8967_v8 }
 0x81a   : > { %6421 = vmatmul.mubr.bf16.vlgmr.msra.gmra.mrb[20].mxu1 %v8967_v8  ;;  %6102 = vmatpush1.bf16.msra.mxu0 %v4844_v45  ;;  %v4862_v8 = vunpack.c.l.s8.bf16 %v4022_v23  ;;  %v4911_v45 = vunpack.c.l.s8.bf16 %v4047_v16 }
 0x81b   : > { %6133 = vmatprep.mubr.bf16.mxu0 %v8971_v51  ;;  %6430 = vmatpush1.bf16.msra.mxu1 %v4846_v0  ;;  %v4046_v0 = vld [vmem:[%s8000_s27 + $0xb30] sm:$0xff] }
 0x81c   : > { %6461 = vmatprep.mubr.bf16.mxu1 %v8971_v51  ;;  %6103 = vmatprep.subr.bf16.mxu0 %v4853_v1  ;;  %v4870_v51 = vunpack.c.h.s8.bf16 %v4022_v23  ;;  %v4908_v1 = vunpack.c.l.s8.bf16 %v4044_v54  ;;  %v4910_v3 = vunpack.c.l.s8.bf16 %v4046_v0  ;;  %v4918_v55 = vunpack.c.h.s8.bf16 %v4046_v0  ;;  %v4052_v23 = vld [vmem:[%s8000_s27 + $0xb60] sm:$0xff] }
 0x81d   : > { %6431 = vmatprep.subr.bf16.mxu1 %v4855_v4  ;;  %v4917_v4 = vunpack.c.h.s8.bf16 %v4045_v48  ;;  %v4076_v0 = vld [vmem:[%s8000_s27 + $0xc20] sm:$0xff] }
 0x81e   : > { %6104 = vmatpush1.bf16.msra.mxu0 %v4852_v41  ;;  %v4053_v41 = vld [vmem:[%s8000_s27 + $0xb68] sm:$0xff] }
 0x81f   : > { %6432 = vmatpush1.bf16.msra.mxu1 %v4854_v5  ;;  %6105 = vmatprep.subr.bf16.mxu0 %v4861_v14  ;;  %v4055_v5 = vld [vmem:[%s8000_s27 + $0xb78] sm:$0xff]  ;;  %v4916_v14 = vunpack.c.h.s8.bf16 %v4044_v54  ;;  %v4933_v30 = vunpack.c.h.s8.bf16 %v4053_v41 }
 0x820   : > { %6433 = vmatprep.subr.bf16.mxu1 %v4863_v62  ;;  %v4925_v62 = vunpack.c.l.s8.bf16 %v4053_v41  ;;  %v4935_v13 = vunpack.c.h.s8.bf16 %v4055_v5 }
 0x822   : > { %6106 = vmatpush1.bf16.msra.mxu0 %v4860_v7  ;;  %v4927_v7 = vunpack.c.l.s8.bf16 %v4055_v5  ;;  %v4085_v5 = vld [vmem:[%s8000_s27 + $0xc68] sm:$0xff] }
 0x823   : > { %6434 = vmatpush1.bf16.msra.mxu1 %v4862_v8  ;;  %6107 = vmatprep.subr.bf16.mxu0 %v4869_v31  ;;  %v4054_v8 = vld [vmem:[%s8000_s27 + $0xb70] sm:$0xff]  ;;  %v4924_v31 = vunpack.c.l.s8.bf16 %v4052_v23 }
 0x824   : > { %6435 = vmatprep.subr.bf16.mxu1 %v4871_v25  ;;  %v4926_v25 = vunpack.c.l.s8.bf16 %v4054_v8  ;;  %v4934_v63 = vunpack.c.h.s8.bf16 %v4054_v8  ;;  %v4084_v8 = vld [vmem:[%s8000_s27 + $0xc60] sm:$0xff] }
 0x826   : > { %6108 = vmatpush1.bf16.msra.mxu0 %v4868_v27  ;;  %v4061_v27 = vld [vmem:[%s8000_s27 + $0xba8] sm:$0xff] }
 0x827   : > { %6436 = vmatpush1.bf16.msra.mxu1 %v4870_v51  ;;  %6109 = vmatprep.subr.bf16.mxu0 %v4877_v38  ;;  %v4063_v51 = vld [vmem:[%s8000_s27 + $0xbb8] sm:$0xff]  ;;  %v4932_v38 = vunpack.c.h.s8.bf16 %v4052_v23  ;;  %v4949_v37 = vunpack.c.h.s8.bf16 %v4061_v27 }
 0x828   : > { %6437 = vmatprep.subr.bf16.mxu1 %v4879_v20  ;;  %v4941_v20 = vunpack.c.l.s8.bf16 %v4061_v27  ;;  %v4951_v32 = vunpack.c.h.s8.bf16 %v4063_v51 }
 0x82a   : > { %6110 = vmatpush1.bf16.msra.mxu0 %v4876_v34  ;;  %v4943_v34 = vunpack.c.l.s8.bf16 %v4063_v51  ;;  %v4093_v51 = vld [vmem:[%s8000_s27 + $0xca8] sm:$0xff] }
 0x82b   : > { %6438 = vmatpush1.bf16.msra.mxu1 %v4878_v18  ;;  %6111 = vmatprep.subr.bf16.mxu0 %v4885_v56  ;;  %v4062_v18 = vld [vmem:[%s8000_s27 + $0xbb0] sm:$0xff]  ;;  %v4940_v56 = vunpack.c.l.s8.bf16 %v4060_v28 }
 0x82c   : > { %6439 = vmatprep.subr.bf16.mxu1 %v4887_v36  ;;  %v4942_v36 = vunpack.c.l.s8.bf16 %v4062_v18  ;;  %v4950_v47 = vunpack.c.h.s8.bf16 %v4062_v18  ;;  %v4094_v18 = vld [vmem:[%s8000_s27 + $0xcb0] sm:$0xff] }
 0x82e   : > { %6112 = vmatpush1.bf16.msra.mxu0 %v4884_v40  ;;  %v4069_v40 = vld [vmem:[%s8000_s27 + $0xbe8] sm:$0xff] }
 0x82f   : > { %6440 = vmatpush1.bf16.msra.mxu1 %v4886_v22  ;;  %6113 = vmatprep.subr.bf16.mxu0 %v4893_v42  ;;  %v4071_v22 = vld [vmem:[%s8000_s27 + $0xbf8] sm:$0xff]  ;;  %v4948_v42 = vunpack.c.h.s8.bf16 %v4060_v28  ;;  %v4965_v48 = vunpack.c.h.s8.bf16 %v4069_v40  ;;  %v4092_v28 = vld [vmem:[%s8000_s27 + $0xca0] sm:$0xff] }
 0x830   : > { %6441 = vmatprep.subr.bf16.mxu1 %v4895_v43  ;;  %v4957_v43 = vunpack.c.l.s8.bf16 %v4069_v40  ;;  %v4967_v16 = vunpack.c.h.s8.bf16 %v4071_v22  ;;  %v4101_v40 = vld [vmem:[%s8000_s27 + $0xce8] sm:$0xff] }
 0x832   : > { %6114 = vmatpush1.bf16.msra.mxu0 %v4892_v21  ;;  %v4959_v21 = vunpack.c.l.s8.bf16 %v4071_v22  ;;  %v4103_v22 = vld [vmem:[%s8000_s27 + $0xcf8] sm:$0xff] }
 0x833   : > { %6442 = vmatpush1.bf16.msra.mxu1 %v4894_v44  ;;  %6115 = vmatprep.subr.bf16.mxu0 %v4901_v29  ;;  %v4070_v44 = vld [vmem:[%s8000_s27 + $0xbf0] sm:$0xff]  ;;  %v4956_v29 = vunpack.c.l.s8.bf16 %v4068_v60 }
 0x834   : > { %6443 = vmatprep.subr.bf16.mxu1 %v4903_v46  ;;  %v4958_v46 = vunpack.c.l.s8.bf16 %v4070_v44  ;;  %v4966_v54 = vunpack.c.h.s8.bf16 %v4070_v44  ;;  %v4102_v44 = vld [vmem:[%s8000_s27 + $0xcf0] sm:$0xff] }
 0x836   : > { %6116 = vmatpush1.bf16.msra.mxu0 %v4900_v49  ;;  %v4077_v49 = vld [vmem:[%s8000_s27 + $0xc28] sm:$0xff] }
 0x837   : > { %6444 = vmatpush1.bf16.msra.mxu1 %v4902_v52  ;;  %6117 = vmatprep.subr.bf16.mxu0 %v4909_v33  ;;  %v4079_v52 = vld [vmem:[%s8000_s27 + $0xc38] sm:$0xff]  ;;  %v4964_v33 = vunpack.c.h.s8.bf16 %v4068_v60  ;;  %v4981_v41 = vunpack.c.h.s8.bf16 %v4077_v49  ;;  %v4100_v60 = vld [vmem:[%s8000_s27 + $0xce0] sm:$0xff] }
 0x838   : > { %6445 = vmatprep.subr.bf16.mxu1 %v4911_v45  ;;  %v4973_v45 = vunpack.c.l.s8.bf16 %v4077_v49  ;;  %v4109_v49 = vld [vmem:[%s8000_s27 + $0xd28] sm:$0xff] }
 0x83a   : > { %6118 = vmatpush1.bf16.msra.mxu0 %v4908_v1  ;;  %v4975_v1 = vunpack.c.l.s8.bf16 %v4079_v52 }
 0x83b   : > { %6446 = vmatpush1.bf16.msra.mxu1 %v4910_v3  ;;  %6119 = vmatprep.subr.bf16.mxu0 %v4917_v4  ;;  %v4078_v3 = vld [vmem:[%s8000_s27 + $0xc30] sm:$0xff]  ;;  %v4972_v4 = vunpack.c.l.s8.bf16 %v4076_v0 }
 0x83c   : > { %6447 = vmatprep.subr.bf16.mxu1 %v4919_v12  ;;  %v4974_v12 = vunpack.c.l.s8.bf16 %v4078_v3  ;;  %v4982_v23 = vunpack.c.h.s8.bf16 %v4078_v3  ;;  %v4110_v3 = vld [vmem:[%s8000_s27 + $0xd30] sm:$0xff] }
 0x83e   : > { %6120 = vmatpush1.bf16.msra.mxu0 %v4916_v14  ;;  %v4983_v14 = vunpack.c.h.s8.bf16 %v4079_v52  ;;  %v4111_v52 = vld [vmem:[%s8000_s27 + $0xd38] sm:$0xff] }
 0x83f   : > { %6448 = vmatpush1.bf16.msra.mxu1 %v4918_v55  ;;  %6121 = vmatprep.subr.bf16.mxu0 %v4925_v62  ;;  %v4087_v55 = vld [vmem:[%s8000_s27 + $0xc78] sm:$0xff]  ;;  %v4980_v62 = vunpack.c.h.s8.bf16 %v4076_v0  ;;  %v4108_v0 = vld [vmem:[%s8000_s27 + $0xd20] sm:$0xff] }
 0x840   : > { %6449 = vmatprep.subr.bf16.mxu1 %v4927_v7  ;;  %v4989_v7 = vunpack.c.l.s8.bf16 %v4085_v5  ;;  %v4999_v27 = vunpack.c.h.s8.bf16 %v4087_v55 }
 0x842   : > { %6122 = vmatpush1.bf16.msra.mxu0 %v4924_v31  ;;  %v4991_v31 = vunpack.c.l.s8.bf16 %v4087_v55  ;;  %v4119_v55 = vld [vmem:[%s8000_s27 + $0xd78] sm:$0xff] }
 0x843   : > { %6450 = vmatpush1.bf16.msra.mxu1 %v4926_v25  ;;  %6123 = vmatprep.subr.bf16.mxu0 %v4933_v30  ;;  %v4086_v25 = vld [vmem:[%s8000_s27 + $0xc70] sm:$0xff]  ;;  %v4988_v30 = vunpack.c.l.s8.bf16 %v4084_v8 }
 0x844   : > { %6451 = vmatprep.subr.bf16.mxu1 %v4935_v13  ;;  %v4997_v13 = vunpack.c.h.s8.bf16 %v4085_v5  ;;  %v5047_v5 = vunpack.c.h.s8.bf16 %v4111_v52 }
 0x846   : > { %6124 = vmatpush1.bf16.msra.mxu0 %v4932_v38  ;;  %v4095_v38 = vld [vmem:[%s8000_s27 + $0xcb8] sm:$0xff] }
 0x847   : > { %6452 = vmatpush1.bf16.msra.mxu1 %v4934_v63  ;;  %6125 = vmatprep.subr.bf16.mxu0 %v4941_v20  ;;  %v4996_v63 = vunpack.c.h.s8.bf16 %v4084_v8  ;;  %v5005_v20 = vunpack.c.l.s8.bf16 %v4093_v51  ;;  %v4116_v8 = vld [vmem:[%s8000_s27 + $0xd60] sm:$0xff] }
 0x848   : > { %6453 = vmatprep.subr.bf16.mxu1 %v4943_v34  ;;  %v5007_v34 = vunpack.c.l.s8.bf16 %v4095_v38 }
 0x84a   : > { %6126 = vmatpush1.bf16.msra.mxu0 %v4940_v56  ;;  %v5004_v56 = vunpack.c.l.s8.bf16 %v4092_v28 }
 0x84b   : > { %6454 = vmatpush1.bf16.msra.mxu1 %v4942_v36  ;;  %6127 = vmatprep.subr.bf16.mxu0 %v4949_v37  ;;  %v5006_v36 = vunpack.c.l.s8.bf16 %v4094_v18  ;;  %v5013_v37 = vunpack.c.h.s8.bf16 %v4093_v51  ;;  %v4125_v51 = vld [vmem:[%s8000_s27 + $0xda8] sm:$0xff] }
 0x84c   : > { %6455 = vmatprep.subr.bf16.mxu1 %v4951_v32  ;;  %v5015_v32 = vunpack.c.h.s8.bf16 %v4095_v38  ;;  %v4127_v38 = vld [vmem:[%s8000_s27 + $0xdb8] sm:$0xff] }
 0x84e   : > { %6128 = vmatpush1.bf16.msra.mxu0 %v4948_v42  ;;  %v5012_v42 = vunpack.c.h.s8.bf16 %v4092_v28  ;;  %v4124_v28 = vld [vmem:[%s8000_s27 + $0xda0] sm:$0xff] }
 0x84f   : > { %6456 = vmatpush1.bf16.msra.mxu1 %v4950_v47  ;;  %6129 = vmatprep.subr.bf16.mxu0 %v4957_v43  ;;  %v5014_v47 = vunpack.c.h.s8.bf16 %v4094_v18  ;;  %v5021_v43 = vunpack.c.l.s8.bf16 %v4101_v40  ;;  %v4126_v18 = vld [vmem:[%s8000_s27 + $0xdb0] sm:$0xff] }
 0x850   : > { %6457 = vmatprep.subr.bf16.mxu1 %v4959_v21  ;;  %v5023_v21 = vunpack.c.l.s8.bf16 %v4103_v22 }
 0x852   : > { %6130 = vmatpush1.bf16.msra.mxu0 %v4956_v29  ;;  %v5020_v29 = vunpack.c.l.s8.bf16 %v4100_v60 }
 0x853   : > { %6458 = vmatpush1.bf16.msra.mxu1 %v4958_v46  ;;  %6131 = vmatprep.subr.bf16.mxu0 %v4965_v48  ;;  %v5022_v46 = vunpack.c.l.s8.bf16 %v4102_v44  ;;  %v5029_v48 = vunpack.c.h.s8.bf16 %v4101_v40  ;;  %v4133_v40 = vld [vmem:[%s8000_s27 + $0xde8] sm:$0xff] }
 0x854   : > { %6459 = vmatprep.subr.bf16.mxu1 %v4967_v16  ;;  %v5031_v16 = vunpack.c.h.s8.bf16 %v4103_v22  ;;  %v4135_v22 = vld [vmem:[%s8000_s27 + $0xdf8] sm:$0xff] }
 0x856   : > { %6132 = vmatpush1.bf16.msra.mxu0 %v4964_v33  ;;  %v5028_v33 = vunpack.c.h.s8.bf16 %v4100_v60  ;;  %v4132_v60 = vld [vmem:[%s8000_s27 + $0xde0] sm:$0xff] }
 0x857   : > { %6460 = vmatpush1.bf16.msra.mxu1 %v4966_v54  ;;  %6142 = vmatprep.subr.bf16.mxu0 %v4973_v45  ;;  %v5030_v54 = vunpack.c.h.s8.bf16 %v4102_v44  ;;  %v5037_v45 = vunpack.c.l.s8.bf16 %v4109_v49  ;;  %v4134_v44 = vld [vmem:[%s8000_s27 + $0xdf0] sm:$0xff] }
 0x858   : > { %6470 = vmatprep.subr.bf16.mxu1 %v4975_v1  ;;  %v5039_v1 = vunpack.c.l.s8.bf16 %v4111_v52  ;;  %v4143_v52 = vld [vmem:[%s8000_s27 + $0xe38] sm:$0xff] }
 0x859   : > { %6134 = vmatmul.mubr.bf16.vlgmr.msra.gmra.mrb[20].mxu0 %v9017_v57 }
 0x85a   : > { %6462 = vmatmul.mubr.bf16.vlgmr.msra.gmra.mrb[20].mxu1 %v9017_v57  ;;  %6143 = vmatpush1.bf16.msra.mxu0 %v4972_v4  ;;  %v4990_v57 = vunpack.c.l.s8.bf16 %v4086_v25  ;;  %v5036_v4 = vunpack.c.l.s8.bf16 %v4108_v0 }
 0x85b   : > { %6174 = vmatprep.mubr.bf16.mxu0 %v9021_v19  ;;  %6471 = vmatpush1.bf16.msra.mxu1 %v4974_v12  ;;  %v5038_v12 = vunpack.c.l.s8.bf16 %v4110_v3 }
 0x85c   : > { %6502 = vmatprep.mubr.bf16.mxu1 %v9021_v19  ;;  %6144 = vmatprep.subr.bf16.mxu0 %v4981_v41  ;;  %v4998_v19 = vunpack.c.h.s8.bf16 %v4086_v25  ;;  %v5045_v41 = vunpack.c.h.s8.bf16 %v4109_v49  ;;  %v4118_v25 = vld [vmem:[%s8000_s27 + $0xd70] sm:$0xff]  ;;  %v4141_v49 = vld [vmem:[%s8000_s27 + $0xe28] sm:$0xff] }
 0x85d   : > { %6472 = vmatprep.subr.bf16.mxu1 %v4983_v14  ;;  %v4117_v14 = vld [vmem:[%s8000_s27 + $0xd68] sm:$0xff] }
 0x85e   : > { %6145 = vmatpush1.bf16.msra.mxu0 %v4980_v62  ;;  %v5044_v62 = vunpack.c.h.s8.bf16 %v4108_v0  ;;  %v4140_v0 = vld [vmem:[%s8000_s27 + $0xe20] sm:$0xff] }
 0x85f   : > { %6473 = vmatpush1.bf16.msra.mxu1 %v4982_v23  ;;  %6146 = vmatprep.subr.bf16.mxu0 %v4989_v7  ;;  %v5046_v23 = vunpack.c.h.s8.bf16 %v4110_v3  ;;  %v5053_v7 = vunpack.c.l.s8.bf16 %v4117_v14  ;;  %v4142_v3 = vld [vmem:[%s8000_s27 + $0xe30] sm:$0xff] }
 0x860   : > { %6474 = vmatprep.subr.bf16.mxu1 %v4991_v31  ;;  %v5055_v31 = vunpack.c.l.s8.bf16 %v4119_v55 }
 0x862   : > { %6147 = vmatpush1.bf16.msra.mxu0 %v4988_v30  ;;  %v5052_v30 = vunpack.c.l.s8.bf16 %v4116_v8 }
 0x863   : > { %6475 = vmatpush1.bf16.msra.mxu1 %v4990_v57  ;;  %6148 = vmatprep.subr.bf16.mxu0 %v4997_v13  ;;  %v5054_v57 = vunpack.c.l.s8.bf16 %v4118_v25  ;;  %v5061_v13 = vunpack.c.h.s8.bf16 %v4117_v14  ;;  %v5111_v14 = vunpack.c.h.s8.bf16 %v4143_v52 }
 0x864   : > { %6476 = vmatprep.subr.bf16.mxu1 %v4999_v27  ;;  %v5063_v27 = vunpack.c.h.s8.bf16 %v4119_v55  ;;  %v4151_v55 = vld [vmem:[%s8000_s27 + $0xe78] sm:$0xff] }
 0x866   : > { %6149 = vmatpush1.bf16.msra.mxu0 %v4996_v63  ;;  %v5060_v63 = vunpack.c.h.s8.bf16 %v4116_v8  ;;  %v4148_v8 = vld [vmem:[%s8000_s27 + $0xe60] sm:$0xff] }
 0x867   : > { %6477 = vmatpush1.bf16.msra.mxu1 %v4998_v19  ;;  %6150 = vmatprep.subr.bf16.mxu0 %v5005_v20  ;;  %v5062_v19 = vunpack.c.h.s8.bf16 %v4118_v25  ;;  %v5069_v20 = vunpack.c.l.s8.bf16 %v4125_v51  ;;  %v4150_v25 = vld [vmem:[%s8000_s27 + $0xe70] sm:$0xff] }
 0x868   : > { %6478 = vmatprep.subr.bf16.mxu1 %v5007_v34  ;;  %v5071_v34 = vunpack.c.l.s8.bf16 %v4127_v38 }
 0x86a   : > { %6151 = vmatpush1.bf16.msra.mxu0 %v5004_v56  ;;  %v5068_v56 = vunpack.c.l.s8.bf16 %v4124_v28 }
 0x86b   : > { %6479 = vmatpush1.bf16.msra.mxu1 %v5006_v36  ;;  %6152 = vmatprep.subr.bf16.mxu0 %v5013_v37  ;;  %v5070_v36 = vunpack.c.l.s8.bf16 %v4126_v18  ;;  %v5077_v37 = vunpack.c.h.s8.bf16 %v4125_v51  ;;  %v4159_v51 = vld [vmem:[%s8000_s27 + $0xeb8] sm:$0xff] }
 0x86c   : > { %6480 = vmatprep.subr.bf16.mxu1 %v5015_v32  ;;  %v5079_v32 = vunpack.c.h.s8.bf16 %v4127_v38  ;;  %v5124_v38 = vunpack.c.h.s8.bf16 %v4148_v8 }
 0x86e   : > { %6153 = vmatpush1.bf16.msra.mxu0 %v5012_v42  ;;  %v5076_v42 = vunpack.c.h.s8.bf16 %v4124_v28  ;;  %v4158_v28 = vld [vmem:[%s8000_s27 + $0xeb0] sm:$0xff] }
 0x86f   : > { %6481 = vmatpush1.bf16.msra.mxu1 %v5014_v47  ;;  %6154 = vmatprep.subr.bf16.mxu0 %v5021_v43  ;;  %v5078_v47 = vunpack.c.h.s8.bf16 %v4126_v18  ;;  %v5085_v43 = vunpack.c.l.s8.bf16 %v4133_v40  ;;  %v5134_v18 = vunpack.c.l.s8.bf16 %v4158_v28 }
 0x870   : > { %6482 = vmatprep.subr.bf16.mxu1 %v5023_v21  ;;  %v5087_v21 = vunpack.c.l.s8.bf16 %v4135_v22 }
 0x872   : > { %6155 = vmatpush1.bf16.msra.mxu0 %v5020_v29  ;;  %v5084_v29 = vunpack.c.l.s8.bf16 %v4132_v60 }
 0x873   : > { %6483 = vmatpush1.bf16.msra.mxu1 %v5022_v46  ;;  %6156 = vmatprep.subr.bf16.mxu0 %v5029_v48  ;;  %v5086_v46 = vunpack.c.l.s8.bf16 %v4134_v44  ;;  %v5093_v48 = vunpack.c.h.s8.bf16 %v4133_v40 }
 0x874   : > { %6484 = vmatprep.subr.bf16.mxu1 %v5031_v16  ;;  %v5095_v16 = vunpack.c.h.s8.bf16 %v4135_v22  ;;  %v5142_v22 = vunpack.c.h.s8.bf16 %v4158_v28 }
 0x876   : > { %6157 = vmatpush1.bf16.msra.mxu0 %v5028_v33  ;;  %v5092_v33 = vunpack.c.h.s8.bf16 %v4132_v60  ;;  %v4166_v60 = vld [vmem:[%s8000_s27 + $0xef0] sm:$0xff] }
 0x877   : > { %6485 = vmatpush1.bf16.msra.mxu1 %v5030_v54  ;;  %6158 = vmatprep.subr.bf16.mxu0 %v5037_v45  ;;  %v5094_v54 = vunpack.c.h.s8.bf16 %v4134_v44  ;;  %v5101_v45 = vunpack.c.l.s8.bf16 %v4141_v49  ;;  %v5150_v44 = vunpack.c.l.s8.bf16 %v4166_v60 }
 0x878   : > { %6486 = vmatprep.subr.bf16.mxu1 %v5039_v1  ;;  %v5103_v1 = vunpack.c.l.s8.bf16 %v4143_v52  ;;  %v5158_v52 = vunpack.c.h.s8.bf16 %v4166_v60 }
 0x87a   : > { %6159 = vmatpush1.bf16.msra.mxu0 %v5036_v4  ;;  %v5100_v4 = vunpack.c.l.s8.bf16 %v4140_v0 }
 0x87b   : > { %6487 = vmatpush1.bf16.msra.mxu1 %v5038_v12  ;;  %6160 = vmatprep.subr.bf16.mxu0 %v5045_v41  ;;  %v5102_v12 = vunpack.c.l.s8.bf16 %v4142_v3  ;;  %v5109_v41 = vunpack.c.h.s8.bf16 %v4141_v49 }
 0x87c   : > { %6488 = vmatprep.subr.bf16.mxu1 %v5047_v5  ;;  %v4149_v5 = vld [vmem:[%s8000_s27 + $0xe68] sm:$0xff] }
 0x87e   : > { %6161 = vmatpush1.bf16.msra.mxu0 %v5044_v62  ;;  %v5108_v62 = vunpack.c.h.s8.bf16 %v4140_v0  ;;  %v4174_v0 = vld [vmem:[%s8000_s27 + $0xf30] sm:$0xff] }
 0x87f   : > { %6489 = vmatpush1.bf16.msra.mxu1 %v5046_v23  ;;  %6162 = vmatprep.subr.bf16.mxu0 %v5053_v7  ;;  %v5110_v23 = vunpack.c.h.s8.bf16 %v4142_v3  ;;  %v5117_v7 = vunpack.c.l.s8.bf16 %v4149_v5  ;;  %v5166_v3 = vunpack.c.l.s8.bf16 %v4174_v0 }
 0x880   : > { %6490 = vmatprep.subr.bf16.mxu1 %v5055_v31  ;;  %v5119_v31 = vunpack.c.l.s8.bf16 %v4151_v55 }
 0x882   : > { %6163 = vmatpush1.bf16.msra.mxu0 %v5052_v30  ;;  %v5116_v30 = vunpack.c.l.s8.bf16 %v4148_v8  ;;  %v4182_v8 = vld [vmem:[%s8000_s27 + $0xf70] sm:$0xff] }
 0x883   : > { %6491 = vmatpush1.bf16.msra.mxu1 %v5054_v57  ;;  %6164 = vmatprep.subr.bf16.mxu0 %v5061_v13  ;;  %v5125_v57 = vunpack.c.h.s8.bf16 %v4149_v5  ;;  %v5127_v13 = vunpack.c.h.s8.bf16 %v4151_v55  ;;  %v4183_v5 = vld [vmem:[%s8000_s27 + $0xf78] sm:$0xff]  ;;  %v5174_v55 = vunpack.c.h.s8.bf16 %v4174_v0 }
 0x884   : > { %6492 = vmatprep.subr.bf16.mxu1 %v5063_v27  ;;  %v4157_v27 = vld [vmem:[%s8000_s27 + $0xea8] sm:$0xff] }
 0x886   : > { %6165 = vmatpush1.bf16.msra.mxu0 %v5060_v63  ;;  %v5133_v63 = vunpack.c.l.s8.bf16 %v4157_v27 }
 0x887   : > { %6493 = vmatpush1.bf16.msra.mxu1 %v5062_v19  ;;  %6166 = vmatprep.subr.bf16.mxu0 %v5069_v20  ;;  %v4156_v19 = vld [vmem:[%s8000_s27 + $0xea0] sm:$0xff]  ;;  %v5135_v20 = vunpack.c.l.s8.bf16 %v4159_v51 }
 0x888   : > { %6494 = vmatprep.subr.bf16.mxu1 %v5071_v34  ;;  %v5132_v34 = vunpack.c.l.s8.bf16 %v4156_v19  ;;  %v5140_v40 = vunpack.c.h.s8.bf16 %v4156_v19  ;;  %v4190_v19 = vld [vmem:[%s8000_s27 + $0xfb0] sm:$0xff] }
 0x889   : > { %v5198_v28 = vunpack.c.l.s8.bf16 %v4190_v19 }
 0x88a   : > { %6167 = vmatpush1.bf16.msra.mxu0 %v5068_v56  ;;  %v5141_v56 = vunpack.c.h.s8.bf16 %v4157_v27 }
 0x88b   : > { %6495 = vmatpush1.bf16.msra.mxu1 %v5070_v36  ;;  %6168 = vmatprep.subr.bf16.mxu0 %v5077_v37  ;;  %v5143_v36 = vunpack.c.h.s8.bf16 %v4159_v51  ;;  %v4165_v37 = vld [vmem:[%s8000_s27 + $0xee8] sm:$0xff]  ;;  %v5190_v51 = vunpack.c.h.s8.bf16 %v4182_v8 }
 0x88c   : > { %6496 = vmatprep.subr.bf16.mxu1 %v5079_v32  ;;  %v4167_v32 = vld [vmem:[%s8000_s27 + $0xef8] sm:$0xff] }
 0x88e   : > { %6169 = vmatpush1.bf16.msra.mxu0 %v5076_v42  ;;  %v5149_v42 = vunpack.c.l.s8.bf16 %v4165_v37 }
 0x88f   : > { %6497 = vmatpush1.bf16.msra.mxu1 %v5078_v47  ;;  %6170 = vmatprep.subr.bf16.mxu0 %v5085_v43  ;;  %v4164_v47 = vld [vmem:[%s8000_s27 + $0xee0] sm:$0xff]  ;;  %v5151_v43 = vunpack.c.l.s8.bf16 %v4167_v32 }
 0x890   : > { %6498 = vmatprep.subr.bf16.mxu1 %v5087_v21  ;;  %v5148_v21 = vunpack.c.l.s8.bf16 %v4164_v47  ;;  %v5156_v49 = vunpack.c.h.s8.bf16 %v4164_v47  ;;  %v4198_v47 = vld [vmem:[%s8000_s27 + $0xff0] sm:$0xff] }
 0x891   : > { %v5214_v60 = vunpack.c.l.s8.bf16 %v4198_v47 }
 0x892   : > { %6171 = vmatpush1.bf16.msra.mxu0 %v5084_v29  ;;  %v5157_v29 = vunpack.c.h.s8.bf16 %v4165_v37 }
 0x893   : > { %6499 = vmatpush1.bf16.msra.mxu1 %v5086_v46  ;;  %6172 = vmatprep.subr.bf16.mxu0 %v5093_v48  ;;  %v5159_v46 = vunpack.c.h.s8.bf16 %v4167_v32  ;;  %v4173_v48 = vld [vmem:[%s8000_s27 + $0xf28] sm:$0xff]  ;;  %v5206_v32 = vunpack.c.h.s8.bf16 %v4190_v19 }
 0x894   : > { %6500 = vmatprep.subr.bf16.mxu1 %v5095_v16  ;;  %v4175_v16 = vld [vmem:[%s8000_s27 + $0xf38] sm:$0xff] }
 0x896   : > { %6173 = vmatpush1.bf16.msra.mxu0 %v5092_v33  ;;  %v5165_v33 = vunpack.c.l.s8.bf16 %v4173_v48 }
 0x897   : > { %6501 = vmatpush1.bf16.msra.mxu1 %v5094_v54  ;;  %6183 = vmatprep.subr.bf16.mxu0 %v5101_v45  ;;  %v4172_v54 = vld [vmem:[%s8000_s27 + $0xf20] sm:$0xff]  ;;  %v5167_v45 = vunpack.c.l.s8.bf16 %v4175_v16 }
 0x898   : > { %6511 = vmatprep.subr.bf16.mxu1 %v5103_v1  ;;  %v5164_v1 = vunpack.c.l.s8.bf16 %v4172_v54 }
 0x899   : > { %6175 = vmatmul.mubr.bf16.vlgmr.msra.gmra.mrb[20].mxu0 %v9073_v59 }
 0x89a   : > { %6503 = vmatmul.mubr.bf16.vlgmr.msra.gmra.mrb[20].mxu1 %v9073_v59  ;;  %6184 = vmatpush1.bf16.msra.mxu0 %v5100_v4  ;;  %v5118_v59 = vunpack.c.l.s8.bf16 %v4150_v25  ;;  %v5173_v4 = vunpack.c.h.s8.bf16 %v4173_v48 }
 0x89b   : > { %6215 = vmatprep.mubr.bf16.mxu0 %v9077_v2  ;;  %6512 = vmatpush1.bf16.msra.mxu1 %v5102_v12  ;;  %v5175_v12 = vunpack.c.h.s8.bf16 %v4175_v16 }
 0x89c   : > { %6543 = vmatprep.mubr.bf16.mxu1 %v9077_v2  ;;  %6185 = vmatprep.subr.bf16.mxu0 %v5109_v41  ;;  %v5126_v2 = vunpack.c.h.s8.bf16 %v4150_v25  ;;  %v4181_v41 = vld [vmem:[%s8000_s27 + $0xf68] sm:$0xff]  ;;  %v5182_v25 = vunpack.c.l.s8.bf16 %v4182_v8 }
 0x89d   : > { %6513 = vmatprep.subr.bf16.mxu1 %v5111_v14  ;;  %v5172_v14 = vunpack.c.h.s8.bf16 %v4172_v54 }
 0x89e   : > { %6186 = vmatpush1.bf16.msra.mxu0 %v5108_v62  ;;  %v5181_v62 = vunpack.c.l.s8.bf16 %v4181_v41 }
 0x89f   : > { %6514 = vmatpush1.bf16.msra.mxu1 %v5110_v23  ;;  %6187 = vmatprep.subr.bf16.mxu0 %v5117_v7  ;;  %v4180_v23 = vld [vmem:[%s8000_s27 + $0xf60] sm:$0xff]  ;;  %v5183_v7 = vunpack.c.l.s8.bf16 %v4183_v5 }
 0x8a0   : > { %6515 = vmatprep.subr.bf16.mxu1 %v5119_v31  ;;  %v5180_v31 = vunpack.c.l.s8.bf16 %v4180_v23  ;;  %v5188_v27 = vunpack.c.h.s8.bf16 %v4180_v23 }
 0x8a2   : > { %6188 = vmatpush1.bf16.msra.mxu0 %v5116_v30  ;;  %v5189_v30 = vunpack.c.h.s8.bf16 %v4181_v41 }
 0x8a3   : > { %6516 = vmatpush1.bf16.msra.mxu1 %v5118_v59  ;;  %6189 = vmatprep.subr.bf16.mxu0 %v5125_v57  ;;  %v5191_v59 = vunpack.c.h.s8.bf16 %v4183_v5  ;;  %v4189_v57 = vld [vmem:[%s8000_s27 + $0xfa8] sm:$0xff] }
 0x8a4   : > { %6517 = vmatprep.subr.bf16.mxu1 %v5127_v13  ;;  %v4191_v13 = vld [vmem:[%s8000_s27 + $0xfb8] sm:$0xff] }
 0x8a6   : > { %6190 = vmatpush1.bf16.msra.mxu0 %v5124_v38  ;;  %v5197_v38 = vunpack.c.l.s8.bf16 %v4189_v57 }
 0x8a7   : > { %6518 = vmatpush1.bf16.msra.mxu1 %v5126_v2  ;;  %6191 = vmatprep.subr.bf16.mxu0 %v5133_v63  ;;  %v4188_v2 = vld [vmem:[%s8000_s27 + $0xfa0] sm:$0xff]  ;;  %v5199_v63 = vunpack.c.l.s8.bf16 %v4191_v13 }
 0x8a8   : > { %6519 = vmatprep.subr.bf16.mxu1 %v5135_v20  ;;  %v5196_v20 = vunpack.c.l.s8.bf16 %v4188_v2  ;;  %v5204_v37 = vunpack.c.h.s8.bf16 %v4188_v2 }
 0x8aa   : > { %6192 = vmatpush1.bf16.msra.mxu0 %v5132_v34  ;;  %v5205_v34 = vunpack.c.h.s8.bf16 %v4189_v57 }
 0x8ab   : > { %6520 = vmatpush1.bf16.msra.mxu1 %v5134_v18  ;;  %6193 = vmatprep.subr.bf16.mxu0 %v5141_v56  ;;  %v5207_v18 = vunpack.c.h.s8.bf16 %v4191_v13  ;;  %v4197_v56 = vld [vmem:[%s8000_s27 + $0xfe8] sm:$0xff] }
 0x8ac   : > { %6521 = vmatprep.subr.bf16.mxu1 %v5143_v36  ;;  %v4199_v36 = vld [vmem:[%s8000_s27 + $0xff8] sm:$0xff] }
 0x8ae   : > { %6194 = vmatpush1.bf16.msra.mxu0 %v5140_v40  ;;  %v5213_v40 = vunpack.c.l.s8.bf16 %v4197_v56 }
 0x8af   : > { %6522 = vmatpush1.bf16.msra.mxu1 %v5142_v22  ;;  %6195 = vmatprep.subr.bf16.mxu0 %v5149_v42  ;;  %v4196_v22 = vld [vmem:[%s8000_s27 + $0xfe0] sm:$0xff]  ;;  %v5215_v42 = vunpack.c.l.s8.bf16 %v4199_v36 }
 0x8b0   : > { %6523 = vmatprep.subr.bf16.mxu1 %v5151_v43  ;;  %v5212_v43 = vunpack.c.l.s8.bf16 %v4196_v22 }
 0x8b2   : > { %6196 = vmatpush1.bf16.msra.mxu0 %v5148_v21  ;;  %v5221_v21 = vunpack.c.h.s8.bf16 %v4197_v56 }
 0x8b3   : > { %6524 = vmatpush1.bf16.msra.mxu1 %v5150_v44  ;;  %6197 = vmatprep.subr.bf16.mxu0 %v5157_v29  ;;  %v5223_v44 = vunpack.c.h.s8.bf16 %v4199_v36  ;;  %v5220_v29 = vunpack.c.h.s8.bf16 %v4196_v22 }
 0x8b4   : > { %6525 = vmatprep.subr.bf16.mxu1 %v5159_v46  ;;  %v5222_v46 = vunpack.c.h.s8.bf16 %v4198_v47 }
 0x8b6   : > { %6198 = vmatpush1.bf16.msra.mxu0 %v5156_v49 }
 0x8b7   : > { %6526 = vmatpush1.bf16.msra.mxu1 %v5158_v52  ;;  %6199 = vmatprep.subr.bf16.mxu0 %v5165_v33 }
 0x8b8   : > { %6527 = vmatprep.subr.bf16.mxu1 %v5167_v45 }
 0x8ba   : > { %6200 = vmatpush1.bf16.msra.mxu0 %v5164_v1  ;;  %v7668_v1 = vmov (!%p7023_p3), 1983009808  }
 0x8bb   : > { %6528 = vmatpush1.bf16.msra.mxu1 %v5166_v3  ;;  %6201 = vmatprep.subr.bf16.mxu0 %v5173_v4  ;;  %v6567_v3 = vunpack.c.l.s4 (!%p7023_p3), %v7668_v1  ;;  %v6564_v4 = vcombine.low (!%p7023_p3), %v9243_v35, %v9248_v61 }
 0x8bc   : > { %6529 = vmatprep.subr.bf16.mxu1 %v5175_v12  ;;  %v6565_v12 = vcombine.low (!%p7023_p3), %v9246_v15, %v9250_v11 }
 0x8be   : > { %6202 = vmatpush1.bf16.msra.mxu0 %v5172_v14 }
 0x8bf   : > { %6530 = vmatpush1.bf16.msra.mxu1 %v5174_v55  ;;  %6203 = vmatprep.subr.bf16.mxu0 %v5181_v62 }
 0x8c0   : > { %6531 = vmatprep.subr.bf16.mxu1 %v5183_v7 }
 0x8c2   : > { %6204 = vmatpush1.bf16.msra.mxu0 %v5180_v31 }
 0x8c3   : > { %6532 = vmatpush1.bf16.msra.mxu1 %v5182_v25  ;;  %6205 = vmatprep.subr.bf16.mxu0 %v5189_v30 }
 0x8c4   : > { %6533 = vmatprep.subr.bf16.mxu1 %v5191_v59 }
 0x8c6   : > { %6206 = vmatpush1.bf16.msra.mxu0 %v5188_v27 }
 0x8c7   : > { %6534 = vmatpush1.bf16.msra.mxu1 %v5190_v51  ;;  %6207 = vmatprep.subr.bf16.mxu0 %v5197_v38 }
 0x8c8   : > { %6535 = vmatprep.subr.bf16.mxu1 %v5199_v63 }
 0x8ca   : > { %6208 = vmatpush1.bf16.msra.mxu0 %v5196_v20 }
 0x8cb   : > { %6536 = vmatpush1.bf16.msra.mxu1 %v5198_v28  ;;  %6209 = vmatprep.subr.bf16.mxu0 %v5205_v34 }
 0x8cc   : > { %6537 = vmatprep.subr.bf16.mxu1 %v5207_v18 }
 0x8ce   : > { %6210 = vmatpush1.bf16.msra.mxu0 %v5204_v37 }
 0x8cf   : > { %6538 = vmatpush1.bf16.msra.mxu1 %v5206_v32  ;;  %6211 = vmatprep.subr.bf16.mxu0 %v5213_v40 }
 0x8d0   : > { %6539 = vmatprep.subr.bf16.mxu1 %v5215_v42 }
 0x8d2   : > { %6212 = vmatpush1.bf16.msra.mxu0 %v5212_v43 }
 0x8d3   : > { %6540 = vmatpush1.bf16.msra.mxu1 %v5214_v60  ;;  %6213 = vmatprep.subr.bf16.mxu0 %v5221_v21 }
 0x8d4   : > { %6541 = vmatprep.subr.bf16.mxu1 %v5223_v44 }
 0x8d6   : > { %6214 = vmatpush1.bf16.msra.mxu0 %v5220_v29 }
 0x8d7   : > { %6542 = vmatpush1.bf16.msra.mxu1 %v5222_v46 }
 0x8d9   : > { %6216 = vmatmul.mubr.bf16.vlgmr.msra.gmra.mrb[20].mxu0 %v9118_v39 }
 0x8da   : > { %6544 = vmatmul.mubr.bf16.vlgmr.msra.gmra.mrb[20].mxu1 %v9118_v39  ;;  %v6568_v39 = vunpack.c.0.s8 (!%p7023_p3), %v6567_v3 }
 0x8dc   : > { %v6571_v14 = vsub.s32 (!%p7023_p3), %v6568_v39, %v8022_v26 }
 0x8de   : > { %v6572_v55 = vrot.slane (!%p7023_p3), %v6564_v4, %v6571_v14  ;;  %v6579_v62 = vrot.slane (!%p7023_p3), %v6565_v12, %v6571_v14 }
 0x8e0   : > { %v6580_v8 = vcombine.low (!%p7023_p3), %v6572_v55, %v6579_v62 }
 0x8e2   : > { %6600 = vst [vmem:[%s9572_s13] sm:$0xff] (!%p7023_p3), %v6580_v8 }
 0x9aa   : > { %6555 = sbr.rel (%p7023_p3) target bundleno = 2486 (0x9b6), region = 76 }
 0x9ac   : > { %v6217_v48 = vpop.f32.mrb[20].mxu0 }
 0x9ad   : > { %v6545_v16 = vpop.f32.mrb[20].mxu1  ;;  %v6219_v49 = vpop.f32.mrb[21].mxu0 }
 0x9ae   : > { %v6547_v52 = vpop.f32.mrb[21].mxu1  ;;  %v6221_v33 = vpop.f32.mrb[22].mxu0  ;;  %v6581_v41 = vcombine.low (!%p7023_p3), %v6217_v48, %v6219_v49 }
 0x9af   : > { %v6549_v54 = vpop.f32.mrb[22].mxu1  ;;  %v6222_v45 = vpop.f32.mrb[23].mxu0  ;;  %v6582_v5 = vcombine.low (!%p7023_p3), %v6545_v16, %v6547_v52 }
 0x9b0   : > { %v6550_v0 = vpop.f32.mrb[23].mxu1  ;;  %v6589_v23 = vrot.slane (!%p7023_p3), %v6581_v41, %v6571_v14 }
 0x9b1   : > { %v6596_v7 = vrot.slane %v6582_v5, %v6571_v14 }
 0x9b3   : > { %v6597_v31 = vcombine.low %v6589_v23, %v6596_v7 }
 0x9b5   : > { %6601 = vst [vmem:[%s9572_s13 + $0x8] sm:$0xff] %v6597_v31 }
 0x9b6 PF: > { %s9573_s22 = sld [smem:[#allocation18_spill]] }
 0x9bc   : > { %p7024_p12 = scmp.le.s32.totalorder %s9573_s22, 0 }
 0x9bd   : > { %v7669_v25 = vmov (!%p7024_p12), 1983009808   ;;  %v6616_v59 = vcombine.low (!%p7024_p12), %v9243_v35, %v9248_v61  ;;  %v6617_v57 = vcombine.low (!%p7024_p12), %v9246_v15, %v9250_v11  ;;  %v6633_v27 = vcombine.low (!%p7024_p12), %v6217_v48, %v6219_v49  ;;  %s9574_s19 = sld [smem:[#allocation24_spill]] (!%p7024_p12) }
 0x9be   : > { %6605 = sbr.rel (%p7024_p12) target bundleno = 2507 (0x9cb), region = 80  ;;  %v6619_v30 = vunpack.c.l.s4 (!%p7024_p12), %v7669_v25  ;;  %v6634_v51 = vcombine.low (!%p7024_p12), %v6545_v16, %v6547_v52 }
 0x9c0   : > { %v6620_v13 = vunpack.c.0.s8 (!%p7024_p12), %v6619_v30 }
 0x9c2   : > { %v6623_v38 = vsub.s32 (!%p7024_p12), %v6620_v13, %v8022_v26 }
 0x9c3   : > { %v6606_v28 = vld [vmem:[%s9574_s19] sm:$0xff] (!%p7024_p12)  ;;  %v6607_v35 = vld [vmem:[%s9574_s19 + $0x8] sm:$0xff] (!%p7024_p12) }
 0x9c4   : > { %v6624_v2 = vrot.slane (!%p7024_p12), %v6616_v59, %v6623_v38  ;;  %v6631_v63 = vrot.slane (!%p7024_p12), %v6617_v57, %v6623_v38  ;;  %v6641_v19 = vrot.slane (!%p7024_p12), %v6633_v27, %v6623_v38  ;;  %v6648_v20 = vrot.slane (!%p7024_p12), %v6634_v51, %v6623_v38 }
 0x9c6   : > { %v6632_v61 = vcombine.low %v6624_v2, %v6631_v63  ;;  %v6649_v34 = vcombine.low %v6641_v19, %v6648_v20 }
 0x9c8   : > { %v6652_v15 = vadd.f32 %v6632_v61, %v6606_v28  ;;  %v6653_v11 = vadd.f32 %v6649_v34, %v6607_v35 }
 0x9ca   : > { %6654 = vst [vmem:[%s9574_s19] sm:$0xff] %v6652_v15  ;;  %6655 = vst [vmem:[%s9574_s19 + $0x8] sm:$0xff] %v6653_v11 }
 0x9cb PF: > { %s9575_s5 = sld [smem:[#allocation18_spill]] }
 0x9d1   : > { %p6656_p7 = scmp.eq.s32.totalorder %s9575_s5, 3  ;;  %p7025_p4 = scmp.ne.s32.totalorder %s9575_s5, 3 }
 0x9d2   : > { %v6662_v18 = vld [vmem:[#allocation9] sm:$0xff] (!%p7025_p4)  ;;  %v7670_v40 = vmov (!%p7025_p4), 1983009808   ;;  %s9576_s2 = sld [smem:[#allocation24_spill]] (!%p7025_p4) }
 0x9d3   : > { %6659 = sbr.rel (%p7025_p4) target bundleno = 2529 (0x9e1), region = 84  ;;  %v6667_v56 = vrot.slane (!%p7025_p4), %v6662_v18, %v8693_v17  ;;  %v6671_v36 = vrot.slane (!%p7025_p4), %v6662_v18, %v8633_v6  ;;  %v6675_v37 = vrot.slane (!%p7025_p4), %v6662_v18, %v8749_v50  ;;  %v6679_v32 = vrot.slane (!%p7025_p4), %v6662_v18, %v8696_v24 }
 0x9d4   : > { %v6699_v22 = vunpack.c.l.s4 (!%p7025_p4), %v7670_v40  ;;  %v6683_v42 = vrot.slane (!%p7025_p4), %v6662_v18, %v8805_v9  ;;  %v6687_v47 = vrot.slane (!%p7025_p4), %v6662_v18, %v8752_v53  ;;  %v6691_v43 = vrot.slane (!%p7025_p4), %v6662_v18, %v8867_v58 }
 0x9d5   : > { %v6695_v60 = vrot.slane (!%p7025_p4), %v6662_v18, %v8808_v10  ;;  %v6696_v21 = vcombine.low (!%p7025_p4), %v6667_v56, %v6671_v36  ;;  %v6697_v44 = vcombine.low (!%p7025_p4), %v6675_v37, %v6679_v32 }
 0x9d6   : > { %v6700_v29 = vunpack.c.0.s8 (!%p7025_p4), %v6699_v22  ;;  %v6713_v46 = vcombine.low (!%p7025_p4), %v6683_v42, %v6687_v47 }
 0x9d7   : > { %v6714_v48 = vcombine.low (!%p7025_p4), %v6691_v43, %v6695_v60 }
 0x9d8   : > { %v6703_v16 = vsub.s32 (!%p7025_p4), %v6700_v29, %v8022_v26  ;;  %v6660_v45 = vld [vmem:[%s9576_s2] sm:$0xff] (!%p7025_p4)  ;;  %v6661_v0 = vld [vmem:[%s9576_s2 + $0x8] sm:$0xff] (!%p7025_p4) }
 0x9da   : > { %v6704_v49 = vrot.slane %v6696_v21, %v6703_v16  ;;  %v6711_v52 = vrot.slane %v6697_v44, %v6703_v16  ;;  %v6721_v33 = vrot.slane %v6713_v46, %v6703_v16  ;;  %v6728_v54 = vrot.slane %v6714_v48, %v6703_v16 }
 0x9dc   : > { %v6712_v1 = vcombine.low %v6704_v49, %v6711_v52  ;;  %v6729_v3 = vcombine.low %v6721_v33, %v6728_v54 }
 0x9de   : > { %v6732_v4 = vmul.f32 %v6712_v1, %v6660_v45  ;;  %v6733_v12 = vmul.f32 %v6729_v3, %v6661_v0 }
 0x9e0   : > { %6734 = vst [vmem:[%s9576_s2] sm:$0xff] %v6732_v4  ;;  %6735 = vst [vmem:[%s9576_s2 + $0x8] sm:$0xff] %v6733_v12 }
 0x9e1 PF: > { %6740 = sbr.rel (!%p6656_p7) target bundleno = 2544 (0x9f0), region = 88  ;;  %v6743_v39 = vld [vmem:[#allocation10] sm:$0xff] (%p6656_p7)  ;;  %v7671_v62 = vmov (%p6656_p7), 1983009808   ;;  %s9578_s17 = sld [smem:[#allocation24_spill]] (%p6656_p7) }
 0x9e2   : > { %v6748_v41 = vrot.slane (%p6656_p7), %v6743_v39, %v8693_v17  ;;  %v6752_v5 = vrot.slane (%p6656_p7), %v6743_v39, %v8633_v6  ;;  %v6756_v14 = vrot.slane (%p6656_p7), %v6743_v39, %v8749_v50  ;;  %v6760_v55 = vrot.slane (%p6656_p7), %v6743_v39, %v8696_v24 }
 0x9e3   : > { %v6780_v23 = vunpack.c.l.s4 (%p6656_p7), %v7671_v62  ;;  %v6764_v7 = vrot.slane (%p6656_p7), %v6743_v39, %v8805_v9  ;;  %v6768_v8 = vrot.slane (%p6656_p7), %v6743_v39, %v8752_v53  ;;  %v6772_v31 = vrot.slane (%p6656_p7), %v6743_v39, %v8867_v58 }
 0x9e4   : > { %v6776_v25 = vrot.slane (%p6656_p7), %v6743_v39, %v8808_v10  ;;  %v6777_v30 = vcombine.low (%p6656_p7), %v6748_v41, %v6752_v5  ;;  %v6778_v59 = vcombine.low (%p6656_p7), %v6756_v14, %v6760_v55 }
 0x9e5   : > { %v6781_v57 = vunpack.c.0.s8 (%p6656_p7), %v6780_v23  ;;  %v6794_v17 = vcombine.low (%p6656_p7), %v6764_v7, %v6768_v8 }
 0x9e6   : > { %v6795_v13 = vcombine.low (%p6656_p7), %v6772_v31, %v6776_v25 }
 0x9e7   : > { %v6784_v6 = vsub.s32 (%p6656_p7), %v6781_v57, %v8022_v26  ;;  %v6741_v9 = vld [vmem:[%s9578_s17] sm:$0xff] (%p6656_p7)  ;;  %v6742_v53 = vld [vmem:[%s9578_s17 + $0x8] sm:$0xff] (%p6656_p7) }
 0x9e9   : > { %v6785_v50 = vrot.slane %v6777_v30, %v6784_v6  ;;  %v6792_v27 = vrot.slane %v6778_v59, %v6784_v6  ;;  %v6802_v24 = vrot.slane %v6794_v17, %v6784_v6  ;;  %v6809_v51 = vrot.slane %v6795_v13, %v6784_v6 }
 0x9eb   : > { %v6793_v10 = vcombine.low %v6785_v50, %v6792_v27  ;;  %v6810_v58 = vcombine.low %v6802_v24, %v6809_v51 }
 0x9ed   : > { %v6813_v38 = vadd.f32 %v6793_v10, %v6741_v9  ;;  %v6814_v2 = vadd.f32 %v6810_v58, %v6742_v53 }
 0x9ef   : > { %6815 = vst [vmem:[%s9578_s17] sm:$0xff] %v6813_v38  ;;  %6816 = vst [vmem:[%s9578_s17 + $0x8] sm:$0xff] %v6814_v2 }
 0x9f0 PF: > { %s27_s29 = sadd.s32 1, %s7655_s29   ;;  %s9579_s20 = sld [smem:[#allocation17_spill]] }
 0x9f1   : > { %p24_p5 = scmp.ge.s32.totalorder %s27_s29, 6   ;;  %s9580_s26 = sld [smem:[#allocation20_spill]] }
 0x9f2   : > { %s9581_s14 = sld [smem:[#allocation19_spill]]  ;;  %s9582_s24 = smov %s7639_s25 }
 0x9f3   : > { %s9584_s27 = smov %s7651_s28  ;;  %26 = sbr.rel (!%p24_p5) target bundleno = 14 (0xe), region = 149 }
 0x9f6   : > { %s9583_s25 = smov %s9579_s20 }
 0x9f8   : > { %s9585_s28 = smov %s9581_s14 }
 0x9fa   :  { %6838 = vsyncpa [#allocation3], 1 }
 0x9fb   :  { %6840 = vsyncpa [#allocation3 + $0x1], 1 }
 0x9fc   :  { %6841 = vsyncpa [#allocation5], 1 }
 0x9fd   :  { %6843 = vsyncpa [#allocation5 + $0x1], 1 }
 0x9fe   :  { %6844 = vsyncpa [#allocation8], 1 }
 0x9ff   :  { %6846 = vsyncpa [#allocation8 + $0x1], 1 }
 0xa00   :  { %6847 = vsyncpa [#allocation11], 1 }

</bundles_post_ra>
